<compile_context>
chip_gen: v7x
topology: tpu7x:2x2x1
jax: 0.10.0
libtpu: 0.0.40
codegen_flags: <defaults>
</compile_context>

<pallas_src>
import functools

import jax
import jax.numpy as jnp
from jax.experimental import pallas as pl
from jax.experimental.pallas import tpu as pltpu


def _grouped_matmul_kernel(p_ref, w_ref, o_ref):
    # p_ref: (GB, K, M)  bf16  im2col patches (K = Cin_g*KH*KW, M = OH*OW)
    # w_ref: (GB, N, K)  f32   weights (N = Cout_g), cast to bf16 on-chip
    # o_ref: (GB, N, M)  f32   transposed output (so the NCHW reshape is free)
    gb = o_ref.shape[0]
    for g in range(gb):  # static unroll: one MXU matmul per group in the block
        w_bf16 = w_ref[g].astype(jnp.bfloat16)             # cheap VPU cast in VMEM
        o_ref[g] = jax.lax.dot_general(
            w_bf16, p_ref[g],
            dimension_numbers=(((1,), (0,)), ((), ())),     # (N,K) x (K,M) -> (N,M)
            preferred_element_type=jnp.float32,             # f32 accumulation
        )


@functools.partial(jax.jit, static_argnames=("groups", "group_block"))
def grouped_conv2d_3x3_s2_p1(x, w, groups=8, group_block=4):
    """x: [1, C, H, W] f32, w: [Cout, Cin//groups, 3, 3] f32 (OIHW); stride 2, pad 1."""
    N, C, H, W = x.shape
    Cout, Cin_g, KH, KW = w.shape
    assert N == 1 and C == groups * Cin_g and Cout % groups == 0
    assert groups % group_block == 0
    Cout_g = Cout // groups
    SH = SW = 2
    OH = (H + 2 - KH) // SH + 1
    OW = (W + 2 - KW) // SW + 1
    M = OH * OW
    K = Cin_g * KH * KW

    # ---- im2col glue (bf16, laid out so no transpose is ever needed) ----
    xp = jnp.pad(x[0].astype(jnp.bfloat16), ((0, 0), (1, 1), (1, 1)))  # [C, H+2, W+2]
    cols = [
        xp[:, kh:kh + SH * OH:SH, kw:kw + SW * OW:SW]                  # [C, OH, OW]
        for kh in range(KH) for kw in range(KW)
    ]
    # [C, KH*KW, OH, OW] -> [G, Cin_g*KH*KW, OH*OW]   (K is cin-major, khw-minor)
    patches = jnp.stack(cols, axis=1).reshape(groups, K, M)

    # Free (no-copy) reshape of the OIHW weights: identical K ordering.
    wmat = w.reshape(groups, Cout_g, K)                                 # [G, N, K] f32

    GB = group_block
    num_blocks = groups // GB

    out = pl.pallas_call(
        _grouped_matmul_kernel,
        out_shape=jax.ShapeDtypeStruct((groups, Cout_g, M), jnp.float32),
        grid_spec=pltpu.PrefetchScalarGridSpec(
            num_scalar_prefetch=0,
            grid=(num_blocks,),
            in_specs=[
                pl.BlockSpec((GB, K, M), lambda g: (g, 0, 0)),
                pl.BlockSpec((GB, Cout_g, K), lambda g: (g, 0, 0)),
            ],
            out_specs=pl.BlockSpec((GB, Cout_g, M), lambda g: (g, 0, 0)),
        ),
        compiler_params=pltpu.CompilerParams(
            dimension_semantics=("parallel",),   # group-blocks shard across v7x TCs
            vmem_limit_bytes=40 * 1024 * 1024,
        ),
    )(patches, wmat)                             # [G, Cout_g, M]

    # channel = g*Cout_g + n, spatial = (oh, ow): pure reshape, no transpose.
    return out.reshape(1, Cout, OH, OW).astype(x.dtype)


if __name__ == "__main__":
    key = jax.random.PRNGKey(0)
    kx, kw = jax.random.split(key)

    C, G = 1344, 8
    H = W = 28
    x = jax.random.normal(kx, (1, C, H, W), dtype=jnp.float32)
    # deterministic synthetic weights (shape from the module's __init__)
    w = 0.02 * jax.random.normal(kw, (C, C // G, 3, 3), dtype=jnp.float32)

    y = grouped_conv2d_3x3_s2_p1(x, w, groups=G)
    y = jax.block_until_ready(y)
    assert y.shape == (1, C, 14, 14), y.shape

    # sanity check against XLA's grouped conv (f32 reference; bf16 kernel inputs)
    ref = jax.lax.conv_general_dilated(
        x, w, window_strides=(2, 2), padding=((1, 1), (1, 1)),
        dimension_numbers=("NCHW", "OIHW", "NCHW"), feature_group_count=G,
    )
    assert bool(jnp.allclose(y, ref, atol=5e-2, rtol=5e-2)), float(
        jnp.max(jnp.abs(y - ref))
    )

    print("KERNEL_OK")
</pallas_src>

<mosaic_0001>
module attributes {stable_mosaic.version = 11 : i64} {
  func.func @_grouped_matmul_kernel(%arg0: i32, %arg1: memref<4x1512x196xbf16, #tpu.memory_space<vmem>>, %arg2: memref<4x168x1512xf32, #tpu.memory_space<vmem>>, %arg3: memref<4x168x196xf32, #tpu.memory_space<vmem>>) attributes {dimension_semantics = [#tpu.dimension_semantics<parallel>], iteration_bounds = array<i64: 2>, scalar_prefetch = 0 : i64, scratch_operands = 0 : i64, tpu.core_type = #tpu.core_type<tc>, window_params = [{transform_indices = @transform_0, window_bounds = array<i64: 4, 1512, 196>}, {transform_indices = @transform_1, window_bounds = array<i64: 4, 168, 1512>}, {transform_indices = @transform_2, window_bounds = array<i64: 4, 168, 196>}]} {
    %c0 = arith.constant 0 : index
    %c0_0 = arith.constant 0 : index
    %c0_1 = arith.constant 0 : index
    %0 = vector.load %arg2[%c0, %c0_0, %c0_1] : memref<4x168x1512xf32, #tpu.memory_space<vmem>>, vector<1x168x1512xf32>
    %1 = vector.shape_cast %0 : vector<1x168x1512xf32> to vector<168x1512xf32>
    %2 = arith.truncf %1 : vector<168x1512xf32> to vector<168x1512xbf16>
    %c0_2 = arith.constant 0 : index
    %c0_3 = arith.constant 0 : index
    %c0_4 = arith.constant 0 : index
    %3 = vector.load %arg1[%c0_2, %c0_3, %c0_4] : memref<4x1512x196xbf16, #tpu.memory_space<vmem>>, vector<1x1512x196xbf16>
    %4 = vector.shape_cast %3 : vector<1x1512x196xbf16> to vector<1512x196xbf16>
    %cst = arith.constant dense<0.000000e+00> : vector<168x196xf32>
    %5 = tpu.matmul %2, %4, %cst {dimension_numbers = #tpu.dot_dimension_numbers<[1], [0], [0], [1], [0, 0, 1, 1], [], []>} : vector<168x1512xbf16>, vector<1512x196xbf16>, vector<168x196xf32> -> vector<168x196xf32>
    %c0_5 = arith.constant 0 : index
    %c0_6 = arith.constant 0 : index
    %c0_7 = arith.constant 0 : index
    %6 = vector.load %arg3[%c0_5, %c0_6, %c0_7] : memref<4x168x196xf32, #tpu.memory_space<vmem>>, vector<1x168x196xf32>
    %7 = vector.shape_cast %6 : vector<1x168x196xf32> to vector<168x196xf32>
    %8 = vector.shape_cast %5 : vector<168x196xf32> to vector<1x168x196xf32>
    tpu.vector_store %arg3[%c0_5, %c0_6, %c0_7], %8 {strides = array<i32>} : memref<4x168x196xf32, #tpu.memory_space<vmem>>, vector<1x168x196xf32>,
    %c1 = arith.constant 1 : index
    %c0_8 = arith.constant 0 : index
    %c0_9 = arith.constant 0 : index
    %9 = vector.load %arg2[%c1, %c0_8, %c0_9] : memref<4x168x1512xf32, #tpu.memory_space<vmem>>, vector<1x168x1512xf32>
    %10 = vector.shape_cast %9 : vector<1x168x1512xf32> to vector<168x1512xf32>
    %11 = arith.truncf %10 : vector<168x1512xf32> to vector<168x1512xbf16>
    %c1_10 = arith.constant 1 : index
    %c0_11 = arith.constant 0 : index
    %c0_12 = arith.constant 0 : index
    %12 = vector.load %arg1[%c1_10, %c0_11, %c0_12] : memref<4x1512x196xbf16, #tpu.memory_space<vmem>>, vector<1x1512x196xbf16>
    %13 = vector.shape_cast %12 : vector<1x1512x196xbf16> to vector<1512x196xbf16>
    %cst_13 = arith.constant dense<0.000000e+00> : vector<168x196xf32>
    %14 = tpu.matmul %11, %13, %cst_13 {dimension_numbers = #tpu.dot_dimension_numbers<[1], [0], [0], [1], [0, 0, 1, 1], [], []>} : vector<168x1512xbf16>, vector<1512x196xbf16>, vector<168x196xf32> -> vector<168x196xf32>
    %c1_14 = arith.constant 1 : index
    %c0_15 = arith.constant 0 : index
    %c0_16 = arith.constant 0 : index
    %15 = vector.load %arg3[%c1_14, %c0_15, %c0_16] : memref<4x168x196xf32, #tpu.memory_space<vmem>>, vector<1x168x196xf32>
    %16 = vector.shape_cast %15 : vector<1x168x196xf32> to vector<168x196xf32>
    %17 = vector.shape_cast %14 : vector<168x196xf32> to vector<1x168x196xf32>
    tpu.vector_store %arg3[%c1_14, %c0_15, %c0_16], %17 {strides = array<i32>} : memref<4x168x196xf32, #tpu.memory_space<vmem>>, vector<1x168x196xf32>,
    %c2 = arith.constant 2 : index
    %c0_17 = arith.constant 0 : index
    %c0_18 = arith.constant 0 : index
    %18 = vector.load %arg2[%c2, %c0_17, %c0_18] : memref<4x168x1512xf32, #tpu.memory_space<vmem>>, vector<1x168x1512xf32>
    %19 = vector.shape_cast %18 : vector<1x168x1512xf32> to vector<168x1512xf32>
    %20 = arith.truncf %19 : vector<168x1512xf32> to vector<168x1512xbf16>
    %c2_19 = arith.constant 2 : index
    %c0_20 = arith.constant 0 : index
    %c0_21 = arith.constant 0 : index
    %21 = vector.load %arg1[%c2_19, %c0_20, %c0_21] : memref<4x1512x196xbf16, #tpu.memory_space<vmem>>, vector<1x1512x196xbf16>
    %22 = vector.shape_cast %21 : vector<1x1512x196xbf16> to vector<1512x196xbf16>
    %cst_22 = arith.constant dense<0.000000e+00> : vector<168x196xf32>
    %23 = tpu.matmul %20, %22, %cst_22 {dimension_numbers = #tpu.dot_dimension_numbers<[1], [0], [0], [1], [0, 0, 1, 1], [], []>} : vector<168x1512xbf16>, vector<1512x196xbf16>, vector<168x196xf32> -> vector<168x196xf32>
    %c2_23 = arith.constant 2 : index
    %c0_24 = arith.constant 0 : index
    %c0_25 = arith.constant 0 : index
    %24 = vector.load %arg3[%c2_23, %c0_24, %c0_25] : memref<4x168x196xf32, #tpu.memory_space<vmem>>, vector<1x168x196xf32>
    %25 = vector.shape_cast %24 : vector<1x168x196xf32> to vector<168x196xf32>
    %26 = vector.shape_cast %23 : vector<168x196xf32> to vector<1x168x196xf32>
    tpu.vector_store %arg3[%c2_23, %c0_24, %c0_25], %26 {strides = array<i32>} : memref<4x168x196xf32, #tpu.memory_space<vmem>>, vector<1x168x196xf32>,
    %c3 = arith.constant 3 : index
    %c0_26 = arith.constant 0 : index
    %c0_27 = arith.constant 0 : index
    %27 = vector.load %arg2[%c3, %c0_26, %c0_27] : memref<4x168x1512xf32, #tpu.memory_space<vmem>>, vector<1x168x1512xf32>
    %28 = vector.shape_cast %27 : vector<1x168x1512xf32> to vector<168x1512xf32>
    %29 = arith.truncf %28 : vector<168x1512xf32> to vector<168x1512xbf16>
    %c3_28 = arith.constant 3 : index
    %c0_29 = arith.constant 0 : index
    %c0_30 = arith.constant 0 : index
    %30 = vector.load %arg1[%c3_28, %c0_29, %c0_30] : memref<4x1512x196xbf16, #tpu.memory_space<vmem>>, vector<1x1512x196xbf16>
    %31 = vector.shape_cast %30 : vector<1x1512x196xbf16> to vector<1512x196xbf16>
    %cst_31 = arith.constant dense<0.000000e+00> : vector<168x196xf32>
    %32 = tpu.matmul %29, %31, %cst_31 {dimension_numbers = #tpu.dot_dimension_numbers<[1], [0], [0], [1], [0, 0, 1, 1], [], []>} : vector<168x1512xbf16>, vector<1512x196xbf16>, vector<168x196xf32> -> vector<168x196xf32>
    %c3_32 = arith.constant 3 : index
    %c0_33 = arith.constant 0 : index
    %c0_34 = arith.constant 0 : index
    %33 = vector.load %arg3[%c3_32, %c0_33, %c0_34] : memref<4x168x196xf32, #tpu.memory_space<vmem>>, vector<1x168x196xf32>
    %34 = vector.shape_cast %33 : vector<1x168x196xf32> to vector<168x196xf32>
    %35 = vector.shape_cast %32 : vector<168x196xf32> to vector<1x168x196xf32>
    tpu.vector_store %arg3[%c3_32, %c0_33, %c0_34], %35 {strides = array<i32>} : memref<4x168x196xf32, #tpu.memory_space<vmem>>, vector<1x168x196xf32>,
    return
  }
  func.func @transform_0(%arg0: i32) -> (i32, i32, i32) {
    %c0_i32 = arith.constant 0 : i32
    %c0_i32_0 = arith.constant 0 : i32
    %c0_i32_1 = arith.constant 0 : i32
    return %arg0, %c0_i32, %c0_i32_0 : i32, i32, i32
  }
  func.func @transform_1(%arg0: i32) -> (i32, i32, i32) {
    %c0_i32 = arith.constant 0 : i32
    %c0_i32_0 = arith.constant 0 : i32
    %c0_i32_1 = arith.constant 0 : i32
    return %arg0, %c0_i32, %c0_i32_0 : i32, i32, i32
  }
  func.func @transform_2(%arg0: i32) -> (i32, i32, i32) {
    %c0_i32 = arith.constant 0 : i32
    %c0_i32_0 = arith.constant 0 : i32
    %c0_i32_1 = arith.constant 0 : i32
    return %arg0, %c0_i32, %c0_i32_0 : i32, i32, i32
  }
}

</mosaic_0001>

<bundles_post_ra>
// kernel: grouped_conv2d_3x3_s2_p1.1
= control target key start
LH: loop header
LB: loop body
LE: loop exit
PB: predicated region body
PF: predicated region fallthrough
CT: control target
= control target key end

     0   :  { %s14360_s9 = smov 0   ;;  %s16459_s0 = inlined_call_operand.vmem [shape: bf16[8,1512,196], index: 0, kind: input, shape index: {}]   ;;  %s16460_s1 = inlined_call_operand.vmem [shape: f32[8,168,1512], index: 1, kind: input, shape index: {}]   ;;  %s16461_s2 = inlined_call_operand.vmem [shape: f32[8,168,196], index: 2, kind: output, shape index: {}]  }
   0x1 LB: > { %s10040_s10 = sadd.s32 4294967295, %s14343_s9   ;;  %p10044_p0 = scmp.ge.s32.totalorder %s14343_s9, 1  ;;  %s14343_s9 = sphi %s14360_s9, %s12_s9  }
   0x2   : > { %p126_p1 = scmp.lt.s32.totalorder %s14343_s9, 3 }
   0x4   : > { %p127_p2 = pnand %p10044_p0, %p126_p1 }
   0x5   : > { %s10045_s11 = sshll.u32 (!%p127_p2), %s10040_s10, 2  ;;  %vm1730_vm0 = vcmask (!%p127_p2), 1043456   ;;  %vm1696_vm1 = vcmask (!%p127_p2), 850944   ;;  %vm2584_vm2 = vcmask (!%p127_p2), 556032  }
   0x6   : > { %130 = sbr.rel (%p127_p2) target bundleno = 1346 (0x542), region = 28  ;;  %p157_p3 = scmp.lt.s32.totalorder (!%p127_p2), %s10045_s11, 7 }
   0xd   : > { %s16463_s11 = smov (!%p157_p3, %s10045_s11), 7 }
   0xe   : > { %s13190_s12 = smul.u32 1512, %s16463_s11 }
   0xf   : > { %s13191_s16 = smul.u32 2016, %s16463_s11 }
  0x10   : > { %s14374_s15 = scalar_lea.vmem %s16459_s0, %s13190_s12  ;;  %s13192_s20 = smul.u32 336, %s16463_s11 }
  0x11   : > { %v13201_v0 = vld [vmem:[%s14374_s15 + $0x4] ss:$8 sps:$4 sm:$0xff]   ;;  %v13205_v2 = vld [vmem:[%s14374_s15] ss:$8 sps:$4 sm:$0xff]   ;;  %v13207_v4 = vld [vmem:[%s14374_s15 + $0x14] ss:$8 sps:$4 sm:$0xff]   ;;  %s14422_s19 = scalar_lea.vmem %s16460_s1, %s13191_s16 }
  0x12   : > { %v13203_v1 = vld [vmem:[%s14374_s15 + $0x5ec] ss:$8 sps:$4 sm:$0xff]   ;;  %1737 = vmatprep.subr.bf16.mxu0 %v13201_v0  ;;  %v13206_v3 = vld [vmem:[%s14374_s15 + $0x5e8] ss:$8 sps:$4 sm:$0xff]   ;;  %v13209_v5 = vld [vmem:[%s14374_s15 + $0x5fc] ss:$8 sps:$4 sm:$0xff]   ;;  %s15592_s23 = scalar_lea.vmem %s16461_s2, %s13192_s20 }
  0x13   : > { %4185 = vmatprep.subr.bf16.mxu1 %v13203_v1  ;;  %1738 = vmatpush1.bf16.msra.mxu0 %v13205_v2  ;;  %v13211_v6 = vld [vmem:[%s14374_s15 + $0x10] ss:$8 sps:$4 sm:$0xff]   ;;  %v13213_v8 = vld [vmem:[%s14374_s15 + $0x24] ss:$8 sps:$4 sm:$0xff]   ;;  %v13217_v10 = vld [vmem:[%s14374_s15 + $0x20] ss:$8 sps:$4 sm:$0xff]  }
  0x14   : > { %4186 = vmatpush1.bf16.msra.mxu1 %v13206_v3  ;;  %1739 = vmatprep.subr.bf16.mxu0 %v13207_v4  ;;  %v13212_v7 = vld [vmem:[%s14374_s15 + $0x5f8] ss:$8 sps:$4 sm:$0xff]   ;;  %v13215_v9 = vld [vmem:[%s14374_s15 + $0x60c] ss:$8 sps:$4 sm:$0xff]   ;;  %v13218_v11 = vld [vmem:[%s14374_s15 + $0x608] ss:$8 sps:$4 sm:$0xff]  }
  0x15   : > { %4187 = vmatprep.subr.bf16.mxu1 %v13209_v5  ;;  %v13219_v12 = vld [vmem:[%s14374_s15 + $0x34] ss:$8 sps:$4 sm:$0xff]   ;;  %v13223_v14 = vld [vmem:[%s14374_s15 + $0x30] ss:$8 sps:$4 sm:$0xff]   ;;  %v13225_v16 = vld [vmem:[%s14374_s15 + $0x44] ss:$8 sps:$4 sm:$0xff]  }
  0x16   : > { %v13221_v13 = vld [vmem:[%s14374_s15 + $0x61c] ss:$8 sps:$4 sm:$0xff]   ;;  %v13224_v15 = vld [vmem:[%s14374_s15 + $0x618] ss:$8 sps:$4 sm:$0xff]   ;;  %v13227_v17 = vld [vmem:[%s14374_s15 + $0x62c] ss:$8 sps:$4 sm:$0xff]  }
  0x17   : > { %1740 = vmatpush1.bf16.msra.mxu0 %v13211_v6  ;;  %v13229_v18 = vld [vmem:[%s14374_s15 + $0x40] ss:$8 sps:$4 sm:$0xff]   ;;  %v13231_v20 = vld [vmem:[%s14374_s15 + $0x54] ss:$8 sps:$4 sm:$0xff]   ;;  %v13235_v22 = vld [vmem:[%s14374_s15 + $0x50] ss:$8 sps:$4 sm:$0xff]  }
  0x18   : > { %4188 = vmatpush1.bf16.msra.mxu1 %v13212_v7  ;;  %1741 = vmatprep.subr.bf16.mxu0 %v13213_v8  ;;  %v13230_v19 = vld [vmem:[%s14374_s15 + $0x628] ss:$8 sps:$4 sm:$0xff]   ;;  %v13233_v21 = vld [vmem:[%s14374_s15 + $0x63c] ss:$8 sps:$4 sm:$0xff]   ;;  %v13236_v23 = vld [vmem:[%s14374_s15 + $0x638] ss:$8 sps:$4 sm:$0xff]  }
  0x19   : > { %4189 = vmatprep.subr.bf16.mxu1 %v13215_v9  ;;  %v13237_v24 = vld [vmem:[%s14374_s15 + $0x64] ss:$8 sps:$4 sm:$0xff]   ;;  %v13241_v26 = vld [vmem:[%s14374_s15 + $0x60] ss:$8 sps:$4 sm:$0xff]   ;;  %v13243_v28 = vld [vmem:[%s14374_s15 + $0x74] ss:$8 sps:$4 sm:$0xff]  }
  0x1a   : > { %v13239_v25 = vld [vmem:[%s14374_s15 + $0x64c] ss:$8 sps:$4 sm:$0xff]   ;;  %v13242_v27 = vld [vmem:[%s14374_s15 + $0x648] ss:$8 sps:$4 sm:$0xff]   ;;  %v13245_v29 = vld [vmem:[%s14374_s15 + $0x65c] ss:$8 sps:$4 sm:$0xff]  }
  0x1b   : > { %1742 = vmatpush1.bf16.msra.mxu0 %v13217_v10  ;;  %v13247_v30 = vld [vmem:[%s14374_s15 + $0x70] ss:$8 sps:$4 sm:$0xff]   ;;  %v13249_v32 = vld [vmem:[%s14374_s15 + $0x84] ss:$8 sps:$4 sm:$0xff]   ;;  %v13253_v34 = vld [vmem:[%s14374_s15 + $0x80] ss:$8 sps:$4 sm:$0xff]  }
  0x1c   : > { %4190 = vmatpush1.bf16.msra.mxu1 %v13218_v11  ;;  %1743 = vmatprep.subr.bf16.mxu0 %v13219_v12  ;;  %v13248_v31 = vld [vmem:[%s14374_s15 + $0x658] ss:$8 sps:$4 sm:$0xff]   ;;  %v13251_v33 = vld [vmem:[%s14374_s15 + $0x66c] ss:$8 sps:$4 sm:$0xff]   ;;  %v13254_v35 = vld [vmem:[%s14374_s15 + $0x668] ss:$8 sps:$4 sm:$0xff]  }
  0x1d   : > { %4191 = vmatprep.subr.bf16.mxu1 %v13221_v13  ;;  %v13255_v36 = vld [vmem:[%s14374_s15 + $0x94] ss:$8 sps:$4 sm:$0xff]   ;;  %v13259_v38 = vld [vmem:[%s14374_s15 + $0x90] ss:$8 sps:$4 sm:$0xff]   ;;  %v13261_v40 = vld [vmem:[%s14374_s15 + $0xa4] ss:$8 sps:$4 sm:$0xff]  }
  0x1e   : > { %v13257_v37 = vld [vmem:[%s14374_s15 + $0x67c] ss:$8 sps:$4 sm:$0xff]   ;;  %v13260_v39 = vld [vmem:[%s14374_s15 + $0x678] ss:$8 sps:$4 sm:$0xff]   ;;  %v13263_v41 = vld [vmem:[%s14374_s15 + $0x68c] ss:$8 sps:$4 sm:$0xff]  }
  0x1f   : > { %1744 = vmatpush1.bf16.msra.mxu0 %v13223_v14  ;;  %v13265_v42 = vld [vmem:[%s14374_s15 + $0xa0] ss:$8 sps:$4 sm:$0xff]   ;;  %v13267_v44 = vld [vmem:[%s14374_s15 + $0xb4] ss:$8 sps:$4 sm:$0xff]   ;;  %v13271_v50 = vld [vmem:[%s14374_s15 + $0xb0] ss:$8 sps:$4 sm:$0xff]  }
  0x20   : > { %4192 = vmatpush1.bf16.msra.mxu1 %v13224_v15  ;;  %1745 = vmatprep.subr.bf16.mxu0 %v13225_v16  ;;  %v13266_v43 = vld [vmem:[%s14374_s15 + $0x688] ss:$8 sps:$4 sm:$0xff]   ;;  %v13269_v45 = vld [vmem:[%s14374_s15 + $0x69c] ss:$8 sps:$4 sm:$0xff]   ;;  %v13272_v51 = vld [vmem:[%s14374_s15 + $0x698] ss:$8 sps:$4 sm:$0xff]  }
  0x21   : > { %4193 = vmatprep.subr.bf16.mxu1 %v13227_v17  ;;  %v179_v46 = vld [vmem:[%s14422_s19 + $0x8] sm:$0xff]  ;;  %v13279_v58 = vld [vmem:[%s14374_s15 + $0xd4] ss:$8 sps:$4 sm:$0xff]   ;;  %v13283_v60 = vld [vmem:[%s14374_s15 + $0xd0] ss:$8 sps:$4 sm:$0xff]  }
  0x22   : > { %v191_v47 = vld [vmem:[%s14422_s19 + $0x68] sm:$0xff]  ;;  %v13281_v59 = vld [vmem:[%s14374_s15 + $0x6bc] ss:$8 sps:$4 sm:$0xff]   ;;  %v13284_v61 = vld [vmem:[%s14374_s15 + $0x6b8] ss:$8 sps:$4 sm:$0xff]  }
  0x23   : > { %1746 = vmatpush1.bf16.msra.mxu0 %v13229_v18  ;;  %v10254_v48 = vld [vmem:[%s14422_s19 + $0x7e8] sm:$0xff]  ;;  %v431_v52 = vpack.c.bf16 %v191_v47, %v179_v46  ;;  %v13291_v2 = vld [vmem:[%s14374_s15 + $0xf4] ss:$8 sps:$4 sm:$0xff]   ;;  %v13295_v4 = vld [vmem:[%s14374_s15 + $0xf0] ss:$8 sps:$4 sm:$0xff]  }
  0x24   : > { %4194 = vmatpush1.bf16.msra.mxu1 %v13230_v19  ;;  %1747 = vmatprep.subr.bf16.mxu0 %v13231_v20  ;;  %v10266_v49 = vld [vmem:[%s14422_s19 + $0x848] sm:$0xff]  ;;  %v13293_v3 = vld [vmem:[%s14374_s15 + $0x6dc] ss:$8 sps:$4 sm:$0xff]   ;;  %v13296_v5 = vld [vmem:[%s14374_s15 + $0x6d8] ss:$8 sps:$4 sm:$0xff]  }
  0x25   : > { %4195 = vmatprep.subr.bf16.mxu1 %v13233_v21  ;;  %v2880_v53 = vpack.c.bf16 %v10266_v49, %v10254_v48  ;;  %v13273_v54 = vld [vmem:[%s14374_s15 + $0xc4] ss:$8 sps:$4 sm:$0xff]   ;;  %1769 = vmatprep.mubr.bf16.mxu0 %v431_v52  ;;  %v13277_v56 = vld [vmem:[%s14374_s15 + $0xc0] ss:$8 sps:$4 sm:$0xff]   ;;  %v13305_v20 = vld [vmem:[%s14374_s15 + $0x114] ss:$8 sps:$4 sm:$0xff]  }
  0x26   : > { %v13275_v55 = vld [vmem:[%s14374_s15 + $0x6ac] ss:$8 sps:$4 sm:$0xff]   ;;  %v13278_v57 = vld [vmem:[%s14374_s15 + $0x6a8] ss:$8 sps:$4 sm:$0xff]   ;;  %v178_v6 = vld [vmem:[%s14422_s19] sm:$0xff] }
  0x27   : > { %1748 = vmatpush1.bf16.msra.mxu0 %v13235_v22  ;;  %4217 = vmatprep.mubr.bf16.mxu1 %v2880_v53  ;;  %v13285_v62 = vld [vmem:[%s14374_s15 + $0xe4] ss:$8 sps:$4 sm:$0xff]   ;;  %v13289_v0 = vld [vmem:[%s14374_s15 + $0xe0] ss:$8 sps:$4 sm:$0xff]   ;;  %v13303_v22 = vld [vmem:[%s14374_s15 + $0x110] ss:$8 sps:$4 sm:$0xff]  }
  0x28   : > { %4196 = vmatpush1.bf16.msra.mxu1 %v13236_v23  ;;  %1749 = vmatprep.subr.bf16.mxu0 %v13237_v24  ;;  %v13287_v63 = vld [vmem:[%s14374_s15 + $0x6cc] ss:$8 sps:$4 sm:$0xff]   ;;  %v13290_v1 = vld [vmem:[%s14374_s15 + $0x6c8] ss:$8 sps:$4 sm:$0xff]   ;;  %v190_v7 = vld [vmem:[%s14422_s19 + $0x60] sm:$0xff] }
  0x29   : > { %4197 = vmatprep.subr.bf16.mxu1 %v13239_v25  ;;  %v13299_v8 = vld [vmem:[%s14374_s15 + $0x104] ss:$8 sps:$4 sm:$0xff]   ;;  %v430_v14 = vpack.c.bf16 %v190_v7, %v178_v6  ;;  %v13297_v18 = vld [vmem:[%s14374_s15 + $0x100] ss:$8 sps:$4 sm:$0xff]   ;;  %v13315_v46 = vld [vmem:[%s14374_s15 + $0x130] ss:$8 sps:$4 sm:$0xff]  }
  0x2a   : > { %v10253_v9 = vld [vmem:[%s14422_s19 + $0x7e0] sm:$0xff]  ;;  %v13302_v11 = vld [vmem:[%s14374_s15 + $0x6ec] ss:$8 sps:$4 sm:$0xff]   ;;  %v13300_v19 = vld [vmem:[%s14374_s15 + $0x6e8] ss:$8 sps:$4 sm:$0xff]  }
  0x2b   : > { %1750 = vmatpush1.bf16.msra.mxu0 %v13241_v26  ;;  %v10265_v10 = vld [vmem:[%s14422_s19 + $0x840] sm:$0xff]  ;;  %v203_v12 = vld [vmem:[%s14422_s19 + $0xc8] sm:$0xff]  ;;  %v13317_v47 = vld [vmem:[%s14374_s15 + $0x134] ss:$8 sps:$4 sm:$0xff]  }
  0x2c   : > { %4198 = vmatpush1.bf16.msra.mxu1 %v13242_v27  ;;  %1751 = vmatprep.subr.bf16.mxu0 %v13243_v28  ;;  %v215_v13 = vld [vmem:[%s14422_s19 + $0x128] sm:$0xff]  ;;  %v2879_v15 = vpack.c.bf16 %v10265_v10, %v10253_v9  ;;  %v13308_v21 = vld [vmem:[%s14374_s15 + $0x6fc] ss:$8 sps:$4 sm:$0xff]   ;;  %v13306_v23 = vld [vmem:[%s14374_s15 + $0x6f8] ss:$8 sps:$4 sm:$0xff]  }
  0x2d   : > { %4199 = vmatprep.subr.bf16.mxu1 %v13245_v29  ;;  %v10278_v16 = vld [vmem:[%s14422_s19 + $0x8a8] sm:$0xff]  ;;  %v443_v24 = vpack.c.bf16 %v215_v13, %v203_v12  ;;  %v202_v26 = vld [vmem:[%s14422_s19 + $0xc0] sm:$0xff] }
  0x2e   : > { %v10290_v17 = vld [vmem:[%s14422_s19 + $0x908] sm:$0xff]  ;;  %v214_v27 = vld [vmem:[%s14422_s19 + $0x120] sm:$0xff] }
  0x2f   : > { %1752 = vmatpush1.bf16.msra.mxu0 %v13247_v30  ;;  %v2892_v25 = vpack.c.bf16 %v10290_v17, %v10278_v16  ;;  %v10277_v28 = vld [vmem:[%s14422_s19 + $0x8a0] sm:$0xff]  ;;  %v251_v52 = vld [vmem:[%s14422_s19 + $0x248] sm:$0xff] }
  0x30   : > { %4200 = vmatpush1.bf16.msra.mxu1 %v13248_v31  ;;  %1753 = vmatprep.subr.bf16.mxu0 %v13249_v32  ;;  %v10289_v29 = vld [vmem:[%s14422_s19 + $0x900] sm:$0xff]  ;;  %v13314_v31 = vld [vmem:[%s14374_s15 + $0x70c] ss:$8 sps:$4 sm:$0xff]   ;;  %v13336_v17 = vld [vmem:[%s14374_s15 + $0x748] ss:$8 sps:$4 sm:$0xff]  }
  0x31   : > { %4201 = vmatprep.subr.bf16.mxu1 %v13251_v33  ;;  %v13311_v30 = vld [vmem:[%s14374_s15 + $0x124] ss:$8 sps:$4 sm:$0xff]   ;;  %v13318_v49 = vld [vmem:[%s14374_s15 + $0x718] ss:$8 sps:$4 sm:$0xff]  }
  0x32   : > { %v227_v32 = vld [vmem:[%s14422_s19 + $0x188] sm:$0xff]  ;;  %v13320_v48 = vld [vmem:[%s14374_s15 + $0x71c] ss:$8 sps:$4 sm:$0xff]  }
  0x33   : > { %1754 = vmatpush1.bf16.msra.mxu0 %v13253_v34  ;;  %v239_v33 = vld [vmem:[%s14422_s19 + $0x1e8] sm:$0xff] }
  0x34   : > { %4202 = vmatpush1.bf16.msra.mxu1 %v13254_v35  ;;  %1755 = vmatprep.subr.bf16.mxu0 %v13255_v36  ;;  %v10302_v34 = vld [vmem:[%s14422_s19 + $0x968] sm:$0xff]  ;;  %v442_v36 = vpack.c.bf16 %v214_v27, %v202_v26  ;;  %v13339_v26 = vld [vmem:[%s14374_s15 + $0x170] ss:$8 sps:$4 sm:$0xff]  }
  0x35   : > { %4203 = vmatprep.subr.bf16.mxu1 %v13257_v37  ;;  %v10314_v35 = vld [vmem:[%s14422_s19 + $0x9c8] sm:$0xff]  ;;  %v2891_v37 = vpack.c.bf16 %v10289_v29, %v10277_v28  ;;  %v13342_v29 = vld [vmem:[%s14374_s15 + $0x758] ss:$8 sps:$4 sm:$0xff]  }
  0x36   : > { %v263_v53 = vld [vmem:[%s14422_s19 + $0x2a8] sm:$0xff] }
  0x37   : > { %1756 = vmatpush1.bf16.msra.mxu0 %v13259_v38  ;;  %v13309_v38 = vld [vmem:[%s14374_s15 + $0x120] ss:$8 sps:$4 sm:$0xff]   ;;  %v13335_v10 = vld [vmem:[%s14374_s15 + $0x164] ss:$8 sps:$4 sm:$0xff]  }
  0x38   : > { %4204 = vmatpush1.bf16.msra.mxu1 %v13260_v39  ;;  %1757 = vmatprep.subr.bf16.mxu0 %v13261_v40  ;;  %v13312_v39 = vld [vmem:[%s14374_s15 + $0x708] ss:$8 sps:$4 sm:$0xff]   ;;  %v455_v40 = vpack.c.bf16 %v239_v33, %v227_v32 }
  0x39   : > { %4205 = vmatprep.subr.bf16.mxu1 %v13263_v41  ;;  %v2904_v41 = vpack.c.bf16 %v10314_v35, %v10302_v34  ;;  %v275_v6 = vld [vmem:[%s14422_s19 + $0x308] sm:$0xff] }
  0x3a   : > { %v287_v7 = vld [vmem:[%s14422_s19 + $0x368] sm:$0xff] }
  0x3b   : > { %1758 = vmatpush1.bf16.msra.mxu0 %v13265_v42  ;;  %v226_v42 = vld [vmem:[%s14422_s19 + $0x180] sm:$0xff]  ;;  %v10362_v9 = vld [vmem:[%s14422_s19 + $0xb48] sm:$0xff] }
  0x3c   : > { %4206 = vmatpush1.bf16.msra.mxu1 %v13266_v43  ;;  %1759 = vmatprep.subr.bf16.mxu0 %v13267_v44  ;;  %v238_v43 = vld [vmem:[%s14422_s19 + $0x1e0] sm:$0xff]  ;;  %v10374_v27 = vld [vmem:[%s14422_s19 + $0xba8] sm:$0xff] }
  0x3d   : > { %4207 = vmatprep.subr.bf16.mxu1 %v13269_v45  ;;  %v10301_v44 = vld [vmem:[%s14422_s19 + $0x960] sm:$0xff]  ;;  %v10386_v28 = vld [vmem:[%s14422_s19 + $0xc08] sm:$0xff] }
  0x3e   : > { %v10313_v45 = vld [vmem:[%s14422_s19 + $0x9c0] sm:$0xff]  ;;  %v2940_v35 = vpack.c.bf16 %v10386_v28, %v10374_v27  ;;  %v13386_v27 = vld [vmem:[%s14374_s15 + $0x7cc] ss:$8 sps:$4 sm:$0xff]  }
  0x3f   : > { %1760 = vmatpush1.bf16.msra.mxu0 %v13271_v50  ;;  %v13323_v50 = vld [vmem:[%s14374_s15 + $0x144] ss:$8 sps:$4 sm:$0xff]   ;;  %v13333_v16 = vld [vmem:[%s14374_s15 + $0x160] ss:$8 sps:$4 sm:$0xff]  }
  0x40   : > { %4208 = vmatpush1.bf16.msra.mxu1 %v13272_v51  ;;  %1761 = vmatprep.subr.bf16.mxu0 %v13273_v54  ;;  %v13326_v51 = vld [vmem:[%s14374_s15 + $0x72c] ss:$8 sps:$4 sm:$0xff]  }
  0x41   : > { %4209 = vmatprep.subr.bf16.mxu1 %v13275_v55  ;;  %v10326_v54 = vld [vmem:[%s14422_s19 + $0xa28] sm:$0xff] }
  0x42   : > { %v10338_v55 = vld [vmem:[%s14422_s19 + $0xa88] sm:$0xff] }
  0x43   : > { %1762 = vmatpush1.bf16.msra.mxu0 %v13277_v56  ;;  %v454_v56 = vpack.c.bf16 %v238_v43, %v226_v42  ;;  %v13353_v42 = vld [vmem:[%s14374_s15 + $0x194] ss:$8 sps:$4 sm:$0xff]  }
  0x44   : > { %4210 = vmatpush1.bf16.msra.mxu1 %v13278_v57  ;;  %1763 = vmatprep.subr.bf16.mxu0 %v13279_v58  ;;  %v2903_v57 = vpack.c.bf16 %v10313_v45, %v10301_v44  ;;  %v13321_v58 = vld [vmem:[%s14374_s15 + $0x140] ss:$8 sps:$4 sm:$0xff]   ;;  %v13356_v43 = vld [vmem:[%s14374_s15 + $0x77c] ss:$8 sps:$4 sm:$0xff]  }
  0x45   : > { %4211 = vmatprep.subr.bf16.mxu1 %v13281_v59  ;;  %v467_v59 = vpack.c.bf16 %v263_v53, %v251_v52  ;;  %v323_v44 = vld [vmem:[%s14422_s19 + $0x488] sm:$0xff] }
  0x46   : > { %v335_v45 = vld [vmem:[%s14422_s19 + $0x4e8] sm:$0xff] }
  0x47   : > { %1764 = vmatpush1.bf16.msra.mxu0 %v13283_v60  ;;  %v13324_v60 = vld [vmem:[%s14374_s15 + $0x728] ss:$8 sps:$4 sm:$0xff]  }
  0x48   : > { %4212 = vmatpush1.bf16.msra.mxu1 %v13284_v61  ;;  %1765 = vmatprep.subr.bf16.mxu0 %v13285_v62  ;;  %v2916_v61 = vpack.c.bf16 %v10338_v55, %v10326_v54  ;;  %v250_v62 = vld [vmem:[%s14422_s19 + $0x240] sm:$0xff]  ;;  %v503_v54 = vpack.c.bf16 %v335_v45, %v323_v44  ;;  %v13387_v44 = vld [vmem:[%s14374_s15 + $0x1f0] ss:$8 sps:$4 sm:$0xff]  }
  0x49   : > { %4213 = vmatprep.subr.bf16.mxu1 %v13287_v63  ;;  %v262_v63 = vld [vmem:[%s14422_s19 + $0x2a0] sm:$0xff] }
  0x4a   : > { %v466_v12 = vpack.c.bf16 %v262_v63, %v250_v62  ;;  %v13365_v62 = vld [vmem:[%s14374_s15 + $0x1b4] ss:$8 sps:$4 sm:$0xff]   ;;  %v13390_v45 = vld [vmem:[%s14374_s15 + $0x7d8] ss:$8 sps:$4 sm:$0xff]  }
  0x4b   : > { %1766 = vmatpush1.bf16.msra.mxu0 %v13289_v0  ;;  %v10325_v0 = vld [vmem:[%s14422_s19 + $0xa20] sm:$0xff] }
  0x4c   : > { %4214 = vmatpush1.bf16.msra.mxu1 %v13290_v1  ;;  %1767 = vmatprep.subr.bf16.mxu0 %v13291_v2  ;;  %v10337_v1 = vld [vmem:[%s14422_s19 + $0xa80] sm:$0xff]  ;;  %v13329_v2 = vld [vmem:[%s14374_s15 + $0x154] ss:$8 sps:$4 sm:$0xff]  }
  0x4d   : > { %4215 = vmatprep.subr.bf16.mxu1 %v13293_v3  ;;  %v13332_v3 = vld [vmem:[%s14374_s15 + $0x73c] ss:$8 sps:$4 sm:$0xff]   ;;  %v2915_v13 = vpack.c.bf16 %v10337_v1, %v10325_v0  ;;  %v347_v0 = vld [vmem:[%s14422_s19 + $0x548] sm:$0xff] }
  0x4e   : > { %v13368_v63 = vld [vmem:[%s14374_s15 + $0x79c] ss:$8 sps:$4 sm:$0xff]   ;;  %v359_v1 = vld [vmem:[%s14422_s19 + $0x5a8] sm:$0xff] }
  0x4f   : > { %1768 = vmatpush1.bf16.msra.mxu0 %v13295_v4  ;;  %v13327_v4 = vld [vmem:[%s14374_s15 + $0x150] ss:$8 sps:$4 sm:$0xff]  }
  0x50   : > { %4216 = vmatpush1.bf16.msra.mxu1 %v13296_v5  ;;  %1878 = vmatprep.subr.bf16.mxu0 %v13299_v8  ;;  %v13330_v5 = vld [vmem:[%s14374_s15 + $0x738] ss:$8 sps:$4 sm:$0xff]   ;;  %v10350_v8 = vld [vmem:[%s14422_s19 + $0xae8] sm:$0xff] }
  0x51   : > { %4326 = vmatprep.subr.bf16.mxu1 %v13302_v11  ;;  %v13338_v11 = vld [vmem:[%s14374_s15 + $0x74c] ss:$8 sps:$4 sm:$0xff]  }
  0x52   : > { %1770 = vmatmul.mubr.bf16.vlgmr.msra.gmra.mrb[0].mxu0 %v430_v14  ;;  %v479_v14 = vpack.c.bf16 %v287_v7, %v275_v6  ;;  %v13371_v6 = vld [vmem:[%s14374_s15 + $0x1c4] ss:$8 sps:$4 sm:$0xff]  }
  0x53   : > { %4218 = vmatmul.mubr.bf16.vlgmr.msra.gmra.mrb[0].mxu1 %v2879_v15  ;;  %1879 = vmatpush1.bf16.msra.mxu0 %v13297_v18  ;;  %v2928_v15 = vpack.c.bf16 %v10362_v9, %v10350_v8  ;;  %v274_v18 = vld [vmem:[%s14422_s19 + $0x300] sm:$0xff]  ;;  %v13374_v7 = vld [vmem:[%s14374_s15 + $0x7ac] ss:$8 sps:$4 sm:$0xff]  }
  0x54   : > { %4327 = vmatpush1.bf16.msra.mxu1 %v13300_v19  ;;  %1880 = vmatprep.subr.bf16.mxu0 %v13305_v20  ;;  %v286_v19 = vld [vmem:[%s14422_s19 + $0x360] sm:$0xff] }
  0x55   : > { %4328 = vmatprep.subr.bf16.mxu1 %v13308_v21  ;;  %1779 = vmatprep.mubr.bf16.mxu0 %v443_v24  ;;  %v10349_v20 = vld [vmem:[%s14422_s19 + $0xae0] sm:$0xff]  ;;  %v299_v24 = vld [vmem:[%s14422_s19 + $0x3c8] sm:$0xff]  ;;  %v478_v32 = vpack.c.bf16 %v286_v19, %v274_v18  ;;  %v13377_v18 = vld [vmem:[%s14374_s15 + $0x1d4] ss:$8 sps:$4 sm:$0xff]  }
  0x56   : > { %4227 = vmatprep.mubr.bf16.mxu1 %v2892_v25  ;;  %v10361_v21 = vld [vmem:[%s14422_s19 + $0xb40] sm:$0xff]  ;;  %v311_v25 = vld [vmem:[%s14422_s19 + $0x428] sm:$0xff] }
  0x57   : > { %1881 = vmatpush1.bf16.msra.mxu0 %v13303_v22  ;;  %v13341_v22 = vld [vmem:[%s14374_s15 + $0x174] ss:$8 sps:$4 sm:$0xff]   ;;  %v2927_v33 = vpack.c.bf16 %v10361_v21, %v10349_v20  ;;  %v491_v34 = vpack.c.bf16 %v311_v25, %v299_v24  ;;  %v371_v20 = vld [vmem:[%s14422_s19 + $0x608] sm:$0xff]  ;;  %v13375_v24 = vld [vmem:[%s14374_s15 + $0x1d0] ss:$8 sps:$4 sm:$0xff]  }
  0x58   : > { %4329 = vmatpush1.bf16.msra.mxu1 %v13306_v23  ;;  %1882 = vmatprep.subr.bf16.mxu0 %v13311_v30  ;;  %v13344_v23 = vld [vmem:[%s14374_s15 + $0x75c] ss:$8 sps:$4 sm:$0xff]   ;;  %v383_v21 = vld [vmem:[%s14422_s19 + $0x668] sm:$0xff]  ;;  %v13378_v25 = vld [vmem:[%s14374_s15 + $0x7b8] ss:$8 sps:$4 sm:$0xff]  }
  0x59   : > { %4330 = vmatprep.subr.bf16.mxu1 %v13314_v31  ;;  %v13347_v30 = vld [vmem:[%s14374_s15 + $0x184] ss:$8 sps:$4 sm:$0xff]  }
  0x5a   : > { %1780 = vmatmul.mubr.bf16.gmra.mrb[4].mxu0 %v442_v36  ;;  %v13350_v31 = vld [vmem:[%s14374_s15 + $0x76c] ss:$8 sps:$4 sm:$0xff]   ;;  %v13345_v36 = vld [vmem:[%s14374_s15 + $0x180] ss:$8 sps:$4 sm:$0xff]   ;;  %v13380_v19 = vld [vmem:[%s14374_s15 + $0x7bc] ss:$8 sps:$4 sm:$0xff]  }
  0x5b   : > { %4228 = vmatmul.mubr.bf16.gmra.mrb[4].mxu1 %v2891_v37  ;;  %1883 = vmatpush1.bf16.msra.mxu0 %v13309_v38  ;;  %v13348_v37 = vld [vmem:[%s14374_s15 + $0x768] ss:$8 sps:$4 sm:$0xff]   ;;  %v298_v38 = vld [vmem:[%s14422_s19 + $0x3c0] sm:$0xff] }
  0x5c   : > { %4331 = vmatpush1.bf16.msra.mxu1 %v13312_v39  ;;  %1789 = vmatprep.mubr.bf16.mxu0 %v455_v40  ;;  %v310_v39 = vld [vmem:[%s14422_s19 + $0x420] sm:$0xff] }
  0x5d   : > { %4237 = vmatprep.mubr.bf16.mxu1 %v2904_v41  ;;  %1884 = vmatprep.subr.bf16.mxu0 %v13317_v47  ;;  %v10373_v40 = vld [vmem:[%s14422_s19 + $0xba0] sm:$0xff]  ;;  %v10410_v47 = vld [vmem:[%s14422_s19 + $0xcc8] sm:$0xff]  ;;  %v490_v52 = vpack.c.bf16 %v310_v39, %v298_v38  ;;  %v13389_v38 = vld [vmem:[%s14374_s15 + $0x1f4] ss:$8 sps:$4 sm:$0xff]  }
  0x5e   : > { %4332 = vmatprep.subr.bf16.mxu1 %v13320_v48  ;;  %v10385_v41 = vld [vmem:[%s14422_s19 + $0xc00] sm:$0xff]  ;;  %v13351_v48 = vld [vmem:[%s14374_s15 + $0x190] ss:$8 sps:$4 sm:$0xff]  }
  0x5f   : > { %1885 = vmatpush1.bf16.msra.mxu0 %v13315_v46  ;;  %v10398_v46 = vld [vmem:[%s14422_s19 + $0xc68] sm:$0xff]  ;;  %v2939_v53 = vpack.c.bf16 %v10385_v41, %v10373_v40  ;;  %v13392_v39 = vld [vmem:[%s14374_s15 + $0x7dc] ss:$8 sps:$4 sm:$0xff]  }
  0x60   : > { %4333 = vmatpush1.bf16.msra.mxu1 %v13318_v49  ;;  %1886 = vmatprep.subr.bf16.mxu0 %v13323_v50  ;;  %v13354_v49 = vld [vmem:[%s14374_s15 + $0x778] ss:$8 sps:$4 sm:$0xff]   ;;  %v13359_v50 = vld [vmem:[%s14374_s15 + $0x1a4] ss:$8 sps:$4 sm:$0xff]   ;;  %v2952_v55 = vpack.c.bf16 %v10410_v47, %v10398_v46 }
  0x61   : > { %4334 = vmatprep.subr.bf16.mxu1 %v13326_v51  ;;  %v13362_v51 = vld [vmem:[%s14374_s15 + $0x78c] ss:$8 sps:$4 sm:$0xff]  }
  0x62   : > { %1790 = vmatmul.mubr.bf16.gmra.mrb[8].mxu0 %v454_v56  ;;  %v13357_v56 = vld [vmem:[%s14374_s15 + $0x1a0] ss:$8 sps:$4 sm:$0xff]   ;;  %v13395_v46 = vld [vmem:[%s14374_s15 + $0x204] ss:$8 sps:$4 sm:$0xff]  }
  0x63   : > { %4238 = vmatmul.mubr.bf16.gmra.mrb[8].mxu1 %v2903_v57  ;;  %1799 = vmatprep.mubr.bf16.mxu0 %v467_v59  ;;  %v13360_v57 = vld [vmem:[%s14374_s15 + $0x788] ss:$8 sps:$4 sm:$0xff]   ;;  %v334_v59 = vld [vmem:[%s14422_s19 + $0x4e0] sm:$0xff]  ;;  %v13398_v47 = vld [vmem:[%s14374_s15 + $0x7ec] ss:$8 sps:$4 sm:$0xff]  }
  0x64   : > { %1887 = vmatpush1.bf16.msra.mxu0 %v13321_v58  ;;  %4247 = vmatprep.mubr.bf16.mxu1 %v2916_v61  ;;  %v322_v58 = vld [vmem:[%s14422_s19 + $0x480] sm:$0xff]  ;;  %v395_v40 = vld [vmem:[%s14422_s19 + $0x6c8] sm:$0xff] }
  0x65   : > { %4335 = vmatpush1.bf16.msra.mxu1 %v13324_v60  ;;  %1888 = vmatprep.subr.bf16.mxu0 %v13329_v2  ;;  %v10397_v60 = vld [vmem:[%s14422_s19 + $0xc60] sm:$0xff]  ;;  %v10422_v2 = vld [vmem:[%s14422_s19 + $0xd28] sm:$0xff]  ;;  %v502_v8 = vpack.c.bf16 %v334_v59, %v322_v58 }
  0x66   : > { %4336 = vmatprep.subr.bf16.mxu1 %v13332_v3  ;;  %v10409_v61 = vld [vmem:[%s14422_s19 + $0xcc0] sm:$0xff]  ;;  %v10434_v3 = vld [vmem:[%s14422_s19 + $0xd88] sm:$0xff] }
  0x67   : > { %v2951_v9 = vpack.c.bf16 %v10409_v61, %v10397_v60  ;;  %v407_v41 = vld [vmem:[%s14422_s19 + $0x728] sm:$0xff] }
  0x68   : > { %1889 = vmatpush1.bf16.msra.mxu0 %v13327_v4  ;;  %v13363_v4 = vld [vmem:[%s14374_s15 + $0x1b0] ss:$8 sps:$4 sm:$0xff]  }
  0x69   : > { %4337 = vmatpush1.bf16.msra.mxu1 %v13330_v5  ;;  %1890 = vmatprep.subr.bf16.mxu0 %v13335_v10  ;;  %v13366_v5 = vld [vmem:[%s14374_s15 + $0x798] ss:$8 sps:$4 sm:$0xff]   ;;  %v515_v10 = vpack.c.bf16 %v359_v1, %v347_v0 }
  0x6a   : > { %4338 = vmatprep.subr.bf16.mxu1 %v13338_v11  ;;  %1800 = vmatmul.mubr.bf16.gmra.mrb[12].mxu0 %v466_v12  ;;  %v2964_v11 = vpack.c.bf16 %v10434_v3, %v10422_v2  ;;  %v13369_v12 = vld [vmem:[%s14374_s15 + $0x1c0] ss:$8 sps:$4 sm:$0xff]   ;;  %v181_v0 = vld [vmem:[%s14422_s19 + $0x18] sm:$0xff] }
  0x6b   : > { %4248 = vmatmul.mubr.bf16.gmra.mrb[12].mxu1 %v2915_v13  ;;  %1809 = vmatprep.mubr.bf16.mxu0 %v479_v14  ;;  %v13372_v13 = vld [vmem:[%s14374_s15 + $0x7a8] ss:$8 sps:$4 sm:$0xff]   ;;  %v346_v14 = vld [vmem:[%s14422_s19 + $0x540] sm:$0xff]  ;;  %v193_v1 = vld [vmem:[%s14422_s19 + $0x78] sm:$0xff] }
  0x6c   : > { %4257 = vmatprep.mubr.bf16.mxu1 %v2928_v15  ;;  %1891 = vmatpush1.bf16.msra.mxu0 %v13333_v16  ;;  %v358_v15 = vld [vmem:[%s14422_s19 + $0x5a0] sm:$0xff]  ;;  %v10256_v2 = vld [vmem:[%s14422_s19 + $0x7f8] sm:$0xff] }
  0x6d   : > { %4339 = vmatpush1.bf16.msra.mxu1 %v13336_v17  ;;  %1892 = vmatprep.subr.bf16.mxu0 %v13341_v22  ;;  %v10421_v16 = vld [vmem:[%s14422_s19 + $0xd20] sm:$0xff]  ;;  %v10446_v22 = vld [vmem:[%s14422_s19 + $0xde8] sm:$0xff]  ;;  %v514_v28 = vpack.c.bf16 %v358_v15, %v346_v14  ;;  %v10268_v3 = vld [vmem:[%s14422_s19 + $0x858] sm:$0xff] }
  0x6e   : > { %4340 = vmatprep.subr.bf16.mxu1 %v13344_v23  ;;  %v10433_v17 = vld [vmem:[%s14422_s19 + $0xd80] sm:$0xff]  ;;  %v10458_v23 = vld [vmem:[%s14422_s19 + $0xe48] sm:$0xff]  ;;  %v217_v14 = vld [vmem:[%s14422_s19 + $0x138] sm:$0xff] }
  0x70   : > { %1893 = vmatpush1.bf16.msra.mxu0 %v13339_v26  ;;  %v13383_v26 = vld [vmem:[%s14374_s15 + $0x1e4] ss:$8 sps:$4 sm:$0xff]  }
  0x71   : > { %4341 = vmatpush1.bf16.msra.mxu1 %v13342_v29  ;;  %1894 = vmatprep.subr.bf16.mxu0 %v13347_v30  ;;  %v2963_v29 = vpack.c.bf16 %v10433_v17, %v10421_v16  ;;  %v527_v30 = vpack.c.bf16 %v383_v21, %v371_v20  ;;  %v10280_v17 = vld [vmem:[%s14422_s19 + $0x8b8] sm:$0xff] }
  0x72   : > { %4342 = vmatprep.subr.bf16.mxu1 %v13350_v31  ;;  %1810 = vmatmul.mubr.bf16.gmra.mrb[16].mxu0 %v478_v32  ;;  %v2976_v31 = vpack.c.bf16 %v10458_v23, %v10446_v22  ;;  %v13381_v32 = vld [vmem:[%s14374_s15 + $0x1e0] ss:$8 sps:$4 sm:$0xff]   ;;  %v13401_v20 = vld [vmem:[%s14374_s15 + $0x214] ss:$8 sps:$4 sm:$0xff]   ;;  %v13399_v22 = vld [vmem:[%s14374_s15 + $0x210] ss:$8 sps:$4 sm:$0xff]  }
  0x73   : > { %4258 = vmatmul.mubr.bf16.gmra.mrb[16].mxu1 %v2927_v33  ;;  %1819 = vmatprep.mubr.bf16.mxu0 %v491_v34  ;;  %v13384_v33 = vld [vmem:[%s14374_s15 + $0x7c8] ss:$8 sps:$4 sm:$0xff]   ;;  %v370_v34 = vld [vmem:[%s14422_s19 + $0x600] sm:$0xff] }
  0x74   : > { %4267 = vmatprep.mubr.bf16.mxu1 %v2940_v35  ;;  %1895 = vmatpush1.bf16.msra.mxu0 %v13345_v36  ;;  %v382_v35 = vld [vmem:[%s14422_s19 + $0x660] sm:$0xff] }
  0x75   : > { %4343 = vmatpush1.bf16.msra.mxu1 %v13348_v37  ;;  %1896 = vmatprep.subr.bf16.mxu0 %v13353_v42  ;;  %v10445_v36 = vld [vmem:[%s14422_s19 + $0xde0] sm:$0xff]  ;;  %v10470_v42 = vld [vmem:[%s14422_s19 + $0xea8] sm:$0xff] }
  0x76   : > { %4344 = vmatprep.subr.bf16.mxu1 %v13356_v43  ;;  %v10457_v37 = vld [vmem:[%s14422_s19 + $0xe40] sm:$0xff]  ;;  %v10482_v43 = vld [vmem:[%s14422_s19 + $0xf08] sm:$0xff] }
  0x77   : > { %v13404_v21 = vld [vmem:[%s14374_s15 + $0x7fc] ss:$8 sps:$4 sm:$0xff]   ;;  %v13402_v23 = vld [vmem:[%s14374_s15 + $0x7f8] ss:$8 sps:$4 sm:$0xff]  }
  0x78   : > { %1897 = vmatpush1.bf16.msra.mxu0 %v13351_v48  ;;  %v526_v48 = vpack.c.bf16 %v382_v35, %v370_v34  ;;  %v10304_v34 = vld [vmem:[%s14422_s19 + $0x978] sm:$0xff] }
  0x79   : > { %4345 = vmatpush1.bf16.msra.mxu1 %v13354_v49  ;;  %1898 = vmatprep.subr.bf16.mxu0 %v13359_v50  ;;  %v2975_v49 = vpack.c.bf16 %v10457_v37, %v10445_v36  ;;  %v539_v50 = vpack.c.bf16 %v407_v41, %v395_v40  ;;  %v10316_v35 = vld [vmem:[%s14422_s19 + $0x9d8] sm:$0xff] }
  0x7a   : > { %4346 = vmatprep.subr.bf16.mxu1 %v13362_v51  ;;  %1820 = vmatmul.mubr.bf16.gmra.mrb[20].mxu0 %v490_v52  ;;  %v2988_v51 = vpack.c.bf16 %v10482_v43, %v10470_v42  ;;  %v394_v52 = vld [vmem:[%s14422_s19 + $0x6c0] sm:$0xff]  ;;  %v2906_v41 = vpack.c.bf16 %v10316_v35, %v10304_v34  ;;  %v228_v42 = vld [vmem:[%s14422_s19 + $0x190] sm:$0xff] }
  0x7b   : > { %4268 = vmatmul.mubr.bf16.gmra.mrb[20].mxu1 %v2939_v53  ;;  %1829 = vmatprep.mubr.bf16.mxu0 %v503_v54  ;;  %v406_v53 = vld [vmem:[%s14422_s19 + $0x720] sm:$0xff]  ;;  %v240_v43 = vld [vmem:[%s14422_s19 + $0x1f0] sm:$0xff] }
  0x7c   : > { %4277 = vmatprep.mubr.bf16.mxu1 %v2952_v55  ;;  %1899 = vmatpush1.bf16.msra.mxu0 %v13357_v56  ;;  %v10469_v54 = vld [vmem:[%s14422_s19 + $0xea0] sm:$0xff]  ;;  %v419_v56 = vld [vmem:[%s14422_s19 + $0x788] sm:$0xff]  ;;  %v538_v58 = vpack.c.bf16 %v406_v53, %v394_v52  ;;  %v253_v52 = vld [vmem:[%s14422_s19 + $0x258] sm:$0xff] }
  0x7d   : > { %4347 = vmatpush1.bf16.msra.mxu1 %v13360_v57  ;;  %1900 = vmatprep.subr.bf16.mxu0 %v13365_v62  ;;  %v10481_v55 = vld [vmem:[%s14422_s19 + $0xf00] sm:$0xff]  ;;  %v10494_v57 = vld [vmem:[%s14422_s19 + $0xf68] sm:$0xff]  ;;  %v551_v60 = vpack.c.bf16 %v419_v56, %v419_v56  ;;  %v265_v53 = vld [vmem:[%s14422_s19 + $0x2b8] sm:$0xff]  ;;  %v456_v56 = vpack.c.bf16 %v240_v43, %v228_v42 }
  0x7e   : > { %4348 = vmatprep.subr.bf16.mxu1 %v13368_v63  ;;  %v2987_v59 = vpack.c.bf16 %v10481_v55, %v10469_v54  ;;  %v3000_v61 = vpack.c.bf16 %v10494_v57, %v10494_v57  ;;  %v418_v62 = vld [vmem:[%s14422_s19 + $0x780] sm:$0xff]  ;;  %v10328_v54 = vld [vmem:[%s14422_s19 + $0xa38] sm:$0xff]  ;;  %v10387_v42 = vld [vmem:[%s14422_s19 + $0xc10] sm:$0xff] }
  0x7f   : > { %v10493_v63 = vld [vmem:[%s14422_s19 + $0xf60] sm:$0xff]  ;;  %v10340_v55 = vld [vmem:[%s14422_s19 + $0xa98] sm:$0xff] }
  0x80   : > { %1901 = vmatpush1.bf16.msra.mxu0 %v13363_v4  ;;  %v550_v4 = vpack.c.bf16 %v418_v62, %v418_v62  ;;  %v252_v62 = vld [vmem:[%s14422_s19 + $0x250] sm:$0xff]  ;;  %v13452_v43 = vld [vmem:[%s14374_s15 + $0x87c] ss:$8 sps:$4 sm:$0xff]  }
  0x81   : > { %4349 = vmatpush1.bf16.msra.mxu1 %v13366_v5  ;;  %1902 = vmatprep.subr.bf16.mxu0 %v13371_v6  ;;  %v2999_v5 = vpack.c.bf16 %v10493_v63, %v10493_v63  ;;  %v433_v6 = vpack.c.bf16 %v193_v1, %v181_v0  ;;  %v264_v63 = vld [vmem:[%s14422_s19 + $0x2b0] sm:$0xff] }
  0x82   : > { %4350 = vmatprep.subr.bf16.mxu1 %v13374_v7  ;;  %1830 = vmatmul.mubr.bf16.gmra.mrb[24].mxu0 %v502_v8  ;;  %v2882_v7 = vpack.c.bf16 %v10268_v3, %v10256_v2  ;;  %v180_v8 = vld [vmem:[%s14422_s19 + $0x10] sm:$0xff]  ;;  %v13428_v2 = vld [vmem:[%s14374_s15 + $0x83c] ss:$8 sps:$4 sm:$0xff]  }
  0x83   : > { %4278 = vmatmul.mubr.bf16.gmra.mrb[24].mxu1 %v2951_v9  ;;  %1839 = vmatprep.mubr.bf16.mxu0 %v515_v10  ;;  %v192_v9 = vld [vmem:[%s14422_s19 + $0x70] sm:$0xff] }
  0x84   : > { %4287 = vmatprep.mubr.bf16.mxu1 %v2964_v11  ;;  %1903 = vmatpush1.bf16.msra.mxu0 %v13369_v12  ;;  %v10255_v10 = vld [vmem:[%s14422_s19 + $0x7f0] sm:$0xff]  ;;  %v13393_v12 = vld [vmem:[%s14374_s15 + $0x200] ss:$8 sps:$4 sm:$0xff]   ;;  %v432_v15 = vpack.c.bf16 %v192_v9, %v180_v8  ;;  %v10352_v8 = vld [vmem:[%s14422_s19 + $0xaf8] sm:$0xff] }
  0x85   : > { %4351 = vmatpush1.bf16.msra.mxu1 %v13372_v13  ;;  %1904 = vmatprep.subr.bf16.mxu0 %v13377_v18  ;;  %v10267_v11 = vld [vmem:[%s14422_s19 + $0x850] sm:$0xff]  ;;  %v205_v13 = vld [vmem:[%s14422_s19 + $0xd8] sm:$0xff] }
  0x86   : > { %4352 = vmatprep.subr.bf16.mxu1 %v13380_v19  ;;  %v2881_v16 = vpack.c.bf16 %v10267_v11, %v10255_v10  ;;  %v10292_v18 = vld [vmem:[%s14422_s19 + $0x918] sm:$0xff]  ;;  %v13396_v19 = vld [vmem:[%s14374_s15 + $0x7e8] ss:$8 sps:$4 sm:$0xff]   ;;  %v13431_v10 = vld [vmem:[%s14374_s15 + $0x264] ss:$8 sps:$4 sm:$0xff]  }
  0x87   : > { %v10327_v0 = vld [vmem:[%s14422_s19 + $0xa30] sm:$0xff]  ;;  %v10364_v9 = vld [vmem:[%s14422_s19 + $0xb58] sm:$0xff] }
  0x88   : > { %1905 = vmatpush1.bf16.msra.mxu0 %v13375_v24  ;;  %v445_v24 = vpack.c.bf16 %v217_v14, %v205_v13  ;;  %v13425_v1 = vld [vmem:[%s14374_s15 + $0x254] ss:$8 sps:$4 sm:$0xff]  }
  0x89   : > { %4353 = vmatpush1.bf16.msra.mxu1 %v13378_v25  ;;  %1906 = vmatprep.subr.bf16.mxu0 %v13383_v26  ;;  %v2894_v25 = vpack.c.bf16 %v10292_v18, %v10280_v17  ;;  %v204_v26 = vld [vmem:[%s14422_s19 + $0xd0] sm:$0xff] }
  0x8a   : > { %4354 = vmatprep.subr.bf16.mxu1 %v13386_v27  ;;  %1840 = vmatmul.mubr.bf16.gmra.mrb[28].mxu0 %v514_v28  ;;  %v216_v27 = vld [vmem:[%s14422_s19 + $0x130] sm:$0xff] }
  0x8b   : > { %4288 = vmatmul.mubr.bf16.gmra.mrb[28].mxu1 %v2963_v29  ;;  %1849 = vmatprep.mubr.bf16.mxu0 %v527_v30  ;;  %v10279_v28 = vld [vmem:[%s14422_s19 + $0x8b0] sm:$0xff]  ;;  %v13407_v30 = vld [vmem:[%s14374_s15 + $0x224] ss:$8 sps:$4 sm:$0xff]   ;;  %v444_v36 = vpack.c.bf16 %v216_v27, %v204_v26  ;;  %v10376_v27 = vld [vmem:[%s14422_s19 + $0xbb8] sm:$0xff] }
  0x8c   : > { %4297 = vmatprep.mubr.bf16.mxu1 %v2976_v31  ;;  %1907 = vmatpush1.bf16.msra.mxu0 %v13381_v32  ;;  %v10291_v29 = vld [vmem:[%s14422_s19 + $0x910] sm:$0xff]  ;;  %v229_v32 = vld [vmem:[%s14422_s19 + $0x198] sm:$0xff] }
  0x8d   : > { %4355 = vmatpush1.bf16.msra.mxu1 %v13384_v33  ;;  %1908 = vmatprep.subr.bf16.mxu0 %v13389_v38  ;;  %v13410_v31 = vld [vmem:[%s14374_s15 + $0x80c] ss:$8 sps:$4 sm:$0xff]   ;;  %v241_v33 = vld [vmem:[%s14422_s19 + $0x1f8] sm:$0xff]  ;;  %v2893_v37 = vpack.c.bf16 %v10291_v29, %v10279_v28  ;;  %v13405_v38 = vld [vmem:[%s14374_s15 + $0x220] ss:$8 sps:$4 sm:$0xff]  }
  0x8e   : > { %4356 = vmatprep.subr.bf16.mxu1 %v13392_v39  ;;  %v13408_v39 = vld [vmem:[%s14374_s15 + $0x808] ss:$8 sps:$4 sm:$0xff]   ;;  %v457_v40 = vpack.c.bf16 %v241_v33, %v229_v32  ;;  %v13434_v11 = vld [vmem:[%s14374_s15 + $0x84c] ss:$8 sps:$4 sm:$0xff]   ;;  %v10388_v28 = vld [vmem:[%s14422_s19 + $0xc18] sm:$0xff] }
  0x8f   : > { %v10339_v3 = vld [vmem:[%s14422_s19 + $0xa90] sm:$0xff]  ;;  %v13438_v29 = vld [vmem:[%s14374_s15 + $0x858] ss:$8 sps:$4 sm:$0xff]   ;;  %v2942_v35 = vpack.c.bf16 %v10388_v28, %v10376_v27 }
  0x90   : > { %1909 = vmatpush1.bf16.msra.mxu0 %v13387_v44  ;;  %v10303_v44 = vld [vmem:[%s14422_s19 + $0x970] sm:$0xff]  ;;  %v2917_v13 = vpack.c.bf16 %v10339_v3, %v10327_v0  ;;  %v349_v0 = vld [vmem:[%s14422_s19 + $0x558] sm:$0xff] }
  0x91   : > { %4357 = vmatpush1.bf16.msra.mxu1 %v13390_v45  ;;  %2019 = vmatprep.subr.bf16.mxu0 %v13395_v46  ;;  %v10315_v45 = vld [vmem:[%s14422_s19 + $0x9d0] sm:$0xff]  ;;  %v10436_v3 = vld [vmem:[%s14422_s19 + $0xd98] sm:$0xff] }
  0x92   : > { %4467 = vmatprep.subr.bf16.mxu1 %v13398_v47  ;;  %1850 = vmatmul.mubr.bf16.gmra.mrb[32].mxu0 %v526_v48  ;;  %v13411_v46 = vld [vmem:[%s14374_s15 + $0x230] ss:$8 sps:$4 sm:$0xff]   ;;  %v13413_v47 = vld [vmem:[%s14374_s15 + $0x234] ss:$8 sps:$4 sm:$0xff]   ;;  %v2905_v57 = vpack.c.bf16 %v10315_v45, %v10303_v44 }
  0x93   : > { %4298 = vmatmul.mubr.bf16.gmra.mrb[32].mxu1 %v2975_v49  ;;  %1859 = vmatprep.mubr.bf16.mxu0 %v539_v50  ;;  %v13416_v48 = vld [vmem:[%s14374_s15 + $0x81c] ss:$8 sps:$4 sm:$0xff]   ;;  %v13414_v49 = vld [vmem:[%s14374_s15 + $0x818] ss:$8 sps:$4 sm:$0xff]   ;;  %v13432_v17 = vld [vmem:[%s14374_s15 + $0x848] ss:$8 sps:$4 sm:$0xff]  }
  0x94   : > { %4307 = vmatprep.mubr.bf16.mxu1 %v2988_v51  ;;  %v13419_v50 = vld [vmem:[%s14374_s15 + $0x244] ss:$8 sps:$4 sm:$0xff]   ;;  %v276_v18 = vld [vmem:[%s14422_s19 + $0x310] sm:$0xff]  ;;  %v325_v44 = vld [vmem:[%s14422_s19 + $0x498] sm:$0xff] }
  0x95   : > { %v13422_v51 = vld [vmem:[%s14374_s15 + $0x82c] ss:$8 sps:$4 sm:$0xff]   ;;  %v13435_v26 = vld [vmem:[%s14374_s15 + $0x270] ss:$8 sps:$4 sm:$0xff]  }
  0x96   : > { %v337_v45 = vld [vmem:[%s14422_s19 + $0x4f8] sm:$0xff]  ;;  %v13482_v27 = vld [vmem:[%s14374_s15 + $0x8cc] ss:$8 sps:$4 sm:$0xff]  }
  0x9a   : > { %1860 = vmatmul.mubr.bf16.gmra.mrb[36].mxu0 %v538_v58  ;;  %v13417_v58 = vld [vmem:[%s14374_s15 + $0x240] ss:$8 sps:$4 sm:$0xff]  }
  0x9b   : > { %4308 = vmatmul.mubr.bf16.gmra.mrb[36].mxu1 %v2987_v59  ;;  %1869 = vmatprep.mubr.bf16.mxu0 %v551_v60  ;;  %v469_v59 = vpack.c.bf16 %v265_v53, %v253_v52  ;;  %v13420_v60 = vld [vmem:[%s14374_s15 + $0x828] ss:$8 sps:$4 sm:$0xff]  }
  0x9c   : > { %4317 = vmatprep.mubr.bf16.mxu1 %v3000_v61  ;;  %v2918_v61 = vpack.c.bf16 %v10340_v55, %v10328_v54  ;;  %v505_v54 = vpack.c.bf16 %v337_v45, %v325_v44  ;;  %v13483_v44 = vld [vmem:[%s14374_s15 + $0x2f0] ss:$8 sps:$4 sm:$0xff]  }
  0x9d   : > { %v13486_v45 = vld [vmem:[%s14374_s15 + $0x8d8] ss:$8 sps:$4 sm:$0xff]  }
  0xa2   : > { %1870 = vmatmul.mubr.bf16.gmra.mrb[40].mxu0 %v550_v4  ;;  %v13423_v4 = vld [vmem:[%s14374_s15 + $0x250] ss:$8 sps:$4 sm:$0xff]  }
  0xa3   : > { %4318 = vmatmul.mubr.bf16.gmra.mrb[40].mxu1 %v2999_v5  ;;  %1910 = vmatprep.mubr.bf16.mxu0 %v433_v6  ;;  %v13426_v5 = vld [vmem:[%s14374_s15 + $0x838] ss:$8 sps:$4 sm:$0xff]  }
  0xa4   : > { %4358 = vmatprep.mubr.bf16.mxu1 %v2882_v7  ;;  %v277_v6 = vld [vmem:[%s14422_s19 + $0x318] sm:$0xff] }
  0xa5   : > { %v289_v7 = vld [vmem:[%s14422_s19 + $0x378] sm:$0xff] }
  0xa6   : > { %v481_v14 = vpack.c.bf16 %v289_v7, %v277_v6  ;;  %v13467_v6 = vld [vmem:[%s14374_s15 + $0x2c4] ss:$8 sps:$4 sm:$0xff]  }
  0xa7   : > { %v13470_v7 = vld [vmem:[%s14374_s15 + $0x8ac] ss:$8 sps:$4 sm:$0xff]  }
  0xaa   : > { %1911 = vmatmul.mubr.bf16.vlgmr.msra.gmra.mrb[0].mxu0 %v432_v15  ;;  %v2930_v15 = vpack.c.bf16 %v10364_v9, %v10352_v8 }
  0xab   : > { %4359 = vmatmul.mubr.bf16.vlgmr.msra.gmra.mrb[0].mxu1 %v2881_v16  ;;  %2020 = vmatpush1.bf16.msra.mxu0 %v13393_v12  ;;  %v468_v12 = vpack.c.bf16 %v264_v63, %v252_v62  ;;  %v13429_v16 = vld [vmem:[%s14374_s15 + $0x260] ss:$8 sps:$4 sm:$0xff]   ;;  %v13461_v62 = vld [vmem:[%s14374_s15 + $0x2b4] ss:$8 sps:$4 sm:$0xff]  }
  0xac   : > { %4468 = vmatpush1.bf16.msra.mxu1 %v13396_v19  ;;  %2021 = vmatprep.subr.bf16.mxu0 %v13401_v20  ;;  %v288_v19 = vld [vmem:[%s14422_s19 + $0x370] sm:$0xff]  ;;  %v13464_v63 = vld [vmem:[%s14374_s15 + $0x89c] ss:$8 sps:$4 sm:$0xff]  }
  0xad   : > { %4469 = vmatprep.subr.bf16.mxu1 %v13404_v21  ;;  %1920 = vmatprep.mubr.bf16.mxu0 %v445_v24  ;;  %v10351_v20 = vld [vmem:[%s14422_s19 + $0xaf0] sm:$0xff]  ;;  %v301_v24 = vld [vmem:[%s14422_s19 + $0x3d8] sm:$0xff]  ;;  %v480_v32 = vpack.c.bf16 %v288_v19, %v276_v18 }
  0xae   : > { %4368 = vmatprep.mubr.bf16.mxu1 %v2894_v25  ;;  %v10363_v21 = vld [vmem:[%s14422_s19 + $0xb50] sm:$0xff]  ;;  %v313_v25 = vld [vmem:[%s14422_s19 + $0x438] sm:$0xff] }
  0xaf   : > { %2022 = vmatpush1.bf16.msra.mxu0 %v13399_v22  ;;  %v13437_v22 = vld [vmem:[%s14374_s15 + $0x274] ss:$8 sps:$4 sm:$0xff]   ;;  %v2929_v33 = vpack.c.bf16 %v10363_v21, %v10351_v20  ;;  %v493_v34 = vpack.c.bf16 %v313_v25, %v301_v24  ;;  %v13471_v24 = vld [vmem:[%s14374_s15 + $0x2d0] ss:$8 sps:$4 sm:$0xff]  }
  0xb0   : > { %4470 = vmatpush1.bf16.msra.mxu1 %v13402_v23  ;;  %2023 = vmatprep.subr.bf16.mxu0 %v13407_v30  ;;  %v13440_v23 = vld [vmem:[%s14374_s15 + $0x85c] ss:$8 sps:$4 sm:$0xff]   ;;  %v13474_v25 = vld [vmem:[%s14374_s15 + $0x8b8] ss:$8 sps:$4 sm:$0xff]  }
  0xb1   : > { %4471 = vmatprep.subr.bf16.mxu1 %v13410_v31  ;;  %v13443_v30 = vld [vmem:[%s14374_s15 + $0x284] ss:$8 sps:$4 sm:$0xff]   ;;  %v13473_v18 = vld [vmem:[%s14374_s15 + $0x2d4] ss:$8 sps:$4 sm:$0xff]  }
  0xb2   : > { %1921 = vmatmul.mubr.bf16.gmra.mrb[4].mxu0 %v444_v36  ;;  %v13446_v31 = vld [vmem:[%s14374_s15 + $0x86c] ss:$8 sps:$4 sm:$0xff]   ;;  %v13441_v36 = vld [vmem:[%s14374_s15 + $0x280] ss:$8 sps:$4 sm:$0xff]   ;;  %v13476_v19 = vld [vmem:[%s14374_s15 + $0x8bc] ss:$8 sps:$4 sm:$0xff]  }
  0xb3   : > { %4369 = vmatmul.mubr.bf16.gmra.mrb[4].mxu1 %v2893_v37  ;;  %2024 = vmatpush1.bf16.msra.mxu0 %v13405_v38  ;;  %v13444_v37 = vld [vmem:[%s14374_s15 + $0x868] ss:$8 sps:$4 sm:$0xff]   ;;  %v13449_v38 = vld [vmem:[%s14374_s15 + $0x294] ss:$8 sps:$4 sm:$0xff]  }
  0xb4   : > { %4472 = vmatpush1.bf16.msra.mxu1 %v13408_v39  ;;  %1930 = vmatprep.mubr.bf16.mxu0 %v457_v40  ;;  %v300_v39 = vld [vmem:[%s14422_s19 + $0x3d0] sm:$0xff]  ;;  %v373_v20 = vld [vmem:[%s14422_s19 + $0x618] sm:$0xff] }
  0xb5   : > { %4378 = vmatprep.mubr.bf16.mxu1 %v2906_v41  ;;  %2025 = vmatprep.subr.bf16.mxu0 %v13413_v47  ;;  %v312_v40 = vld [vmem:[%s14422_s19 + $0x430] sm:$0xff]  ;;  %v10412_v47 = vld [vmem:[%s14422_s19 + $0xcd8] sm:$0xff] }
  0xb6   : > { %4473 = vmatprep.subr.bf16.mxu1 %v13416_v48  ;;  %v10375_v41 = vld [vmem:[%s14422_s19 + $0xbb0] sm:$0xff]  ;;  %v492_v52 = vpack.c.bf16 %v312_v40, %v300_v39  ;;  %v385_v21 = vld [vmem:[%s14422_s19 + $0x678] sm:$0xff] }
  0xb7   : > { %2026 = vmatpush1.bf16.msra.mxu0 %v13411_v46  ;;  %v10400_v46 = vld [vmem:[%s14422_s19 + $0xc78] sm:$0xff]  ;;  %v2941_v53 = vpack.c.bf16 %v10387_v42, %v10375_v41  ;;  %v10459_v39 = vld [vmem:[%s14422_s19 + $0xe50] sm:$0xff] }
  0xb8   : > { %4474 = vmatpush1.bf16.msra.mxu1 %v13414_v49  ;;  %2027 = vmatprep.subr.bf16.mxu0 %v13419_v50  ;;  %v13447_v48 = vld [vmem:[%s14374_s15 + $0x290] ss:$8 sps:$4 sm:$0xff]   ;;  %v13455_v50 = vld [vmem:[%s14374_s15 + $0x2a4] ss:$8 sps:$4 sm:$0xff]   ;;  %v2954_v55 = vpack.c.bf16 %v10412_v47, %v10400_v46 }
  0xb9   : > { %4475 = vmatprep.subr.bf16.mxu1 %v13422_v51  ;;  %v13450_v49 = vld [vmem:[%s14374_s15 + $0x878] ss:$8 sps:$4 sm:$0xff]   ;;  %v13458_v51 = vld [vmem:[%s14374_s15 + $0x88c] ss:$8 sps:$4 sm:$0xff]  }
  0xba   : > { %1931 = vmatmul.mubr.bf16.gmra.mrb[8].mxu0 %v456_v56  ;;  %v13453_v56 = vld [vmem:[%s14374_s15 + $0x2a0] ss:$8 sps:$4 sm:$0xff]   ;;  %v397_v40 = vld [vmem:[%s14422_s19 + $0x6d8] sm:$0xff]  ;;  %v13491_v46 = vld [vmem:[%s14374_s15 + $0x304] ss:$8 sps:$4 sm:$0xff]  }
  0xbb   : > { %4379 = vmatmul.mubr.bf16.gmra.mrb[8].mxu1 %v2905_v57  ;;  %1940 = vmatprep.mubr.bf16.mxu0 %v469_v59  ;;  %v13456_v57 = vld [vmem:[%s14374_s15 + $0x888] ss:$8 sps:$4 sm:$0xff]   ;;  %v409_v41 = vld [vmem:[%s14422_s19 + $0x738] sm:$0xff]  ;;  %v13494_v47 = vld [vmem:[%s14374_s15 + $0x8ec] ss:$8 sps:$4 sm:$0xff]  }
  0xbc   : > { %2028 = vmatpush1.bf16.msra.mxu0 %v13417_v58  ;;  %4388 = vmatprep.mubr.bf16.mxu1 %v2918_v61  ;;  %v324_v58 = vld [vmem:[%s14422_s19 + $0x490] sm:$0xff]  ;;  %v10472_v42 = vld [vmem:[%s14422_s19 + $0xeb8] sm:$0xff] }
  0xbd   : > { %4476 = vmatpush1.bf16.msra.mxu1 %v13420_v60  ;;  %2029 = vmatprep.subr.bf16.mxu0 %v13425_v1  ;;  %v336_v59 = vld [vmem:[%s14422_s19 + $0x4f0] sm:$0xff]  ;;  %v361_v1 = vld [vmem:[%s14422_s19 + $0x5b8] sm:$0xff] }
  0xbe   : > { %4477 = vmatprep.subr.bf16.mxu1 %v13428_v2  ;;  %v10399_v60 = vld [vmem:[%s14422_s19 + $0xc70] sm:$0xff]  ;;  %v10424_v2 = vld [vmem:[%s14422_s19 + $0xd38] sm:$0xff]  ;;  %v504_v8 = vpack.c.bf16 %v336_v59, %v324_v58 }
  0xbf   : > { %v10411_v61 = vld [vmem:[%s14422_s19 + $0xcd0] sm:$0xff] }
  0xc0   : > { %2030 = vmatpush1.bf16.msra.mxu0 %v13423_v4  ;;  %v13459_v4 = vld [vmem:[%s14374_s15 + $0x2b0] ss:$8 sps:$4 sm:$0xff]   ;;  %v2953_v9 = vpack.c.bf16 %v10411_v61, %v10399_v60 }
  0xc1   : > { %4478 = vmatpush1.bf16.msra.mxu1 %v13426_v5  ;;  %2031 = vmatprep.subr.bf16.mxu0 %v13431_v10  ;;  %v13462_v5 = vld [vmem:[%s14374_s15 + $0x898] ss:$8 sps:$4 sm:$0xff]   ;;  %v517_v10 = vpack.c.bf16 %v361_v1, %v349_v0  ;;  %v183_v0 = vld [vmem:[%s14422_s19 + $0x28] sm:$0xff] }
  0xc2   : > { %4479 = vmatprep.subr.bf16.mxu1 %v13434_v11  ;;  %1941 = vmatmul.mubr.bf16.gmra.mrb[12].mxu0 %v468_v12  ;;  %v2966_v11 = vpack.c.bf16 %v10436_v3, %v10424_v2  ;;  %v13465_v12 = vld [vmem:[%s14374_s15 + $0x2c0] ss:$8 sps:$4 sm:$0xff]  }
  0xc3   : > { %4389 = vmatmul.mubr.bf16.gmra.mrb[12].mxu1 %v2917_v13  ;;  %1950 = vmatprep.mubr.bf16.mxu0 %v481_v14  ;;  %v13468_v13 = vld [vmem:[%s14374_s15 + $0x8a8] ss:$8 sps:$4 sm:$0xff]  }
  0xc4   : > { %4398 = vmatprep.mubr.bf16.mxu1 %v2930_v15  ;;  %2032 = vmatpush1.bf16.msra.mxu0 %v13429_v16  ;;  %v348_v14 = vld [vmem:[%s14422_s19 + $0x550] sm:$0xff]  ;;  %v195_v1 = vld [vmem:[%s14422_s19 + $0x88] sm:$0xff] }
  0xc5   : > { %4480 = vmatpush1.bf16.msra.mxu1 %v13432_v17  ;;  %2033 = vmatprep.subr.bf16.mxu0 %v13437_v22  ;;  %v360_v15 = vld [vmem:[%s14422_s19 + $0x5b0] sm:$0xff]  ;;  %v10448_v22 = vld [vmem:[%s14422_s19 + $0xdf8] sm:$0xff]  ;;  %v10258_v2 = vld [vmem:[%s14422_s19 + $0x808] sm:$0xff] }
  0xc6   : > { %4481 = vmatprep.subr.bf16.mxu1 %v13440_v23  ;;  %v10423_v16 = vld [vmem:[%s14422_s19 + $0xd30] sm:$0xff]  ;;  %v10460_v23 = vld [vmem:[%s14422_s19 + $0xe58] sm:$0xff]  ;;  %v516_v28 = vpack.c.bf16 %v360_v15, %v348_v14  ;;  %v10270_v3 = vld [vmem:[%s14422_s19 + $0x868] sm:$0xff] }
  0xc7   : > { %v10435_v17 = vld [vmem:[%s14422_s19 + $0xd90] sm:$0xff]  ;;  %v207_v14 = vld [vmem:[%s14422_s19 + $0xe8] sm:$0xff] }
  0xc8   : > { %2034 = vmatpush1.bf16.msra.mxu0 %v13435_v26  ;;  %v13479_v26 = vld [vmem:[%s14374_s15 + $0x2e4] ss:$8 sps:$4 sm:$0xff]  }
  0xc9   : > { %4482 = vmatpush1.bf16.msra.mxu1 %v13438_v29  ;;  %2035 = vmatprep.subr.bf16.mxu0 %v13443_v30  ;;  %v2965_v29 = vpack.c.bf16 %v10435_v17, %v10423_v16  ;;  %v529_v30 = vpack.c.bf16 %v385_v21, %v373_v20  ;;  %v219_v17 = vld [vmem:[%s14422_s19 + $0x148] sm:$0xff]  ;;  %v13497_v20 = vld [vmem:[%s14374_s15 + $0x314] ss:$8 sps:$4 sm:$0xff]  }
  0xca   : > { %4483 = vmatprep.subr.bf16.mxu1 %v13446_v31  ;;  %1951 = vmatmul.mubr.bf16.gmra.mrb[16].mxu0 %v480_v32  ;;  %v2978_v31 = vpack.c.bf16 %v10460_v23, %v10448_v22  ;;  %v13477_v32 = vld [vmem:[%s14374_s15 + $0x2e0] ss:$8 sps:$4 sm:$0xff]   ;;  %v13500_v21 = vld [vmem:[%s14374_s15 + $0x8fc] ss:$8 sps:$4 sm:$0xff]   ;;  %v13495_v22 = vld [vmem:[%s14374_s15 + $0x310] ss:$8 sps:$4 sm:$0xff]  }
  0xcb   : > { %4399 = vmatmul.mubr.bf16.gmra.mrb[16].mxu1 %v2929_v33  ;;  %1960 = vmatprep.mubr.bf16.mxu0 %v493_v34  ;;  %v13480_v33 = vld [vmem:[%s14374_s15 + $0x8c8] ss:$8 sps:$4 sm:$0xff]   ;;  %v13498_v23 = vld [vmem:[%s14374_s15 + $0x8f8] ss:$8 sps:$4 sm:$0xff]  }
  0xcc   : > { %4408 = vmatprep.mubr.bf16.mxu1 %v2942_v35  ;;  %2036 = vmatpush1.bf16.msra.mxu0 %v13441_v36  ;;  %v372_v34 = vld [vmem:[%s14422_s19 + $0x610] sm:$0xff] }
  0xcd   : > { %4484 = vmatpush1.bf16.msra.mxu1 %v13444_v37  ;;  %2037 = vmatprep.subr.bf16.mxu0 %v13449_v38  ;;  %v384_v35 = vld [vmem:[%s14422_s19 + $0x670] sm:$0xff]  ;;  %v13488_v38 = vld [vmem:[%s14374_s15 + $0x8dc] ss:$8 sps:$4 sm:$0xff]  }
  0xce   : > { %4485 = vmatprep.subr.bf16.mxu1 %v13452_v43  ;;  %v10447_v36 = vld [vmem:[%s14422_s19 + $0xdf0] sm:$0xff]  ;;  %v10484_v43 = vld [vmem:[%s14422_s19 + $0xf18] sm:$0xff] }
  0xcf   : > { %v13485_v37 = vld [vmem:[%s14374_s15 + $0x2f4] ss:$8 sps:$4 sm:$0xff]  }
  0xd0   : > { %2038 = vmatpush1.bf16.msra.mxu0 %v13447_v48  ;;  %v528_v48 = vpack.c.bf16 %v384_v35, %v372_v34  ;;  %v10306_v34 = vld [vmem:[%s14422_s19 + $0x988] sm:$0xff] }
  0xd1   : > { %4486 = vmatpush1.bf16.msra.mxu1 %v13450_v49  ;;  %2039 = vmatprep.subr.bf16.mxu0 %v13455_v50  ;;  %v2977_v49 = vpack.c.bf16 %v10459_v39, %v10447_v36  ;;  %v541_v50 = vpack.c.bf16 %v409_v41, %v397_v40  ;;  %v10318_v35 = vld [vmem:[%s14422_s19 + $0x9e8] sm:$0xff] }
  0xd2   : > { %4487 = vmatprep.subr.bf16.mxu1 %v13458_v51  ;;  %1961 = vmatmul.mubr.bf16.gmra.mrb[20].mxu0 %v492_v52  ;;  %v2990_v51 = vpack.c.bf16 %v10484_v43, %v10472_v42  ;;  %v396_v52 = vld [vmem:[%s14422_s19 + $0x6d0] sm:$0xff]  ;;  %v2908_v41 = vpack.c.bf16 %v10318_v35, %v10306_v34  ;;  %v230_v42 = vld [vmem:[%s14422_s19 + $0x1a0] sm:$0xff] }
  0xd3   : > { %4409 = vmatmul.mubr.bf16.gmra.mrb[20].mxu1 %v2941_v53  ;;  %1970 = vmatprep.mubr.bf16.mxu0 %v505_v54  ;;  %v408_v53 = vld [vmem:[%s14422_s19 + $0x730] sm:$0xff]  ;;  %v242_v43 = vld [vmem:[%s14422_s19 + $0x200] sm:$0xff] }
  0xd4   : > { %4418 = vmatprep.mubr.bf16.mxu1 %v2954_v55  ;;  %2040 = vmatpush1.bf16.msra.mxu0 %v13453_v56  ;;  %v10471_v54 = vld [vmem:[%s14422_s19 + $0xeb0] sm:$0xff]  ;;  %v421_v56 = vld [vmem:[%s14422_s19 + $0x798] sm:$0xff]  ;;  %v540_v58 = vpack.c.bf16 %v408_v53, %v396_v52  ;;  %v255_v52 = vld [vmem:[%s14422_s19 + $0x268] sm:$0xff] }
  0xd5   : > { %4488 = vmatpush1.bf16.msra.mxu1 %v13456_v57  ;;  %2041 = vmatprep.subr.bf16.mxu0 %v13461_v62  ;;  %v10483_v55 = vld [vmem:[%s14422_s19 + $0xf10] sm:$0xff]  ;;  %v10496_v57 = vld [vmem:[%s14422_s19 + $0xf78] sm:$0xff]  ;;  %v553_v60 = vpack.c.bf16 %v421_v56, %v421_v56  ;;  %v267_v53 = vld [vmem:[%s14422_s19 + $0x2c8] sm:$0xff]  ;;  %v458_v56 = vpack.c.bf16 %v242_v43, %v230_v42 }
  0xd6   : > { %4489 = vmatprep.subr.bf16.mxu1 %v13464_v63  ;;  %v2989_v59 = vpack.c.bf16 %v10483_v55, %v10471_v54  ;;  %v3002_v61 = vpack.c.bf16 %v10496_v57, %v10496_v57  ;;  %v420_v62 = vld [vmem:[%s14422_s19 + $0x790] sm:$0xff]  ;;  %v10330_v54 = vld [vmem:[%s14422_s19 + $0xa48] sm:$0xff]  ;;  %v10377_v42 = vld [vmem:[%s14422_s19 + $0xbc0] sm:$0xff] }
  0xd7   : > { %v10495_v63 = vld [vmem:[%s14422_s19 + $0xf70] sm:$0xff]  ;;  %v10342_v55 = vld [vmem:[%s14422_s19 + $0xaa8] sm:$0xff]  ;;  %v10389_v43 = vld [vmem:[%s14422_s19 + $0xc20] sm:$0xff] }
  0xd8   : > { %2042 = vmatpush1.bf16.msra.mxu0 %v13459_v4  ;;  %v552_v4 = vpack.c.bf16 %v420_v62, %v420_v62  ;;  %v13504_v39 = vld [vmem:[%s14374_s15 + $0x908] ss:$8 sps:$4 sm:$0xff]   ;;  %v254_v62 = vld [vmem:[%s14422_s19 + $0x260] sm:$0xff] }
  0xd9   : > { %4490 = vmatpush1.bf16.msra.mxu1 %v13462_v5  ;;  %2043 = vmatprep.subr.bf16.mxu0 %v13467_v6  ;;  %v3001_v5 = vpack.c.bf16 %v10495_v63, %v10495_v63  ;;  %v435_v6 = vpack.c.bf16 %v195_v1, %v183_v0  ;;  %v266_v63 = vld [vmem:[%s14422_s19 + $0x2c0] sm:$0xff] }
  0xda   : > { %4491 = vmatprep.subr.bf16.mxu1 %v13470_v7  ;;  %1971 = vmatmul.mubr.bf16.gmra.mrb[24].mxu0 %v504_v8  ;;  %v2884_v7 = vpack.c.bf16 %v10270_v3, %v10258_v2  ;;  %v182_v8 = vld [vmem:[%s14422_s19 + $0x20] sm:$0xff]  ;;  %v13519_v2 = vld [vmem:[%s14374_s15 + $0x350] ss:$8 sps:$4 sm:$0xff]   ;;  %v13521_v3 = vld [vmem:[%s14374_s15 + $0x354] ss:$8 sps:$4 sm:$0xff]  }
  0xdb   : > { %4419 = vmatmul.mubr.bf16.gmra.mrb[24].mxu1 %v2953_v9  ;;  %1980 = vmatprep.mubr.bf16.mxu0 %v517_v10  ;;  %v194_v9 = vld [vmem:[%s14422_s19 + $0x80] sm:$0xff] }
  0xdc   : > { %4428 = vmatprep.mubr.bf16.mxu1 %v2966_v11  ;;  %2044 = vmatpush1.bf16.msra.mxu0 %v13465_v12  ;;  %v10257_v10 = vld [vmem:[%s14422_s19 + $0x800] sm:$0xff]  ;;  %v434_v15 = vpack.c.bf16 %v194_v9, %v182_v8  ;;  %v10354_v8 = vld [vmem:[%s14422_s19 + $0xb08] sm:$0xff] }
  0xdd   : > { %4492 = vmatpush1.bf16.msra.mxu1 %v13468_v13  ;;  %2045 = vmatprep.subr.bf16.mxu0 %v13473_v18  ;;  %v10269_v11 = vld [vmem:[%s14422_s19 + $0x860] sm:$0xff]  ;;  %v13492_v13 = vld [vmem:[%s14374_s15 + $0x8e8] ss:$8 sps:$4 sm:$0xff]  }
  0xde   : > { %4493 = vmatprep.subr.bf16.mxu1 %v13476_v19  ;;  %v13489_v12 = vld [vmem:[%s14374_s15 + $0x300] ss:$8 sps:$4 sm:$0xff]   ;;  %v2883_v16 = vpack.c.bf16 %v10269_v11, %v10257_v10  ;;  %v13527_v10 = vld [vmem:[%s14374_s15 + $0x364] ss:$8 sps:$4 sm:$0xff]  }
  0xdf   : > { %v10282_v18 = vld [vmem:[%s14422_s19 + $0x8c8] sm:$0xff]  ;;  %v10329_v0 = vld [vmem:[%s14422_s19 + $0xa40] sm:$0xff] }
  0xe0   : > { %2046 = vmatpush1.bf16.msra.mxu0 %v13471_v24  ;;  %v10294_v19 = vld [vmem:[%s14422_s19 + $0x928] sm:$0xff]  ;;  %v447_v24 = vpack.c.bf16 %v219_v17, %v207_v14  ;;  %v10341_v1 = vld [vmem:[%s14422_s19 + $0xaa0] sm:$0xff] }
  0xe1   : > { %4494 = vmatpush1.bf16.msra.mxu1 %v13474_v25  ;;  %2047 = vmatprep.subr.bf16.mxu0 %v13479_v26  ;;  %v2896_v25 = vpack.c.bf16 %v10294_v19, %v10282_v18  ;;  %v206_v26 = vld [vmem:[%s14422_s19 + $0xe0] sm:$0xff]  ;;  %v10366_v9 = vld [vmem:[%s14422_s19 + $0xb68] sm:$0xff] }
  0xe2   : > { %4495 = vmatprep.subr.bf16.mxu1 %v13482_v27  ;;  %1981 = vmatmul.mubr.bf16.gmra.mrb[28].mxu0 %v516_v28  ;;  %v218_v27 = vld [vmem:[%s14422_s19 + $0x140] sm:$0xff]  ;;  %v13530_v11 = vld [vmem:[%s14374_s15 + $0x94c] ss:$8 sps:$4 sm:$0xff]   ;;  %v13528_v17 = vld [vmem:[%s14374_s15 + $0x948] ss:$8 sps:$4 sm:$0xff]  }
  0xe3   : > { %4429 = vmatmul.mubr.bf16.gmra.mrb[28].mxu1 %v2965_v29  ;;  %1990 = vmatprep.mubr.bf16.mxu0 %v529_v30  ;;  %v10281_v28 = vld [vmem:[%s14422_s19 + $0x8c0] sm:$0xff]  ;;  %v446_v36 = vpack.c.bf16 %v218_v27, %v206_v26  ;;  %v13531_v26 = vld [vmem:[%s14374_s15 + $0x370] ss:$8 sps:$4 sm:$0xff]   ;;  %v10378_v27 = vld [vmem:[%s14422_s19 + $0xbc8] sm:$0xff] }
  0xe4   : > { %4438 = vmatprep.mubr.bf16.mxu1 %v2978_v31  ;;  %2048 = vmatpush1.bf16.msra.mxu0 %v13477_v32  ;;  %v10293_v29 = vld [vmem:[%s14422_s19 + $0x920] sm:$0xff]  ;;  %v13506_v31 = vld [vmem:[%s14374_s15 + $0x90c] ss:$8 sps:$4 sm:$0xff]  }
  0xe5   : > { %4496 = vmatpush1.bf16.msra.mxu1 %v13480_v33  ;;  %2049 = vmatprep.subr.bf16.mxu0 %v13485_v37  ;;  %v13503_v30 = vld [vmem:[%s14374_s15 + $0x324] ss:$8 sps:$4 sm:$0xff]   ;;  %v2895_v37 = vpack.c.bf16 %v10293_v29, %v10281_v28  ;;  %v13534_v29 = vld [vmem:[%s14374_s15 + $0x958] ss:$8 sps:$4 sm:$0xff]  }
  0xe6   : > { %4497 = vmatprep.subr.bf16.mxu1 %v13488_v38  ;;  %v231_v32 = vld [vmem:[%s14422_s19 + $0x1a8] sm:$0xff]  ;;  %v278_v18 = vld [vmem:[%s14422_s19 + $0x320] sm:$0xff] }
  0xe7   : > { %v243_v33 = vld [vmem:[%s14422_s19 + $0x208] sm:$0xff]  ;;  %v290_v19 = vld [vmem:[%s14422_s19 + $0x380] sm:$0xff] }
  0xe8   : > { %2050 = vmatpush1.bf16.msra.mxu0 %v13483_v44  ;;  %v13501_v38 = vld [vmem:[%s14374_s15 + $0x320] ss:$8 sps:$4 sm:$0xff]   ;;  %v459_v40 = vpack.c.bf16 %v243_v33, %v231_v32  ;;  %v482_v32 = vpack.c.bf16 %v290_v19, %v278_v18  ;;  %v13569_v18 = vld [vmem:[%s14374_s15 + $0x3d4] ss:$8 sps:$4 sm:$0xff]  }
  0xe9   : > { %4498 = vmatpush1.bf16.msra.mxu1 %v13486_v45  ;;  %2160 = vmatprep.subr.bf16.mxu0 %v13491_v46  ;;  %v10305_v44 = vld [vmem:[%s14422_s19 + $0x980] sm:$0xff]  ;;  %v13507_v46 = vld [vmem:[%s14374_s15 + $0x330] ss:$8 sps:$4 sm:$0xff]   ;;  %v10390_v28 = vld [vmem:[%s14422_s19 + $0xc28] sm:$0xff] }
  0xea   : > { %4608 = vmatprep.subr.bf16.mxu1 %v13494_v47  ;;  %1991 = vmatmul.mubr.bf16.gmra.mrb[32].mxu0 %v528_v48  ;;  %v10317_v45 = vld [vmem:[%s14422_s19 + $0x9e0] sm:$0xff]  ;;  %v13509_v47 = vld [vmem:[%s14374_s15 + $0x334] ss:$8 sps:$4 sm:$0xff]   ;;  %v2944_v35 = vpack.c.bf16 %v10390_v28, %v10378_v27 }
  0xeb   : > { %4439 = vmatmul.mubr.bf16.gmra.mrb[32].mxu1 %v2977_v49  ;;  %2000 = vmatprep.mubr.bf16.mxu0 %v541_v50  ;;  %v13512_v48 = vld [vmem:[%s14374_s15 + $0x91c] ss:$8 sps:$4 sm:$0xff]   ;;  %v13510_v49 = vld [vmem:[%s14374_s15 + $0x918] ss:$8 sps:$4 sm:$0xff]   ;;  %v2907_v57 = vpack.c.bf16 %v10317_v45, %v10305_v44  ;;  %v327_v44 = vld [vmem:[%s14422_s19 + $0x4a8] sm:$0xff] }
  0xec   : > { %4448 = vmatprep.mubr.bf16.mxu1 %v2990_v51  ;;  %v13515_v50 = vld [vmem:[%s14374_s15 + $0x344] ss:$8 sps:$4 sm:$0xff]  }
  0xed   : > { %v13518_v51 = vld [vmem:[%s14374_s15 + $0x92c] ss:$8 sps:$4 sm:$0xff]   ;;  %v13572_v19 = vld [vmem:[%s14374_s15 + $0x9bc] ss:$8 sps:$4 sm:$0xff]  }
  0xee   : > { %v339_v45 = vld [vmem:[%s14422_s19 + $0x508] sm:$0xff] }
  0xef   : > { %v13578_v27 = vld [vmem:[%s14374_s15 + $0x9cc] ss:$8 sps:$4 sm:$0xff]  }
  0xf2   : > { %2001 = vmatmul.mubr.bf16.gmra.mrb[36].mxu0 %v540_v58  ;;  %v13513_v58 = vld [vmem:[%s14374_s15 + $0x340] ss:$8 sps:$4 sm:$0xff]  }
  0xf3   : > { %4449 = vmatmul.mubr.bf16.gmra.mrb[36].mxu1 %v2989_v59  ;;  %2010 = vmatprep.mubr.bf16.mxu0 %v553_v60  ;;  %v471_v59 = vpack.c.bf16 %v267_v53, %v255_v52  ;;  %v13516_v60 = vld [vmem:[%s14374_s15 + $0x928] ss:$8 sps:$4 sm:$0xff]   ;;  %v2943_v53 = vpack.c.bf16 %v10389_v43, %v10377_v42 }
  0xf4   : > { %4458 = vmatprep.mubr.bf16.mxu1 %v3002_v61  ;;  %v2920_v61 = vpack.c.bf16 %v10342_v55, %v10330_v54  ;;  %v507_v54 = vpack.c.bf16 %v339_v45, %v327_v44  ;;  %v10474_v42 = vld [vmem:[%s14422_s19 + $0xec8] sm:$0xff]  ;;  %v13579_v44 = vld [vmem:[%s14374_s15 + $0x3f0] ss:$8 sps:$4 sm:$0xff]  }
  0xf5   : > { %v10486_v43 = vld [vmem:[%s14422_s19 + $0xf28] sm:$0xff]  ;;  %v13582_v45 = vld [vmem:[%s14374_s15 + $0x9d8] ss:$8 sps:$4 sm:$0xff]  }
  0xfa   : > { %2011 = vmatmul.mubr.bf16.gmra.mrb[40].mxu0 %v552_v4  ;;  %v13524_v4 = vld [vmem:[%s14374_s15 + $0x93c] ss:$8 sps:$4 sm:$0xff]  }
  0xfb   : > { %4459 = vmatmul.mubr.bf16.gmra.mrb[40].mxu1 %v3001_v5  ;;  %2051 = vmatprep.mubr.bf16.mxu0 %v435_v6  ;;  %v13522_v5 = vld [vmem:[%s14374_s15 + $0x938] ss:$8 sps:$4 sm:$0xff]   ;;  %v279_v6 = vld [vmem:[%s14422_s19 + $0x328] sm:$0xff] }
  0xfc   : > { %4499 = vmatprep.mubr.bf16.mxu1 %v2884_v7  ;;  %v291_v7 = vld [vmem:[%s14422_s19 + $0x388] sm:$0xff] }
  0xfd   : > { %v483_v14 = vpack.c.bf16 %v291_v7, %v279_v6  ;;  %v13563_v6 = vld [vmem:[%s14374_s15 + $0x3c4] ss:$8 sps:$4 sm:$0xff]  }
  0xfe   : > { %v13566_v7 = vld [vmem:[%s14374_s15 + $0x9ac] ss:$8 sps:$4 sm:$0xff]  }
 0x102   : > { %2052 = vmatmul.mubr.bf16.vlgmr.msra.gmra.mrb[0].mxu0 %v434_v15  ;;  %v2932_v15 = vpack.c.bf16 %v10366_v9, %v10354_v8 }
 0x103   : > { %4500 = vmatmul.mubr.bf16.vlgmr.msra.gmra.mrb[0].mxu1 %v2883_v16  ;;  %2161 = vmatpush1.bf16.msra.mxu0 %v13489_v12  ;;  %v470_v12 = vpack.c.bf16 %v266_v63, %v254_v62  ;;  %v13525_v16 = vld [vmem:[%s14374_s15 + $0x360] ss:$8 sps:$4 sm:$0xff]   ;;  %v13557_v62 = vld [vmem:[%s14374_s15 + $0x3b4] ss:$8 sps:$4 sm:$0xff]  }
 0x104   : > { %4609 = vmatpush1.bf16.msra.mxu1 %v13492_v13  ;;  %2162 = vmatprep.subr.bf16.mxu0 %v13497_v20  ;;  %v2919_v13 = vpack.c.bf16 %v10341_v1, %v10329_v0  ;;  %v13533_v20 = vld [vmem:[%s14374_s15 + $0x374] ss:$8 sps:$4 sm:$0xff]   ;;  %v351_v0 = vld [vmem:[%s14422_s19 + $0x568] sm:$0xff] }
 0x105   : > { %4610 = vmatprep.subr.bf16.mxu1 %v13500_v21  ;;  %2061 = vmatprep.mubr.bf16.mxu0 %v447_v24  ;;  %v13536_v21 = vld [vmem:[%s14374_s15 + $0x95c] ss:$8 sps:$4 sm:$0xff]   ;;  %v303_v24 = vld [vmem:[%s14422_s19 + $0x3e8] sm:$0xff] }
 0x106   : > { %4509 = vmatprep.mubr.bf16.mxu1 %v2896_v25  ;;  %v315_v25 = vld [vmem:[%s14422_s19 + $0x448] sm:$0xff]  ;;  %v13560_v63 = vld [vmem:[%s14374_s15 + $0x99c] ss:$8 sps:$4 sm:$0xff]  }
 0x107   : > { %2163 = vmatpush1.bf16.msra.mxu0 %v13495_v22  ;;  %v10353_v22 = vld [vmem:[%s14422_s19 + $0xb00] sm:$0xff]  ;;  %v495_v34 = vpack.c.bf16 %v315_v25, %v303_v24  ;;  %v363_v1 = vld [vmem:[%s14422_s19 + $0x5c8] sm:$0xff]  ;;  %v13567_v24 = vld [vmem:[%s14374_s15 + $0x3d0] ss:$8 sps:$4 sm:$0xff]  }
 0x108   : > { %4611 = vmatpush1.bf16.msra.mxu1 %v13498_v23  ;;  %2164 = vmatprep.subr.bf16.mxu0 %v13503_v30  ;;  %v10365_v23 = vld [vmem:[%s14422_s19 + $0xb60] sm:$0xff] }
 0x109   : > { %4612 = vmatprep.subr.bf16.mxu1 %v13506_v31  ;;  %v13539_v30 = vld [vmem:[%s14374_s15 + $0x384] ss:$8 sps:$4 sm:$0xff]   ;;  %v2931_v33 = vpack.c.bf16 %v10365_v23, %v10353_v22  ;;  %v13570_v25 = vld [vmem:[%s14374_s15 + $0x9b8] ss:$8 sps:$4 sm:$0xff]  }
 0x10a   : > { %2062 = vmatmul.mubr.bf16.gmra.mrb[4].mxu0 %v446_v36  ;;  %v13542_v31 = vld [vmem:[%s14374_s15 + $0x96c] ss:$8 sps:$4 sm:$0xff]   ;;  %v13537_v36 = vld [vmem:[%s14374_s15 + $0x380] ss:$8 sps:$4 sm:$0xff]  }
 0x10b   : > { %4510 = vmatmul.mubr.bf16.gmra.mrb[4].mxu1 %v2895_v37  ;;  %2165 = vmatpush1.bf16.msra.mxu0 %v13501_v38  ;;  %v13540_v37 = vld [vmem:[%s14374_s15 + $0x968] ss:$8 sps:$4 sm:$0xff]   ;;  %v302_v38 = vld [vmem:[%s14422_s19 + $0x3e0] sm:$0xff] }
 0x10c   : > { %4613 = vmatpush1.bf16.msra.mxu1 %v13504_v39  ;;  %2071 = vmatprep.mubr.bf16.mxu0 %v459_v40  ;;  %v314_v39 = vld [vmem:[%s14422_s19 + $0x440] sm:$0xff]  ;;  %v13545_v40 = vld [vmem:[%s14374_s15 + $0x394] ss:$8 sps:$4 sm:$0xff]   ;;  %v10450_v22 = vld [vmem:[%s14422_s19 + $0xe08] sm:$0xff] }
 0x10d   : > { %4519 = vmatprep.mubr.bf16.mxu1 %v2908_v41  ;;  %2166 = vmatprep.subr.bf16.mxu0 %v13509_v47  ;;  %v13548_v41 = vld [vmem:[%s14374_s15 + $0x97c] ss:$8 sps:$4 sm:$0xff]   ;;  %v10414_v47 = vld [vmem:[%s14422_s19 + $0xce8] sm:$0xff]  ;;  %v494_v52 = vpack.c.bf16 %v314_v39, %v302_v38 }
 0x10e   : > { %4614 = vmatprep.subr.bf16.mxu1 %v13512_v48  ;;  %v13543_v48 = vld [vmem:[%s14374_s15 + $0x390] ss:$8 sps:$4 sm:$0xff]   ;;  %v10462_v23 = vld [vmem:[%s14422_s19 + $0xe68] sm:$0xff]  ;;  %v13581_v38 = vld [vmem:[%s14374_s15 + $0x3f4] ss:$8 sps:$4 sm:$0xff]  }
 0x10f   : > { %2167 = vmatpush1.bf16.msra.mxu0 %v13507_v46  ;;  %v10402_v46 = vld [vmem:[%s14422_s19 + $0xc88] sm:$0xff]  ;;  %v13584_v39 = vld [vmem:[%s14374_s15 + $0x9dc] ss:$8 sps:$4 sm:$0xff]  }
 0x110   : > { %4615 = vmatpush1.bf16.msra.mxu1 %v13510_v49  ;;  %2168 = vmatprep.subr.bf16.mxu0 %v13515_v50  ;;  %v13546_v49 = vld [vmem:[%s14374_s15 + $0x978] ss:$8 sps:$4 sm:$0xff]   ;;  %v13551_v50 = vld [vmem:[%s14374_s15 + $0x3a4] ss:$8 sps:$4 sm:$0xff]   ;;  %v2956_v55 = vpack.c.bf16 %v10414_v47, %v10402_v46 }
 0x111   : > { %4616 = vmatprep.subr.bf16.mxu1 %v13518_v51  ;;  %v13554_v51 = vld [vmem:[%s14374_s15 + $0x98c] ss:$8 sps:$4 sm:$0xff]  }
 0x112   : > { %2072 = vmatmul.mubr.bf16.gmra.mrb[8].mxu0 %v458_v56  ;;  %v13549_v56 = vld [vmem:[%s14374_s15 + $0x3a0] ss:$8 sps:$4 sm:$0xff]   ;;  %v13587_v46 = vld [vmem:[%s14374_s15 + $0x404] ss:$8 sps:$4 sm:$0xff]  }
 0x113   : > { %4520 = vmatmul.mubr.bf16.gmra.mrb[8].mxu1 %v2907_v57  ;;  %2081 = vmatprep.mubr.bf16.mxu0 %v471_v59  ;;  %v13552_v57 = vld [vmem:[%s14374_s15 + $0x988] ss:$8 sps:$4 sm:$0xff]   ;;  %v338_v59 = vld [vmem:[%s14422_s19 + $0x500] sm:$0xff]  ;;  %v13590_v47 = vld [vmem:[%s14374_s15 + $0x9ec] ss:$8 sps:$4 sm:$0xff]  }
 0x114   : > { %2169 = vmatpush1.bf16.msra.mxu0 %v13513_v58  ;;  %4529 = vmatprep.mubr.bf16.mxu1 %v2920_v61  ;;  %v326_v58 = vld [vmem:[%s14422_s19 + $0x4a0] sm:$0xff] }
 0x115   : > { %4617 = vmatpush1.bf16.msra.mxu1 %v13516_v60  ;;  %2170 = vmatprep.subr.bf16.mxu0 %v13521_v3  ;;  %v10401_v60 = vld [vmem:[%s14422_s19 + $0xc80] sm:$0xff]  ;;  %v10438_v3 = vld [vmem:[%s14422_s19 + $0xda8] sm:$0xff]  ;;  %v506_v8 = vpack.c.bf16 %v338_v59, %v326_v58 }
 0x116   : > { %4618 = vmatprep.subr.bf16.mxu1 %v13524_v4  ;;  %v10413_v61 = vld [vmem:[%s14422_s19 + $0xce0] sm:$0xff]  ;;  %v13555_v4 = vld [vmem:[%s14374_s15 + $0x3b0] ss:$8 sps:$4 sm:$0xff]  }
 0x117   : > { %v2955_v9 = vpack.c.bf16 %v10413_v61, %v10401_v60 }
 0x118   : > { %2171 = vmatpush1.bf16.msra.mxu0 %v13519_v2  ;;  %v10426_v2 = vld [vmem:[%s14422_s19 + $0xd48] sm:$0xff] }
 0x119   : > { %4619 = vmatpush1.bf16.msra.mxu1 %v13522_v5  ;;  %2172 = vmatprep.subr.bf16.mxu0 %v13527_v10  ;;  %v13558_v5 = vld [vmem:[%s14374_s15 + $0x998] ss:$8 sps:$4 sm:$0xff]   ;;  %v519_v10 = vpack.c.bf16 %v363_v1, %v351_v0 }
 0x11a   : > { %4620 = vmatprep.subr.bf16.mxu1 %v13530_v11  ;;  %2082 = vmatmul.mubr.bf16.gmra.mrb[12].mxu0 %v470_v12  ;;  %v2968_v11 = vpack.c.bf16 %v10438_v3, %v10426_v2  ;;  %v13561_v12 = vld [vmem:[%s14374_s15 + $0x3c0] ss:$8 sps:$4 sm:$0xff]   ;;  %v185_v0 = vld [vmem:[%s14422_s19 + $0x38] sm:$0xff] }
 0x11b   : > { %4530 = vmatmul.mubr.bf16.gmra.mrb[12].mxu1 %v2919_v13  ;;  %2091 = vmatprep.mubr.bf16.mxu0 %v483_v14  ;;  %v13564_v13 = vld [vmem:[%s14374_s15 + $0x9a8] ss:$8 sps:$4 sm:$0xff]   ;;  %v350_v14 = vld [vmem:[%s14422_s19 + $0x560] sm:$0xff]  ;;  %v197_v1 = vld [vmem:[%s14422_s19 + $0x98] sm:$0xff] }
 0x11c   : > { %4539 = vmatprep.mubr.bf16.mxu1 %v2932_v15  ;;  %2173 = vmatpush1.bf16.msra.mxu0 %v13525_v16  ;;  %v362_v15 = vld [vmem:[%s14422_s19 + $0x5c0] sm:$0xff]  ;;  %v10260_v2 = vld [vmem:[%s14422_s19 + $0x818] sm:$0xff] }
 0x11d   : > { %4621 = vmatpush1.bf16.msra.mxu1 %v13528_v17  ;;  %2174 = vmatprep.subr.bf16.mxu0 %v13533_v20  ;;  %v10425_v16 = vld [vmem:[%s14422_s19 + $0xd40] sm:$0xff]  ;;  %v375_v20 = vld [vmem:[%s14422_s19 + $0x628] sm:$0xff]  ;;  %v518_v28 = vpack.c.bf16 %v362_v15, %v350_v14  ;;  %v10272_v3 = vld [vmem:[%s14422_s19 + $0x878] sm:$0xff] }
 0x11e   : > { %4622 = vmatprep.subr.bf16.mxu1 %v13536_v21  ;;  %v10437_v17 = vld [vmem:[%s14422_s19 + $0xda0] sm:$0xff]  ;;  %v387_v21 = vld [vmem:[%s14422_s19 + $0x688] sm:$0xff]  ;;  %v10284_v14 = vld [vmem:[%s14422_s19 + $0x8d8] sm:$0xff] }
 0x120   : > { %2175 = vmatpush1.bf16.msra.mxu0 %v13531_v26  ;;  %v13575_v26 = vld [vmem:[%s14374_s15 + $0x3e4] ss:$8 sps:$4 sm:$0xff]  }
 0x121   : > { %4623 = vmatpush1.bf16.msra.mxu1 %v13534_v29  ;;  %2176 = vmatprep.subr.bf16.mxu0 %v13539_v30  ;;  %v2967_v29 = vpack.c.bf16 %v10437_v17, %v10425_v16  ;;  %v531_v30 = vpack.c.bf16 %v387_v21, %v375_v20  ;;  %v10296_v17 = vld [vmem:[%s14422_s19 + $0x938] sm:$0xff] }
 0x122   : > { %4624 = vmatprep.subr.bf16.mxu1 %v13542_v31  ;;  %2092 = vmatmul.mubr.bf16.gmra.mrb[16].mxu0 %v482_v32  ;;  %v2980_v31 = vpack.c.bf16 %v10462_v23, %v10450_v22  ;;  %v13573_v32 = vld [vmem:[%s14374_s15 + $0x3e0] ss:$8 sps:$4 sm:$0xff]   ;;  %v13593_v20 = vld [vmem:[%s14374_s15 + $0x414] ss:$8 sps:$4 sm:$0xff]   ;;  %v13591_v22 = vld [vmem:[%s14374_s15 + $0x410] ss:$8 sps:$4 sm:$0xff]  }
 0x123   : > { %4540 = vmatmul.mubr.bf16.gmra.mrb[16].mxu1 %v2931_v33  ;;  %2101 = vmatprep.mubr.bf16.mxu0 %v495_v34  ;;  %v13576_v33 = vld [vmem:[%s14374_s15 + $0x9c8] ss:$8 sps:$4 sm:$0xff]   ;;  %v374_v34 = vld [vmem:[%s14422_s19 + $0x620] sm:$0xff] }
 0x124   : > { %4549 = vmatprep.mubr.bf16.mxu1 %v2944_v35  ;;  %2177 = vmatpush1.bf16.msra.mxu0 %v13537_v36  ;;  %v386_v35 = vld [vmem:[%s14422_s19 + $0x680] sm:$0xff] }
 0x125   : > { %4625 = vmatpush1.bf16.msra.mxu1 %v13540_v37  ;;  %2178 = vmatprep.subr.bf16.mxu0 %v13545_v40  ;;  %v10449_v36 = vld [vmem:[%s14422_s19 + $0xe00] sm:$0xff]  ;;  %v399_v40 = vld [vmem:[%s14422_s19 + $0x6e8] sm:$0xff] }
 0x126   : > { %4626 = vmatprep.subr.bf16.mxu1 %v13548_v41  ;;  %v10461_v37 = vld [vmem:[%s14422_s19 + $0xe60] sm:$0xff]  ;;  %v411_v41 = vld [vmem:[%s14422_s19 + $0x748] sm:$0xff] }
 0x127   : > { %v13596_v21 = vld [vmem:[%s14374_s15 + $0x9fc] ss:$8 sps:$4 sm:$0xff]   ;;  %v13594_v23 = vld [vmem:[%s14374_s15 + $0x9f8] ss:$8 sps:$4 sm:$0xff]  }
 0x128   : > { %2179 = vmatpush1.bf16.msra.mxu0 %v13543_v48  ;;  %v530_v48 = vpack.c.bf16 %v386_v35, %v374_v34  ;;  %v10308_v34 = vld [vmem:[%s14422_s19 + $0x998] sm:$0xff] }
 0x129   : > { %4627 = vmatpush1.bf16.msra.mxu1 %v13546_v49  ;;  %2180 = vmatprep.subr.bf16.mxu0 %v13551_v50  ;;  %v2979_v49 = vpack.c.bf16 %v10461_v37, %v10449_v36  ;;  %v543_v50 = vpack.c.bf16 %v411_v41, %v399_v40  ;;  %v10320_v35 = vld [vmem:[%s14422_s19 + $0x9f8] sm:$0xff] }
 0x12a   : > { %4628 = vmatprep.subr.bf16.mxu1 %v13554_v51  ;;  %2102 = vmatmul.mubr.bf16.gmra.mrb[20].mxu0 %v494_v52  ;;  %v2992_v51 = vpack.c.bf16 %v10486_v43, %v10474_v42  ;;  %v398_v52 = vld [vmem:[%s14422_s19 + $0x6e0] sm:$0xff]  ;;  %v2910_v41 = vpack.c.bf16 %v10320_v35, %v10308_v34  ;;  %v232_v42 = vld [vmem:[%s14422_s19 + $0x1b0] sm:$0xff] }
 0x12b   : > { %4550 = vmatmul.mubr.bf16.gmra.mrb[20].mxu1 %v2943_v53  ;;  %2111 = vmatprep.mubr.bf16.mxu0 %v507_v54  ;;  %v410_v53 = vld [vmem:[%s14422_s19 + $0x740] sm:$0xff]  ;;  %v244_v43 = vld [vmem:[%s14422_s19 + $0x210] sm:$0xff] }
 0x12c   : > { %4559 = vmatprep.mubr.bf16.mxu1 %v2956_v55  ;;  %2181 = vmatpush1.bf16.msra.mxu0 %v13549_v56  ;;  %v10473_v54 = vld [vmem:[%s14422_s19 + $0xec0] sm:$0xff]  ;;  %v423_v56 = vld [vmem:[%s14422_s19 + $0x7a8] sm:$0xff]  ;;  %v542_v58 = vpack.c.bf16 %v410_v53, %v398_v52  ;;  %v257_v52 = vld [vmem:[%s14422_s19 + $0x278] sm:$0xff] }
 0x12d   : > { %4629 = vmatpush1.bf16.msra.mxu1 %v13552_v57  ;;  %2182 = vmatprep.subr.bf16.mxu0 %v13557_v62  ;;  %v10485_v55 = vld [vmem:[%s14422_s19 + $0xf20] sm:$0xff]  ;;  %v10498_v57 = vld [vmem:[%s14422_s19 + $0xf88] sm:$0xff]  ;;  %v555_v60 = vpack.c.bf16 %v423_v56, %v423_v56  ;;  %v269_v53 = vld [vmem:[%s14422_s19 + $0x2d8] sm:$0xff]  ;;  %v460_v56 = vpack.c.bf16 %v244_v43, %v232_v42 }
 0x12e   : > { %4630 = vmatprep.subr.bf16.mxu1 %v13560_v63  ;;  %v2991_v59 = vpack.c.bf16 %v10485_v55, %v10473_v54  ;;  %v3004_v61 = vpack.c.bf16 %v10498_v57, %v10498_v57  ;;  %v422_v62 = vld [vmem:[%s14422_s19 + $0x7a0] sm:$0xff]  ;;  %v10332_v54 = vld [vmem:[%s14422_s19 + $0xa58] sm:$0xff] }
 0x12f   : > { %v10497_v63 = vld [vmem:[%s14422_s19 + $0xf80] sm:$0xff]  ;;  %v10344_v55 = vld [vmem:[%s14422_s19 + $0xab8] sm:$0xff] }
 0x130   : > { %2183 = vmatpush1.bf16.msra.mxu0 %v13555_v4  ;;  %v554_v4 = vpack.c.bf16 %v422_v62, %v422_v62  ;;  %v13617_v62 = vld [vmem:[%s14374_s15 + $0x454] ss:$8 sps:$4 sm:$0xff]  }
 0x131   : > { %4631 = vmatpush1.bf16.msra.mxu1 %v13558_v5  ;;  %2184 = vmatprep.subr.bf16.mxu0 %v13563_v6  ;;  %v3003_v5 = vpack.c.bf16 %v10497_v63, %v10497_v63  ;;  %v437_v6 = vpack.c.bf16 %v197_v1, %v185_v0  ;;  %v256_v63 = vld [vmem:[%s14422_s19 + $0x270] sm:$0xff]  ;;  %v13644_v43 = vld [vmem:[%s14374_s15 + $0xa7c] ss:$8 sps:$4 sm:$0xff]  }
 0x132   : > { %4632 = vmatprep.subr.bf16.mxu1 %v13566_v7  ;;  %2112 = vmatmul.mubr.bf16.gmra.mrb[24].mxu0 %v506_v8  ;;  %v2886_v7 = vpack.c.bf16 %v10272_v3, %v10260_v2  ;;  %v184_v8 = vld [vmem:[%s14422_s19 + $0x30] sm:$0xff] }
 0x133   : > { %4560 = vmatmul.mubr.bf16.gmra.mrb[24].mxu1 %v2955_v9  ;;  %2121 = vmatprep.mubr.bf16.mxu0 %v519_v10  ;;  %v196_v9 = vld [vmem:[%s14422_s19 + $0x90] sm:$0xff] }
 0x134   : > { %4569 = vmatprep.mubr.bf16.mxu1 %v2968_v11  ;;  %2185 = vmatpush1.bf16.msra.mxu0 %v13561_v12  ;;  %v10259_v10 = vld [vmem:[%s14422_s19 + $0x810] sm:$0xff]  ;;  %v209_v12 = vld [vmem:[%s14422_s19 + $0xf8] sm:$0xff]  ;;  %v436_v15 = vpack.c.bf16 %v196_v9, %v184_v8 }
 0x135   : > { %4633 = vmatpush1.bf16.msra.mxu1 %v13564_v13  ;;  %2186 = vmatprep.subr.bf16.mxu0 %v13569_v18  ;;  %v10271_v11 = vld [vmem:[%s14422_s19 + $0x870] sm:$0xff]  ;;  %v221_v13 = vld [vmem:[%s14422_s19 + $0x158] sm:$0xff]  ;;  %v13585_v18 = vld [vmem:[%s14374_s15 + $0x400] ss:$8 sps:$4 sm:$0xff]  }
 0x136   : > { %4634 = vmatprep.subr.bf16.mxu1 %v13572_v19  ;;  %v2885_v16 = vpack.c.bf16 %v10271_v11, %v10259_v10  ;;  %v13588_v19 = vld [vmem:[%s14374_s15 + $0x9e8] ss:$8 sps:$4 sm:$0xff]   ;;  %v10356_v8 = vld [vmem:[%s14422_s19 + $0xb18] sm:$0xff]  ;;  %v13623_v10 = vld [vmem:[%s14374_s15 + $0x464] ss:$8 sps:$4 sm:$0xff]  }
 0x137   : > { %v268_v0 = vld [vmem:[%s14422_s19 + $0x2d0] sm:$0xff]  ;;  %v10368_v9 = vld [vmem:[%s14422_s19 + $0xb78] sm:$0xff] }
 0x138   : > { %2187 = vmatpush1.bf16.msra.mxu0 %v13567_v24  ;;  %v449_v24 = vpack.c.bf16 %v221_v13, %v209_v12  ;;  %v10331_v1 = vld [vmem:[%s14422_s19 + $0xa50] sm:$0xff]  ;;  %v472_v12 = vpack.c.bf16 %v268_v0, %v256_v63  ;;  %v353_v0 = vld [vmem:[%s14422_s19 + $0x578] sm:$0xff] }
 0x139   : > { %4635 = vmatpush1.bf16.msra.mxu1 %v13570_v25  ;;  %2188 = vmatprep.subr.bf16.mxu0 %v13575_v26  ;;  %v2898_v25 = vpack.c.bf16 %v10296_v17, %v10284_v14  ;;  %v208_v26 = vld [vmem:[%s14422_s19 + $0xf0] sm:$0xff] }
 0x13a   : > { %4636 = vmatprep.subr.bf16.mxu1 %v13578_v27  ;;  %2122 = vmatmul.mubr.bf16.gmra.mrb[28].mxu0 %v518_v28  ;;  %v220_v27 = vld [vmem:[%s14422_s19 + $0x150] sm:$0xff] }
 0x13b   : > { %4570 = vmatmul.mubr.bf16.gmra.mrb[28].mxu1 %v2967_v29  ;;  %2131 = vmatprep.mubr.bf16.mxu0 %v531_v30  ;;  %v10283_v28 = vld [vmem:[%s14422_s19 + $0x8d0] sm:$0xff]  ;;  %v13599_v30 = vld [vmem:[%s14374_s15 + $0x424] ss:$8 sps:$4 sm:$0xff]   ;;  %v448_v36 = vpack.c.bf16 %v220_v27, %v208_v26  ;;  %v10380_v27 = vld [vmem:[%s14422_s19 + $0xbd8] sm:$0xff] }
 0x13c   : > { %4579 = vmatprep.mubr.bf16.mxu1 %v2980_v31  ;;  %2189 = vmatpush1.bf16.msra.mxu0 %v13573_v32  ;;  %v10295_v29 = vld [vmem:[%s14422_s19 + $0x930] sm:$0xff]  ;;  %v233_v32 = vld [vmem:[%s14422_s19 + $0x1b8] sm:$0xff] }
 0x13d   : > { %4637 = vmatpush1.bf16.msra.mxu1 %v13576_v33  ;;  %2190 = vmatprep.subr.bf16.mxu0 %v13581_v38  ;;  %v13602_v31 = vld [vmem:[%s14374_s15 + $0xa0c] ss:$8 sps:$4 sm:$0xff]   ;;  %v245_v33 = vld [vmem:[%s14422_s19 + $0x218] sm:$0xff]  ;;  %v2897_v37 = vpack.c.bf16 %v10295_v29, %v10283_v28  ;;  %v13597_v38 = vld [vmem:[%s14374_s15 + $0x420] ss:$8 sps:$4 sm:$0xff]  }
 0x13e   : > { %4638 = vmatprep.subr.bf16.mxu1 %v13584_v39  ;;  %v13600_v39 = vld [vmem:[%s14374_s15 + $0xa08] ss:$8 sps:$4 sm:$0xff]   ;;  %v461_v40 = vpack.c.bf16 %v245_v33, %v233_v32  ;;  %v13626_v11 = vld [vmem:[%s14374_s15 + $0xa4c] ss:$8 sps:$4 sm:$0xff]   ;;  %v10392_v28 = vld [vmem:[%s14422_s19 + $0xc38] sm:$0xff] }
 0x13f   : > { %v10343_v2 = vld [vmem:[%s14422_s19 + $0xab0] sm:$0xff]  ;;  %v13630_v29 = vld [vmem:[%s14374_s15 + $0xa58] ss:$8 sps:$4 sm:$0xff]   ;;  %v2946_v35 = vpack.c.bf16 %v10392_v28, %v10380_v27 }
 0x140   : > { %2191 = vmatpush1.bf16.msra.mxu0 %v13579_v44  ;;  %v10307_v44 = vld [vmem:[%s14422_s19 + $0x990] sm:$0xff]  ;;  %v2921_v13 = vpack.c.bf16 %v10343_v2, %v10331_v1  ;;  %v365_v1 = vld [vmem:[%s14422_s19 + $0x5d8] sm:$0xff] }
 0x141   : > { %4639 = vmatpush1.bf16.msra.mxu1 %v13582_v45  ;;  %2301 = vmatprep.subr.bf16.mxu0 %v13587_v46  ;;  %v13605_v45 = vld [vmem:[%s14374_s15 + $0x434] ss:$8 sps:$4 sm:$0xff]   ;;  %v13615_v3 = vld [vmem:[%s14374_s15 + $0x450] ss:$8 sps:$4 sm:$0xff]  }
 0x142   : > { %4749 = vmatprep.subr.bf16.mxu1 %v13590_v47  ;;  %2132 = vmatmul.mubr.bf16.gmra.mrb[32].mxu0 %v530_v48  ;;  %v13608_v46 = vld [vmem:[%s14374_s15 + $0xa1c] ss:$8 sps:$4 sm:$0xff]   ;;  %v10319_v47 = vld [vmem:[%s14422_s19 + $0x9f0] sm:$0xff] }
 0x143   : > { %4580 = vmatmul.mubr.bf16.gmra.mrb[32].mxu1 %v2979_v49  ;;  %2141 = vmatprep.mubr.bf16.mxu0 %v543_v50  ;;  %v13603_v48 = vld [vmem:[%s14374_s15 + $0x430] ss:$8 sps:$4 sm:$0xff]   ;;  %v13611_v50 = vld [vmem:[%s14374_s15 + $0x444] ss:$8 sps:$4 sm:$0xff]   ;;  %v2909_v57 = vpack.c.bf16 %v10319_v47, %v10307_v44  ;;  %v13641_v42 = vld [vmem:[%s14374_s15 + $0x494] ss:$8 sps:$4 sm:$0xff]  }
 0x144   : > { %4589 = vmatprep.mubr.bf16.mxu1 %v2992_v51  ;;  %v13606_v49 = vld [vmem:[%s14374_s15 + $0xa18] ss:$8 sps:$4 sm:$0xff]   ;;  %v13614_v51 = vld [vmem:[%s14374_s15 + $0xa2c] ss:$8 sps:$4 sm:$0xff]   ;;  %v13624_v17 = vld [vmem:[%s14374_s15 + $0xa48] ss:$8 sps:$4 sm:$0xff]  }
 0x145   : > { %v13627_v26 = vld [vmem:[%s14374_s15 + $0x470] ss:$8 sps:$4 sm:$0xff]   ;;  %v13674_v27 = vld [vmem:[%s14374_s15 + $0xacc] ss:$8 sps:$4 sm:$0xff]  }
 0x146   : > { %v329_v44 = vld [vmem:[%s14422_s19 + $0x4b8] sm:$0xff]  ;;  %v10415_v63 = vld [vmem:[%s14422_s19 + $0xcf0] sm:$0xff] }
 0x147   : > { %v10416_v47 = vld [vmem:[%s14422_s19 + $0xcf8] sm:$0xff] }
 0x148   : > { %v10428_v2 = vld [vmem:[%s14422_s19 + $0xd58] sm:$0xff] }
 0x14a   : > { %2142 = vmatmul.mubr.bf16.gmra.mrb[36].mxu0 %v542_v58  ;;  %v13609_v58 = vld [vmem:[%s14374_s15 + $0x440] ss:$8 sps:$4 sm:$0xff]  }
 0x14b   : > { %4590 = vmatmul.mubr.bf16.gmra.mrb[36].mxu1 %v2991_v59  ;;  %2151 = vmatprep.mubr.bf16.mxu0 %v555_v60  ;;  %v473_v59 = vpack.c.bf16 %v269_v53, %v257_v52  ;;  %v13612_v60 = vld [vmem:[%s14374_s15 + $0xa28] ss:$8 sps:$4 sm:$0xff]  }
 0x14c   : > { %4599 = vmatprep.mubr.bf16.mxu1 %v3004_v61  ;;  %v2922_v61 = vpack.c.bf16 %v10344_v55, %v10332_v54 }
 0x152   : > { %2152 = vmatmul.mubr.bf16.gmra.mrb[40].mxu0 %v554_v4  ;;  %v13620_v4 = vld [vmem:[%s14374_s15 + $0xa3c] ss:$8 sps:$4 sm:$0xff]  }
 0x153   : > { %4600 = vmatmul.mubr.bf16.gmra.mrb[40].mxu1 %v3003_v5  ;;  %2192 = vmatprep.mubr.bf16.mxu0 %v437_v6  ;;  %v13618_v5 = vld [vmem:[%s14374_s15 + $0xa38] ss:$8 sps:$4 sm:$0xff]  }
 0x154   : > { %4640 = vmatprep.mubr.bf16.mxu1 %v2886_v7  ;;  %v281_v6 = vld [vmem:[%s14422_s19 + $0x338] sm:$0xff] }
 0x155   : > { %v293_v7 = vld [vmem:[%s14422_s19 + $0x398] sm:$0xff] }
 0x156   : > { %v485_v14 = vpack.c.bf16 %v293_v7, %v281_v6  ;;  %v13659_v6 = vld [vmem:[%s14374_s15 + $0x4c4] ss:$8 sps:$4 sm:$0xff]  }
 0x157   : > { %v13662_v7 = vld [vmem:[%s14374_s15 + $0xaac] ss:$8 sps:$4 sm:$0xff]  }
 0x15a   : > { %2193 = vmatmul.mubr.bf16.vlgmr.msra.gmra.mrb[0].mxu0 %v436_v15  ;;  %v2934_v15 = vpack.c.bf16 %v10368_v9, %v10356_v8 }
 0x15b   : > { %4641 = vmatmul.mubr.bf16.vlgmr.msra.gmra.mrb[0].mxu1 %v2885_v16  ;;  %2302 = vmatpush1.bf16.msra.mxu0 %v13585_v18  ;;  %v13621_v16 = vld [vmem:[%s14374_s15 + $0x460] ss:$8 sps:$4 sm:$0xff]   ;;  %v280_v18 = vld [vmem:[%s14422_s19 + $0x330] sm:$0xff] }
 0x15c   : > { %4750 = vmatpush1.bf16.msra.mxu1 %v13588_v19  ;;  %2303 = vmatprep.subr.bf16.mxu0 %v13593_v20  ;;  %v292_v19 = vld [vmem:[%s14422_s19 + $0x390] sm:$0xff] }
 0x15d   : > { %4751 = vmatprep.subr.bf16.mxu1 %v13596_v21  ;;  %2202 = vmatprep.mubr.bf16.mxu0 %v449_v24  ;;  %v10355_v20 = vld [vmem:[%s14422_s19 + $0xb10] sm:$0xff]  ;;  %v305_v24 = vld [vmem:[%s14422_s19 + $0x3f8] sm:$0xff]  ;;  %v484_v32 = vpack.c.bf16 %v292_v19, %v280_v18 }
 0x15e   : > { %4650 = vmatprep.mubr.bf16.mxu1 %v2898_v25  ;;  %v10367_v21 = vld [vmem:[%s14422_s19 + $0xb70] sm:$0xff]  ;;  %v317_v25 = vld [vmem:[%s14422_s19 + $0x458] sm:$0xff] }
 0x15f   : > { %2304 = vmatpush1.bf16.msra.mxu0 %v13591_v22  ;;  %v13629_v22 = vld [vmem:[%s14374_s15 + $0x474] ss:$8 sps:$4 sm:$0xff]   ;;  %v2933_v33 = vpack.c.bf16 %v10367_v21, %v10355_v20  ;;  %v497_v34 = vpack.c.bf16 %v317_v25, %v305_v24  ;;  %v13663_v24 = vld [vmem:[%s14374_s15 + $0x4d0] ss:$8 sps:$4 sm:$0xff]  }
 0x160   : > { %4752 = vmatpush1.bf16.msra.mxu1 %v13594_v23  ;;  %2305 = vmatprep.subr.bf16.mxu0 %v13599_v30  ;;  %v13632_v23 = vld [vmem:[%s14374_s15 + $0xa5c] ss:$8 sps:$4 sm:$0xff]   ;;  %v13666_v25 = vld [vmem:[%s14374_s15 + $0xab8] ss:$8 sps:$4 sm:$0xff]  }
 0x161   : > { %4753 = vmatprep.subr.bf16.mxu1 %v13602_v31  ;;  %v13635_v30 = vld [vmem:[%s14374_s15 + $0x484] ss:$8 sps:$4 sm:$0xff]   ;;  %v13665_v18 = vld [vmem:[%s14374_s15 + $0x4d4] ss:$8 sps:$4 sm:$0xff]  }
 0x162   : > { %2203 = vmatmul.mubr.bf16.gmra.mrb[4].mxu0 %v448_v36  ;;  %v13638_v31 = vld [vmem:[%s14374_s15 + $0xa6c] ss:$8 sps:$4 sm:$0xff]   ;;  %v13633_v36 = vld [vmem:[%s14374_s15 + $0x480] ss:$8 sps:$4 sm:$0xff]   ;;  %v13668_v19 = vld [vmem:[%s14374_s15 + $0xabc] ss:$8 sps:$4 sm:$0xff]  }
 0x163   : > { %4651 = vmatmul.mubr.bf16.gmra.mrb[4].mxu1 %v2897_v37  ;;  %2306 = vmatpush1.bf16.msra.mxu0 %v13597_v38  ;;  %v13636_v37 = vld [vmem:[%s14374_s15 + $0xa68] ss:$8 sps:$4 sm:$0xff]   ;;  %v377_v20 = vld [vmem:[%s14422_s19 + $0x638] sm:$0xff] }
 0x164   : > { %4754 = vmatpush1.bf16.msra.mxu1 %v13600_v39  ;;  %2212 = vmatprep.mubr.bf16.mxu0 %v461_v40  ;;  %v304_v38 = vld [vmem:[%s14422_s19 + $0x3f0] sm:$0xff]  ;;  %v389_v21 = vld [vmem:[%s14422_s19 + $0x698] sm:$0xff] }
 0x165   : > { %4660 = vmatprep.mubr.bf16.mxu1 %v2910_v41  ;;  %2307 = vmatprep.subr.bf16.mxu0 %v13605_v45  ;;  %v316_v39 = vld [vmem:[%s14422_s19 + $0x450] sm:$0xff]  ;;  %v341_v45 = vld [vmem:[%s14422_s19 + $0x518] sm:$0xff] }
 0x166   : > { %4755 = vmatprep.subr.bf16.mxu1 %v13608_v46  ;;  %v10379_v40 = vld [vmem:[%s14422_s19 + $0xbd0] sm:$0xff]  ;;  %v10404_v46 = vld [vmem:[%s14422_s19 + $0xc98] sm:$0xff]  ;;  %v496_v52 = vpack.c.bf16 %v316_v39, %v304_v38  ;;  %v509_v54 = vpack.c.bf16 %v341_v45, %v329_v44 }
 0x167   : > { %2308 = vmatpush1.bf16.msra.mxu0 %v13603_v48  ;;  %v10391_v41 = vld [vmem:[%s14422_s19 + $0xc30] sm:$0xff]  ;;  %v2958_v55 = vpack.c.bf16 %v10416_v47, %v10404_v46  ;;  %v13680_v39 = vld [vmem:[%s14374_s15 + $0xadc] ss:$8 sps:$4 sm:$0xff]   ;;  %v13678_v45 = vld [vmem:[%s14374_s15 + $0xad8] ss:$8 sps:$4 sm:$0xff]  }
 0x168   : > { %4756 = vmatpush1.bf16.msra.mxu1 %v13606_v49  ;;  %2309 = vmatprep.subr.bf16.mxu0 %v13611_v50  ;;  %v13639_v48 = vld [vmem:[%s14374_s15 + $0x490] ss:$8 sps:$4 sm:$0xff]   ;;  %v13647_v50 = vld [vmem:[%s14374_s15 + $0x4a4] ss:$8 sps:$4 sm:$0xff]   ;;  %v2945_v53 = vpack.c.bf16 %v10391_v41, %v10379_v40  ;;  %v13677_v38 = vld [vmem:[%s14374_s15 + $0x4f4] ss:$8 sps:$4 sm:$0xff]  }
 0x169   : > { %4757 = vmatprep.subr.bf16.mxu1 %v13614_v51  ;;  %v13642_v49 = vld [vmem:[%s14374_s15 + $0xa78] ss:$8 sps:$4 sm:$0xff]   ;;  %v13650_v51 = vld [vmem:[%s14374_s15 + $0xa8c] ss:$8 sps:$4 sm:$0xff]  }
 0x16a   : > { %2213 = vmatmul.mubr.bf16.gmra.mrb[8].mxu0 %v460_v56  ;;  %v13645_v56 = vld [vmem:[%s14374_s15 + $0x4a0] ss:$8 sps:$4 sm:$0xff]   ;;  %v401_v40 = vld [vmem:[%s14422_s19 + $0x6f8] sm:$0xff]  ;;  %v13683_v46 = vld [vmem:[%s14374_s15 + $0x504] ss:$8 sps:$4 sm:$0xff]  }
 0x16b   : > { %4661 = vmatmul.mubr.bf16.gmra.mrb[8].mxu1 %v2909_v57  ;;  %2222 = vmatprep.mubr.bf16.mxu0 %v473_v59  ;;  %v13648_v57 = vld [vmem:[%s14374_s15 + $0xa88] ss:$8 sps:$4 sm:$0xff]   ;;  %v413_v41 = vld [vmem:[%s14422_s19 + $0x758] sm:$0xff]  ;;  %v13686_v47 = vld [vmem:[%s14374_s15 + $0xaec] ss:$8 sps:$4 sm:$0xff]  }
 0x16c   : > { %2310 = vmatpush1.bf16.msra.mxu0 %v13609_v58  ;;  %4670 = vmatprep.mubr.bf16.mxu1 %v2922_v61  ;;  %v328_v58 = vld [vmem:[%s14422_s19 + $0x4b0] sm:$0xff] }
 0x16d   : > { %4758 = vmatpush1.bf16.msra.mxu1 %v13612_v60  ;;  %2311 = vmatprep.subr.bf16.mxu0 %v13617_v62  ;;  %v340_v59 = vld [vmem:[%s14422_s19 + $0x510] sm:$0xff]  ;;  %v13656_v62 = vld [vmem:[%s14374_s15 + $0xa9c] ss:$8 sps:$4 sm:$0xff]  }
 0x16e   : > { %4759 = vmatprep.subr.bf16.mxu1 %v13620_v4  ;;  %v10403_v60 = vld [vmem:[%s14422_s19 + $0xc90] sm:$0xff]  ;;  %v508_v8 = vpack.c.bf16 %v340_v59, %v328_v58 }
 0x16f   : > { %v13653_v61 = vld [vmem:[%s14374_s15 + $0x4b4] ss:$8 sps:$4 sm:$0xff]   ;;  %v13651_v4 = vld [vmem:[%s14374_s15 + $0x4b0] ss:$8 sps:$4 sm:$0xff]   ;;  %v2957_v9 = vpack.c.bf16 %v10415_v63, %v10403_v60 }
 0x170   : > { %2312 = vmatpush1.bf16.msra.mxu0 %v13615_v3  ;;  %v10440_v3 = vld [vmem:[%s14422_s19 + $0xdb8] sm:$0xff]  ;;  %v10499_v63 = vld [vmem:[%s14422_s19 + $0xf90] sm:$0xff] }
 0x171   : > { %4760 = vmatpush1.bf16.msra.mxu1 %v13618_v5  ;;  %2313 = vmatprep.subr.bf16.mxu0 %v13623_v10  ;;  %v13654_v5 = vld [vmem:[%s14374_s15 + $0xa98] ss:$8 sps:$4 sm:$0xff]   ;;  %v521_v10 = vpack.c.bf16 %v365_v1, %v353_v0  ;;  %v187_v0 = vld [vmem:[%s14422_s19 + $0x48] sm:$0xff] }
 0x172   : > { %4761 = vmatprep.subr.bf16.mxu1 %v13626_v11  ;;  %2223 = vmatmul.mubr.bf16.gmra.mrb[12].mxu0 %v472_v12  ;;  %v2970_v11 = vpack.c.bf16 %v10440_v3, %v10428_v2  ;;  %v13657_v12 = vld [vmem:[%s14374_s15 + $0x4c0] ss:$8 sps:$4 sm:$0xff]   ;;  %v13675_v44 = vld [vmem:[%s14374_s15 + $0x4f0] ss:$8 sps:$4 sm:$0xff]  }
 0x173   : > { %4671 = vmatmul.mubr.bf16.gmra.mrb[12].mxu1 %v2921_v13  ;;  %2232 = vmatprep.mubr.bf16.mxu0 %v485_v14  ;;  %v13660_v13 = vld [vmem:[%s14374_s15 + $0xaa8] ss:$8 sps:$4 sm:$0xff]  }
 0x174   : > { %4680 = vmatprep.mubr.bf16.mxu1 %v2934_v15  ;;  %2314 = vmatpush1.bf16.msra.mxu0 %v13621_v16  ;;  %v352_v14 = vld [vmem:[%s14422_s19 + $0x570] sm:$0xff]  ;;  %v199_v1 = vld [vmem:[%s14422_s19 + $0xa8] sm:$0xff] }
 0x175   : > { %4762 = vmatpush1.bf16.msra.mxu1 %v13624_v17  ;;  %2315 = vmatprep.subr.bf16.mxu0 %v13629_v22  ;;  %v364_v15 = vld [vmem:[%s14422_s19 + $0x5d0] sm:$0xff]  ;;  %v10452_v22 = vld [vmem:[%s14422_s19 + $0xe18] sm:$0xff]  ;;  %v10262_v2 = vld [vmem:[%s14422_s19 + $0x828] sm:$0xff] }
 0x176   : > { %4763 = vmatprep.subr.bf16.mxu1 %v13632_v23  ;;  %v10427_v16 = vld [vmem:[%s14422_s19 + $0xd50] sm:$0xff]  ;;  %v10464_v23 = vld [vmem:[%s14422_s19 + $0xe78] sm:$0xff]  ;;  %v520_v28 = vpack.c.bf16 %v364_v15, %v352_v14  ;;  %v10274_v3 = vld [vmem:[%s14422_s19 + $0x888] sm:$0xff] }
 0x177   : > { %v10439_v17 = vld [vmem:[%s14422_s19 + $0xdb0] sm:$0xff]  ;;  %v10286_v14 = vld [vmem:[%s14422_s19 + $0x8e8] sm:$0xff] }
 0x178   : > { %2316 = vmatpush1.bf16.msra.mxu0 %v13627_v26  ;;  %v13671_v26 = vld [vmem:[%s14374_s15 + $0x4e4] ss:$8 sps:$4 sm:$0xff]  }
 0x179   : > { %4764 = vmatpush1.bf16.msra.mxu1 %v13630_v29  ;;  %2317 = vmatprep.subr.bf16.mxu0 %v13635_v30  ;;  %v2969_v29 = vpack.c.bf16 %v10439_v17, %v10427_v16  ;;  %v533_v30 = vpack.c.bf16 %v389_v21, %v377_v20  ;;  %v10298_v17 = vld [vmem:[%s14422_s19 + $0x948] sm:$0xff]  ;;  %v13689_v20 = vld [vmem:[%s14374_s15 + $0x514] ss:$8 sps:$4 sm:$0xff]  }
 0x17a   : > { %4765 = vmatprep.subr.bf16.mxu1 %v13638_v31  ;;  %2233 = vmatmul.mubr.bf16.gmra.mrb[16].mxu0 %v484_v32  ;;  %v2982_v31 = vpack.c.bf16 %v10464_v23, %v10452_v22  ;;  %v13669_v32 = vld [vmem:[%s14374_s15 + $0x4e0] ss:$8 sps:$4 sm:$0xff]   ;;  %v13692_v21 = vld [vmem:[%s14374_s15 + $0xafc] ss:$8 sps:$4 sm:$0xff]   ;;  %v13687_v22 = vld [vmem:[%s14374_s15 + $0x510] ss:$8 sps:$4 sm:$0xff]  }
 0x17b   : > { %4681 = vmatmul.mubr.bf16.gmra.mrb[16].mxu1 %v2933_v33  ;;  %2242 = vmatprep.mubr.bf16.mxu0 %v497_v34  ;;  %v13672_v33 = vld [vmem:[%s14374_s15 + $0xac8] ss:$8 sps:$4 sm:$0xff]   ;;  %v13690_v23 = vld [vmem:[%s14374_s15 + $0xaf8] ss:$8 sps:$4 sm:$0xff]  }
 0x17c   : > { %4690 = vmatprep.mubr.bf16.mxu1 %v2946_v35  ;;  %2318 = vmatpush1.bf16.msra.mxu0 %v13633_v36  ;;  %v376_v34 = vld [vmem:[%s14422_s19 + $0x630] sm:$0xff] }
 0x17d   : > { %4766 = vmatpush1.bf16.msra.mxu1 %v13636_v37  ;;  %2319 = vmatprep.subr.bf16.mxu0 %v13641_v42  ;;  %v388_v35 = vld [vmem:[%s14422_s19 + $0x690] sm:$0xff]  ;;  %v10476_v42 = vld [vmem:[%s14422_s19 + $0xed8] sm:$0xff] }
 0x17e   : > { %4767 = vmatprep.subr.bf16.mxu1 %v13644_v43  ;;  %v10451_v36 = vld [vmem:[%s14422_s19 + $0xe10] sm:$0xff]  ;;  %v10488_v43 = vld [vmem:[%s14422_s19 + $0xf38] sm:$0xff] }
 0x17f   : > { %v10463_v37 = vld [vmem:[%s14422_s19 + $0xe70] sm:$0xff] }
 0x180   : > { %2320 = vmatpush1.bf16.msra.mxu0 %v13639_v48  ;;  %v532_v48 = vpack.c.bf16 %v388_v35, %v376_v34  ;;  %v10310_v34 = vld [vmem:[%s14422_s19 + $0x9a8] sm:$0xff] }
 0x181   : > { %4768 = vmatpush1.bf16.msra.mxu1 %v13642_v49  ;;  %2321 = vmatprep.subr.bf16.mxu0 %v13647_v50  ;;  %v2981_v49 = vpack.c.bf16 %v10463_v37, %v10451_v36  ;;  %v545_v50 = vpack.c.bf16 %v413_v41, %v401_v40  ;;  %v10322_v35 = vld [vmem:[%s14422_s19 + $0xa08] sm:$0xff] }
 0x182   : > { %4769 = vmatprep.subr.bf16.mxu1 %v13650_v51  ;;  %2243 = vmatmul.mubr.bf16.gmra.mrb[20].mxu0 %v496_v52  ;;  %v2994_v51 = vpack.c.bf16 %v10488_v43, %v10476_v42  ;;  %v400_v52 = vld [vmem:[%s14422_s19 + $0x6f0] sm:$0xff]  ;;  %v2912_v41 = vpack.c.bf16 %v10322_v35, %v10310_v34  ;;  %v234_v43 = vld [vmem:[%s14422_s19 + $0x1c0] sm:$0xff] }
 0x183   : > { %4691 = vmatmul.mubr.bf16.gmra.mrb[20].mxu1 %v2945_v53  ;;  %2252 = vmatprep.mubr.bf16.mxu0 %v509_v54  ;;  %v412_v53 = vld [vmem:[%s14422_s19 + $0x750] sm:$0xff] }
 0x184   : > { %4700 = vmatprep.mubr.bf16.mxu1 %v2958_v55  ;;  %2322 = vmatpush1.bf16.msra.mxu0 %v13645_v56  ;;  %v10475_v54 = vld [vmem:[%s14422_s19 + $0xed0] sm:$0xff]  ;;  %v425_v56 = vld [vmem:[%s14422_s19 + $0x7b8] sm:$0xff]  ;;  %v544_v58 = vpack.c.bf16 %v412_v53, %v400_v52  ;;  %v10334_v52 = vld [vmem:[%s14422_s19 + $0xa68] sm:$0xff] }
 0x185   : > { %4770 = vmatpush1.bf16.msra.mxu1 %v13648_v57  ;;  %2323 = vmatprep.subr.bf16.mxu0 %v13653_v61  ;;  %v10487_v55 = vld [vmem:[%s14422_s19 + $0xf30] sm:$0xff]  ;;  %v10500_v57 = vld [vmem:[%s14422_s19 + $0xf98] sm:$0xff]  ;;  %v557_v60 = vpack.c.bf16 %v425_v56, %v425_v56  ;;  %v10346_v53 = vld [vmem:[%s14422_s19 + $0xac8] sm:$0xff] }
 0x186   : > { %4771 = vmatprep.subr.bf16.mxu1 %v13656_v62  ;;  %v2993_v59 = vpack.c.bf16 %v10487_v55, %v10475_v54  ;;  %v3006_v61 = vpack.c.bf16 %v10500_v57, %v10500_v57  ;;  %v424_v62 = vld [vmem:[%s14422_s19 + $0x7b0] sm:$0xff]  ;;  %v13707_v54 = vld [vmem:[%s14374_s15 + $0x544] ss:$8 sps:$4 sm:$0xff]  }
 0x187   : > { %v13701_v42 = vld [vmem:[%s14374_s15 + $0x534] ss:$8 sps:$4 sm:$0xff]  }
 0x188   : > { %2324 = vmatpush1.bf16.msra.mxu0 %v13651_v4  ;;  %v556_v4 = vpack.c.bf16 %v424_v62, %v424_v62  ;;  %v13710_v55 = vld [vmem:[%s14374_s15 + $0xb2c] ss:$8 sps:$4 sm:$0xff]  }
 0x189   : > { %4772 = vmatpush1.bf16.msra.mxu1 %v13654_v5  ;;  %2325 = vmatprep.subr.bf16.mxu0 %v13659_v6  ;;  %v3005_v5 = vpack.c.bf16 %v10499_v63, %v10499_v63  ;;  %v439_v6 = vpack.c.bf16 %v199_v1, %v187_v0  ;;  %v13713_v62 = vld [vmem:[%s14374_s15 + $0x554] ss:$8 sps:$4 sm:$0xff]   ;;  %v258_v63 = vld [vmem:[%s14422_s19 + $0x280] sm:$0xff] }
 0x18a   : > { %4773 = vmatprep.subr.bf16.mxu1 %v13662_v7  ;;  %2253 = vmatmul.mubr.bf16.gmra.mrb[24].mxu0 %v508_v8  ;;  %v2888_v7 = vpack.c.bf16 %v10274_v3, %v10262_v2  ;;  %v186_v8 = vld [vmem:[%s14422_s19 + $0x40] sm:$0xff] }
 0x18b   : > { %4701 = vmatmul.mubr.bf16.gmra.mrb[24].mxu1 %v2957_v9  ;;  %2262 = vmatprep.mubr.bf16.mxu0 %v521_v10  ;;  %v198_v9 = vld [vmem:[%s14422_s19 + $0xa0] sm:$0xff] }
 0x18c   : > { %4710 = vmatprep.mubr.bf16.mxu1 %v2970_v11  ;;  %2326 = vmatpush1.bf16.msra.mxu0 %v13657_v12  ;;  %v10261_v10 = vld [vmem:[%s14422_s19 + $0x820] sm:$0xff]  ;;  %v211_v12 = vld [vmem:[%s14422_s19 + $0x108] sm:$0xff]  ;;  %v438_v15 = vpack.c.bf16 %v198_v9, %v186_v8 }
 0x18d   : > { %4774 = vmatpush1.bf16.msra.mxu1 %v13660_v13  ;;  %2327 = vmatprep.subr.bf16.mxu0 %v13665_v18  ;;  %v10273_v11 = vld [vmem:[%s14422_s19 + $0x880] sm:$0xff]  ;;  %v223_v13 = vld [vmem:[%s14422_s19 + $0x168] sm:$0xff] }
 0x18e   : > { %4775 = vmatprep.subr.bf16.mxu1 %v13668_v19  ;;  %v2887_v16 = vpack.c.bf16 %v10273_v11, %v10261_v10  ;;  %v13681_v18 = vld [vmem:[%s14374_s15 + $0x500] ss:$8 sps:$4 sm:$0xff]   ;;  %v13716_v3 = vld [vmem:[%s14374_s15 + $0xb3c] ss:$8 sps:$4 sm:$0xff]   ;;  %v13722_v11 = vld [vmem:[%s14374_s15 + $0xb4c] ss:$8 sps:$4 sm:$0xff]  }
 0x18f   : > { %v13684_v19 = vld [vmem:[%s14374_s15 + $0xae8] ss:$8 sps:$4 sm:$0xff]   ;;  %v270_v0 = vld [vmem:[%s14422_s19 + $0x2e0] sm:$0xff] }
 0x190   : > { %2328 = vmatpush1.bf16.msra.mxu0 %v13663_v24  ;;  %v451_v24 = vpack.c.bf16 %v223_v13, %v211_v12  ;;  %v10333_v1 = vld [vmem:[%s14422_s19 + $0xa60] sm:$0xff]  ;;  %v10358_v8 = vld [vmem:[%s14422_s19 + $0xb28] sm:$0xff]  ;;  %v474_v12 = vpack.c.bf16 %v270_v0, %v258_v63 }
 0x191   : > { %4776 = vmatpush1.bf16.msra.mxu1 %v13666_v25  ;;  %2329 = vmatprep.subr.bf16.mxu0 %v13671_v26  ;;  %v2900_v25 = vpack.c.bf16 %v10298_v17, %v10286_v14  ;;  %v210_v26 = vld [vmem:[%s14422_s19 + $0x100] sm:$0xff]  ;;  %v10370_v9 = vld [vmem:[%s14422_s19 + $0xb88] sm:$0xff] }
 0x192   : > { %4777 = vmatprep.subr.bf16.mxu1 %v13674_v27  ;;  %2263 = vmatmul.mubr.bf16.gmra.mrb[28].mxu0 %v520_v28  ;;  %v222_v27 = vld [vmem:[%s14422_s19 + $0x160] sm:$0xff]  ;;  %v13720_v17 = vld [vmem:[%s14374_s15 + $0xb48] ss:$8 sps:$4 sm:$0xff]  }
 0x193   : > { %4711 = vmatmul.mubr.bf16.gmra.mrb[28].mxu1 %v2969_v29  ;;  %2272 = vmatprep.mubr.bf16.mxu0 %v533_v30  ;;  %v10285_v28 = vld [vmem:[%s14422_s19 + $0x8e0] sm:$0xff]  ;;  %v450_v36 = vpack.c.bf16 %v222_v27, %v210_v26  ;;  %v10382_v26 = vld [vmem:[%s14422_s19 + $0xbe8] sm:$0xff] }
 0x194   : > { %4720 = vmatprep.mubr.bf16.mxu1 %v2982_v31  ;;  %2330 = vmatpush1.bf16.msra.mxu0 %v13669_v32  ;;  %v10297_v29 = vld [vmem:[%s14422_s19 + $0x940] sm:$0xff]  ;;  %v13698_v31 = vld [vmem:[%s14374_s15 + $0xb0c] ss:$8 sps:$4 sm:$0xff]  }
 0x195   : > { %4778 = vmatpush1.bf16.msra.mxu1 %v13672_v33  ;;  %2331 = vmatprep.subr.bf16.mxu0 %v13677_v38  ;;  %v13695_v30 = vld [vmem:[%s14374_s15 + $0x524] ss:$8 sps:$4 sm:$0xff]   ;;  %v2899_v37 = vpack.c.bf16 %v10297_v29, %v10285_v28  ;;  %v13693_v38 = vld [vmem:[%s14374_s15 + $0x520] ss:$8 sps:$4 sm:$0xff]   ;;  %v13723_v28 = vld [vmem:[%s14374_s15 + $0x570] ss:$8 sps:$4 sm:$0xff]  }
 0x196   : > { %4779 = vmatprep.subr.bf16.mxu1 %v13680_v39  ;;  %v235_v32 = vld [vmem:[%s14422_s19 + $0x1c8] sm:$0xff]  ;;  %v10345_v2 = vld [vmem:[%s14422_s19 + $0xac0] sm:$0xff] }
 0x197   : > { %v247_v33 = vld [vmem:[%s14422_s19 + $0x228] sm:$0xff]  ;;  %v2923_v13 = vpack.c.bf16 %v10345_v2, %v10333_v1  ;;  %v13726_v29 = vld [vmem:[%s14374_s15 + $0xb58] ss:$8 sps:$4 sm:$0xff]   ;;  %v13752_v63 = vld [vmem:[%s14374_s15 + $0xb9c] ss:$8 sps:$4 sm:$0xff]  }
 0x198   : > { %2332 = vmatpush1.bf16.msra.mxu0 %v13675_v44  ;;  %v13696_v39 = vld [vmem:[%s14374_s15 + $0xb08] ss:$8 sps:$4 sm:$0xff]   ;;  %v463_v40 = vpack.c.bf16 %v247_v33, %v235_v32  ;;  %v246_v44 = vld [vmem:[%s14422_s19 + $0x220] sm:$0xff] }
 0x199   : > { %4780 = vmatpush1.bf16.msra.mxu1 %v13678_v45  ;;  %2442 = vmatprep.subr.bf16.mxu0 %v13683_v46  ;;  %v10309_v45 = vld [vmem:[%s14422_s19 + $0x9a0] sm:$0xff]  ;;  %v462_v56 = vpack.c.bf16 %v246_v44, %v234_v43  ;;  %v10394_v27 = vld [vmem:[%s14422_s19 + $0xc48] sm:$0xff] }
 0x19a   : > { %4890 = vmatprep.subr.bf16.mxu1 %v13686_v47  ;;  %2273 = vmatmul.mubr.bf16.gmra.mrb[32].mxu0 %v532_v48  ;;  %v10321_v46 = vld [vmem:[%s14422_s19 + $0xa00] sm:$0xff]  ;;  %v13699_v47 = vld [vmem:[%s14374_s15 + $0x530] ss:$8 sps:$4 sm:$0xff]   ;;  %v2948_v35 = vpack.c.bf16 %v10394_v27, %v10382_v26  ;;  %v331_v44 = vld [vmem:[%s14422_s19 + $0x4c8] sm:$0xff] }
 0x19b   : > { %4721 = vmatmul.mubr.bf16.gmra.mrb[32].mxu1 %v2981_v49  ;;  %2282 = vmatprep.mubr.bf16.mxu0 %v545_v50  ;;  %v13704_v48 = vld [vmem:[%s14374_s15 + $0xb1c] ss:$8 sps:$4 sm:$0xff]   ;;  %v13702_v49 = vld [vmem:[%s14374_s15 + $0xb18] ss:$8 sps:$4 sm:$0xff]   ;;  %v259_v50 = vld [vmem:[%s14422_s19 + $0x288] sm:$0xff]  ;;  %v2911_v57 = vpack.c.bf16 %v10321_v46, %v10309_v45 }
 0x19c   : > { %4730 = vmatprep.mubr.bf16.mxu1 %v2994_v51  ;;  %v271_v51 = vld [vmem:[%s14422_s19 + $0x2e8] sm:$0xff]  ;;  %v13740_v43 = vld [vmem:[%s14374_s15 + $0xb7c] ss:$8 sps:$4 sm:$0xff]   ;;  %v13759_v26 = vld [vmem:[%s14374_s15 + $0x5d0] ss:$8 sps:$4 sm:$0xff]  }
 0x19d   : > { %v13719_v10 = vld [vmem:[%s14374_s15 + $0x564] ss:$8 sps:$4 sm:$0xff]   ;;  %v13762_v27 = vld [vmem:[%s14374_s15 + $0xbb8] ss:$8 sps:$4 sm:$0xff]  }
 0x19e   : > { %v343_v45 = vld [vmem:[%s14422_s19 + $0x528] sm:$0xff] }
 0x19f   : > { %v10406_v46 = vld [vmem:[%s14422_s19 + $0xca8] sm:$0xff] }
 0x1a0   : > { %v355_v0 = vld [vmem:[%s14422_s19 + $0x588] sm:$0xff] }
 0x1a1   : > { %v367_v1 = vld [vmem:[%s14422_s19 + $0x5e8] sm:$0xff] }
 0x1a2   : > { %2283 = vmatmul.mubr.bf16.gmra.mrb[36].mxu0 %v544_v58  ;;  %v475_v58 = vpack.c.bf16 %v271_v51, %v259_v50  ;;  %v13743_v50 = vld [vmem:[%s14374_s15 + $0x5a4] ss:$8 sps:$4 sm:$0xff]  }
 0x1a3   : > { %4731 = vmatmul.mubr.bf16.gmra.mrb[36].mxu1 %v2993_v59  ;;  %2292 = vmatprep.mubr.bf16.mxu0 %v557_v60  ;;  %v2924_v59 = vpack.c.bf16 %v10346_v53, %v10334_v52  ;;  %v13705_v60 = vld [vmem:[%s14374_s15 + $0x540] ss:$8 sps:$4 sm:$0xff]   ;;  %v13746_v51 = vld [vmem:[%s14374_s15 + $0xb8c] ss:$8 sps:$4 sm:$0xff]  }
 0x1a4   : > { %4740 = vmatprep.mubr.bf16.mxu1 %v3006_v61  ;;  %v13708_v61 = vld [vmem:[%s14374_s15 + $0xb28] ss:$8 sps:$4 sm:$0xff]  }
 0x1a5   : > { %v10430_v2 = vld [vmem:[%s14422_s19 + $0xd68] sm:$0xff] }
 0x1aa   : > { %2293 = vmatmul.mubr.bf16.gmra.mrb[40].mxu0 %v556_v4  ;;  %v13711_v4 = vld [vmem:[%s14374_s15 + $0x550] ss:$8 sps:$4 sm:$0xff]  }
 0x1ab   : > { %4741 = vmatmul.mubr.bf16.gmra.mrb[40].mxu1 %v3005_v5  ;;  %2333 = vmatprep.mubr.bf16.mxu0 %v439_v6  ;;  %v13714_v5 = vld [vmem:[%s14374_s15 + $0xb38] ss:$8 sps:$4 sm:$0xff]   ;;  %v283_v6 = vld [vmem:[%s14422_s19 + $0x348] sm:$0xff] }
 0x1ac   : > { %4781 = vmatprep.mubr.bf16.mxu1 %v2888_v7  ;;  %v295_v7 = vld [vmem:[%s14422_s19 + $0x3a8] sm:$0xff] }
 0x1ad   : > { %v487_v14 = vpack.c.bf16 %v295_v7, %v283_v6  ;;  %v13755_v6 = vld [vmem:[%s14374_s15 + $0x5c4] ss:$8 sps:$4 sm:$0xff]  }
 0x1ae   : > { %v13758_v7 = vld [vmem:[%s14374_s15 + $0xbac] ss:$8 sps:$4 sm:$0xff]  }
 0x1b2   : > { %2334 = vmatmul.mubr.bf16.vlgmr.msra.gmra.mrb[0].mxu0 %v438_v15  ;;  %v2936_v15 = vpack.c.bf16 %v10370_v9, %v10358_v8 }
 0x1b3   : > { %4782 = vmatmul.mubr.bf16.vlgmr.msra.gmra.mrb[0].mxu1 %v2887_v16  ;;  %2443 = vmatpush1.bf16.msra.mxu0 %v13681_v18  ;;  %v13717_v16 = vld [vmem:[%s14374_s15 + $0x560] ss:$8 sps:$4 sm:$0xff]   ;;  %v13725_v18 = vld [vmem:[%s14374_s15 + $0x574] ss:$8 sps:$4 sm:$0xff]  }
 0x1b4   : > { %4891 = vmatpush1.bf16.msra.mxu1 %v13684_v19  ;;  %2444 = vmatprep.subr.bf16.mxu0 %v13689_v20  ;;  %v282_v19 = vld [vmem:[%s14422_s19 + $0x340] sm:$0xff] }
 0x1b5   : > { %4892 = vmatprep.subr.bf16.mxu1 %v13692_v21  ;;  %2343 = vmatprep.mubr.bf16.mxu0 %v451_v24  ;;  %v294_v20 = vld [vmem:[%s14422_s19 + $0x3a0] sm:$0xff]  ;;  %v307_v24 = vld [vmem:[%s14422_s19 + $0x408] sm:$0xff] }
 0x1b6   : > { %4791 = vmatprep.mubr.bf16.mxu1 %v2900_v25  ;;  %v10357_v21 = vld [vmem:[%s14422_s19 + $0xb20] sm:$0xff]  ;;  %v319_v25 = vld [vmem:[%s14422_s19 + $0x468] sm:$0xff]  ;;  %v486_v32 = vpack.c.bf16 %v294_v20, %v282_v19 }
 0x1b7   : > { %2445 = vmatpush1.bf16.msra.mxu0 %v13687_v22  ;;  %v13728_v22 = vld [vmem:[%s14374_s15 + $0xb5c] ss:$8 sps:$4 sm:$0xff]   ;;  %v499_v34 = vpack.c.bf16 %v319_v25, %v307_v24  ;;  %v10454_v24 = vld [vmem:[%s14422_s19 + $0xe28] sm:$0xff] }
 0x1b8   : > { %4893 = vmatpush1.bf16.msra.mxu1 %v13690_v23  ;;  %2446 = vmatprep.subr.bf16.mxu0 %v13695_v30  ;;  %v10369_v23 = vld [vmem:[%s14422_s19 + $0xb80] sm:$0xff]  ;;  %v10466_v25 = vld [vmem:[%s14422_s19 + $0xe88] sm:$0xff] }
 0x1b9   : > { %4894 = vmatprep.subr.bf16.mxu1 %v13698_v31  ;;  %v13731_v30 = vld [vmem:[%s14374_s15 + $0x584] ss:$8 sps:$4 sm:$0xff]   ;;  %v2935_v33 = vpack.c.bf16 %v10369_v23, %v10357_v21 }
 0x1ba   : > { %2344 = vmatmul.mubr.bf16.gmra.mrb[4].mxu0 %v450_v36  ;;  %v13734_v31 = vld [vmem:[%s14374_s15 + $0xb6c] ss:$8 sps:$4 sm:$0xff]   ;;  %v13729_v36 = vld [vmem:[%s14374_s15 + $0x580] ss:$8 sps:$4 sm:$0xff]  }
 0x1bb   : > { %4792 = vmatmul.mubr.bf16.gmra.mrb[4].mxu1 %v2899_v37  ;;  %2447 = vmatpush1.bf16.msra.mxu0 %v13693_v38  ;;  %v13732_v37 = vld [vmem:[%s14374_s15 + $0xb68] ss:$8 sps:$4 sm:$0xff]   ;;  %v306_v38 = vld [vmem:[%s14422_s19 + $0x400] sm:$0xff] }
 0x1bc   : > { %4895 = vmatpush1.bf16.msra.mxu1 %v13696_v39  ;;  %2353 = vmatprep.mubr.bf16.mxu0 %v463_v40  ;;  %v318_v39 = vld [vmem:[%s14422_s19 + $0x460] sm:$0xff]  ;;  %v379_v21 = vld [vmem:[%s14422_s19 + $0x648] sm:$0xff] }
 0x1bd   : > { %4801 = vmatprep.mubr.bf16.mxu1 %v2912_v41  ;;  %2448 = vmatprep.subr.bf16.mxu0 %v13701_v42  ;;  %v10381_v40 = vld [vmem:[%s14422_s19 + $0xbe0] sm:$0xff]  ;;  %v13737_v42 = vld [vmem:[%s14374_s15 + $0x594] ss:$8 sps:$4 sm:$0xff]   ;;  %v498_v52 = vpack.c.bf16 %v318_v39, %v306_v38  ;;  %v391_v23 = vld [vmem:[%s14422_s19 + $0x6a8] sm:$0xff] }
 0x1be   : > { %4896 = vmatprep.subr.bf16.mxu1 %v13704_v48  ;;  %v10393_v41 = vld [vmem:[%s14422_s19 + $0xc40] sm:$0xff]  ;;  %v13735_v48 = vld [vmem:[%s14374_s15 + $0x590] ss:$8 sps:$4 sm:$0xff]  }
 0x1bf   : > { %2449 = vmatpush1.bf16.msra.mxu0 %v13699_v47  ;;  %v10418_v47 = vld [vmem:[%s14422_s19 + $0xd08] sm:$0xff]  ;;  %v2947_v53 = vpack.c.bf16 %v10393_v41, %v10381_v40  ;;  %v10429_v19 = vld [vmem:[%s14422_s19 + $0xd60] sm:$0xff] }
 0x1c0   : > { %4897 = vmatpush1.bf16.msra.mxu1 %v13702_v49  ;;  %2450 = vmatprep.subr.bf16.mxu0 %v13707_v54  ;;  %v13738_v49 = vld [vmem:[%s14374_s15 + $0xb78] ss:$8 sps:$4 sm:$0xff]   ;;  %v511_v54 = vpack.c.bf16 %v343_v45, %v331_v44  ;;  %v403_v44 = vld [vmem:[%s14422_s19 + $0x708] sm:$0xff] }
 0x1c1   : > { %4898 = vmatprep.subr.bf16.mxu1 %v13710_v55  ;;  %v2960_v55 = vpack.c.bf16 %v10418_v47, %v10406_v46  ;;  %v10441_v20 = vld [vmem:[%s14422_s19 + $0xdc0] sm:$0xff]  ;;  %v415_v45 = vld [vmem:[%s14422_s19 + $0x768] sm:$0xff] }
 0x1c2   : > { %2354 = vmatmul.mubr.bf16.gmra.mrb[8].mxu0 %v462_v56  ;;  %v13741_v56 = vld [vmem:[%s14374_s15 + $0x5a0] ss:$8 sps:$4 sm:$0xff]  }
 0x1c3   : > { %4802 = vmatmul.mubr.bf16.gmra.mrb[8].mxu1 %v2911_v57  ;;  %2363 = vmatprep.mubr.bf16.mxu0 %v475_v58  ;;  %v13744_v57 = vld [vmem:[%s14374_s15 + $0xb88] ss:$8 sps:$4 sm:$0xff]   ;;  %v330_v58 = vld [vmem:[%s14422_s19 + $0x4c0] sm:$0xff] }
 0x1c4   : > { %4811 = vmatprep.mubr.bf16.mxu1 %v2924_v59  ;;  %2451 = vmatpush1.bf16.msra.mxu0 %v13705_v60  ;;  %v342_v59 = vld [vmem:[%s14422_s19 + $0x520] sm:$0xff]  ;;  %v10478_v46 = vld [vmem:[%s14422_s19 + $0xee8] sm:$0xff] }
 0x1c5   : > { %4899 = vmatpush1.bf16.msra.mxu1 %v13708_v61  ;;  %2452 = vmatprep.subr.bf16.mxu0 %v13713_v62  ;;  %v10405_v60 = vld [vmem:[%s14422_s19 + $0xca0] sm:$0xff]  ;;  %v13749_v62 = vld [vmem:[%s14374_s15 + $0x5b4] ss:$8 sps:$4 sm:$0xff]   ;;  %v510_v8 = vpack.c.bf16 %v342_v59, %v330_v58  ;;  %v10490_v47 = vld [vmem:[%s14422_s19 + $0xf48] sm:$0xff] }
 0x1c6   : > { %4900 = vmatprep.subr.bf16.mxu1 %v13716_v3  ;;  %v10417_v61 = vld [vmem:[%s14422_s19 + $0xd00] sm:$0xff]  ;;  %v10442_v3 = vld [vmem:[%s14422_s19 + $0xdc8] sm:$0xff] }
 0x1c7   : > { %v2959_v9 = vpack.c.bf16 %v10417_v61, %v10405_v60  ;;  %v378_v40 = vld [vmem:[%s14422_s19 + $0x640] sm:$0xff] }
 0x1c8   : > { %2453 = vmatpush1.bf16.msra.mxu0 %v13711_v4  ;;  %v13747_v4 = vld [vmem:[%s14374_s15 + $0x5b0] ss:$8 sps:$4 sm:$0xff]   ;;  %v390_v41 = vld [vmem:[%s14422_s19 + $0x6a0] sm:$0xff] }
 0x1c9   : > { %4901 = vmatpush1.bf16.msra.mxu1 %v13714_v5  ;;  %2454 = vmatprep.subr.bf16.mxu0 %v13719_v10  ;;  %v13750_v5 = vld [vmem:[%s14374_s15 + $0xb98] ss:$8 sps:$4 sm:$0xff]  }
 0x1ca   : > { %4902 = vmatprep.subr.bf16.mxu1 %v13722_v11  ;;  %2364 = vmatmul.mubr.bf16.gmra.mrb[12].mxu0 %v474_v12  ;;  %v13753_v10 = vld [vmem:[%s14374_s15 + $0x5c0] ss:$8 sps:$4 sm:$0xff]   ;;  %v523_v12 = vpack.c.bf16 %v367_v1, %v355_v0  ;;  %v189_v0 = vld [vmem:[%s14422_s19 + $0x58] sm:$0xff] }
 0x1cb   : > { %4812 = vmatmul.mubr.bf16.gmra.mrb[12].mxu1 %v2923_v13  ;;  %2373 = vmatprep.mubr.bf16.mxu0 %v487_v14  ;;  %v13756_v11 = vld [vmem:[%s14374_s15 + $0xba8] ss:$8 sps:$4 sm:$0xff]   ;;  %v2972_v13 = vpack.c.bf16 %v10442_v3, %v10430_v2  ;;  %v13761_v14 = vld [vmem:[%s14374_s15 + $0x5d4] ss:$8 sps:$4 sm:$0xff]  }
 0x1cc   : > { %4821 = vmatprep.mubr.bf16.mxu1 %v2936_v15  ;;  %2455 = vmatpush1.bf16.msra.mxu0 %v13717_v16  ;;  %v13764_v15 = vld [vmem:[%s14374_s15 + $0xbbc] ss:$8 sps:$4 sm:$0xff]  }
 0x1cd   : > { %4903 = vmatpush1.bf16.msra.mxu1 %v13720_v17  ;;  %2456 = vmatprep.subr.bf16.mxu0 %v13725_v18  ;;  %v750_v16 = vld [vmem:[%s14374_s15 + $0x5e0] sm:$0xff]  ;;  %v201_v1 = vld [vmem:[%s14422_s19 + $0xb8] sm:$0xff] }
 0x1ce   : > { %4904 = vmatprep.subr.bf16.mxu1 %v13728_v22  ;;  %v354_v17 = vld [vmem:[%s14422_s19 + $0x580] sm:$0xff]  ;;  %v10693_v22 = vld [vmem:[%s14374_s15 + $0xbc8] sm:$0xff]  ;;  %v10264_v2 = vld [vmem:[%s14422_s19 + $0x838] sm:$0xff] }
 0x1cf   : > { %v366_v18 = vld [vmem:[%s14422_s19 + $0x5e0] sm:$0xff]  ;;  %v10276_v3 = vld [vmem:[%s14422_s19 + $0x898] sm:$0xff] }
 0x1d0   : > { %2457 = vmatpush1.bf16.msra.mxu0 %v13723_v28  ;;  %v10240_v28 = vcombine.high %v750_v16, %v750_v16 }
 0x1d1   : > { %4905 = vmatpush1.bf16.msra.mxu1 %v13726_v29  ;;  %2458 = vmatprep.subr.bf16.mxu0 %v13731_v30  ;;  %v10883_v29 = vcombine.high %v10693_v22, %v10693_v22  ;;  %v10239_v30 = vcombine.low %v750_v16, %v750_v16 }
 0x1d2   : > { %4906 = vmatprep.subr.bf16.mxu1 %v13734_v31  ;;  %2374 = vmatmul.mubr.bf16.gmra.mrb[16].mxu0 %v486_v32  ;;  %v10882_v31 = vcombine.low %v10693_v22, %v10693_v22  ;;  %v522_v32 = vpack.c.bf16 %v366_v18, %v354_v17  ;;  %v10288_v18 = vld [vmem:[%s14422_s19 + $0x8f8] sm:$0xff]  ;;  %v13775_v22 = vld [vmem:[%s14374_s15 + $0xbe0] ss:$8 sps:$4 sm:$0xff]  }
 0x1d3   : > { %4822 = vmatmul.mubr.bf16.gmra.mrb[16].mxu1 %v2935_v33  ;;  %2383 = vmatprep.mubr.bf16.mxu0 %v499_v34  ;;  %v2971_v33 = vpack.c.bf16 %v10441_v20, %v10429_v19  ;;  %v535_v34 = vpack.c.bf16 %v391_v23, %v379_v21  ;;  %v1732_v38 = vsel %vm1730_vm0, %v10239_v30, 0  ;;  %v10300_v19 = vld [vmem:[%s14422_s19 + $0x958] sm:$0xff]  ;;  %v13777_v20 = vld [vmem:[%s14374_s15 + $0xbe4] ss:$8 sps:$4 sm:$0xff]   ;;  %v13778_v23 = vld [vmem:[%s14374_s15 + $0x11c8] ss:$8 sps:$4 sm:$0xff]  }
 0x1d4   : > { %4831 = vmatprep.mubr.bf16.mxu1 %v2948_v35  ;;  %2459 = vmatpush1.bf16.msra.mxu0 %v13729_v36  ;;  %v2984_v35 = vpack.c.bf16 %v10466_v25, %v10454_v24  ;;  %v13771_v36 = vld [vmem:[%s14374_s15 + $0xbd4] ss:$8 sps:$4 sm:$0xff]   ;;  %v4180_v39 = vsel %vm1730_vm0, %v10882_v31, 0  ;;  %v2902_v25 = vpack.c.bf16 %v10300_v19, %v10288_v18  ;;  %v13813_v18 = vld [vmem:[%s14374_s15 + $0xc44] ss:$8 sps:$4 sm:$0xff]  }
 0x1d5   : > { %4907 = vmatpush1.bf16.msra.mxu1 %v13732_v37  ;;  %2460 = vmatprep.subr.bf16.mxu0 %v13737_v42  ;;  %v13774_v37 = vld [vmem:[%s14374_s15 + $0x11bc] ss:$8 sps:$4 sm:$0xff]   ;;  %v13780_v21 = vld [vmem:[%s14374_s15 + $0x11cc] ss:$8 sps:$4 sm:$0xff]  }
 0x1d6   : > { %4908 = vmatprep.subr.bf16.mxu1 %v13740_v43  ;;  %v10453_v42 = vld [vmem:[%s14422_s19 + $0xe20] sm:$0xff]  ;;  %v13783_v30 = vld [vmem:[%s14374_s15 + $0xbf4] ss:$8 sps:$4 sm:$0xff]  }
 0x1d7   : > { %v10465_v43 = vld [vmem:[%s14422_s19 + $0xe80] sm:$0xff]  ;;  %v13816_v19 = vld [vmem:[%s14374_s15 + $0x122c] ss:$8 sps:$4 sm:$0xff]  }
 0x1d8   : > { %2461 = vmatpush1.bf16.msra.mxu0 %v13735_v48  ;;  %v534_v48 = vpack.c.bf16 %v390_v41, %v378_v40  ;;  %v13786_v31 = vld [vmem:[%s14374_s15 + $0x11dc] ss:$8 sps:$4 sm:$0xff]   ;;  %v13792_v41 = vld [vmem:[%s14374_s15 + $0x11ec] ss:$8 sps:$4 sm:$0xff]  }
 0x1d9   : > { %4909 = vmatpush1.bf16.msra.mxu1 %v13738_v49  ;;  %2462 = vmatprep.subr.bf16.mxu0 %v13743_v50  ;;  %v2983_v49 = vpack.c.bf16 %v10465_v43, %v10453_v42  ;;  %v547_v50 = vpack.c.bf16 %v415_v45, %v403_v44  ;;  %v13789_v40 = vld [vmem:[%s14374_s15 + $0xc04] ss:$8 sps:$4 sm:$0xff]   ;;  %v236_v44 = vld [vmem:[%s14422_s19 + $0x1d0] sm:$0xff] }
 0x1da   : > { %4910 = vmatprep.subr.bf16.mxu1 %v13746_v51  ;;  %2384 = vmatmul.mubr.bf16.gmra.mrb[20].mxu0 %v498_v52  ;;  %v2996_v51 = vpack.c.bf16 %v10490_v47, %v10478_v46  ;;  %v402_v52 = vld [vmem:[%s14422_s19 + $0x700] sm:$0xff]  ;;  %v248_v45 = vld [vmem:[%s14422_s19 + $0x230] sm:$0xff] }
 0x1db   : > { %4832 = vmatmul.mubr.bf16.gmra.mrb[20].mxu1 %v2947_v53  ;;  %2393 = vmatprep.mubr.bf16.mxu0 %v511_v54  ;;  %v414_v53 = vld [vmem:[%s14422_s19 + $0x760] sm:$0xff]  ;;  %v10311_v46 = vld [vmem:[%s14422_s19 + $0x9b0] sm:$0xff] }
 0x1dc   : > { %4841 = vmatprep.mubr.bf16.mxu1 %v2960_v55  ;;  %2463 = vmatpush1.bf16.msra.mxu0 %v13741_v56  ;;  %v10477_v54 = vld [vmem:[%s14422_s19 + $0xee0] sm:$0xff]  ;;  %v427_v56 = vld [vmem:[%s14422_s19 + $0x7c8] sm:$0xff]  ;;  %v546_v58 = vpack.c.bf16 %v414_v53, %v402_v52  ;;  %v10323_v47 = vld [vmem:[%s14422_s19 + $0xa10] sm:$0xff] }
 0x1dd   : > { %4911 = vmatpush1.bf16.msra.mxu1 %v13744_v57  ;;  %2464 = vmatprep.subr.bf16.mxu0 %v13749_v62  ;;  %v10489_v55 = vld [vmem:[%s14422_s19 + $0xf40] sm:$0xff]  ;;  %v10502_v57 = vld [vmem:[%s14422_s19 + $0xfa8] sm:$0xff]  ;;  %v559_v60 = vpack.c.bf16 %v427_v56, %v427_v56  ;;  %v261_v52 = vld [vmem:[%s14422_s19 + $0x298] sm:$0xff]  ;;  %v464_v56 = vpack.c.bf16 %v248_v45, %v236_v44 }
 0x1de   : > { %4912 = vmatprep.subr.bf16.mxu1 %v13752_v63  ;;  %v2995_v59 = vpack.c.bf16 %v10489_v55, %v10477_v54  ;;  %v3008_v61 = vpack.c.bf16 %v10502_v57, %v10502_v57  ;;  %v426_v62 = vld [vmem:[%s14422_s19 + $0x7c0] sm:$0xff]  ;;  %v273_v53 = vld [vmem:[%s14422_s19 + $0x2f8] sm:$0xff]  ;;  %v2913_v57 = vpack.c.bf16 %v10323_v47, %v10311_v46 }
 0x1df   : > { %v10501_v63 = vld [vmem:[%s14422_s19 + $0xfa0] sm:$0xff]  ;;  %v10336_v54 = vld [vmem:[%s14422_s19 + $0xa78] sm:$0xff] }
 0x1e0   : > { %2465 = vmatpush1.bf16.msra.mxu0 %v13747_v4  ;;  %v558_v4 = vpack.c.bf16 %v426_v62, %v426_v62  ;;  %v10348_v55 = vld [vmem:[%s14422_s19 + $0xad8] sm:$0xff]  ;;  %v13801_v62 = vld [vmem:[%s14374_s15 + $0xc24] ss:$8 sps:$4 sm:$0xff]  }
 0x1e1   : > { %4913 = vmatpush1.bf16.msra.mxu1 %v13750_v5  ;;  %2466 = vmatprep.subr.bf16.mxu0 %v13755_v6  ;;  %v3007_v5 = vpack.c.bf16 %v10501_v63, %v10501_v63  ;;  %v441_v6 = vpack.c.bf16 %v201_v1, %v189_v0  ;;  %v13804_v63 = vld [vmem:[%s14374_s15 + $0x120c] ss:$8 sps:$4 sm:$0xff]   ;;  %v333_v44 = vld [vmem:[%s14422_s19 + $0x4d8] sm:$0xff] }
 0x1e2   : > { %4914 = vmatprep.subr.bf16.mxu1 %v13758_v7  ;;  %2394 = vmatmul.mubr.bf16.gmra.mrb[24].mxu0 %v510_v8  ;;  %v2890_v7 = vpack.c.bf16 %v10276_v3, %v10264_v2  ;;  %v188_v8 = vld [vmem:[%s14422_s19 + $0x50] sm:$0xff]  ;;  %v345_v45 = vld [vmem:[%s14422_s19 + $0x538] sm:$0xff] }
 0x1e3   : > { %4842 = vmatmul.mubr.bf16.gmra.mrb[24].mxu1 %v2959_v9  ;;  %2403 = vmatprep.mubr.bf16.mxu0 %v523_v12  ;;  %v200_v9 = vld [vmem:[%s14422_s19 + $0xb0] sm:$0xff]  ;;  %v10408_v46 = vld [vmem:[%s14422_s19 + $0xcb8] sm:$0xff] }
 0x1e4   : > { %4851 = vmatprep.mubr.bf16.mxu1 %v2972_v13  ;;  %2467 = vmatpush1.bf16.msra.mxu0 %v13753_v10  ;;  %v10263_v10 = vld [vmem:[%s14422_s19 + $0x830] sm:$0xff]  ;;  %v13772_v13 = vld [vmem:[%s14374_s15 + $0x11b8] ss:$8 sps:$4 sm:$0xff]   ;;  %v440_v16 = vpack.c.bf16 %v200_v9, %v188_v8 }
 0x1e5   : > { %4915 = vmatpush1.bf16.msra.mxu1 %v13756_v11  ;;  %2468 = vmatprep.subr.bf16.mxu0 %v13761_v14  ;;  %v10275_v11 = vld [vmem:[%s14422_s19 + $0x890] sm:$0xff]  ;;  %v213_v14 = vld [vmem:[%s14422_s19 + $0x118] sm:$0xff] }
 0x1e6   : > { %4916 = vmatprep.subr.bf16.mxu1 %v13764_v15  ;;  %v13769_v12 = vld [vmem:[%s14374_s15 + $0xbd0] ss:$8 sps:$4 sm:$0xff]   ;;  %v2889_v17 = vpack.c.bf16 %v10275_v11, %v10263_v10  ;;  %v13807_v10 = vld [vmem:[%s14374_s15 + $0xc34] ss:$8 sps:$4 sm:$0xff]  }
 0x1e7   : > { %v225_v15 = vld [vmem:[%s14422_s19 + $0x178] sm:$0xff]  ;;  %v260_v0 = vld [vmem:[%s14422_s19 + $0x290] sm:$0xff] }
 0x1e8   : > { %2469 = vmatpush1.bf16.msra.mxu0 %v13759_v26  ;;  %v453_v24 = vpack.c.bf16 %v225_v15, %v213_v14  ;;  %v212_v26 = vld [vmem:[%s14422_s19 + $0x110] sm:$0xff]  ;;  %v10360_v8 = vld [vmem:[%s14422_s19 + $0xb38] sm:$0xff] }
 0x1e9   : > { %4917 = vmatpush1.bf16.msra.mxu1 %v13762_v27  ;;  %10241 = vmatprep.subr.msk.bf16.mxu0 %vm1730_vm0, %v10240_v28  ;;  %v224_v27 = vld [vmem:[%s14422_s19 + $0x170] sm:$0xff]  ;;  %v10372_v9 = vld [vmem:[%s14422_s19 + $0xb98] sm:$0xff] }
 0x1ea   : > { %10884 = vmatprep.subr.msk.bf16.mxu1 %vm1730_vm0, %v10883_v29  ;;  %2404 = vmatmul.mubr.bf16.gmra.mrb[28].mxu0 %v522_v32  ;;  %v10287_v28 = vld [vmem:[%s14422_s19 + $0x8f0] sm:$0xff]  ;;  %v237_v32 = vld [vmem:[%s14422_s19 + $0x1d8] sm:$0xff] }
 0x1eb   : > { %4852 = vmatmul.mubr.bf16.gmra.mrb[28].mxu1 %v2971_v33  ;;  %2413 = vmatprep.mubr.bf16.mxu0 %v535_v34  ;;  %v10299_v29 = vld [vmem:[%s14422_s19 + $0x950] sm:$0xff]  ;;  %v249_v33 = vld [vmem:[%s14422_s19 + $0x238] sm:$0xff] }
 0x1ec   : > { %4861 = vmatprep.mubr.bf16.mxu1 %v2984_v35  ;;  %2471 = vmatpush1.bf16.msra.mxu0 %v1732_v38  ;;  %v10312_v34 = vld [vmem:[%s14422_s19 + $0x9b8] sm:$0xff]  ;;  %v452_v38 = vpack.c.bf16 %v224_v27, %v212_v26  ;;  %v465_v42 = vpack.c.bf16 %v249_v33, %v237_v32  ;;  %v272_v1 = vld [vmem:[%s14422_s19 + $0x2f0] sm:$0xff] }
 0x1ed   : > { %4919 = vmatpush1.bf16.msra.mxu1 %v4180_v39  ;;  %6633 = vmatprep.subr.bf16.mxu0 %v13771_v36  ;;  %v13781_v35 = vld [vmem:[%s14374_s15 + $0xbf0] ss:$8 sps:$4 sm:$0xff]   ;;  %v2901_v39 = vpack.c.bf16 %v10299_v29, %v10287_v28  ;;  %v13810_v11 = vld [vmem:[%s14374_s15 + $0x121c] ss:$8 sps:$4 sm:$0xff]   ;;  %v13811_v28 = vld [vmem:[%s14374_s15 + $0xc40] ss:$8 sps:$4 sm:$0xff]  }
 0x1ee   : > { %9081 = vmatprep.subr.bf16.mxu1 %v13774_v37  ;;  %v13784_v36 = vld [vmem:[%s14374_s15 + $0x11d8] ss:$8 sps:$4 sm:$0xff]   ;;  %v10335_v2 = vld [vmem:[%s14422_s19 + $0xa70] sm:$0xff] }
 0x1ef   : > { %v10324_v37 = vld [vmem:[%s14422_s19 + $0xa18] sm:$0xff]  ;;  %v10347_v3 = vld [vmem:[%s14422_s19 + $0xad0] sm:$0xff] }
 0x1f0   : > { %v2914_v43 = vpack.c.bf16 %v10324_v37, %v10312_v34  ;;  %v13805_v14 = vld [vmem:[%s14374_s15 + $0xc30] ss:$8 sps:$4 sm:$0xff]  }
 0x1f1   : > { %v13808_v15 = vld [vmem:[%s14374_s15 + $0x1218] ss:$8 sps:$4 sm:$0xff]   ;;  %v13814_v29 = vld [vmem:[%s14374_s15 + $0x1228] ss:$8 sps:$4 sm:$0xff]  }
 0x1f2   : > { %2414 = vmatmul.mubr.bf16.gmra.mrb[32].mxu0 %v534_v48  ;;  %v13787_v48 = vld [vmem:[%s14374_s15 + $0xc00] ss:$8 sps:$4 sm:$0xff]   ;;  %v10384_v26 = vld [vmem:[%s14422_s19 + $0xbf8] sm:$0xff] }
 0x1f3   : > { %4862 = vmatmul.mubr.bf16.gmra.mrb[32].mxu1 %v2983_v49  ;;  %2423 = vmatprep.mubr.bf16.mxu0 %v547_v50  ;;  %v13790_v49 = vld [vmem:[%s14374_s15 + $0x11e8] ss:$8 sps:$4 sm:$0xff]   ;;  %v13795_v50 = vld [vmem:[%s14374_s15 + $0xc14] ss:$8 sps:$4 sm:$0xff]  }
 0x1f4   : > { %4871 = vmatprep.mubr.bf16.mxu1 %v2996_v51  ;;  %v13798_v51 = vld [vmem:[%s14374_s15 + $0x11fc] ss:$8 sps:$4 sm:$0xff]   ;;  %v13817_v34 = vld [vmem:[%s14374_s15 + $0xc50] ss:$8 sps:$4 sm:$0xff]  }
 0x1f5   : > { %v10396_v27 = vld [vmem:[%s14422_s19 + $0xc58] sm:$0xff] }
 0x1f6   : > { %v2950_v37 = vpack.c.bf16 %v10396_v27, %v10384_v26  ;;  %v10420_v47 = vld [vmem:[%s14422_s19 + $0xd18] sm:$0xff] }
 0x1f7   : > { %v13855_v26 = vld [vmem:[%s14374_s15 + $0xcb4] ss:$8 sps:$4 sm:$0xff]  }
 0x1f8   : > { %v13858_v27 = vld [vmem:[%s14374_s15 + $0x129c] ss:$8 sps:$4 sm:$0xff]  }
 0x1fa   : > { %2424 = vmatmul.mubr.bf16.gmra.mrb[36].mxu0 %v546_v58  ;;  %v13793_v58 = vld [vmem:[%s14374_s15 + $0xc10] ss:$8 sps:$4 sm:$0xff]  }
 0x1fb   : > { %4872 = vmatmul.mubr.bf16.gmra.mrb[36].mxu1 %v2995_v59  ;;  %2433 = vmatprep.mubr.bf16.mxu0 %v559_v60  ;;  %v13796_v59 = vld [vmem:[%s14374_s15 + $0x11f8] ss:$8 sps:$4 sm:$0xff]   ;;  %v477_v60 = vpack.c.bf16 %v273_v53, %v261_v52 }
 0x1fc   : > { %4881 = vmatprep.mubr.bf16.mxu1 %v3008_v61  ;;  %v2926_v61 = vpack.c.bf16 %v10348_v55, %v10336_v54  ;;  %v13829_v54 = vld [vmem:[%s14374_s15 + $0xc70] ss:$8 sps:$4 sm:$0xff]  }
 0x1fd   : > { %v13832_v55 = vld [vmem:[%s14374_s15 + $0x1258] ss:$8 sps:$4 sm:$0xff]  }
 0x202   : > { %2434 = vmatmul.mubr.bf16.gmra.mrb[40].mxu0 %v558_v4  ;;  %v13799_v4 = vld [vmem:[%s14374_s15 + $0xc20] ss:$8 sps:$4 sm:$0xff]  }
 0x203   : > { %4882 = vmatmul.mubr.bf16.gmra.mrb[40].mxu1 %v3007_v5  ;;  %10242 = vmatprep.mubr.msk.bf16.mxu0 %vm1696_vm1, %v441_v6  ;;  %v13802_v5 = vld [vmem:[%s14374_s15 + $0x1208] ss:$8 sps:$4 sm:$0xff]   ;;  %v285_v6 = vld [vmem:[%s14422_s19 + $0x358] sm:$0xff] }
 0x204   : > { %10885 = vmatprep.mubr.msk.bf16.mxu1 %vm1696_vm1, %v2890_v7  ;;  %v297_v7 = vld [vmem:[%s14422_s19 + $0x3b8] sm:$0xff] }
 0x20a   : > { %2475 = vmatmul.mubr.bf16.vlgmr.msra.gmra.mrb[0].mxu0 %v440_v16  ;;  %v489_v16 = vpack.c.bf16 %v297_v7, %v285_v6  ;;  %v13843_v6 = vld [vmem:[%s14374_s15 + $0xc94] ss:$8 sps:$4 sm:$0xff]  }
 0x20b   : > { %4923 = vmatmul.mubr.bf16.vlgmr.msra.gmra.mrb[0].mxu1 %v2889_v17  ;;  %6634 = vmatpush1.bf16.msra.mxu0 %v13769_v12  ;;  %v476_v12 = vpack.c.bf16 %v272_v1, %v260_v0  ;;  %v2938_v17 = vpack.c.bf16 %v10372_v9, %v10360_v8  ;;  %v357_v0 = vld [vmem:[%s14422_s19 + $0x598] sm:$0xff] }
 0x20c   : > { %9082 = vmatpush1.bf16.msra.mxu1 %v13772_v13  ;;  %6635 = vmatprep.subr.bf16.mxu0 %v13777_v20  ;;  %v2925_v13 = vpack.c.bf16 %v10347_v3, %v10335_v2  ;;  %v284_v20 = vld [vmem:[%s14422_s19 + $0x350] sm:$0xff]  ;;  %v369_v1 = vld [vmem:[%s14422_s19 + $0x5f8] sm:$0xff] }
 0x20d   : > { %9083 = vmatprep.subr.bf16.mxu1 %v13780_v21  ;;  %10243 = vmatprep.mubr.msk.bf16.mxu0 %vm1696_vm1, %v453_v24  ;;  %v296_v21 = vld [vmem:[%s14422_s19 + $0x3b0] sm:$0xff]  ;;  %v309_v24 = vld [vmem:[%s14422_s19 + $0x418] sm:$0xff] }
 0x20e   : > { %10886 = vmatprep.mubr.msk.bf16.mxu1 %vm1696_vm1, %v2902_v25  ;;  %v321_v25 = vld [vmem:[%s14422_s19 + $0x478] sm:$0xff]  ;;  %v488_v32 = vpack.c.bf16 %v296_v21, %v284_v20 }
 0x20f   : > { %6636 = vmatpush1.bf16.msra.mxu0 %v13775_v22  ;;  %v10359_v22 = vld [vmem:[%s14422_s19 + $0xb30] sm:$0xff]  ;;  %v10432_v2 = vld [vmem:[%s14422_s19 + $0xd78] sm:$0xff] }
 0x210   : > { %9084 = vmatpush1.bf16.msra.mxu1 %v13778_v23  ;;  %6637 = vmatprep.subr.bf16.mxu0 %v13783_v30  ;;  %v10371_v23 = vld [vmem:[%s14422_s19 + $0xb90] sm:$0xff]  ;;  %v10444_v3 = vld [vmem:[%s14422_s19 + $0xdd8] sm:$0xff] }
 0x211   : > { %9085 = vmatprep.subr.bf16.mxu1 %v13786_v31  ;;  %v13819_v30 = vld [vmem:[%s14374_s15 + $0xc54] ss:$8 sps:$4 sm:$0xff]   ;;  %v2937_v33 = vpack.c.bf16 %v10371_v23, %v10359_v22 }
 0x212   : > { %2485 = vmatmul.mubr.bf16.gmra.mrb[4].mxu0 %v452_v38  ;;  %v13822_v31 = vld [vmem:[%s14374_s15 + $0x123c] ss:$8 sps:$4 sm:$0xff]  }
 0x213   : > { %4933 = vmatmul.mubr.bf16.gmra.mrb[4].mxu1 %v2901_v39  ;;  %6638 = vmatpush1.bf16.msra.mxu0 %v13781_v35  ;;  %v13820_v35 = vld [vmem:[%s14374_s15 + $0x1238] ss:$8 sps:$4 sm:$0xff]   ;;  %v13825_v38 = vld [vmem:[%s14374_s15 + $0xc64] ss:$8 sps:$4 sm:$0xff]  }
 0x214   : > { %9086 = vmatpush1.bf16.msra.mxu1 %v13784_v36  ;;  %10244 = vmatprep.mubr.msk.bf16.mxu0 %vm1696_vm1, %v465_v42  ;;  %v501_v36 = vpack.c.bf16 %v321_v25, %v309_v24  ;;  %v13828_v39 = vld [vmem:[%s14374_s15 + $0x124c] ss:$8 sps:$4 sm:$0xff]   ;;  %v13846_v7 = vld [vmem:[%s14374_s15 + $0x127c] ss:$8 sps:$4 sm:$0xff]   ;;  %v13847_v24 = vld [vmem:[%s14374_s15 + $0xca0] ss:$8 sps:$4 sm:$0xff]  }
 0x215   : > { %10887 = vmatprep.mubr.msk.bf16.mxu1 %vm1696_vm1, %v2914_v43  ;;  %6639 = vmatprep.subr.bf16.mxu0 %v13789_v40  ;;  %v308_v40 = vld [vmem:[%s14422_s19 + $0x410] sm:$0xff]  ;;  %v381_v20 = vld [vmem:[%s14422_s19 + $0x658] sm:$0xff] }
 0x216   : > { %9087 = vmatprep.subr.bf16.mxu1 %v13792_v41  ;;  %v320_v41 = vld [vmem:[%s14422_s19 + $0x470] sm:$0xff]  ;;  %v393_v21 = vld [vmem:[%s14422_s19 + $0x6b8] sm:$0xff] }
 0x217   : > { %6640 = vmatpush1.bf16.msra.mxu0 %v13787_v48  ;;  %v10383_v42 = vld [vmem:[%s14422_s19 + $0xbf0] sm:$0xff]  ;;  %v13823_v48 = vld [vmem:[%s14374_s15 + $0xc60] ss:$8 sps:$4 sm:$0xff]   ;;  %v500_v52 = vpack.c.bf16 %v320_v41, %v308_v40  ;;  %v10456_v22 = vld [vmem:[%s14422_s19 + $0xe38] sm:$0xff] }
 0x218   : > { %9088 = vmatpush1.bf16.msra.mxu1 %v13790_v49  ;;  %6641 = vmatprep.subr.bf16.mxu0 %v13795_v50  ;;  %v10395_v43 = vld [vmem:[%s14422_s19 + $0xc50] sm:$0xff]  ;;  %v10468_v23 = vld [vmem:[%s14422_s19 + $0xe98] sm:$0xff] }
 0x219   : > { %9089 = vmatprep.subr.bf16.mxu1 %v13798_v51  ;;  %v13826_v49 = vld [vmem:[%s14374_s15 + $0x1248] ss:$8 sps:$4 sm:$0xff]   ;;  %v13831_v50 = vld [vmem:[%s14374_s15 + $0xc74] ss:$8 sps:$4 sm:$0xff]   ;;  %v2949_v53 = vpack.c.bf16 %v10395_v43, %v10383_v42 }
 0x21a   : > { %2495 = vmatmul.mubr.bf16.gmra.mrb[8].mxu0 %v464_v56  ;;  %v13834_v51 = vld [vmem:[%s14374_s15 + $0x125c] ss:$8 sps:$4 sm:$0xff]   ;;  %v513_v56 = vpack.c.bf16 %v345_v45, %v333_v44  ;;  %v13850_v25 = vld [vmem:[%s14374_s15 + $0x1288] ss:$8 sps:$4 sm:$0xff]  }
 0x21b   : > { %4943 = vmatmul.mubr.bf16.gmra.mrb[8].mxu1 %v2913_v57  ;;  %10245 = vmatprep.mubr.msk.bf16.mxu0 %vm1696_vm1, %v477_v60  ;;  %v2962_v57 = vpack.c.bf16 %v10420_v47, %v10408_v46  ;;  %v332_v60 = vld [vmem:[%s14422_s19 + $0x4d0] sm:$0xff]  ;;  %v405_v40 = vld [vmem:[%s14422_s19 + $0x718] sm:$0xff]  ;;  %v13859_v44 = vld [vmem:[%s14374_s15 + $0xcc0] ss:$8 sps:$4 sm:$0xff]  }
 0x21c   : > { %10888 = vmatprep.mubr.msk.bf16.mxu1 %vm1696_vm1, %v2926_v61  ;;  %6642 = vmatpush1.bf16.msra.mxu0 %v13793_v58  ;;  %v13837_v58 = vld [vmem:[%s14374_s15 + $0xc84] ss:$8 sps:$4 sm:$0xff]   ;;  %v344_v61 = vld [vmem:[%s14422_s19 + $0x530] sm:$0xff]  ;;  %v417_v41 = vld [vmem:[%s14422_s19 + $0x778] sm:$0xff] }
 0x21d   : > { %9090 = vmatpush1.bf16.msra.mxu1 %v13796_v59  ;;  %6643 = vmatprep.subr.bf16.mxu0 %v13801_v62  ;;  %v13840_v59 = vld [vmem:[%s14374_s15 + $0x126c] ss:$8 sps:$4 sm:$0xff]   ;;  %v512_v8 = vpack.c.bf16 %v344_v61, %v332_v60  ;;  %v10480_v42 = vld [vmem:[%s14422_s19 + $0xef8] sm:$0xff]  ;;  %v13862_v45 = vld [vmem:[%s14374_s15 + $0x12a8] ss:$8 sps:$4 sm:$0xff]  }
 0x21e   : > { %9091 = vmatprep.subr.bf16.mxu1 %v13804_v63  ;;  %v10407_v62 = vld [vmem:[%s14422_s19 + $0xcb0] sm:$0xff]  ;;  %v10492_v43 = vld [vmem:[%s14422_s19 + $0xf58] sm:$0xff] }
 0x21f   : > { %v10419_v63 = vld [vmem:[%s14422_s19 + $0xd10] sm:$0xff]  ;;  %v13870_v47 = vld [vmem:[%s14374_s15 + $0x12bc] ss:$8 sps:$4 sm:$0xff]  }
 0x220   : > { %6644 = vmatpush1.bf16.msra.mxu0 %v13799_v4  ;;  %v13835_v4 = vld [vmem:[%s14374_s15 + $0xc80] ss:$8 sps:$4 sm:$0xff]   ;;  %v2961_v9 = vpack.c.bf16 %v10419_v63, %v10407_v62  ;;  %v13867_v46 = vld [vmem:[%s14374_s15 + $0xcd4] ss:$8 sps:$4 sm:$0xff]  }
 0x221   : > { %9092 = vmatpush1.bf16.msra.mxu1 %v13802_v5  ;;  %6645 = vmatprep.subr.bf16.mxu0 %v13807_v10  ;;  %v13838_v5 = vld [vmem:[%s14374_s15 + $0x1268] ss:$8 sps:$4 sm:$0xff]  }
 0x222   : > { %9093 = vmatprep.subr.bf16.mxu1 %v13810_v11  ;;  %2505 = vmatmul.mubr.bf16.gmra.mrb[12].mxu0 %v476_v12  ;;  %v13841_v10 = vld [vmem:[%s14374_s15 + $0xc90] ss:$8 sps:$4 sm:$0xff]   ;;  %v525_v12 = vpack.c.bf16 %v369_v1, %v357_v0  ;;  %v10939_v0 = vld [vmem:[%s14422_s19 + $0xfc8] sm:$0xff] }
 0x223   : > { %4953 = vmatmul.mubr.bf16.gmra.mrb[12].mxu1 %v2925_v13  ;;  %10246 = vmatprep.mubr.msk.bf16.mxu0 %vm1696_vm1, %v489_v16  ;;  %v13844_v11 = vld [vmem:[%s14374_s15 + $0x1278] ss:$8 sps:$4 sm:$0xff]   ;;  %v2974_v13 = vpack.c.bf16 %v10444_v3, %v10432_v2  ;;  %v356_v16 = vld [vmem:[%s14422_s19 + $0x590] sm:$0xff]  ;;  %v10951_v1 = vld [vmem:[%s14422_s19 + $0x1028] sm:$0xff] }
 0x224   : > { %10889 = vmatprep.mubr.msk.bf16.mxu1 %vm1696_vm1, %v2938_v17  ;;  %6646 = vmatpush1.bf16.msra.mxu0 %v13805_v14  ;;  %v13849_v14 = vld [vmem:[%s14374_s15 + $0xca4] ss:$8 sps:$4 sm:$0xff]   ;;  %v368_v17 = vld [vmem:[%s14422_s19 + $0x5f0] sm:$0xff] }
 0x225   : > { %9094 = vmatpush1.bf16.msra.mxu1 %v13808_v15  ;;  %6647 = vmatprep.subr.bf16.mxu0 %v13813_v18  ;;  %v13852_v15 = vld [vmem:[%s14374_s15 + $0x128c] ss:$8 sps:$4 sm:$0xff]  }
 0x226   : > { %9095 = vmatprep.subr.bf16.mxu1 %v13816_v19  ;;  %v10431_v18 = vld [vmem:[%s14422_s19 + $0xd70] sm:$0xff]  ;;  %v11624_v2 = vld [vmem:[%s14422_s19 + $0x17a8] sm:$0xff] }
 0x227   : > { %v10443_v19 = vld [vmem:[%s14422_s19 + $0xdd0] sm:$0xff]  ;;  %v11636_v3 = vld [vmem:[%s14422_s19 + $0x1808] sm:$0xff] }
 0x228   : > { %6648 = vmatpush1.bf16.msra.mxu0 %v13811_v28  ;;  %v524_v28 = vpack.c.bf16 %v368_v17, %v356_v16  ;;  %v428_v62 = vld [vmem:[%s14422_s19 + $0x7d0] sm:$0xff]  ;;  %v11648_v16 = vld [vmem:[%s14422_s19 + $0x1868] sm:$0xff] }
 0x229   : > { %9096 = vmatpush1.bf16.msra.mxu1 %v13814_v29  ;;  %6649 = vmatprep.subr.bf16.mxu0 %v13819_v30  ;;  %v2973_v29 = vpack.c.bf16 %v10443_v19, %v10431_v18  ;;  %v537_v30 = vpack.c.bf16 %v393_v21, %v381_v20  ;;  %v10503_v63 = vld [vmem:[%s14422_s19 + $0xfb0] sm:$0xff]  ;;  %v11660_v17 = vld [vmem:[%s14422_s19 + $0x18c8] sm:$0xff]  ;;  %v13868_v19 = vld [vmem:[%s14374_s15 + $0x12b8] ss:$8 sps:$4 sm:$0xff]  }
 0x22a   : > { %9097 = vmatprep.subr.bf16.mxu1 %v13822_v31  ;;  %2515 = vmatmul.mubr.bf16.gmra.mrb[16].mxu0 %v488_v32  ;;  %v2986_v31 = vpack.c.bf16 %v10468_v23, %v10456_v22  ;;  %v13853_v32 = vld [vmem:[%s14374_s15 + $0xcb0] ss:$8 sps:$4 sm:$0xff]   ;;  %v13873_v20 = vld [vmem:[%s14374_s15 + $0xce4] ss:$8 sps:$4 sm:$0xff]   ;;  %v13871_v22 = vld [vmem:[%s14374_s15 + $0xce0] ss:$8 sps:$4 sm:$0xff]  }
 0x22b   : > { %4963 = vmatmul.mubr.bf16.gmra.mrb[16].mxu1 %v2937_v33  ;;  %10247 = vmatprep.mubr.msk.bf16.mxu0 %vm1696_vm1, %v501_v36  ;;  %v13856_v33 = vld [vmem:[%s14374_s15 + $0x1298] ss:$8 sps:$4 sm:$0xff]   ;;  %v380_v36 = vld [vmem:[%s14422_s19 + $0x650] sm:$0xff] }
 0x22c   : > { %10890 = vmatprep.mubr.msk.bf16.mxu1 %vm1696_vm1, %v2950_v37  ;;  %6650 = vmatpush1.bf16.msra.mxu0 %v13817_v34  ;;  %v13861_v34 = vld [vmem:[%s14374_s15 + $0xcc4] ss:$8 sps:$4 sm:$0xff]   ;;  %v392_v37 = vld [vmem:[%s14422_s19 + $0x6b0] sm:$0xff] }
 0x22d   : > { %9098 = vmatpush1.bf16.msra.mxu1 %v13820_v35  ;;  %6651 = vmatprep.subr.bf16.mxu0 %v13825_v38  ;;  %v13864_v35 = vld [vmem:[%s14374_s15 + $0x12ac] ss:$8 sps:$4 sm:$0xff]   ;;  %v13865_v18 = vld [vmem:[%s14374_s15 + $0xcd0] ss:$8 sps:$4 sm:$0xff]  }
 0x22e   : > { %9099 = vmatprep.subr.bf16.mxu1 %v13828_v39  ;;  %v10455_v38 = vld [vmem:[%s14422_s19 + $0xe30] sm:$0xff] }
 0x22f   : > { %v10467_v39 = vld [vmem:[%s14422_s19 + $0xe90] sm:$0xff] }
 0x230   : > { %6652 = vmatpush1.bf16.msra.mxu0 %v13823_v48  ;;  %v536_v48 = vpack.c.bf16 %v392_v37, %v380_v36  ;;  %v13876_v21 = vld [vmem:[%s14374_s15 + $0x12cc] ss:$8 sps:$4 sm:$0xff]   ;;  %v13874_v23 = vld [vmem:[%s14374_s15 + $0x12c8] ss:$8 sps:$4 sm:$0xff]  }
 0x231   : > { %9100 = vmatpush1.bf16.msra.mxu1 %v13826_v49  ;;  %6653 = vmatprep.subr.bf16.mxu0 %v13831_v50  ;;  %v2985_v49 = vpack.c.bf16 %v10467_v39, %v10455_v38  ;;  %v549_v50 = vpack.c.bf16 %v417_v41, %v405_v40  ;;  %v13877_v38 = vld [vmem:[%s14374_s15 + $0xcf0] ss:$8 sps:$4 sm:$0xff]  }
 0x232   : > { %9101 = vmatprep.subr.bf16.mxu1 %v13834_v51  ;;  %2525 = vmatmul.mubr.bf16.gmra.mrb[20].mxu0 %v500_v52  ;;  %v2998_v51 = vpack.c.bf16 %v10492_v43, %v10480_v42  ;;  %v404_v52 = vld [vmem:[%s14422_s19 + $0x710] sm:$0xff]  ;;  %v13880_v39 = vld [vmem:[%s14374_s15 + $0x12d8] ss:$8 sps:$4 sm:$0xff]  }
 0x233   : > { %4973 = vmatmul.mubr.bf16.gmra.mrb[20].mxu1 %v2949_v53  ;;  %10248 = vmatprep.mubr.msk.bf16.mxu0 %vm1696_vm1, %v513_v56  ;;  %v416_v53 = vld [vmem:[%s14422_s19 + $0x770] sm:$0xff]  ;;  %v429_v56 = vld [vmem:[%s14422_s19 + $0x7d8] sm:$0xff]  ;;  %v10986_v42 = vld [vmem:[%s14422_s19 + $0x1140] sm:$0xff] }
 0x234   : > { %10891 = vmatprep.mubr.msk.bf16.mxu1 %vm1696_vm1, %v2962_v57  ;;  %6654 = vmatpush1.bf16.msra.mxu0 %v13829_v54  ;;  %v10479_v54 = vld [vmem:[%s14422_s19 + $0xef0] sm:$0xff]  ;;  %v10504_v57 = vld [vmem:[%s14422_s19 + $0xfb8] sm:$0xff]  ;;  %v561_v60 = vpack.c.bf16 %v429_v56, %v429_v56  ;;  %v10998_v43 = vld [vmem:[%s14422_s19 + $0x11a0] sm:$0xff] }
 0x235   : > { %9102 = vmatpush1.bf16.msra.mxu1 %v13832_v55  ;;  %6655 = vmatprep.subr.bf16.mxu0 %v13837_v58  ;;  %v10491_v55 = vld [vmem:[%s14422_s19 + $0xf50] sm:$0xff]  ;;  %v548_v58 = vpack.c.bf16 %v416_v53, %v404_v52  ;;  %v3010_v61 = vpack.c.bf16 %v10504_v57, %v10504_v57  ;;  %v11011_v52 = vld [vmem:[%s14422_s19 + $0x1208] sm:$0xff]  ;;  %v5351_v56 = vpack.c.bf16 %v10998_v43, %v10986_v42  ;;  %v11743_v42 = vld [vmem:[%s14422_s19 + $0x1b60] sm:$0xff] }
 0x236   : > { %9103 = vmatprep.subr.bf16.mxu1 %v13840_v59  ;;  %v2997_v59 = vpack.c.bf16 %v10491_v55, %v10479_v54  ;;  %v11023_v53 = vld [vmem:[%s14422_s19 + $0x1268] sm:$0xff]  ;;  %v11755_v43 = vld [vmem:[%s14422_s19 + $0x1bc0] sm:$0xff] }
 0x237   : > { %v11696_v54 = vld [vmem:[%s14422_s19 + $0x19e8] sm:$0xff] }
 0x238   : > { %6656 = vmatpush1.bf16.msra.mxu0 %v13835_v4  ;;  %v560_v4 = vpack.c.bf16 %v428_v62, %v428_v62  ;;  %v11708_v55 = vld [vmem:[%s14422_s19 + $0x1a48] sm:$0xff] }
 0x239   : > { %9104 = vmatpush1.bf16.msra.mxu1 %v13838_v5  ;;  %6657 = vmatprep.subr.bf16.mxu0 %v13843_v6  ;;  %v3009_v5 = vpack.c.bf16 %v10503_v63, %v10503_v63  ;;  %v5328_v6 = vpack.c.bf16 %v10951_v1, %v10939_v0  ;;  %v13897_v62 = vld [vmem:[%s14374_s15 + $0xd24] ss:$8 sps:$4 sm:$0xff]  }
 0x23a   : > { %9105 = vmatprep.subr.bf16.mxu1 %v13846_v7  ;;  %2535 = vmatmul.mubr.bf16.gmra.mrb[24].mxu0 %v512_v8  ;;  %v7776_v7 = vpack.c.bf16 %v11636_v3, %v11624_v2  ;;  %v10938_v8 = vld [vmem:[%s14422_s19 + $0xfc0] sm:$0xff]  ;;  %v13900_v63 = vld [vmem:[%s14374_s15 + $0x130c] ss:$8 sps:$4 sm:$0xff]  }
 0x23b   : > { %4983 = vmatmul.mubr.bf16.gmra.mrb[24].mxu1 %v2961_v9  ;;  %10249 = vmatprep.mubr.msk.bf16.mxu0 %vm1696_vm1, %v525_v12  ;;  %v10950_v9 = vld [vmem:[%s14422_s19 + $0x1020] sm:$0xff]  ;;  %v10963_v12 = vld [vmem:[%s14422_s19 + $0x1088] sm:$0xff] }
 0x23c   : > { %10892 = vmatprep.mubr.msk.bf16.mxu1 %vm1696_vm1, %v2974_v13  ;;  %6658 = vmatpush1.bf16.msra.mxu0 %v13841_v10  ;;  %v11623_v10 = vld [vmem:[%s14422_s19 + $0x17a0] sm:$0xff]  ;;  %v5327_v13 = vpack.c.bf16 %v10950_v9, %v10938_v8  ;;  %v11720_v8 = vld [vmem:[%s14422_s19 + $0x1aa8] sm:$0xff] }
 0x23d   : > { %9106 = vmatpush1.bf16.msra.mxu1 %v13844_v11  ;;  %6659 = vmatprep.subr.bf16.mxu0 %v13849_v14  ;;  %v11635_v11 = vld [vmem:[%s14422_s19 + $0x1800] sm:$0xff]  ;;  %v11732_v9 = vld [vmem:[%s14422_s19 + $0x1b08] sm:$0xff] }
 0x23e   : > { %9107 = vmatprep.subr.bf16.mxu1 %v13852_v15  ;;  %v7775_v14 = vpack.c.bf16 %v11635_v11, %v11623_v10  ;;  %v10975_v15 = vld [vmem:[%s14422_s19 + $0x10e8] sm:$0xff]  ;;  %v11010_v0 = vld [vmem:[%s14422_s19 + $0x1200] sm:$0xff]  ;;  %v13903_v10 = vld [vmem:[%s14374_s15 + $0xd34] ss:$8 sps:$4 sm:$0xff]  }
 0x23f   : > { %v11022_v1 = vld [vmem:[%s14422_s19 + $0x1260] sm:$0xff] }
 0x240   : > { %6660 = vmatpush1.bf16.msra.mxu0 %v13847_v24  ;;  %v5340_v24 = vpack.c.bf16 %v10975_v15, %v10963_v12  ;;  %v11695_v2 = vld [vmem:[%s14422_s19 + $0x19e0] sm:$0xff]  ;;  %v5363_v12 = vpack.c.bf16 %v11022_v1, %v11010_v0  ;;  %v7824_v15 = vpack.c.bf16 %v11732_v9, %v11720_v8  ;;  %v11107_v0 = vld [vmem:[%s14422_s19 + $0x1508] sm:$0xff] }
 0x241   : > { %9108 = vmatpush1.bf16.msra.mxu1 %v13850_v25  ;;  %6661 = vmatprep.subr.bf16.mxu0 %v13855_v26  ;;  %v7788_v25 = vpack.c.bf16 %v11660_v17, %v11648_v16  ;;  %v10962_v26 = vld [vmem:[%s14422_s19 + $0x1080] sm:$0xff]  ;;  %v13901_v16 = vld [vmem:[%s14374_s15 + $0xd30] ss:$8 sps:$4 sm:$0xff]   ;;  %v11119_v1 = vld [vmem:[%s14422_s19 + $0x1568] sm:$0xff] }
 0x242   : > { %9109 = vmatprep.subr.bf16.mxu1 %v13858_v27  ;;  %2545 = vmatmul.mubr.bf16.gmra.mrb[28].mxu0 %v524_v28  ;;  %v10974_v27 = vld [vmem:[%s14422_s19 + $0x10e0] sm:$0xff] }
 0x243   : > { %4993 = vmatmul.mubr.bf16.gmra.mrb[28].mxu1 %v2973_v29  ;;  %10250 = vmatprep.mubr.msk.bf16.mxu0 %vm1696_vm1, %v537_v30  ;;  %v11647_v28 = vld [vmem:[%s14422_s19 + $0x1860] sm:$0xff]  ;;  %v13879_v30 = vld [vmem:[%s14374_s15 + $0xcf4] ss:$8 sps:$4 sm:$0xff]   ;;  %v5339_v36 = vpack.c.bf16 %v10974_v27, %v10962_v26  ;;  %v11744_v27 = vld [vmem:[%s14422_s19 + $0x1b68] sm:$0xff] }
 0x244   : > { %10893 = vmatprep.mubr.msk.bf16.mxu1 %vm1696_vm1, %v2986_v31  ;;  %6662 = vmatpush1.bf16.msra.mxu0 %v13853_v32  ;;  %v11659_v29 = vld [vmem:[%s14422_s19 + $0x18c0] sm:$0xff]  ;;  %v10987_v32 = vld [vmem:[%s14422_s19 + $0x1148] sm:$0xff] }
 0x245   : > { %9110 = vmatpush1.bf16.msra.mxu1 %v13856_v33  ;;  %6663 = vmatprep.subr.bf16.mxu0 %v13861_v34  ;;  %v13882_v31 = vld [vmem:[%s14374_s15 + $0x12dc] ss:$8 sps:$4 sm:$0xff]   ;;  %v10999_v33 = vld [vmem:[%s14422_s19 + $0x11a8] sm:$0xff]  ;;  %v7787_v37 = vpack.c.bf16 %v11659_v29, %v11647_v28  ;;  %v13904_v17 = vld [vmem:[%s14374_s15 + $0x1318] ss:$8 sps:$4 sm:$0xff]  }
 0x246   : > { %9111 = vmatprep.subr.bf16.mxu1 %v13864_v35  ;;  %v11672_v34 = vld [vmem:[%s14422_s19 + $0x1928] sm:$0xff]  ;;  %v5352_v40 = vpack.c.bf16 %v10999_v33, %v10987_v32  ;;  %v11707_v3 = vld [vmem:[%s14422_s19 + $0x1a40] sm:$0xff] }
 0x247   : > { %v11684_v35 = vld [vmem:[%s14422_s19 + $0x1988] sm:$0xff]  ;;  %v13906_v11 = vld [vmem:[%s14374_s15 + $0x131c] ss:$8 sps:$4 sm:$0xff]  }
 0x248   : > { %6664 = vmatpush1.bf16.msra.mxu0 %v13859_v44  ;;  %v7800_v41 = vpack.c.bf16 %v11684_v35, %v11672_v34  ;;  %v11671_v44 = vld [vmem:[%s14422_s19 + $0x1920] sm:$0xff]  ;;  %v11756_v28 = vld [vmem:[%s14422_s19 + $0x1bc8] sm:$0xff] }
 0x249   : > { %9112 = vmatpush1.bf16.msra.mxu1 %v13862_v45  ;;  %6774 = vmatprep.subr.bf16.mxu0 %v13867_v46  ;;  %v11683_v45 = vld [vmem:[%s14422_s19 + $0x1980] sm:$0xff]  ;;  %v13910_v29 = vld [vmem:[%s14374_s15 + $0x1328] ss:$8 sps:$4 sm:$0xff]   ;;  %v7836_v35 = vpack.c.bf16 %v11756_v28, %v11744_v27 }
 0x24a   : > { %9222 = vmatprep.subr.bf16.mxu1 %v13870_v47  ;;  %2555 = vmatmul.mubr.bf16.gmra.mrb[32].mxu0 %v536_v48  ;;  %v13883_v46 = vld [vmem:[%s14374_s15 + $0xd00] ss:$8 sps:$4 sm:$0xff]   ;;  %v13885_v47 = vld [vmem:[%s14374_s15 + $0xd04] ss:$8 sps:$4 sm:$0xff]   ;;  %v7799_v57 = vpack.c.bf16 %v11683_v45, %v11671_v44 }
 0x24b   : > { %5003 = vmatmul.mubr.bf16.gmra.mrb[32].mxu1 %v2985_v49  ;;  %10251 = vmatprep.mubr.msk.bf16.mxu0 %vm1696_vm1, %v549_v50  ;;  %v13886_v48 = vld [vmem:[%s14374_s15 + $0x12e8] ss:$8 sps:$4 sm:$0xff]   ;;  %v13888_v49 = vld [vmem:[%s14374_s15 + $0x12ec] ss:$8 sps:$4 sm:$0xff]   ;;  %v13954_v27 = vld [vmem:[%s14374_s15 + $0x139c] ss:$8 sps:$4 sm:$0xff]  }
 0x24c   : > { %10894 = vmatprep.mubr.msk.bf16.mxu1 %vm1696_vm1, %v2998_v51  ;;  %v13891_v50 = vld [vmem:[%s14374_s15 + $0xd14] ss:$8 sps:$4 sm:$0xff]   ;;  %v13907_v26 = vld [vmem:[%s14374_s15 + $0xd40] ss:$8 sps:$4 sm:$0xff]  }
 0x24d   : > { %v13894_v51 = vld [vmem:[%s14374_s15 + $0x12fc] ss:$8 sps:$4 sm:$0xff]   ;;  %v11083_v44 = vld [vmem:[%s14422_s19 + $0x1448] sm:$0xff] }
 0x24e   : > { %v11095_v45 = vld [vmem:[%s14422_s19 + $0x14a8] sm:$0xff] }
 0x252   : > { %2565 = vmatmul.mubr.bf16.gmra.mrb[36].mxu0 %v548_v58  ;;  %v13889_v58 = vld [vmem:[%s14374_s15 + $0xd10] ss:$8 sps:$4 sm:$0xff]  }
 0x253   : > { %5013 = vmatmul.mubr.bf16.gmra.mrb[36].mxu1 %v2997_v59  ;;  %10252 = vmatprep.mubr.msk.bf16.mxu0 %vm1696_vm1, %v561_v60  ;;  %v13892_v59 = vld [vmem:[%s14374_s15 + $0x12f8] ss:$8 sps:$4 sm:$0xff]   ;;  %v5364_v60 = vpack.c.bf16 %v11023_v53, %v11011_v52  ;;  %v7835_v53 = vpack.c.bf16 %v11755_v43, %v11743_v42  ;;  %v11840_v42 = vld [vmem:[%s14422_s19 + $0x1e68] sm:$0xff] }
 0x254   : > { %10895 = vmatprep.mubr.msk.bf16.mxu1 %vm1696_vm1, %v3010_v61  ;;  %v7812_v61 = vpack.c.bf16 %v11708_v55, %v11696_v54  ;;  %v5400_v54 = vpack.c.bf16 %v11095_v45, %v11083_v44  ;;  %v11852_v43 = vld [vmem:[%s14422_s19 + $0x1ec8] sm:$0xff] }
 0x255   : > { %v13955_v44 = vld [vmem:[%s14374_s15 + $0xdc0] ss:$8 sps:$4 sm:$0xff]  }
 0x256   : > { %v13958_v45 = vld [vmem:[%s14374_s15 + $0x13a8] ss:$8 sps:$4 sm:$0xff]  }
 0x25a   : > { %2575 = vmatmul.mubr.bf16.gmra.mrb[40].mxu0 %v560_v4  ;;  %v13895_v4 = vld [vmem:[%s14374_s15 + $0xd20] ss:$8 sps:$4 sm:$0xff]  }
 0x25b   : > { %5023 = vmatmul.mubr.bf16.gmra.mrb[40].mxu1 %v3009_v5  ;;  %6665 = vmatprep.mubr.bf16.mxu0 %v5328_v6  ;;  %v13898_v5 = vld [vmem:[%s14374_s15 + $0x1308] ss:$8 sps:$4 sm:$0xff]  }
 0x25c   : > { %9113 = vmatprep.mubr.bf16.mxu1 %v7776_v7  ;;  %v11035_v6 = vld [vmem:[%s14422_s19 + $0x12c8] sm:$0xff] }
 0x25d   : > { %v11047_v7 = vld [vmem:[%s14422_s19 + $0x1328] sm:$0xff] }
 0x262   : > { %6666 = vmatmul.mubr.bf16.vlgmr.msra.gmra.mrb[44].mxu0 %v5327_v13  ;;  %v7811_v13 = vpack.c.bf16 %v11707_v3, %v11695_v2  ;;  %v11792_v2 = vld [vmem:[%s14422_s19 + $0x1ce8] sm:$0xff] }
 0x263   : > { %9114 = vmatmul.mubr.bf16.vlgmr.msra.gmra.mrb[44].mxu1 %v7775_v14  ;;  %6775 = vmatpush1.bf16.msra.mxu0 %v13865_v18  ;;  %v5376_v14 = vpack.c.bf16 %v11047_v7, %v11035_v6  ;;  %v11034_v18 = vld [vmem:[%s14422_s19 + $0x12c0] sm:$0xff]  ;;  %v11804_v3 = vld [vmem:[%s14422_s19 + $0x1d48] sm:$0xff]  ;;  %v13939_v6 = vld [vmem:[%s14374_s15 + $0xd94] ss:$8 sps:$4 sm:$0xff]  }
 0x264   : > { %9223 = vmatpush1.bf16.msra.mxu1 %v13868_v19  ;;  %6776 = vmatprep.subr.bf16.mxu0 %v13873_v20  ;;  %v11046_v19 = vld [vmem:[%s14422_s19 + $0x1320] sm:$0xff] }
 0x265   : > { %9224 = vmatprep.subr.bf16.mxu1 %v13876_v21  ;;  %6675 = vmatprep.mubr.bf16.mxu0 %v5340_v24  ;;  %v11719_v20 = vld [vmem:[%s14422_s19 + $0x1aa0] sm:$0xff]  ;;  %v11059_v24 = vld [vmem:[%s14422_s19 + $0x1388] sm:$0xff]  ;;  %v5375_v32 = vpack.c.bf16 %v11046_v19, %v11034_v18 }
 0x266   : > { %9123 = vmatprep.mubr.bf16.mxu1 %v7788_v25  ;;  %v11731_v21 = vld [vmem:[%s14422_s19 + $0x1b00] sm:$0xff]  ;;  %v11071_v25 = vld [vmem:[%s14422_s19 + $0x13e8] sm:$0xff] }
 0x267   : > { %6777 = vmatpush1.bf16.msra.mxu0 %v13871_v22  ;;  %v13909_v22 = vld [vmem:[%s14374_s15 + $0xd44] ss:$8 sps:$4 sm:$0xff]   ;;  %v7823_v33 = vpack.c.bf16 %v11731_v21, %v11719_v20  ;;  %v5388_v34 = vpack.c.bf16 %v11071_v25, %v11059_v24  ;;  %v13943_v24 = vld [vmem:[%s14374_s15 + $0xda0] ss:$8 sps:$4 sm:$0xff]  }
 0x268   : > { %9225 = vmatpush1.bf16.msra.mxu1 %v13874_v23  ;;  %6778 = vmatprep.subr.bf16.mxu0 %v13879_v30  ;;  %v13912_v23 = vld [vmem:[%s14374_s15 + $0x132c] ss:$8 sps:$4 sm:$0xff]   ;;  %v13942_v7 = vld [vmem:[%s14374_s15 + $0x137c] ss:$8 sps:$4 sm:$0xff]   ;;  %v13946_v25 = vld [vmem:[%s14374_s15 + $0x1388] ss:$8 sps:$4 sm:$0xff]  }
 0x269   : > { %9226 = vmatprep.subr.bf16.mxu1 %v13882_v31  ;;  %v13915_v30 = vld [vmem:[%s14374_s15 + $0xd54] ss:$8 sps:$4 sm:$0xff]   ;;  %v11791_v18 = vld [vmem:[%s14422_s19 + $0x1ce0] sm:$0xff]  ;;  %v11131_v20 = vld [vmem:[%s14422_s19 + $0x15c8] sm:$0xff] }
 0x26a   : > { %6676 = vmatmul.mubr.bf16.gmra.mrb[48].mxu0 %v5339_v36  ;;  %v13918_v31 = vld [vmem:[%s14374_s15 + $0x133c] ss:$8 sps:$4 sm:$0xff]   ;;  %v13913_v36 = vld [vmem:[%s14374_s15 + $0xd50] ss:$8 sps:$4 sm:$0xff]   ;;  %v11143_v21 = vld [vmem:[%s14422_s19 + $0x1628] sm:$0xff] }
 0x26b   : > { %9124 = vmatmul.mubr.bf16.gmra.mrb[48].mxu1 %v7787_v37  ;;  %6779 = vmatpush1.bf16.msra.mxu0 %v13877_v38  ;;  %v13916_v37 = vld [vmem:[%s14374_s15 + $0x1338] ss:$8 sps:$4 sm:$0xff]   ;;  %v13921_v38 = vld [vmem:[%s14374_s15 + $0xd64] ss:$8 sps:$4 sm:$0xff]  }
 0x26c   : > { %9227 = vmatpush1.bf16.msra.mxu1 %v13880_v39  ;;  %6685 = vmatprep.mubr.bf16.mxu0 %v5352_v40  ;;  %v13924_v39 = vld [vmem:[%s14374_s15 + $0x134c] ss:$8 sps:$4 sm:$0xff]   ;;  %v11058_v40 = vld [vmem:[%s14422_s19 + $0x1380] sm:$0xff] }
 0x26d   : > { %9133 = vmatprep.mubr.bf16.mxu1 %v7800_v41  ;;  %6780 = vmatprep.subr.bf16.mxu0 %v13885_v47  ;;  %v11070_v41 = vld [vmem:[%s14422_s19 + $0x13e0] sm:$0xff]  ;;  %v11780_v47 = vld [vmem:[%s14422_s19 + $0x1c88] sm:$0xff] }
 0x26e   : > { %9228 = vmatprep.subr.bf16.mxu1 %v13888_v49  ;;  %v13922_v49 = vld [vmem:[%s14374_s15 + $0x1348] ss:$8 sps:$4 sm:$0xff]   ;;  %v5387_v52 = vpack.c.bf16 %v11070_v41, %v11058_v40  ;;  %v11803_v19 = vld [vmem:[%s14422_s19 + $0x1d40] sm:$0xff] }
 0x26f   : > { %6781 = vmatpush1.bf16.msra.mxu0 %v13883_v46  ;;  %v11768_v46 = vld [vmem:[%s14422_s19 + $0x1c28] sm:$0xff] }
 0x270   : > { %9229 = vmatpush1.bf16.msra.mxu1 %v13886_v48  ;;  %6782 = vmatprep.subr.bf16.mxu0 %v13891_v50  ;;  %v13919_v48 = vld [vmem:[%s14374_s15 + $0xd60] ss:$8 sps:$4 sm:$0xff]   ;;  %v13927_v50 = vld [vmem:[%s14374_s15 + $0xd74] ss:$8 sps:$4 sm:$0xff]   ;;  %v7848_v55 = vpack.c.bf16 %v11780_v47, %v11768_v46 }
 0x271   : > { %9230 = vmatprep.subr.bf16.mxu1 %v13894_v51  ;;  %v13930_v51 = vld [vmem:[%s14374_s15 + $0x135c] ss:$8 sps:$4 sm:$0xff]   ;;  %v11155_v40 = vld [vmem:[%s14422_s19 + $0x1688] sm:$0xff] }
 0x272   : > { %6686 = vmatmul.mubr.bf16.gmra.mrb[52].mxu0 %v5351_v56  ;;  %v13925_v56 = vld [vmem:[%s14374_s15 + $0xd70] ss:$8 sps:$4 sm:$0xff]   ;;  %v11167_v41 = vld [vmem:[%s14422_s19 + $0x16e8] sm:$0xff]  ;;  %v13963_v46 = vld [vmem:[%s14374_s15 + $0xdd4] ss:$8 sps:$4 sm:$0xff]  }
 0x273   : > { %9134 = vmatmul.mubr.bf16.gmra.mrb[52].mxu1 %v7799_v57  ;;  %6695 = vmatprep.mubr.bf16.mxu0 %v5364_v60  ;;  %v13928_v57 = vld [vmem:[%s14374_s15 + $0x1358] ss:$8 sps:$4 sm:$0xff]   ;;  %v13966_v47 = vld [vmem:[%s14374_s15 + $0x13bc] ss:$8 sps:$4 sm:$0xff]  }
 0x274   : > { %6783 = vmatpush1.bf16.msra.mxu0 %v13889_v58  ;;  %9143 = vmatprep.mubr.bf16.mxu1 %v7812_v61  ;;  %v11082_v58 = vld [vmem:[%s14422_s19 + $0x1440] sm:$0xff] }
 0x275   : > { %9231 = vmatpush1.bf16.msra.mxu1 %v13892_v59  ;;  %6784 = vmatprep.subr.bf16.mxu0 %v13897_v62  ;;  %v11094_v59 = vld [vmem:[%s14422_s19 + $0x14a0] sm:$0xff] }
 0x276   : > { %9232 = vmatprep.subr.bf16.mxu1 %v13900_v63  ;;  %v11767_v60 = vld [vmem:[%s14422_s19 + $0x1c20] sm:$0xff]  ;;  %v13936_v63 = vld [vmem:[%s14374_s15 + $0x136c] ss:$8 sps:$4 sm:$0xff]   ;;  %v5399_v8 = vpack.c.bf16 %v11094_v59, %v11082_v58 }
 0x277   : > { %v11779_v61 = vld [vmem:[%s14422_s19 + $0x1c80] sm:$0xff] }
 0x278   : > { %6785 = vmatpush1.bf16.msra.mxu0 %v13895_v4  ;;  %v13933_v62 = vld [vmem:[%s14374_s15 + $0xd84] ss:$8 sps:$4 sm:$0xff]   ;;  %v13931_v4 = vld [vmem:[%s14374_s15 + $0xd80] ss:$8 sps:$4 sm:$0xff]   ;;  %v7847_v9 = vpack.c.bf16 %v11779_v61, %v11767_v60 }
 0x279   : > { %9233 = vmatpush1.bf16.msra.mxu1 %v13898_v5  ;;  %6786 = vmatprep.subr.bf16.mxu0 %v13903_v10  ;;  %v13934_v5 = vld [vmem:[%s14374_s15 + $0x1368] ss:$8 sps:$4 sm:$0xff]   ;;  %v5412_v10 = vpack.c.bf16 %v11119_v1, %v11107_v0  ;;  %v10941_v0 = vld [vmem:[%s14422_s19 + $0xfd8] sm:$0xff] }
 0x27a   : > { %9234 = vmatprep.subr.bf16.mxu1 %v13906_v11  ;;  %6696 = vmatmul.mubr.bf16.gmra.mrb[56].mxu0 %v5363_v12  ;;  %v7860_v11 = vpack.c.bf16 %v11804_v3, %v11792_v2  ;;  %v13937_v12 = vld [vmem:[%s14374_s15 + $0xd90] ss:$8 sps:$4 sm:$0xff]  }
 0x27b   : > { %9144 = vmatmul.mubr.bf16.gmra.mrb[56].mxu1 %v7811_v13  ;;  %6705 = vmatprep.mubr.bf16.mxu0 %v5376_v14  ;;  %v13940_v13 = vld [vmem:[%s14374_s15 + $0x1378] ss:$8 sps:$4 sm:$0xff]   ;;  %v13945_v14 = vld [vmem:[%s14374_s15 + $0xda4] ss:$8 sps:$4 sm:$0xff]  }
 0x27c   : > { %9153 = vmatprep.mubr.bf16.mxu1 %v7824_v15  ;;  %6787 = vmatpush1.bf16.msra.mxu0 %v13901_v16  ;;  %v13948_v15 = vld [vmem:[%s14374_s15 + $0x138c] ss:$8 sps:$4 sm:$0xff]   ;;  %v11106_v16 = vld [vmem:[%s14422_s19 + $0x1500] sm:$0xff]  ;;  %v10953_v1 = vld [vmem:[%s14422_s19 + $0x1038] sm:$0xff] }
 0x27d   : > { %9235 = vmatpush1.bf16.msra.mxu1 %v13904_v17  ;;  %6788 = vmatprep.subr.bf16.mxu0 %v13909_v22  ;;  %v11118_v17 = vld [vmem:[%s14422_s19 + $0x1560] sm:$0xff]  ;;  %v11816_v22 = vld [vmem:[%s14422_s19 + $0x1da8] sm:$0xff]  ;;  %v11626_v2 = vld [vmem:[%s14422_s19 + $0x17b8] sm:$0xff] }
 0x27e   : > { %9236 = vmatprep.subr.bf16.mxu1 %v13912_v23  ;;  %v11828_v23 = vld [vmem:[%s14422_s19 + $0x1e08] sm:$0xff]  ;;  %v5411_v28 = vpack.c.bf16 %v11118_v17, %v11106_v16  ;;  %v11638_v3 = vld [vmem:[%s14422_s19 + $0x1818] sm:$0xff] }
 0x280   : > { %6789 = vmatpush1.bf16.msra.mxu0 %v13907_v26  ;;  %v13951_v26 = vld [vmem:[%s14374_s15 + $0xdb4] ss:$8 sps:$4 sm:$0xff]  }
 0x281   : > { %9237 = vmatpush1.bf16.msra.mxu1 %v13910_v29  ;;  %6790 = vmatprep.subr.bf16.mxu0 %v13915_v30  ;;  %v7859_v29 = vpack.c.bf16 %v11803_v19, %v11791_v18  ;;  %v5424_v30 = vpack.c.bf16 %v11143_v21, %v11131_v20  ;;  %v11650_v18 = vld [vmem:[%s14422_s19 + $0x1878] sm:$0xff]  ;;  %v13969_v20 = vld [vmem:[%s14374_s15 + $0xde4] ss:$8 sps:$4 sm:$0xff]  }
 0x282   : > { %9238 = vmatprep.subr.bf16.mxu1 %v13918_v31  ;;  %6706 = vmatmul.mubr.bf16.gmra.mrb[60].mxu0 %v5375_v32  ;;  %v7872_v31 = vpack.c.bf16 %v11828_v23, %v11816_v22  ;;  %v13949_v32 = vld [vmem:[%s14374_s15 + $0xdb0] ss:$8 sps:$4 sm:$0xff]   ;;  %v13972_v21 = vld [vmem:[%s14374_s15 + $0x13cc] ss:$8 sps:$4 sm:$0xff]   ;;  %v13967_v22 = vld [vmem:[%s14374_s15 + $0xde0] ss:$8 sps:$4 sm:$0xff]  }
 0x283   : > { %9154 = vmatmul.mubr.bf16.gmra.mrb[60].mxu1 %v7823_v33  ;;  %6715 = vmatprep.mubr.bf16.mxu0 %v5388_v34  ;;  %v13952_v33 = vld [vmem:[%s14374_s15 + $0x1398] ss:$8 sps:$4 sm:$0xff]   ;;  %v13957_v34 = vld [vmem:[%s14374_s15 + $0xdc4] ss:$8 sps:$4 sm:$0xff]   ;;  %v13970_v23 = vld [vmem:[%s14374_s15 + $0x13c8] ss:$8 sps:$4 sm:$0xff]  }
 0x284   : > { %9163 = vmatprep.mubr.bf16.mxu1 %v7836_v35  ;;  %6791 = vmatpush1.bf16.msra.mxu0 %v13913_v36  ;;  %v13960_v35 = vld [vmem:[%s14374_s15 + $0x13ac] ss:$8 sps:$4 sm:$0xff]   ;;  %v11130_v36 = vld [vmem:[%s14422_s19 + $0x15c0] sm:$0xff]  ;;  %v11662_v19 = vld [vmem:[%s14422_s19 + $0x18d8] sm:$0xff] }
 0x285   : > { %9239 = vmatpush1.bf16.msra.mxu1 %v13916_v37  ;;  %6792 = vmatprep.subr.bf16.mxu0 %v13921_v38  ;;  %v11142_v37 = vld [vmem:[%s14422_s19 + $0x1620] sm:$0xff] }
 0x286   : > { %9240 = vmatprep.subr.bf16.mxu1 %v13924_v39  ;;  %v11815_v38 = vld [vmem:[%s14422_s19 + $0x1da0] sm:$0xff] }
 0x287   : > { %v11827_v39 = vld [vmem:[%s14422_s19 + $0x1e00] sm:$0xff] }
 0x288   : > { %6793 = vmatpush1.bf16.msra.mxu0 %v13919_v48  ;;  %v5423_v48 = vpack.c.bf16 %v11142_v37, %v11130_v36  ;;  %v13976_v36 = vld [vmem:[%s14374_s15 + $0x13d8] ss:$8 sps:$4 sm:$0xff]  }
 0x289   : > { %9241 = vmatpush1.bf16.msra.mxu1 %v13922_v49  ;;  %6794 = vmatprep.subr.bf16.mxu0 %v13927_v50  ;;  %v7871_v49 = vpack.c.bf16 %v11827_v39, %v11815_v38  ;;  %v5436_v50 = vpack.c.bf16 %v11167_v41, %v11155_v40  ;;  %v11686_v37 = vld [vmem:[%s14422_s19 + $0x1998] sm:$0xff]  ;;  %v13981_v40 = vld [vmem:[%s14374_s15 + $0xe04] ss:$8 sps:$4 sm:$0xff]  }
 0x28a   : > { %9242 = vmatprep.subr.bf16.mxu1 %v13930_v51  ;;  %6716 = vmatmul.mubr.bf16.gmra.mrb[64].mxu0 %v5387_v52  ;;  %v7884_v51 = vpack.c.bf16 %v11852_v43, %v11840_v42  ;;  %v11154_v52 = vld [vmem:[%s14422_s19 + $0x1680] sm:$0xff]  ;;  %v13984_v41 = vld [vmem:[%s14374_s15 + $0x13ec] ss:$8 sps:$4 sm:$0xff]  }
 0x28b   : > { %9164 = vmatmul.mubr.bf16.gmra.mrb[64].mxu1 %v7835_v53  ;;  %6725 = vmatprep.mubr.bf16.mxu0 %v5400_v54  ;;  %v11166_v53 = vld [vmem:[%s14422_s19 + $0x16e0] sm:$0xff] }
 0x28c   : > { %9173 = vmatprep.mubr.bf16.mxu1 %v7848_v55  ;;  %6795 = vmatpush1.bf16.msra.mxu0 %v13925_v56  ;;  %v11839_v54 = vld [vmem:[%s14422_s19 + $0x1e60] sm:$0xff]  ;;  %v11179_v56 = vld [vmem:[%s14422_s19 + $0x1748] sm:$0xff]  ;;  %v5435_v58 = vpack.c.bf16 %v11166_v53, %v11154_v52  ;;  %v11013_v52 = vld [vmem:[%s14422_s19 + $0x1218] sm:$0xff] }
 0x28d   : > { %9243 = vmatpush1.bf16.msra.mxu1 %v13928_v57  ;;  %6796 = vmatprep.subr.bf16.mxu0 %v13933_v62  ;;  %v11851_v55 = vld [vmem:[%s14422_s19 + $0x1ec0] sm:$0xff]  ;;  %v11864_v57 = vld [vmem:[%s14422_s19 + $0x1f28] sm:$0xff]  ;;  %v5448_v60 = vpack.c.bf16 %v11179_v56, %v11179_v56  ;;  %v11025_v53 = vld [vmem:[%s14422_s19 + $0x1278] sm:$0xff] }
 0x28e   : > { %9244 = vmatprep.subr.bf16.mxu1 %v13936_v63  ;;  %v7883_v59 = vpack.c.bf16 %v11851_v55, %v11839_v54  ;;  %v7896_v61 = vpack.c.bf16 %v11864_v57, %v11864_v57  ;;  %v11178_v62 = vld [vmem:[%s14422_s19 + $0x1740] sm:$0xff]  ;;  %v11698_v54 = vld [vmem:[%s14422_s19 + $0x19f8] sm:$0xff] }
 0x28f   : > { %v11863_v63 = vld [vmem:[%s14422_s19 + $0x1f20] sm:$0xff]  ;;  %v11710_v55 = vld [vmem:[%s14422_s19 + $0x1a58] sm:$0xff] }
 0x290   : > { %6797 = vmatpush1.bf16.msra.mxu0 %v13931_v4  ;;  %v5447_v4 = vpack.c.bf16 %v11178_v62, %v11178_v62  ;;  %v13996_v62 = vld [vmem:[%s14374_s15 + $0x140c] ss:$8 sps:$4 sm:$0xff]  }
 0x291   : > { %9245 = vmatpush1.bf16.msra.mxu1 %v13934_v5  ;;  %6798 = vmatprep.subr.bf16.mxu0 %v13939_v6  ;;  %v7895_v5 = vpack.c.bf16 %v11863_v63, %v11863_v63  ;;  %v5330_v6 = vpack.c.bf16 %v10953_v1, %v10941_v0  ;;  %v7814_v63 = vpack.c.bf16 %v11710_v55, %v11698_v54  ;;  %v11012_v0 = vld [vmem:[%s14422_s19 + $0x1210] sm:$0xff] }
 0x292   : > { %9246 = vmatprep.subr.bf16.mxu1 %v13942_v7  ;;  %6726 = vmatmul.mubr.bf16.gmra.mrb[68].mxu0 %v5399_v8  ;;  %v7778_v7 = vpack.c.bf16 %v11638_v3, %v11626_v2  ;;  %v10940_v8 = vld [vmem:[%s14422_s19 + $0xfd0] sm:$0xff] }
 0x293   : > { %9174 = vmatmul.mubr.bf16.gmra.mrb[68].mxu1 %v7847_v9  ;;  %6735 = vmatprep.mubr.bf16.mxu0 %v5412_v10  ;;  %v10952_v9 = vld [vmem:[%s14422_s19 + $0x1030] sm:$0xff] }
 0x294   : > { %9183 = vmatprep.mubr.bf16.mxu1 %v7860_v11  ;;  %6799 = vmatpush1.bf16.msra.mxu0 %v13937_v12  ;;  %v11625_v10 = vld [vmem:[%s14422_s19 + $0x17b0] sm:$0xff]  ;;  %v5329_v16 = vpack.c.bf16 %v10952_v9, %v10940_v8  ;;  %v11722_v8 = vld [vmem:[%s14422_s19 + $0x1ab8] sm:$0xff] }
 0x295   : > { %9247 = vmatpush1.bf16.msra.mxu1 %v13940_v13  ;;  %6800 = vmatprep.subr.bf16.mxu0 %v13945_v14  ;;  %v11637_v11 = vld [vmem:[%s14422_s19 + $0x1810] sm:$0xff]  ;;  %v13964_v13 = vld [vmem:[%s14374_s15 + $0x13b8] ss:$8 sps:$4 sm:$0xff]  }
 0x296   : > { %9248 = vmatprep.subr.bf16.mxu1 %v13948_v15  ;;  %v13961_v12 = vld [vmem:[%s14374_s15 + $0xdd0] ss:$8 sps:$4 sm:$0xff]   ;;  %v7777_v17 = vpack.c.bf16 %v11637_v11, %v11625_v10  ;;  %v13999_v10 = vld [vmem:[%s14374_s15 + $0xe34] ss:$8 sps:$4 sm:$0xff]  }
 0x297   : > { %v10965_v14 = vld [vmem:[%s14422_s19 + $0x1098] sm:$0xff]  ;;  %v11024_v1 = vld [vmem:[%s14422_s19 + $0x1270] sm:$0xff] }
 0x298   : > { %6801 = vmatpush1.bf16.msra.mxu0 %v13943_v24  ;;  %v10977_v15 = vld [vmem:[%s14422_s19 + $0x10f8] sm:$0xff]  ;;  %v11697_v2 = vld [vmem:[%s14422_s19 + $0x19f0] sm:$0xff] }
 0x299   : > { %9249 = vmatpush1.bf16.msra.mxu1 %v13946_v25  ;;  %6802 = vmatprep.subr.bf16.mxu0 %v13951_v26  ;;  %v5342_v24 = vpack.c.bf16 %v10977_v15, %v10965_v14  ;;  %v7790_v25 = vpack.c.bf16 %v11662_v19, %v11650_v18  ;;  %v10964_v26 = vld [vmem:[%s14422_s19 + $0x1090] sm:$0xff]  ;;  %v11734_v9 = vld [vmem:[%s14422_s19 + $0x1b18] sm:$0xff]  ;;  %v14005_v19 = vld [vmem:[%s14374_s15 + $0xe44] ss:$8 sps:$4 sm:$0xff]  }
 0x29a   : > { %9250 = vmatprep.subr.bf16.mxu1 %v13954_v27  ;;  %6736 = vmatmul.mubr.bf16.gmra.mrb[72].mxu0 %v5411_v28  ;;  %v10976_v27 = vld [vmem:[%s14422_s19 + $0x10f0] sm:$0xff]  ;;  %v14002_v11 = vld [vmem:[%s14374_s15 + $0x141c] ss:$8 sps:$4 sm:$0xff]   ;;  %v7826_v15 = vpack.c.bf16 %v11734_v9, %v11722_v8 }
 0x29b   : > { %9184 = vmatmul.mubr.bf16.gmra.mrb[72].mxu1 %v7859_v29  ;;  %6745 = vmatprep.mubr.bf16.mxu0 %v5424_v30  ;;  %v11649_v28 = vld [vmem:[%s14422_s19 + $0x1870] sm:$0xff]  ;;  %v5341_v38 = vpack.c.bf16 %v10976_v27, %v10964_v26  ;;  %v11746_v26 = vld [vmem:[%s14422_s19 + $0x1b78] sm:$0xff]  ;;  %v14003_v27 = vld [vmem:[%s14374_s15 + $0xe40] ss:$8 sps:$4 sm:$0xff]  }
 0x29c   : > { %9193 = vmatprep.mubr.bf16.mxu1 %v7872_v31  ;;  %6803 = vmatpush1.bf16.msra.mxu0 %v13949_v32  ;;  %v11661_v29 = vld [vmem:[%s14422_s19 + $0x18d0] sm:$0xff]  ;;  %v13978_v31 = vld [vmem:[%s14374_s15 + $0x13dc] ss:$8 sps:$4 sm:$0xff]  }
 0x29d   : > { %9251 = vmatpush1.bf16.msra.mxu1 %v13952_v33  ;;  %6804 = vmatprep.subr.bf16.mxu0 %v13957_v34  ;;  %v13975_v30 = vld [vmem:[%s14374_s15 + $0xdf4] ss:$8 sps:$4 sm:$0xff]   ;;  %v7789_v39 = vpack.c.bf16 %v11661_v29, %v11649_v28  ;;  %v14006_v29 = vld [vmem:[%s14374_s15 + $0x1428] ss:$8 sps:$4 sm:$0xff]  }
 0x29e   : > { %9252 = vmatprep.subr.bf16.mxu1 %v13960_v35  ;;  %v10989_v32 = vld [vmem:[%s14422_s19 + $0x1158] sm:$0xff]  ;;  %v11709_v3 = vld [vmem:[%s14422_s19 + $0x1a50] sm:$0xff] }
 0x29f   : > { %v11001_v33 = vld [vmem:[%s14422_s19 + $0x11b8] sm:$0xff]  ;;  %v11036_v18 = vld [vmem:[%s14422_s19 + $0x12d0] sm:$0xff] }
 0x2a0   : > { %6805 = vmatpush1.bf16.msra.mxu0 %v13955_v44  ;;  %v11674_v34 = vld [vmem:[%s14422_s19 + $0x1938] sm:$0xff]  ;;  %v5354_v42 = vpack.c.bf16 %v11001_v33, %v10989_v32  ;;  %v10988_v44 = vld [vmem:[%s14422_s19 + $0x1150] sm:$0xff] }
 0x2a1   : > { %9253 = vmatpush1.bf16.msra.mxu1 %v13958_v45  ;;  %6915 = vmatprep.subr.bf16.mxu0 %v13963_v46  ;;  %v13973_v35 = vld [vmem:[%s14374_s15 + $0xdf0] ss:$8 sps:$4 sm:$0xff]   ;;  %v7802_v43 = vpack.c.bf16 %v11686_v37, %v11674_v34 }
 0x2a2   : > { %9363 = vmatprep.subr.bf16.mxu1 %v13966_v47  ;;  %6746 = vmatmul.mubr.bf16.gmra.mrb[76].mxu0 %v5423_v48  ;;  %v11000_v45 = vld [vmem:[%s14422_s19 + $0x11b0] sm:$0xff]  ;;  %v13979_v48 = vld [vmem:[%s14374_s15 + $0xe00] ss:$8 sps:$4 sm:$0xff]   ;;  %v11758_v28 = vld [vmem:[%s14422_s19 + $0x1bd8] sm:$0xff] }
 0x2a3   : > { %9194 = vmatmul.mubr.bf16.gmra.mrb[76].mxu1 %v7871_v49  ;;  %6755 = vmatprep.mubr.bf16.mxu0 %v5436_v50  ;;  %v11673_v46 = vld [vmem:[%s14422_s19 + $0x1930] sm:$0xff]  ;;  %v5353_v56 = vpack.c.bf16 %v11000_v45, %v10988_v44  ;;  %v14012_v37 = vld [vmem:[%s14374_s15 + $0x1438] ss:$8 sps:$4 sm:$0xff]  }
 0x2a4   : > { %9203 = vmatprep.mubr.bf16.mxu1 %v7884_v51  ;;  %v11685_v47 = vld [vmem:[%s14422_s19 + $0x1990] sm:$0xff]  ;;  %v13990_v51 = vld [vmem:[%s14374_s15 + $0x13fc] ss:$8 sps:$4 sm:$0xff]  }
 0x2a5   : > { %v13982_v49 = vld [vmem:[%s14374_s15 + $0x13e8] ss:$8 sps:$4 sm:$0xff]   ;;  %v13987_v50 = vld [vmem:[%s14374_s15 + $0xe14] ss:$8 sps:$4 sm:$0xff]   ;;  %v7801_v57 = vpack.c.bf16 %v11685_v47, %v11673_v46 }
 0x2a6   : > { %v11085_v44 = vld [vmem:[%s14422_s19 + $0x1458] sm:$0xff] }
 0x2a7   : > { %v11097_v45 = vld [vmem:[%s14422_s19 + $0x14b8] sm:$0xff] }
 0x2a8   : > { %v11770_v46 = vld [vmem:[%s14422_s19 + $0x1c38] sm:$0xff] }
 0x2a9   : > { %v11782_v47 = vld [vmem:[%s14422_s19 + $0x1c98] sm:$0xff] }
 0x2aa   : > { %6756 = vmatmul.mubr.bf16.gmra.mrb[80].mxu0 %v5435_v58  ;;  %v13985_v58 = vld [vmem:[%s14374_s15 + $0xe10] ss:$8 sps:$4 sm:$0xff]  }
 0x2ab   : > { %9204 = vmatmul.mubr.bf16.gmra.mrb[80].mxu1 %v7883_v59  ;;  %6765 = vmatprep.mubr.bf16.mxu0 %v5448_v60  ;;  %v13988_v59 = vld [vmem:[%s14374_s15 + $0x13f8] ss:$8 sps:$4 sm:$0xff]   ;;  %v5366_v60 = vpack.c.bf16 %v11025_v53, %v11013_v52  ;;  %v14023_v52 = vld [vmem:[%s14374_s15 + $0xe74] ss:$8 sps:$4 sm:$0xff]  }
 0x2ac   : > { %9213 = vmatprep.mubr.bf16.mxu1 %v7896_v61  ;;  %v13993_v61 = vld [vmem:[%s14374_s15 + $0xe24] ss:$8 sps:$4 sm:$0xff]   ;;  %v11109_v8 = vld [vmem:[%s14422_s19 + $0x1518] sm:$0xff] }
 0x2ad   : > { %v14026_v53 = vld [vmem:[%s14374_s15 + $0x145c] ss:$8 sps:$4 sm:$0xff]  }
 0x2ae   : > { %v11121_v9 = vld [vmem:[%s14422_s19 + $0x1578] sm:$0xff] }
 0x2b2   : > { %6766 = vmatmul.mubr.bf16.gmra.mrb[84].mxu0 %v5447_v4  ;;  %v13991_v4 = vld [vmem:[%s14374_s15 + $0xe20] ss:$8 sps:$4 sm:$0xff]  }
 0x2b3   : > { %9214 = vmatmul.mubr.bf16.gmra.mrb[84].mxu1 %v7895_v5  ;;  %6806 = vmatprep.mubr.bf16.mxu0 %v5330_v6  ;;  %v13994_v5 = vld [vmem:[%s14374_s15 + $0x1408] ss:$8 sps:$4 sm:$0xff]   ;;  %v11037_v6 = vld [vmem:[%s14422_s19 + $0x12d8] sm:$0xff] }
 0x2b4   : > { %9254 = vmatprep.mubr.bf16.mxu1 %v7778_v7  ;;  %v11049_v7 = vld [vmem:[%s14422_s19 + $0x1338] sm:$0xff] }
 0x2b5   : > { %v5378_v14 = vpack.c.bf16 %v11049_v7, %v11037_v6  ;;  %v11769_v6 = vld [vmem:[%s14422_s19 + $0x1c30] sm:$0xff] }
 0x2b6   : > { %v11781_v7 = vld [vmem:[%s14422_s19 + $0x1c90] sm:$0xff] }
 0x2ba   : > { %6807 = vmatmul.mubr.bf16.vlgmr.msra.gmra.mrb[44].mxu0 %v5329_v16  ;;  %v13997_v16 = vld [vmem:[%s14374_s15 + $0xe30] ss:$8 sps:$4 sm:$0xff]  }
 0x2bb   : > { %9255 = vmatmul.mubr.bf16.vlgmr.msra.gmra.mrb[44].mxu1 %v7777_v17  ;;  %6916 = vmatpush1.bf16.msra.mxu0 %v13961_v12  ;;  %v5365_v12 = vpack.c.bf16 %v11024_v1, %v11012_v0  ;;  %v14000_v17 = vld [vmem:[%s14374_s15 + $0x1418] ss:$8 sps:$4 sm:$0xff]  }
 0x2bc   : > { %9364 = vmatpush1.bf16.msra.mxu1 %v13964_v13  ;;  %6917 = vmatprep.subr.bf16.mxu0 %v13969_v20  ;;  %v7813_v13 = vpack.c.bf16 %v11709_v3, %v11697_v2  ;;  %v14008_v20 = vld [vmem:[%s14374_s15 + $0x142c] ss:$8 sps:$4 sm:$0xff]   ;;  %v14021_v0 = vld [vmem:[%s14374_s15 + $0xe70] ss:$8 sps:$4 sm:$0xff]  }
 0x2bd   : > { %9365 = vmatprep.subr.bf16.mxu1 %v13972_v21  ;;  %6816 = vmatprep.mubr.bf16.mxu0 %v5342_v24  ;;  %v11048_v21 = vld [vmem:[%s14422_s19 + $0x1330] sm:$0xff]  ;;  %v11061_v24 = vld [vmem:[%s14422_s19 + $0x1398] sm:$0xff]  ;;  %v14029_v3 = vld [vmem:[%s14374_s15 + $0xe84] ss:$8 sps:$4 sm:$0xff]  }
 0x2be   : > { %9264 = vmatprep.mubr.bf16.mxu1 %v7790_v25  ;;  %v11073_v25 = vld [vmem:[%s14422_s19 + $0x13f8] sm:$0xff]  ;;  %v5377_v32 = vpack.c.bf16 %v11048_v21, %v11036_v18  ;;  %v11084_v2 = vld [vmem:[%s14422_s19 + $0x1450] sm:$0xff]  ;;  %v7849_v21 = vpack.c.bf16 %v11781_v7, %v11769_v6 }
 0x2bf   : > { %6918 = vmatpush1.bf16.msra.mxu0 %v13967_v22  ;;  %v11721_v22 = vld [vmem:[%s14422_s19 + $0x1ab0] sm:$0xff]  ;;  %v5390_v34 = vpack.c.bf16 %v11073_v25, %v11061_v24  ;;  %v14024_v1 = vld [vmem:[%s14374_s15 + $0x1458] ss:$8 sps:$4 sm:$0xff]   ;;  %v5414_v24 = vpack.c.bf16 %v11121_v9, %v11109_v8  ;;  %v14062_v9 = vld [vmem:[%s14374_s15 + $0x14bc] ss:$8 sps:$4 sm:$0xff]  }
 0x2c0   : > { %9366 = vmatpush1.bf16.msra.mxu1 %v13970_v23  ;;  %6919 = vmatprep.subr.bf16.mxu0 %v13975_v30  ;;  %v11733_v23 = vld [vmem:[%s14422_s19 + $0x1b10] sm:$0xff] }
 0x2c1   : > { %9367 = vmatprep.subr.bf16.mxu1 %v13978_v31  ;;  %v14011_v30 = vld [vmem:[%s14374_s15 + $0xe54] ss:$8 sps:$4 sm:$0xff]   ;;  %v7825_v33 = vpack.c.bf16 %v11733_v23, %v11721_v22 }
 0x2c2   : > { %6817 = vmatmul.mubr.bf16.gmra.mrb[48].mxu0 %v5341_v38  ;;  %v14014_v31 = vld [vmem:[%s14374_s15 + $0x143c] ss:$8 sps:$4 sm:$0xff]   ;;  %v11060_v38 = vld [vmem:[%s14422_s19 + $0x1390] sm:$0xff] }
 0x2c3   : > { %9265 = vmatmul.mubr.bf16.gmra.mrb[48].mxu1 %v7789_v39  ;;  %6920 = vmatpush1.bf16.msra.mxu0 %v13973_v35  ;;  %v7838_v35 = vpack.c.bf16 %v11758_v28, %v11746_v26  ;;  %v14017_v39 = vld [vmem:[%s14374_s15 + $0xe64] ss:$8 sps:$4 sm:$0xff]   ;;  %v14033_v28 = vld [vmem:[%s14374_s15 + $0xe90] ss:$8 sps:$4 sm:$0xff]   ;;  %v14059_v8 = vld [vmem:[%s14374_s15 + $0xed4] ss:$8 sps:$4 sm:$0xff]  }
 0x2c4   : > { %9368 = vmatpush1.bf16.msra.mxu1 %v13976_v36  ;;  %6826 = vmatprep.mubr.bf16.mxu0 %v5354_v42  ;;  %v14009_v36 = vld [vmem:[%s14374_s15 + $0xe50] ss:$8 sps:$4 sm:$0xff]  }
 0x2c5   : > { %9274 = vmatprep.mubr.bf16.mxu1 %v7802_v43  ;;  %6921 = vmatprep.subr.bf16.mxu0 %v13981_v40  ;;  %v14020_v40 = vld [vmem:[%s14374_s15 + $0x144c] ss:$8 sps:$4 sm:$0xff]  }
 0x2c6   : > { %9369 = vmatprep.subr.bf16.mxu1 %v13984_v41  ;;  %v11072_v41 = vld [vmem:[%s14422_s19 + $0x13f0] sm:$0xff] }
 0x2c7   : > { %6922 = vmatpush1.bf16.msra.mxu0 %v13979_v48  ;;  %v11745_v42 = vld [vmem:[%s14422_s19 + $0x1b70] sm:$0xff]  ;;  %v14015_v48 = vld [vmem:[%s14374_s15 + $0xe60] ss:$8 sps:$4 sm:$0xff]  }
 0x2c8   : > { %9370 = vmatpush1.bf16.msra.mxu1 %v13982_v49  ;;  %6923 = vmatprep.subr.bf16.mxu0 %v13987_v50  ;;  %v11757_v43 = vld [vmem:[%s14422_s19 + $0x1bd0] sm:$0xff] }
 0x2c9   : > { %9371 = vmatprep.subr.bf16.mxu1 %v13990_v51  ;;  %v14018_v49 = vld [vmem:[%s14374_s15 + $0x1448] ss:$8 sps:$4 sm:$0xff]  }
 0x2ca   : > { %6827 = vmatmul.mubr.bf16.gmra.mrb[52].mxu0 %v5353_v56  ;;  %v5389_v56 = vpack.c.bf16 %v11072_v41, %v11060_v38  ;;  %v11818_v38 = vld [vmem:[%s14422_s19 + $0x1db8] sm:$0xff]  ;;  %v14042_v41 = vld [vmem:[%s14374_s15 + $0x1488] ss:$8 sps:$4 sm:$0xff]  }
 0x2cb   : > { %9275 = vmatmul.mubr.bf16.gmra.mrb[52].mxu1 %v7801_v57  ;;  %6836 = vmatprep.mubr.bf16.mxu0 %v5366_v60  ;;  %v7837_v57 = vpack.c.bf16 %v11757_v43, %v11745_v42  ;;  %v5402_v60 = vpack.c.bf16 %v11097_v45, %v11085_v44  ;;  %v14047_v44 = vld [vmem:[%s14374_s15 + $0xeb4] ss:$8 sps:$4 sm:$0xff]  }
 0x2cc   : > { %6924 = vmatpush1.bf16.msra.mxu0 %v13985_v58  ;;  %9284 = vmatprep.mubr.bf16.mxu1 %v7814_v63  ;;  %v14050_v45 = vld [vmem:[%s14374_s15 + $0x149c] ss:$8 sps:$4 sm:$0xff]  }
 0x2cd   : > { %9372 = vmatpush1.bf16.msra.mxu1 %v13988_v59  ;;  %6925 = vmatprep.subr.bf16.mxu0 %v13993_v61  ;;  %v7850_v61 = vpack.c.bf16 %v11782_v47, %v11770_v46 }
 0x2ce   : > { %9373 = vmatprep.subr.bf16.mxu1 %v13996_v62 }
 0x2d0   : > { %6926 = vmatpush1.bf16.msra.mxu0 %v13991_v4  ;;  %v14032_v4 = vld [vmem:[%s14374_s15 + $0x146c] ss:$8 sps:$4 sm:$0xff]  }
 0x2d1   : > { %9374 = vmatpush1.bf16.msra.mxu1 %v13994_v5  ;;  %6927 = vmatprep.subr.bf16.mxu0 %v13999_v10  ;;  %v11096_v5 = vld [vmem:[%s14422_s19 + $0x14b0] sm:$0xff]  ;;  %v11794_v10 = vld [vmem:[%s14422_s19 + $0x1cf8] sm:$0xff] }
 0x2d2   : > { %9375 = vmatprep.subr.bf16.mxu1 %v14002_v11  ;;  %6837 = vmatmul.mubr.bf16.gmra.mrb[56].mxu0 %v5365_v12  ;;  %v11806_v11 = vld [vmem:[%s14422_s19 + $0x1d58] sm:$0xff]  ;;  %v14027_v12 = vld [vmem:[%s14374_s15 + $0xe80] ss:$8 sps:$4 sm:$0xff]  }
 0x2d3   : > { %9285 = vmatmul.mubr.bf16.gmra.mrb[56].mxu1 %v7813_v13  ;;  %6846 = vmatprep.mubr.bf16.mxu0 %v5378_v14  ;;  %v14030_v13 = vld [vmem:[%s14374_s15 + $0x1468] ss:$8 sps:$4 sm:$0xff]   ;;  %v7862_v25 = vpack.c.bf16 %v11806_v11, %v11794_v10 }
 0x2d4   : > { %9294 = vmatprep.mubr.bf16.mxu1 %v7826_v15  ;;  %6928 = vmatpush1.bf16.msra.mxu0 %v13997_v16  ;;  %v14035_v16 = vld [vmem:[%s14374_s15 + $0xe94] ss:$8 sps:$4 sm:$0xff]  }
 0x2d5   : > { %9376 = vmatpush1.bf16.msra.mxu1 %v14000_v17  ;;  %6929 = vmatprep.subr.bf16.mxu0 %v14005_v19  ;;  %v14038_v17 = vld [vmem:[%s14374_s15 + $0x147c] ss:$8 sps:$4 sm:$0xff]  }
 0x2d6   : > { %9377 = vmatprep.subr.bf16.mxu1 %v14008_v20  ;;  %v5401_v20 = vpack.c.bf16 %v11096_v5, %v11084_v2  ;;  %v11842_v2 = vld [vmem:[%s14422_s19 + $0x1e78] sm:$0xff]  ;;  %v14054_v5 = vld [vmem:[%s14374_s15 + $0x14a8] ss:$8 sps:$4 sm:$0xff]  }
 0x2d8   : > { %6930 = vmatpush1.bf16.msra.mxu0 %v14003_v27 }
 0x2d9   : > { %9378 = vmatpush1.bf16.msra.mxu1 %v14006_v29  ;;  %6931 = vmatprep.subr.bf16.mxu0 %v14011_v30  ;;  %v14036_v29 = vld [vmem:[%s14374_s15 + $0x1478] ss:$8 sps:$4 sm:$0xff]   ;;  %v11108_v30 = vld [vmem:[%s14422_s19 + $0x1510] sm:$0xff] }
 0x2da   : > { %9379 = vmatprep.subr.bf16.mxu1 %v14014_v31  ;;  %6847 = vmatmul.mubr.bf16.gmra.mrb[60].mxu0 %v5377_v32  ;;  %v14041_v31 = vld [vmem:[%s14374_s15 + $0xea4] ss:$8 sps:$4 sm:$0xff]  }
 0x2db   : > { %9295 = vmatmul.mubr.bf16.gmra.mrb[60].mxu1 %v7825_v33  ;;  %6856 = vmatprep.mubr.bf16.mxu0 %v5390_v34  ;;  %v14044_v32 = vld [vmem:[%s14374_s15 + $0x148c] ss:$8 sps:$4 sm:$0xff]  }
 0x2dc   : > { %9304 = vmatprep.mubr.bf16.mxu1 %v7838_v35  ;;  %6932 = vmatpush1.bf16.msra.mxu0 %v14009_v36  ;;  %v11120_v33 = vld [vmem:[%s14422_s19 + $0x1570] sm:$0xff]  ;;  %v11133_v36 = vld [vmem:[%s14422_s19 + $0x15d8] sm:$0xff] }
 0x2dd   : > { %9380 = vmatpush1.bf16.msra.mxu1 %v14012_v37  ;;  %v2476_v50 = vpop.f32.mrb[0].mxu0  ;;  %6933 = vmatprep.subr.bf16.mxu0 %v14017_v39  ;;  %v11793_v34 = vld [vmem:[%s14422_s19 + $0x1cf0] sm:$0xff]  ;;  %v11145_v37 = vld [vmem:[%s14422_s19 + $0x1638] sm:$0xff] }
 0x2de   : > { %v4924_v51 = vpop.f32.mrb[0].mxu1  ;;  %9381 = vmatprep.subr.bf16.mxu1 %v14020_v40  ;;  %2583 = vst [vmem:[%s15592_s23] sm:$0xff] %v2476_v50  ;;  %v2478_v54 = vpop.f32.mrb[1].mxu0  ;;  %v11805_v35 = vld [vmem:[%s14422_s19 + $0x1d50] sm:$0xff]  ;;  %v11830_v39 = vld [vmem:[%s14422_s19 + $0x1e18] sm:$0xff]  ;;  %v14039_v40 = vld [vmem:[%s14374_s15 + $0xea0] ss:$8 sps:$4 sm:$0xff]  }
 0x2df   : > { %v4926_v55 = vpop.f32.mrb[1].mxu1  ;;  %10896 = vst [vmem:[%s15592_s23 + $0x150] sm:$0xff] %v4924_v51  ;;  %2585 = vst.msk [vmem:[%s15592_s23 + $0x8] sm:$0xff] %vm2584_vm2, %v2478_v54  ;;  %v2480_v58 = vpop.f32.mrb[2].mxu0 }
 0x2e0   : > { %v4928_v59 = vpop.f32.mrb[2].mxu1  ;;  %10897 = vst.msk [vmem:[%s15592_s23 + $0x158] sm:$0xff] %vm2584_vm2, %v4926_v55  ;;  %2586 = vst [vmem:[%s15592_s23 + $0x10] sm:$0xff] %v2480_v58  ;;  %v2482_v62 = vpop.f32.mrb[3].mxu0  ;;  %6934 = vmatpush1.bf16.msra.mxu0 %v14015_v48  ;;  %v5413_v48 = vpack.c.bf16 %v11120_v33, %v11108_v30  ;;  %v11132_v58 = vld [vmem:[%s14422_s19 + $0x15d0] sm:$0xff] }
 0x2e1   : > { %v4930_v63 = vpop.f32.mrb[3].mxu1  ;;  %9382 = vmatpush1.bf16.msra.mxu1 %v14018_v49  ;;  %10898 = vst [vmem:[%s15592_s23 + $0x160] sm:$0xff] %v4928_v59  ;;  %2587 = vst.msk [vmem:[%s15592_s23 + $0x18] sm:$0xff] %vm2584_vm2, %v2482_v62  ;;  %6935 = vmatprep.subr.bf16.mxu0 %v14023_v52  ;;  %v7861_v49 = vpack.c.bf16 %v11805_v35, %v11793_v34  ;;  %v5426_v52 = vpack.c.bf16 %v11145_v37, %v11133_v36  ;;  %v14053_v59 = vld [vmem:[%s14374_s15 + $0xec4] ss:$8 sps:$4 sm:$0xff]   ;;  %v11817_v62 = vld [vmem:[%s14422_s19 + $0x1db0] sm:$0xff] }
 0x2e2   : > { %9383 = vmatprep.subr.bf16.mxu1 %v14026_v53  ;;  %10899 = vst.msk [vmem:[%s15592_s23 + $0x168] sm:$0xff] %vm2584_vm2, %v4930_v63  ;;  %6857 = vmatmul.mubr.bf16.gmra.mrb[64].mxu0 %v5389_v56  ;;  %v7874_v53 = vpack.c.bf16 %v11830_v39, %v11818_v38  ;;  %v14045_v56 = vld [vmem:[%s14374_s15 + $0xeb0] ss:$8 sps:$4 sm:$0xff]  }
 0x2e3   : > { %9305 = vmatmul.mubr.bf16.gmra.mrb[64].mxu1 %v7837_v57  ;;  %6866 = vmatprep.mubr.bf16.mxu0 %v5402_v60  ;;  %v14048_v57 = vld [vmem:[%s14374_s15 + $0x1498] ss:$8 sps:$4 sm:$0xff]   ;;  %v14056_v60 = vld [vmem:[%s14374_s15 + $0x14ac] ss:$8 sps:$4 sm:$0xff]  }
 0x2e4   : > { %9314 = vmatprep.mubr.bf16.mxu1 %v7850_v61  ;;  %6936 = vmatpush1.bf16.msra.mxu0 %v14021_v0  ;;  %v11144_v61 = vld [vmem:[%s14422_s19 + $0x1630] sm:$0xff]  ;;  %v11157_v0 = vld [vmem:[%s14422_s19 + $0x1698] sm:$0xff] }
 0x2e5   : > { %9384 = vmatpush1.bf16.msra.mxu1 %v14024_v1  ;;  %v2486_v14 = vpop.f32.mrb[4].mxu0  ;;  %6937 = vmatprep.subr.bf16.mxu0 %v14029_v3  ;;  %v11829_v63 = vld [vmem:[%s14422_s19 + $0x1e10] sm:$0xff]  ;;  %v11169_v1 = vld [vmem:[%s14422_s19 + $0x16f8] sm:$0xff] }
 0x2e6   : > { %v4934_v15 = vpop.f32.mrb[4].mxu1  ;;  %9385 = vmatprep.subr.bf16.mxu1 %v14032_v4  ;;  %2588 = vst [vmem:[%s15592_s23 + $0x20] sm:$0xff] %v2486_v14  ;;  %v2488_v18 = vpop.f32.mrb[5].mxu0  ;;  %v11854_v3 = vld [vmem:[%s14422_s19 + $0x1ed8] sm:$0xff]  ;;  %v14051_v4 = vld [vmem:[%s14374_s15 + $0xec0] ss:$8 sps:$4 sm:$0xff]  }
 0x2e7   : > { %v4936_v19 = vpop.f32.mrb[5].mxu1  ;;  %10900 = vst [vmem:[%s15592_s23 + $0x170] sm:$0xff] %v4934_v15  ;;  %2589 = vst.msk [vmem:[%s15592_s23 + $0x28] sm:$0xff] %vm2584_vm2, %v2488_v18  ;;  %v2490_v22 = vpop.f32.mrb[6].mxu0  ;;  %v11180_v38 = vld [vmem:[%s14422_s19 + $0x1750] sm:$0xff] }
 0x2e8   : > { %v4938_v23 = vpop.f32.mrb[6].mxu1  ;;  %10901 = vst.msk [vmem:[%s15592_s23 + $0x178] sm:$0xff] %vm2584_vm2, %v4936_v19  ;;  %2590 = vst [vmem:[%s15592_s23 + $0x30] sm:$0xff] %v2490_v22  ;;  %v2492_v26 = vpop.f32.mrb[7].mxu0  ;;  %6938 = vmatpush1.bf16.msra.mxu0 %v14027_v12  ;;  %v5425_v12 = vpack.c.bf16 %v11144_v61, %v11132_v58  ;;  %v11841_v22 = vld [vmem:[%s14422_s19 + $0x1e70] sm:$0xff]  ;;  %v11627_v58 = vld [vmem:[%s14422_s19 + $0x17c0] sm:$0xff] }
 0x2e9   : > { %v4940_v27 = vpop.f32.mrb[7].mxu1  ;;  %9386 = vmatpush1.bf16.msra.mxu1 %v14030_v13  ;;  %10902 = vst [vmem:[%s15592_s23 + $0x180] sm:$0xff] %v4938_v23  ;;  %2591 = vst.msk [vmem:[%s15592_s23 + $0x38] sm:$0xff] %vm2584_vm2, %v2492_v26  ;;  %6939 = vmatprep.subr.bf16.mxu0 %v14035_v16  ;;  %v7873_v13 = vpack.c.bf16 %v11829_v63, %v11817_v62  ;;  %v5438_v16 = vpack.c.bf16 %v11169_v1, %v11157_v0  ;;  %v11853_v23 = vld [vmem:[%s14422_s19 + $0x1ed0] sm:$0xff]  ;;  %v10967_v62 = vld [vmem:[%s14422_s19 + $0x10a8] sm:$0xff] }
 0x2ea   : > { %9387 = vmatprep.subr.bf16.mxu1 %v14038_v17  ;;  %10903 = vst.msk [vmem:[%s15592_s23 + $0x188] sm:$0xff] %vm2584_vm2, %v4940_v27  ;;  %6867 = vmatmul.mubr.bf16.gmra.mrb[68].mxu0 %v5401_v20  ;;  %v7886_v17 = vpack.c.bf16 %v11854_v3, %v11842_v2  ;;  %v11156_v20 = vld [vmem:[%s14422_s19 + $0x1690] sm:$0xff]  ;;  %v10979_v3 = vld [vmem:[%s14422_s19 + $0x1108] sm:$0xff] }
 0x2eb   : > { %9315 = vmatmul.mubr.bf16.gmra.mrb[68].mxu1 %v7849_v21  ;;  %6876 = vmatprep.mubr.bf16.mxu0 %v5414_v24  ;;  %v11168_v21 = vld [vmem:[%s14422_s19 + $0x16f0] sm:$0xff]  ;;  %v11181_v24 = vld [vmem:[%s14422_s19 + $0x1758] sm:$0xff] }
 0x2ec   : > { %9324 = vmatprep.mubr.bf16.mxu1 %v7862_v25  ;;  %6940 = vmatpush1.bf16.msra.mxu0 %v14033_v28  ;;  %v11866_v25 = vld [vmem:[%s14422_s19 + $0x1f38] sm:$0xff]  ;;  %v5437_v30 = vpack.c.bf16 %v11168_v21, %v11156_v20  ;;  %v5450_v34 = vpack.c.bf16 %v11181_v24, %v11181_v24  ;;  %v11865_v39 = vld [vmem:[%s14422_s19 + $0x1f30] sm:$0xff]  ;;  %v11663_v21 = vld [vmem:[%s14422_s19 + $0x18e0] sm:$0xff] }
 0x2ed   : > { %9388 = vmatpush1.bf16.msra.mxu1 %v14036_v29  ;;  %v2496_v42 = vpop.f32.mrb[8].mxu0  ;;  %6941 = vmatprep.subr.bf16.mxu0 %v14041_v31  ;;  %v7885_v31 = vpack.c.bf16 %v11853_v23, %v11841_v22  ;;  %v7898_v35 = vpack.c.bf16 %v11866_v25, %v11866_v25  ;;  %v14066_v20 = vld [vmem:[%s14374_s15 + $0x14c8] ss:$8 sps:$4 sm:$0xff]   ;;  %v14071_v22 = vld [vmem:[%s14374_s15 + $0xef4] ss:$8 sps:$4 sm:$0xff]  }
 0x2ee   : > { %v4944_v43 = vpop.f32.mrb[8].mxu1  ;;  %9389 = vmatprep.subr.bf16.mxu1 %v14044_v32  ;;  %2592 = vst [vmem:[%s15592_s23 + $0x40] sm:$0xff] %v2496_v42  ;;  %v2498_v46 = vpop.f32.mrb[9].mxu0  ;;  %v11628_v42 = vld [vmem:[%s14422_s19 + $0x17c8] sm:$0xff]  ;;  %v14074_v23 = vld [vmem:[%s14374_s15 + $0x14dc] ss:$8 sps:$4 sm:$0xff]  }
 0x2ef   : > { %v4946_v47 = vpop.f32.mrb[9].mxu1  ;;  %10904 = vst [vmem:[%s15592_s23 + $0x190] sm:$0xff] %v4944_v43  ;;  %2593 = vst.msk [vmem:[%s15592_s23 + $0x48] sm:$0xff] %vm2584_vm2, %v2498_v46  ;;  %v2500_v50 = vpop.f32.mrb[10].mxu0  ;;  %v11640_v43 = vld [vmem:[%s14422_s19 + $0x1828] sm:$0xff] }
 0x2f0   : > { %v4948_v51 = vpop.f32.mrb[10].mxu1  ;;  %10905 = vst.msk [vmem:[%s15592_s23 + $0x198] sm:$0xff] %vm2584_vm2, %v4946_v47  ;;  %2594 = vst [vmem:[%s15592_s23 + $0x50] sm:$0xff] %v2500_v50  ;;  %v2502_v54 = vpop.f32.mrb[11].mxu0  ;;  %6942 = vmatpush1.bf16.msra.mxu0 %v14039_v40  ;;  %v10943_v40 = vld [vmem:[%s14422_s19 + $0xfe8] sm:$0xff] }
 0x2f1   : > { %v4950_v55 = vpop.f32.mrb[11].mxu1  ;;  %9390 = vmatpush1.bf16.msra.mxu1 %v14042_v41  ;;  %10906 = vst [vmem:[%s15592_s23 + $0x1a0] sm:$0xff] %v4948_v51  ;;  %2595 = vst.msk [vmem:[%s15592_s23 + $0x58] sm:$0xff] %vm2584_vm2, %v2502_v54  ;;  %6943 = vmatprep.subr.bf16.mxu0 %v14047_v44  ;;  %v10955_v41 = vld [vmem:[%s14422_s19 + $0x1048] sm:$0xff] }
 0x2f2   : > { %9391 = vmatprep.subr.bf16.mxu1 %v14050_v45  ;;  %10907 = vst.msk [vmem:[%s15592_s23 + $0x1a8] sm:$0xff] %vm2584_vm2, %v4950_v55  ;;  %6877 = vmatmul.mubr.bf16.gmra.mrb[72].mxu0 %v5413_v48  ;;  %v5449_v48 = vpack.c.bf16 %v11180_v38, %v11180_v38  ;;  %v10991_v24 = vld [vmem:[%s14422_s19 + $0x1168] sm:$0xff] }
 0x2f3   : > { %9325 = vmatmul.mubr.bf16.gmra.mrb[72].mxu1 %v7861_v49  ;;  %6886 = vmatprep.mubr.bf16.mxu0 %v5426_v52  ;;  %v7897_v49 = vpack.c.bf16 %v11865_v39, %v11865_v39  ;;  %v5332_v52 = vpack.c.bf16 %v10955_v41, %v10943_v40 }
 0x2f4   : > { %9334 = vmatprep.mubr.bf16.mxu1 %v7874_v53  ;;  %6944 = vmatpush1.bf16.msra.mxu0 %v14045_v56  ;;  %v7780_v53 = vpack.c.bf16 %v11640_v43, %v11628_v42  ;;  %v10942_v56 = vld [vmem:[%s14422_s19 + $0xfe0] sm:$0xff] }
 0x2f5   : > { %9392 = vmatpush1.bf16.msra.mxu1 %v14048_v57  ;;  %v2506_v6 = vpop.f32.mrb[12].mxu0  ;;  %6945 = vmatprep.subr.bf16.mxu0 %v14053_v59  ;;  %v10954_v57 = vld [vmem:[%s14422_s19 + $0x1040] sm:$0xff] }
 0x2f6   : > { %v4954_v7 = vpop.f32.mrb[12].mxu1  ;;  %9393 = vmatprep.subr.bf16.mxu1 %v14056_v60  ;;  %2596 = vst [vmem:[%s15592_s23 + $0x60] sm:$0xff] %v2506_v6  ;;  %v2508_v10 = vpop.f32.mrb[13].mxu0  ;;  %v11639_v59 = vld [vmem:[%s14422_s19 + $0x1820] sm:$0xff]  ;;  %v5331_v1 = vpack.c.bf16 %v10954_v57, %v10942_v56  ;;  %v11700_v56 = vld [vmem:[%s14422_s19 + $0x1a08] sm:$0xff] }
 0x2f7   : > { %v4956_v11 = vpop.f32.mrb[13].mxu1  ;;  %10908 = vst [vmem:[%s15592_s23 + $0x1b0] sm:$0xff] %v4954_v7  ;;  %2597 = vst.msk [vmem:[%s15592_s23 + $0x68] sm:$0xff] %vm2584_vm2, %v2508_v10  ;;  %v2510_v14 = vpop.f32.mrb[14].mxu0  ;;  %v7779_v2 = vpack.c.bf16 %v11639_v59, %v11627_v58  ;;  %v10990_v42 = vld [vmem:[%s14422_s19 + $0x1160] sm:$0xff]  ;;  %v11712_v57 = vld [vmem:[%s14422_s19 + $0x1a68] sm:$0xff] }
 0x2f8   : > { %v4958_v15 = vpop.f32.mrb[14].mxu1  ;;  %10909 = vst.msk [vmem:[%s15592_s23 + $0x1b8] sm:$0xff] %vm2584_vm2, %v4956_v11  ;;  %2598 = vst [vmem:[%s15592_s23 + $0x70] sm:$0xff] %v2510_v14  ;;  %v2512_v18 = vpop.f32.mrb[15].mxu0  ;;  %6946 = vmatpush1.bf16.msra.mxu0 %v14051_v4  ;;  %v11652_v4 = vld [vmem:[%s14422_s19 + $0x1888] sm:$0xff]  ;;  %v5344_v14 = vpack.c.bf16 %v10979_v3, %v10967_v62 }
 0x2f9   : > { %v4960_v19 = vpop.f32.mrb[15].mxu1  ;;  %9394 = vmatpush1.bf16.msra.mxu1 %v14054_v5  ;;  %10910 = vst [vmem:[%s15592_s23 + $0x1c0] sm:$0xff] %v4958_v15  ;;  %2599 = vst.msk [vmem:[%s15592_s23 + $0x78] sm:$0xff] %vm2584_vm2, %v2512_v18  ;;  %7056 = vmatprep.subr.bf16.mxu0 %v14059_v8  ;;  %v11664_v5 = vld [vmem:[%s14422_s19 + $0x18e8] sm:$0xff]  ;;  %v14057_v8 = vld [vmem:[%s14374_s15 + $0xed0] ss:$8 sps:$4 sm:$0xff]  }
 0x2fa   : > { %9504 = vmatprep.subr.bf16.mxu1 %v14062_v9  ;;  %10911 = vst.msk [vmem:[%s15592_s23 + $0x1c8] sm:$0xff] %vm2584_vm2, %v4960_v19  ;;  %6887 = vmatmul.mubr.bf16.gmra.mrb[76].mxu0 %v5425_v12  ;;  %v14060_v9 = vld [vmem:[%s14374_s15 + $0x14b8] ss:$8 sps:$4 sm:$0xff]   ;;  %v14065_v12 = vld [vmem:[%s14374_s15 + $0xee4] ss:$8 sps:$4 sm:$0xff]   ;;  %v7792_v15 = vpack.c.bf16 %v11664_v5, %v11652_v4  ;;  %v7816_v5 = vpack.c.bf16 %v11712_v57, %v11700_v56 }
 0x2fb   : > { %9335 = vmatmul.mubr.bf16.gmra.mrb[76].mxu1 %v7873_v13  ;;  %6896 = vmatprep.mubr.bf16.mxu0 %v5438_v16  ;;  %v14068_v13 = vld [vmem:[%s14374_s15 + $0x14cc] ss:$8 sps:$4 sm:$0xff]   ;;  %v10966_v16 = vld [vmem:[%s14422_s19 + $0x10a0] sm:$0xff] }
 0x2fc   : > { %9344 = vmatprep.mubr.bf16.mxu1 %v7886_v17  ;;  %v10978_v17 = vld [vmem:[%s14422_s19 + $0x1100] sm:$0xff] }
 0x2fd   : > { %v2516_v26 = vpop.f32.mrb[16].mxu0  ;;  %v11651_v18 = vld [vmem:[%s14422_s19 + $0x1880] sm:$0xff] }
 0x2fe   : > { %v4964_v27 = vpop.f32.mrb[16].mxu1  ;;  %2600 = vst [vmem:[%s15592_s23 + $0x80] sm:$0xff] %v2516_v26  ;;  %v2518_v28 = vpop.f32.mrb[17].mxu0  ;;  %v14063_v19 = vld [vmem:[%s14374_s15 + $0xee0] ss:$8 sps:$4 sm:$0xff]  }
 0x2ff   : > { %v4966_v29 = vpop.f32.mrb[17].mxu1  ;;  %10912 = vst [vmem:[%s15592_s23 + $0x1d0] sm:$0xff] %v4964_v27  ;;  %2601 = vst.msk [vmem:[%s15592_s23 + $0x88] sm:$0xff] %vm2584_vm2, %v2518_v28  ;;  %v2520_v32 = vpop.f32.mrb[18].mxu0  ;;  %v11003_v27 = vld [vmem:[%s14422_s19 + $0x11c8] sm:$0xff] }
 0x300   : > { %v4968_v33 = vpop.f32.mrb[18].mxu1  ;;  %10913 = vst.msk [vmem:[%s15592_s23 + $0x1d8] sm:$0xff] %vm2584_vm2, %v4966_v29  ;;  %2602 = vst [vmem:[%s15592_s23 + $0x90] sm:$0xff] %v2520_v32  ;;  %v2522_v36 = vpop.f32.mrb[19].mxu0  ;;  %v11676_v28 = vld [vmem:[%s14422_s19 + $0x1948] sm:$0xff]  ;;  %v5343_v32 = vpack.c.bf16 %v10978_v17, %v10966_v16  ;;  %v5356_v40 = vpack.c.bf16 %v11003_v27, %v10991_v24 }
 0x301   : > { %v4970_v37 = vpop.f32.mrb[19].mxu1  ;;  %10914 = vst [vmem:[%s15592_s23 + $0x1e0] sm:$0xff] %v4968_v33  ;;  %2603 = vst.msk [vmem:[%s15592_s23 + $0x98] sm:$0xff] %vm2584_vm2, %v2522_v36  ;;  %v11688_v29 = vld [vmem:[%s14422_s19 + $0x19a8] sm:$0xff]  ;;  %v7791_v33 = vpack.c.bf16 %v11663_v21, %v11651_v18  ;;  %v14069_v36 = vld [vmem:[%s14374_s15 + $0xef0] ss:$8 sps:$4 sm:$0xff]  }
 0x302   : > { %10915 = vst.msk [vmem:[%s15592_s23 + $0x1e8] sm:$0xff] %vm2584_vm2, %v4970_v37  ;;  %6897 = vmatmul.mubr.bf16.gmra.mrb[80].mxu0 %v5437_v30  ;;  %v14072_v37 = vld [vmem:[%s14374_s15 + $0x14d8] ss:$8 sps:$4 sm:$0xff]   ;;  %v7804_v41 = vpack.c.bf16 %v11688_v29, %v11676_v28  ;;  %v14077_v43 = vld [vmem:[%s14374_s15 + $0xf04] ss:$8 sps:$4 sm:$0xff]  }
 0x303   : > { %9345 = vmatmul.mubr.bf16.gmra.mrb[80].mxu1 %v7885_v31  ;;  %6906 = vmatprep.mubr.bf16.mxu0 %v5450_v34  ;;  %v14084_v4 = vld [vmem:[%s14374_s15 + $0x14f8] ss:$8 sps:$4 sm:$0xff]   ;;  %v14090_v16 = vld [vmem:[%s14374_s15 + $0x1508] ss:$8 sps:$4 sm:$0xff]   ;;  %v14095_v18 = vld [vmem:[%s14374_s15 + $0xf34] ss:$8 sps:$4 sm:$0xff]  }
 0x304   : > { %9354 = vmatprep.mubr.bf16.mxu1 %v7898_v35  ;;  %v11736_v17 = vld [vmem:[%s14422_s19 + $0x1b28] sm:$0xff]  ;;  %v14098_v21 = vld [vmem:[%s14374_s15 + $0x151c] ss:$8 sps:$4 sm:$0xff]  }
 0x305   : > { %v2526_v44 = vpop.f32.mrb[20].mxu0 }
 0x306   : > { %v4974_v45 = vpop.f32.mrb[20].mxu1  ;;  %2604 = vst [vmem:[%s15592_s23 + $0xa0] sm:$0xff] %v2526_v44  ;;  %v2528_v46 = vpop.f32.mrb[21].mxu0  ;;  %v14080_v44 = vld [vmem:[%s14374_s15 + $0x14ec] ss:$8 sps:$4 sm:$0xff]  }
 0x307   : > { %v4976_v47 = vpop.f32.mrb[21].mxu1  ;;  %10916 = vst [vmem:[%s15592_s23 + $0x1f0] sm:$0xff] %v4974_v45  ;;  %2605 = vst.msk [vmem:[%s15592_s23 + $0xa8] sm:$0xff] %vm2584_vm2, %v2528_v46  ;;  %v2530_v50 = vpop.f32.mrb[22].mxu0  ;;  %v11002_v45 = vld [vmem:[%s14422_s19 + $0x11c0] sm:$0xff] }
 0x308   : > { %v4978_v51 = vpop.f32.mrb[22].mxu1  ;;  %10917 = vst.msk [vmem:[%s15592_s23 + $0x1f8] sm:$0xff] %vm2584_vm2, %v4976_v47  ;;  %2606 = vst [vmem:[%s15592_s23 + $0xb0] sm:$0xff] %v2530_v50  ;;  %v2532_v54 = vpop.f32.mrb[23].mxu0  ;;  %v11675_v46 = vld [vmem:[%s14422_s19 + $0x1940] sm:$0xff]  ;;  %v11015_v50 = vld [vmem:[%s14422_s19 + $0x1228] sm:$0xff] }
 0x309   : > { %v4980_v55 = vpop.f32.mrb[23].mxu1  ;;  %10918 = vst [vmem:[%s15592_s23 + $0x200] sm:$0xff] %v4978_v51  ;;  %2607 = vst.msk [vmem:[%s15592_s23 + $0xb8] sm:$0xff] %vm2584_vm2, %v2532_v54  ;;  %v11687_v47 = vld [vmem:[%s14422_s19 + $0x19a0] sm:$0xff]  ;;  %v14083_v51 = vld [vmem:[%s14374_s15 + $0xf14] ss:$8 sps:$4 sm:$0xff]  }
 0x30a   : > { %10919 = vst.msk [vmem:[%s15592_s23 + $0x208] sm:$0xff] %vm2584_vm2, %v4980_v55  ;;  %6907 = vmatmul.mubr.bf16.gmra.mrb[84].mxu0 %v5449_v48  ;;  %v14075_v48 = vld [vmem:[%s14374_s15 + $0xf00] ss:$8 sps:$4 sm:$0xff]  }
 0x30b   : > { %9355 = vmatmul.mubr.bf16.gmra.mrb[84].mxu1 %v7897_v49  ;;  %6947 = vmatprep.mubr.bf16.mxu0 %v5332_v52  ;;  %v14078_v49 = vld [vmem:[%s14374_s15 + $0x14e8] ss:$8 sps:$4 sm:$0xff]   ;;  %v14086_v52 = vld [vmem:[%s14374_s15 + $0x14fc] ss:$8 sps:$4 sm:$0xff]  }
 0x30c   : > { %9395 = vmatprep.mubr.bf16.mxu1 %v7780_v53  ;;  %v11027_v53 = vld [vmem:[%s14422_s19 + $0x1288] sm:$0xff] }
 0x30d   : > { %v2536_v60 = vpop.f32.mrb[24].mxu0 }
 0x30e   : > { %v4984_v61 = vpop.f32.mrb[24].mxu1  ;;  %2608 = vst [vmem:[%s15592_s23 + $0xc0] sm:$0xff] %v2536_v60  ;;  %v2538_v63 = vpop.f32.mrb[25].mxu0  ;;  %v5355_v60 = vpack.c.bf16 %v11002_v45, %v10990_v42  ;;  %v14099_v42 = vld [vmem:[%s14374_s15 + $0xf40] ss:$8 sps:$4 sm:$0xff]  }
 0x30f   : > { %v4986_v0 = vpop.f32.mrb[25].mxu1  ;;  %10920 = vst [vmem:[%s15592_s23 + $0x210] sm:$0xff] %v4984_v61  ;;  %2609 = vst.msk [vmem:[%s15592_s23 + $0xc8] sm:$0xff] %vm2584_vm2, %v2538_v63  ;;  %v2540_v6 = vpop.f32.mrb[26].mxu0  ;;  %v7803_v61 = vpack.c.bf16 %v11687_v47, %v11675_v46  ;;  %v14102_v45 = vld [vmem:[%s14374_s15 + $0x1528] ss:$8 sps:$4 sm:$0xff]  }
 0x310   : > { %v4988_v7 = vpop.f32.mrb[26].mxu1  ;;  %10921 = vst.msk [vmem:[%s15592_s23 + $0x218] sm:$0xff] %vm2584_vm2, %v4986_v0  ;;  %2610 = vst [vmem:[%s15592_s23 + $0xd0] sm:$0xff] %v2540_v6  ;;  %v2542_v10 = vpop.f32.mrb[27].mxu0  ;;  %v14081_v0 = vld [vmem:[%s14374_s15 + $0xf10] ss:$8 sps:$4 sm:$0xff]  }
 0x311   : > { %v4990_v11 = vpop.f32.mrb[27].mxu1  ;;  %10922 = vst [vmem:[%s15592_s23 + $0x220] sm:$0xff] %v4988_v7  ;;  %2611 = vst.msk [vmem:[%s15592_s23 + $0xd8] sm:$0xff] %vm2584_vm2, %v2542_v10  ;;  %v11014_v6 = vld [vmem:[%s14422_s19 + $0x1220] sm:$0xff] }
 0x312   : > { %10923 = vst.msk [vmem:[%s15592_s23 + $0x228] sm:$0xff] %vm2584_vm2, %v4990_v11  ;;  %6948 = vmatmul.mubr.bf16.vlgmr.msra.gmra.mrb[44].mxu0 %v5331_v1  ;;  %v5368_v1 = vpack.c.bf16 %v11027_v53, %v11015_v50  ;;  %v11026_v7 = vld [vmem:[%s14422_s19 + $0x1280] sm:$0xff] }
 0x313   : > { %9396 = vmatmul.mubr.bf16.vlgmr.msra.gmra.mrb[44].mxu1 %v7779_v2  ;;  %7057 = vmatpush1.bf16.msra.mxu0 %v14057_v8  ;;  %v14089_v8 = vld [vmem:[%s14374_s15 + $0xf24] ss:$8 sps:$4 sm:$0xff]   ;;  %v5367_v24 = vpack.c.bf16 %v11026_v7, %v11014_v6 }
 0x314   : > { %9505 = vmatpush1.bf16.msra.mxu1 %v14060_v9  ;;  %7058 = vmatprep.subr.bf16.mxu0 %v14065_v12  ;;  %v14092_v9 = vld [vmem:[%s14374_s15 + $0x150c] ss:$8 sps:$4 sm:$0xff]   ;;  %v11699_v10 = vld [vmem:[%s14422_s19 + $0x1a00] sm:$0xff] }
 0x315   : > { %9506 = vmatprep.subr.bf16.mxu1 %v14068_v13  ;;  %v2546_v25 = vpop.f32.mrb[28].mxu0  ;;  %6957 = vmatprep.mubr.bf16.mxu0 %v5344_v14  ;;  %v11711_v11 = vld [vmem:[%s14422_s19 + $0x1a60] sm:$0xff]  ;;  %v11039_v12 = vld [vmem:[%s14422_s19 + $0x12e8] sm:$0xff] }
 0x316   : > { %v4994_v26 = vpop.f32.mrb[28].mxu1  ;;  %9405 = vmatprep.mubr.bf16.mxu1 %v7792_v15  ;;  %2612 = vst [vmem:[%s15592_s23 + $0xe0] sm:$0xff] %v2546_v25  ;;  %v2548_v30 = vpop.f32.mrb[29].mxu0  ;;  %v14087_v13 = vld [vmem:[%s14374_s15 + $0xf20] ss:$8 sps:$4 sm:$0xff]   ;;  %v7815_v25 = vpack.c.bf16 %v11711_v11, %v11699_v10 }
 0x317   : > { %v4996_v31 = vpop.f32.mrb[29].mxu1  ;;  %10924 = vst [vmem:[%s15592_s23 + $0x230] sm:$0xff] %v4994_v26  ;;  %2613 = vst.msk [vmem:[%s15592_s23 + $0xe8] sm:$0xff] %vm2584_vm2, %v2548_v30  ;;  %v2550_v34 = vpop.f32.mrb[30].mxu0  ;;  %7059 = vmatpush1.bf16.msra.mxu0 %v14063_v19  ;;  %v11051_v14 = vld [vmem:[%s14422_s19 + $0x1348] sm:$0xff] }
 0x318   : > { %v4998_v35 = vpop.f32.mrb[30].mxu1  ;;  %9507 = vmatpush1.bf16.msra.mxu1 %v14066_v20  ;;  %10925 = vst.msk [vmem:[%s15592_s23 + $0x238] sm:$0xff] %vm2584_vm2, %v4996_v31  ;;  %2614 = vst [vmem:[%s15592_s23 + $0xf0] sm:$0xff] %v2550_v34  ;;  %v2552_v38 = vpop.f32.mrb[31].mxu0  ;;  %7060 = vmatprep.subr.bf16.mxu0 %v14071_v22  ;;  %v11724_v15 = vld [vmem:[%s14422_s19 + $0x1ac8] sm:$0xff]  ;;  %v5380_v28 = vpack.c.bf16 %v11051_v14, %v11039_v12  ;;  %v11038_v34 = vld [vmem:[%s14422_s19 + $0x12e0] sm:$0xff] }
 0x319   : > { %v5000_v39 = vpop.f32.mrb[31].mxu1  ;;  %9508 = vmatprep.subr.bf16.mxu1 %v14074_v23  ;;  %10926 = vst [vmem:[%s15592_s23 + $0x240] sm:$0xff] %v4998_v35  ;;  %2615 = vst.msk [vmem:[%s15592_s23 + $0xf8] sm:$0xff] %vm2584_vm2, %v2552_v38  ;;  %v7828_v29 = vpack.c.bf16 %v11736_v17, %v11724_v15  ;;  %v14101_v35 = vld [vmem:[%s14374_s15 + $0xf44] ss:$8 sps:$4 sm:$0xff]  }
 0x31a   : > { %10927 = vst.msk [vmem:[%s15592_s23 + $0x248] sm:$0xff] %vm2584_vm2, %v5000_v39  ;;  %6958 = vmatmul.mubr.bf16.gmra.mrb[48].mxu0 %v5343_v32  ;;  %v14093_v32 = vld [vmem:[%s14374_s15 + $0xf30] ss:$8 sps:$4 sm:$0xff]   ;;  %v11723_v38 = vld [vmem:[%s14422_s19 + $0x1ac0] sm:$0xff]  ;;  %v11772_v6 = vld [vmem:[%s14422_s19 + $0x1c48] sm:$0xff] }
 0x31b   : > { %9406 = vmatmul.mubr.bf16.gmra.mrb[48].mxu1 %v7791_v33  ;;  %7061 = vmatpush1.bf16.msra.mxu0 %v14069_v36  ;;  %v14096_v33 = vld [vmem:[%s14374_s15 + $0x1518] ss:$8 sps:$4 sm:$0xff]   ;;  %v14104_v36 = vld [vmem:[%s14374_s15 + $0x152c] ss:$8 sps:$4 sm:$0xff]   ;;  %v14122_v11 = vld [vmem:[%s14374_s15 + $0x155c] ss:$8 sps:$4 sm:$0xff]  }
 0x31c   : > { %9509 = vmatpush1.bf16.msra.mxu1 %v14072_v37  ;;  %6967 = vmatprep.mubr.bf16.mxu0 %v5356_v40  ;;  %v11050_v37 = vld [vmem:[%s14422_s19 + $0x1340] sm:$0xff]  ;;  %v11063_v40 = vld [vmem:[%s14422_s19 + $0x13a8] sm:$0xff]  ;;  %v14119_v10 = vld [vmem:[%s14374_s15 + $0xf74] ss:$8 sps:$4 sm:$0xff]  }
 0x31d   : > { %9415 = vmatprep.mubr.bf16.mxu1 %v7804_v41  ;;  %v2556_v54 = vpop.f32.mrb[32].mxu0  ;;  %7062 = vmatprep.subr.bf16.mxu0 %v14077_v43  ;;  %v11735_v39 = vld [vmem:[%s14422_s19 + $0x1b20] sm:$0xff]  ;;  %v11075_v41 = vld [vmem:[%s14422_s19 + $0x1408] sm:$0xff] }
 0x31e   : > { %v5004_v55 = vpop.f32.mrb[32].mxu1  ;;  %9510 = vmatprep.subr.bf16.mxu1 %v14080_v44  ;;  %2616 = vst [vmem:[%s15592_s23 + $0x100] sm:$0xff] %v2556_v54  ;;  %v2558_v58 = vpop.f32.mrb[33].mxu0  ;;  %v11748_v43 = vld [vmem:[%s14422_s19 + $0x1b88] sm:$0xff]  ;;  %v7827_v53 = vpack.c.bf16 %v11735_v39, %v11723_v38  ;;  %v5392_v56 = vpack.c.bf16 %v11075_v41, %v11063_v40  ;;  %v14120_v17 = vld [vmem:[%s14374_s15 + $0x1558] ss:$8 sps:$4 sm:$0xff]  }
 0x31f   : > { %v5006_v59 = vpop.f32.mrb[33].mxu1  ;;  %10928 = vst [vmem:[%s15592_s23 + $0x250] sm:$0xff] %v5004_v55  ;;  %2617 = vst.msk [vmem:[%s15592_s23 + $0x108] sm:$0xff] %vm2584_vm2, %v2558_v58  ;;  %v2560_v62 = vpop.f32.mrb[34].mxu0  ;;  %7063 = vmatpush1.bf16.msra.mxu0 %v14075_v48  ;;  %v11760_v44 = vld [vmem:[%s14422_s19 + $0x1be8] sm:$0xff]  ;;  %v11110_v38 = vld [vmem:[%s14422_s19 + $0x1520] sm:$0xff] }
 0x320   : > { %v5008_v63 = vpop.f32.mrb[34].mxu1  ;;  %9511 = vmatpush1.bf16.msra.mxu1 %v14078_v49  ;;  %10929 = vst.msk [vmem:[%s15592_s23 + $0x258] sm:$0xff] %vm2584_vm2, %v5006_v59  ;;  %2618 = vst [vmem:[%s15592_s23 + $0x110] sm:$0xff] %v2560_v62  ;;  %v2562_v2 = vpop.f32.mrb[35].mxu0  ;;  %7064 = vmatprep.subr.bf16.mxu0 %v14083_v51  ;;  %v14107_v48 = vld [vmem:[%s14374_s15 + $0xf54] ss:$8 sps:$4 sm:$0xff]   ;;  %v7840_v57 = vpack.c.bf16 %v11760_v44, %v11748_v43 }
 0x321   : > { %v5010_v3 = vpop.f32.mrb[35].mxu1  ;;  %9512 = vmatprep.subr.bf16.mxu1 %v14086_v52  ;;  %10930 = vst [vmem:[%s15592_s23 + $0x260] sm:$0xff] %v5008_v63  ;;  %2619 = vst.msk [vmem:[%s15592_s23 + $0x118] sm:$0xff] %vm2584_vm2, %v2562_v2  ;;  %v14110_v49 = vld [vmem:[%s14374_s15 + $0x153c] ss:$8 sps:$4 sm:$0xff]   ;;  %v5379_v52 = vpack.c.bf16 %v11050_v37, %v11038_v34  ;;  %v11784_v7 = vld [vmem:[%s14422_s19 + $0x1ca8] sm:$0xff] }
 0x322   : > { %10931 = vst.msk [vmem:[%s15592_s23 + $0x268] sm:$0xff] %vm2584_vm2, %v5010_v3  ;;  %6968 = vmatmul.mubr.bf16.gmra.mrb[52].mxu0 %v5355_v60  ;;  %v14105_v60 = vld [vmem:[%s14374_s15 + $0xf50] ss:$8 sps:$4 sm:$0xff]   ;;  %v11062_v62 = vld [vmem:[%s14422_s19 + $0x13a0] sm:$0xff]  ;;  %v7852_v15 = vpack.c.bf16 %v11784_v7, %v11772_v6  ;;  %v14140_v40 = vld [vmem:[%s14374_s15 + $0x158c] ss:$8 sps:$4 sm:$0xff]  }
 0x323   : > { %9416 = vmatmul.mubr.bf16.gmra.mrb[52].mxu1 %v7803_v61  ;;  %6977 = vmatprep.mubr.bf16.mxu0 %v5368_v1  ;;  %v14108_v61 = vld [vmem:[%s14374_s15 + $0x1538] ss:$8 sps:$4 sm:$0xff]   ;;  %v14113_v63 = vld [vmem:[%s14374_s15 + $0xf64] ss:$8 sps:$4 sm:$0xff]   ;;  %v14155_v6 = vld [vmem:[%s14374_s15 + $0xfd4] ss:$8 sps:$4 sm:$0xff]  }
 0x324   : > { %7065 = vmatpush1.bf16.msra.mxu0 %v14081_v0  ;;  %9425 = vmatprep.mubr.bf16.mxu1 %v7816_v5  ;;  %v14116_v0 = vld [vmem:[%s14374_s15 + $0x154c] ss:$8 sps:$4 sm:$0xff]   ;;  %v11074_v1 = vld [vmem:[%s14422_s19 + $0x1400] sm:$0xff] }
 0x325   : > { %9513 = vmatpush1.bf16.msra.mxu1 %v14084_v4  ;;  %v2566_v19 = vpop.f32.mrb[36].mxu0  ;;  %7066 = vmatprep.subr.bf16.mxu0 %v14089_v8  ;;  %v11747_v2 = vld [vmem:[%s14422_s19 + $0x1b80] sm:$0xff]  ;;  %v11087_v4 = vld [vmem:[%s14422_s19 + $0x1468] sm:$0xff]  ;;  %v5391_v12 = vpack.c.bf16 %v11074_v1, %v11062_v62 }
 0x326   : > { %v5014_v20 = vpop.f32.mrb[36].mxu1  ;;  %9514 = vmatprep.subr.bf16.mxu1 %v14092_v9  ;;  %2620 = vst [vmem:[%s15592_s23 + $0x120] sm:$0xff] %v2566_v19  ;;  %v2568_v22 = vpop.f32.mrb[37].mxu0  ;;  %v11759_v3 = vld [vmem:[%s14422_s19 + $0x1be0] sm:$0xff]  ;;  %v11099_v5 = vld [vmem:[%s14422_s19 + $0x14c8] sm:$0xff] }
 0x327   : > { %v5016_v23 = vpop.f32.mrb[37].mxu1  ;;  %10932 = vst [vmem:[%s15592_s23 + $0x270] sm:$0xff] %v5014_v20  ;;  %2621 = vst.msk [vmem:[%s15592_s23 + $0x128] sm:$0xff] %vm2584_vm2, %v2568_v22  ;;  %v2570_v26 = vpop.f32.mrb[38].mxu0  ;;  %v14111_v8 = vld [vmem:[%s14374_s15 + $0xf60] ss:$8 sps:$4 sm:$0xff]   ;;  %v5404_v14 = vpack.c.bf16 %v11099_v5, %v11087_v4 }
 0x328   : > { %v5018_v27 = vpop.f32.mrb[38].mxu1  ;;  %7067 = vmatpush1.bf16.msra.mxu0 %v14087_v13  ;;  %10933 = vst.msk [vmem:[%s15592_s23 + $0x278] sm:$0xff] %vm2584_vm2, %v5016_v23  ;;  %2622 = vst [vmem:[%s15592_s23 + $0x130] sm:$0xff] %v2570_v26  ;;  %v2572_v30 = vpop.f32.mrb[39].mxu0  ;;  %v14114_v9 = vld [vmem:[%s14374_s15 + $0x1548] ss:$8 sps:$4 sm:$0xff]   ;;  %v7839_v13 = vpack.c.bf16 %v11759_v3, %v11747_v2 }
 0x329   : > { %v5020_v31 = vpop.f32.mrb[39].mxu1  ;;  %9515 = vmatpush1.bf16.msra.mxu1 %v14090_v16  ;;  %7068 = vmatprep.subr.bf16.mxu0 %v14095_v18  ;;  %10934 = vst [vmem:[%s15592_s23 + $0x280] sm:$0xff] %v5018_v27  ;;  %2623 = vst.msk [vmem:[%s15592_s23 + $0x138] sm:$0xff] %vm2584_vm2, %v2572_v30  ;;  %v14117_v16 = vld [vmem:[%s14374_s15 + $0xf70] ss:$8 sps:$4 sm:$0xff]   ;;  %v11086_v18 = vld [vmem:[%s14422_s19 + $0x1460] sm:$0xff] }
 0x32a   : > { %9516 = vmatprep.subr.bf16.mxu1 %v14098_v21  ;;  %10935 = vst.msk [vmem:[%s15592_s23 + $0x288] sm:$0xff] %vm2584_vm2, %v5020_v31  ;;  %6978 = vmatmul.mubr.bf16.gmra.mrb[56].mxu0 %v5367_v24  ;;  %v14125_v19 = vld [vmem:[%s14374_s15 + $0xf84] ss:$8 sps:$4 sm:$0xff]   ;;  %v14131_v30 = vld [vmem:[%s14374_s15 + $0xf94] ss:$8 sps:$4 sm:$0xff]  }
 0x32b   : > { %9426 = vmatmul.mubr.bf16.gmra.mrb[56].mxu1 %v7815_v25  ;;  %6987 = vmatprep.mubr.bf16.mxu0 %v5380_v28  ;;  %v14128_v20 = vld [vmem:[%s14374_s15 + $0x156c] ss:$8 sps:$4 sm:$0xff]   ;;  %v11098_v21 = vld [vmem:[%s14422_s19 + $0x14c0] sm:$0xff]  ;;  %v14150_v5 = vld [vmem:[%s14374_s15 + $0x15a8] ss:$8 sps:$4 sm:$0xff]  }
 0x32c   : > { %9435 = vmatprep.mubr.bf16.mxu1 %v7828_v29  ;;  %7069 = vmatpush1.bf16.msra.mxu0 %v14093_v32  ;;  %v11771_v22 = vld [vmem:[%s14422_s19 + $0x1c40] sm:$0xff]  ;;  %v11111_v24 = vld [vmem:[%s14422_s19 + $0x1528] sm:$0xff]  ;;  %v5403_v32 = vpack.c.bf16 %v11098_v21, %v11086_v18 }
 0x32d   : > { %9517 = vmatpush1.bf16.msra.mxu1 %v14096_v33  ;;  %v2576_v46 = vpop.f32.mrb[40].mxu0  ;;  %7070 = vmatprep.subr.bf16.mxu0 %v14101_v35  ;;  %v11783_v23 = vld [vmem:[%s14422_s19 + $0x1ca0] sm:$0xff]  ;;  %v11123_v25 = vld [vmem:[%s14422_s19 + $0x1588] sm:$0xff] }
 0x32e   : > { %v5024_v47 = vpop.f32.mrb[40].mxu1  ;;  %9518 = vmatprep.subr.bf16.mxu1 %v14104_v36  ;;  %2624 = vst [vmem:[%s15592_s23 + $0x140] sm:$0xff] %v2576_v46  ;;  %v2578_v50 = vpop.f32.mrb[41].mxu0  ;;  %v11796_v26 = vld [vmem:[%s14422_s19 + $0x1d08] sm:$0xff]  ;;  %v14134_v31 = vld [vmem:[%s14374_s15 + $0x157c] ss:$8 sps:$4 sm:$0xff]   ;;  %v7851_v33 = vpack.c.bf16 %v11783_v23, %v11771_v22  ;;  %v5416_v34 = vpack.c.bf16 %v11123_v25, %v11111_v24 }
 0x32f   : > { %v5026_v51 = vpop.f32.mrb[41].mxu1  ;;  %10936 = vst [vmem:[%s15592_s23 + $0x290] sm:$0xff] %v5024_v47  ;;  %2625 = vst.msk [vmem:[%s15592_s23 + $0x148] sm:$0xff] %vm2584_vm2, %v2578_v50  ;;  %v2580_v54 = vpop.f32.mrb[42].mxu0  ;;  %v11808_v27 = vld [vmem:[%s14422_s19 + $0x1d68] sm:$0xff]  ;;  %v11122_v41 = vld [vmem:[%s14422_s19 + $0x1580] sm:$0xff] }
 0x330   : > { %v5028_v55 = vpop.f32.mrb[42].mxu1  ;;  %10937 = vst.msk [vmem:[%s15592_s23 + $0x298] sm:$0xff] %vm2584_vm2, %v5026_v51  ;;  %v2581_v58 = vpop.f32.mrb[43].mxu0  ;;  %7071 = vmatpush1.bf16.msra.mxu0 %v14099_v42  ;;  %v14123_v28 = vld [vmem:[%s14374_s15 + $0xf80] ss:$8 sps:$4 sm:$0xff]   ;;  %v7864_v35 = vpack.c.bf16 %v11808_v27, %v11796_v26  ;;  %v10945_v24 = vld [vmem:[%s14422_s19 + $0xff8] sm:$0xff] }
 0x331   : > { %v5029_v59 = vpop.f32.mrb[43].mxu1  ;;  %9519 = vmatpush1.bf16.msra.mxu1 %v14102_v45  ;;  %7072 = vmatprep.subr.bf16.mxu0 %v14107_v48  ;;  %v14126_v29 = vld [vmem:[%s14374_s15 + $0x1568] ss:$8 sps:$4 sm:$0xff]   ;;  %v14132_v37 = vld [vmem:[%s14374_s15 + $0x1578] ss:$8 sps:$4 sm:$0xff]  }
 0x332   : > { %9520 = vmatprep.subr.bf16.mxu1 %v14110_v49  ;;  %6988 = vmatmul.mubr.bf16.gmra.mrb[60].mxu0 %v5379_v52  ;;  %v14129_v36 = vld [vmem:[%s14374_s15 + $0xf90] ss:$8 sps:$4 sm:$0xff]   ;;  %v14137_v39 = vld [vmem:[%s14374_s15 + $0xfa4] ss:$8 sps:$4 sm:$0xff]   ;;  %v14135_v48 = vld [vmem:[%s14374_s15 + $0xfa0] ss:$8 sps:$4 sm:$0xff]   ;;  %v5415_v52 = vpack.c.bf16 %v11122_v41, %v11110_v38 }
 0x333   : > { %9436 = vmatmul.mubr.bf16.gmra.mrb[60].mxu1 %v7827_v53  ;;  %6997 = vmatprep.mubr.bf16.mxu0 %v5392_v56  ;;  %v11795_v42 = vld [vmem:[%s14422_s19 + $0x1d00] sm:$0xff]  ;;  %v11135_v44 = vld [vmem:[%s14422_s19 + $0x15e8] sm:$0xff]  ;;  %v14143_v50 = vld [vmem:[%s14374_s15 + $0xfb4] ss:$8 sps:$4 sm:$0xff]  }
 0x334   : > { %9445 = vmatprep.mubr.bf16.mxu1 %v7840_v57  ;;  %7073 = vmatpush1.bf16.msra.mxu0 %v14105_v60  ;;  %v11807_v43 = vld [vmem:[%s14422_s19 + $0x1d60] sm:$0xff]  ;;  %v11147_v45 = vld [vmem:[%s14422_s19 + $0x1648] sm:$0xff]  ;;  %v14141_v56 = vld [vmem:[%s14374_s15 + $0xfb0] ss:$8 sps:$4 sm:$0xff]  }
 0x335   : > { %9521 = vmatpush1.bf16.msra.mxu1 %v14108_v61  ;;  %7074 = vmatprep.subr.bf16.mxu0 %v14113_v63  ;;  %v11820_v46 = vld [vmem:[%s14422_s19 + $0x1dc8] sm:$0xff]  ;;  %v14146_v51 = vld [vmem:[%s14374_s15 + $0x159c] ss:$8 sps:$4 sm:$0xff]   ;;  %v7863_v53 = vpack.c.bf16 %v11807_v43, %v11795_v42  ;;  %v5428_v54 = vpack.c.bf16 %v11147_v45, %v11135_v44  ;;  %v14144_v57 = vld [vmem:[%s14374_s15 + $0x1598] ss:$8 sps:$4 sm:$0xff]  }
 0x336   : > { %9522 = vmatprep.subr.bf16.mxu1 %v14116_v0  ;;  %v11832_v47 = vld [vmem:[%s14422_s19 + $0x1e28] sm:$0xff]  ;;  %v11134_v58 = vld [vmem:[%s14422_s19 + $0x15e0] sm:$0xff]  ;;  %v10957_v25 = vld [vmem:[%s14422_s19 + $0x1058] sm:$0xff] }
 0x337   : > { %v14138_v49 = vld [vmem:[%s14374_s15 + $0x1588] ss:$8 sps:$4 sm:$0xff]   ;;  %v7876_v55 = vpack.c.bf16 %v11832_v47, %v11820_v46  ;;  %v14149_v59 = vld [vmem:[%s14374_s15 + $0xfc4] ss:$8 sps:$4 sm:$0xff]   ;;  %v11630_v26 = vld [vmem:[%s14422_s19 + $0x17d8] sm:$0xff] }
 0x338   : > { %7075 = vmatpush1.bf16.msra.mxu0 %v14111_v8  ;;  %v14152_v60 = vld [vmem:[%s14374_s15 + $0x15ac] ss:$8 sps:$4 sm:$0xff]   ;;  %v11146_v61 = vld [vmem:[%s14422_s19 + $0x1640] sm:$0xff]  ;;  %v11642_v27 = vld [vmem:[%s14422_s19 + $0x1838] sm:$0xff] }
 0x339   : > { %9523 = vmatpush1.bf16.msra.mxu1 %v14114_v9  ;;  %7076 = vmatprep.subr.bf16.mxu0 %v14119_v10  ;;  %v11819_v62 = vld [vmem:[%s14422_s19 + $0x1dc0] sm:$0xff]  ;;  %v11159_v0 = vld [vmem:[%s14422_s19 + $0x16a8] sm:$0xff]  ;;  %v5427_v8 = vpack.c.bf16 %v11146_v61, %v11134_v58  ;;  %v11666_v41 = vld [vmem:[%s14422_s19 + $0x18f8] sm:$0xff] }
 0x33a   : > { %9524 = vmatprep.subr.bf16.mxu1 %v14122_v11  ;;  %6998 = vmatmul.mubr.bf16.gmra.mrb[64].mxu0 %v5391_v12  ;;  %v11831_v63 = vld [vmem:[%s14422_s19 + $0x1e20] sm:$0xff]  ;;  %v11171_v1 = vld [vmem:[%s14422_s19 + $0x1708] sm:$0xff]  ;;  %v14153_v42 = vld [vmem:[%s14374_s15 + $0xfd0] ss:$8 sps:$4 sm:$0xff]  }
 0x33b   : > { %9446 = vmatmul.mubr.bf16.gmra.mrb[64].mxu1 %v7839_v13  ;;  %7007 = vmatprep.mubr.bf16.mxu0 %v5404_v14  ;;  %v11844_v2 = vld [vmem:[%s14422_s19 + $0x1e88] sm:$0xff]  ;;  %v14158_v7 = vld [vmem:[%s14374_s15 + $0x15bc] ss:$8 sps:$4 sm:$0xff]   ;;  %v7875_v9 = vpack.c.bf16 %v11831_v63, %v11819_v62  ;;  %v5440_v10 = vpack.c.bf16 %v11171_v1, %v11159_v0  ;;  %v14156_v43 = vld [vmem:[%s14374_s15 + $0x15b8] ss:$8 sps:$4 sm:$0xff]  }
 0x33c   : > { %9455 = vmatprep.mubr.bf16.mxu1 %v7852_v15  ;;  %7077 = vmatpush1.bf16.msra.mxu0 %v14117_v16  ;;  %v11856_v3 = vld [vmem:[%s14422_s19 + $0x1ee8] sm:$0xff]  ;;  %v11158_v12 = vld [vmem:[%s14422_s19 + $0x16a0] sm:$0xff]  ;;  %v11678_v58 = vld [vmem:[%s14422_s19 + $0x1958] sm:$0xff] }
 0x33d   : > { %9525 = vmatpush1.bf16.msra.mxu1 %v14120_v17  ;;  %7078 = vmatprep.subr.bf16.mxu0 %v14125_v19  ;;  %v14147_v4 = vld [vmem:[%s14374_s15 + $0xfc0] ss:$8 sps:$4 sm:$0xff]   ;;  %v7888_v11 = vpack.c.bf16 %v11856_v3, %v11844_v2  ;;  %v14161_v44 = vld [vmem:[%s14374_s15 + $0xfe4] ss:$8 sps:$4 sm:$0xff]   ;;  %v14165_v62 = vld [vmem:[%s14374_s15 + $0xff0] ss:$8 sps:$4 sm:$0xff]  }
 0x33e   : > { %9526 = vmatprep.subr.bf16.mxu1 %v14128_v20  ;;  %v11170_v13 = vld [vmem:[%s14422_s19 + $0x1700] sm:$0xff]  ;;  %v11183_v16 = vld [vmem:[%s14422_s19 + $0x1768] sm:$0xff]  ;;  %v10992_v2 = vld [vmem:[%s14422_s19 + $0x1170] sm:$0xff] }
 0x33f   : > { %v11843_v14 = vld [vmem:[%s14422_s19 + $0x1e80] sm:$0xff]  ;;  %v11868_v17 = vld [vmem:[%s14422_s19 + $0x1f48] sm:$0xff]  ;;  %v5439_v18 = vpack.c.bf16 %v11170_v13, %v11158_v12  ;;  %v5452_v20 = vpack.c.bf16 %v11183_v16, %v11183_v16  ;;  %v11017_v12 = vld [vmem:[%s14422_s19 + $0x1238] sm:$0xff] }
 0x340   : > { %7079 = vmatpush1.bf16.msra.mxu0 %v14123_v28  ;;  %v11855_v15 = vld [vmem:[%s14422_s19 + $0x1ee0] sm:$0xff]  ;;  %v7900_v21 = vpack.c.bf16 %v11868_v17, %v11868_v17  ;;  %v14164_v45 = vld [vmem:[%s14374_s15 + $0x15cc] ss:$8 sps:$4 sm:$0xff]   ;;  %v11029_v13 = vld [vmem:[%s14422_s19 + $0x1298] sm:$0xff] }
 0x341   : > { %9527 = vmatpush1.bf16.msra.mxu1 %v14126_v29  ;;  %7080 = vmatprep.subr.bf16.mxu0 %v14131_v30  ;;  %v7887_v19 = vpack.c.bf16 %v11855_v15, %v11843_v14  ;;  %v11182_v22 = vld [vmem:[%s14422_s19 + $0x1760] sm:$0xff]  ;;  %v5334_v30 = vpack.c.bf16 %v10957_v25, %v10945_v24  ;;  %v11702_v14 = vld [vmem:[%s14422_s19 + $0x1a18] sm:$0xff]  ;;  %v14188_v25 = vld [vmem:[%s14374_s15 + $0x160c] ss:$8 sps:$4 sm:$0xff]  }
 0x342   : > { %9528 = vmatprep.subr.bf16.mxu1 %v14134_v31  ;;  %7008 = vmatmul.mubr.bf16.gmra.mrb[68].mxu0 %v5403_v32  ;;  %v11867_v23 = vld [vmem:[%s14422_s19 + $0x1f40] sm:$0xff]  ;;  %v5451_v28 = vpack.c.bf16 %v11182_v22, %v11182_v22  ;;  %v7782_v31 = vpack.c.bf16 %v11642_v27, %v11630_v26  ;;  %v10944_v32 = vld [vmem:[%s14422_s19 + $0xff0] sm:$0xff]  ;;  %v11714_v15 = vld [vmem:[%s14422_s19 + $0x1a78] sm:$0xff] }
 0x343   : > { %9456 = vmatmul.mubr.bf16.gmra.mrb[68].mxu1 %v7851_v33  ;;  %7017 = vmatprep.mubr.bf16.mxu0 %v5416_v34  ;;  %v7899_v29 = vpack.c.bf16 %v11867_v23, %v11867_v23  ;;  %v10956_v33 = vld [vmem:[%s14422_s19 + $0x1050] sm:$0xff]  ;;  %v14168_v63 = vld [vmem:[%s14374_s15 + $0x15d8] ss:$8 sps:$4 sm:$0xff]   ;;  %v14173_v3 = vld [vmem:[%s14374_s15 + $0x1004] ss:$8 sps:$4 sm:$0xff]  }
 0x344   : > { %9465 = vmatprep.mubr.bf16.mxu1 %v7864_v35  ;;  %7081 = vmatpush1.bf16.msra.mxu0 %v14129_v36  ;;  %v11629_v34 = vld [vmem:[%s14422_s19 + $0x17d0] sm:$0xff]  ;;  %v10969_v36 = vld [vmem:[%s14422_s19 + $0x10b8] sm:$0xff]  ;;  %v14185_v24 = vld [vmem:[%s14374_s15 + $0x1024] ss:$8 sps:$4 sm:$0xff]  }
 0x345   : > { %9529 = vmatpush1.bf16.msra.mxu1 %v14132_v37  ;;  %7082 = vmatprep.subr.bf16.mxu0 %v14137_v39  ;;  %v11641_v35 = vld [vmem:[%s14422_s19 + $0x1830] sm:$0xff]  ;;  %v5333_v37 = vpack.c.bf16 %v10956_v33, %v10944_v32  ;;  %v10981_v39 = vld [vmem:[%s14422_s19 + $0x1118] sm:$0xff] }
 0x346   : > { %9530 = vmatprep.subr.bf16.mxu1 %v14140_v40  ;;  %v7781_v38 = vpack.c.bf16 %v11641_v35, %v11629_v34  ;;  %v11654_v40 = vld [vmem:[%s14422_s19 + $0x1898] sm:$0xff]  ;;  %v5346_v46 = vpack.c.bf16 %v10981_v39, %v10969_v36  ;;  %v11016_v22 = vld [vmem:[%s14422_s19 + $0x1230] sm:$0xff] }
 0x347   : > { %v7794_v47 = vpack.c.bf16 %v11666_v41, %v11654_v40  ;;  %v11028_v23 = vld [vmem:[%s14422_s19 + $0x1290] sm:$0xff]  ;;  %v11726_v32 = vld [vmem:[%s14422_s19 + $0x1ad8] sm:$0xff] }
 0x348   : > { %7083 = vmatpush1.bf16.msra.mxu0 %v14135_v48  ;;  %v14159_v48 = vld [vmem:[%s14374_s15 + $0xfe0] ss:$8 sps:$4 sm:$0xff]   ;;  %v11701_v26 = vld [vmem:[%s14422_s19 + $0x1a10] sm:$0xff]  ;;  %v11738_v33 = vld [vmem:[%s14422_s19 + $0x1b38] sm:$0xff]  ;;  %v5369_v36 = vpack.c.bf16 %v11028_v23, %v11016_v22 }
 0x349   : > { %9531 = vmatpush1.bf16.msra.mxu1 %v14138_v49  ;;  %7084 = vmatprep.subr.bf16.mxu0 %v14143_v50  ;;  %v14162_v49 = vld [vmem:[%s14374_s15 + $0x15c8] ss:$8 sps:$4 sm:$0xff]   ;;  %v14191_v34 = vld [vmem:[%s14374_s15 + $0x1034] ss:$8 sps:$4 sm:$0xff]   ;;  %v7830_v39 = vpack.c.bf16 %v11738_v33, %v11726_v32  ;;  %v14192_v41 = vld [vmem:[%s14374_s15 + $0x1618] ss:$8 sps:$4 sm:$0xff]  }
 0x34a   : > { %9532 = vmatprep.subr.bf16.mxu1 %v14146_v51  ;;  %7018 = vmatmul.mubr.bf16.gmra.mrb[72].mxu0 %v5415_v52  ;;  %v10968_v50 = vld [vmem:[%s14422_s19 + $0x10b0] sm:$0xff]  ;;  %v14194_v35 = vld [vmem:[%s14374_s15 + $0x161c] ss:$8 sps:$4 sm:$0xff]  }
 0x34b   : > { %9466 = vmatmul.mubr.bf16.gmra.mrb[72].mxu1 %v7863_v53  ;;  %7027 = vmatprep.mubr.bf16.mxu0 %v5428_v54  ;;  %v10980_v51 = vld [vmem:[%s14422_s19 + $0x1110] sm:$0xff] }
 0x34c   : > { %9475 = vmatprep.mubr.bf16.mxu1 %v7876_v55  ;;  %7085 = vmatpush1.bf16.msra.mxu0 %v14141_v56  ;;  %v11653_v52 = vld [vmem:[%s14422_s19 + $0x1890] sm:$0xff]  ;;  %v14170_v55 = vld [vmem:[%s14374_s15 + $0x15dc] ss:$8 sps:$4 sm:$0xff]  }
 0x34d   : > { %9533 = vmatpush1.bf16.msra.mxu1 %v14144_v57  ;;  %7086 = vmatprep.subr.bf16.mxu0 %v14149_v59  ;;  %v11665_v53 = vld [vmem:[%s14422_s19 + $0x18f0] sm:$0xff]  ;;  %v10993_v56 = vld [vmem:[%s14422_s19 + $0x1178] sm:$0xff] }
 0x34e   : > { %9534 = vmatprep.subr.bf16.mxu1 %v14152_v60  ;;  %v14167_v54 = vld [vmem:[%s14374_s15 + $0xff4] ss:$8 sps:$4 sm:$0xff]   ;;  %v5345_v60 = vpack.c.bf16 %v10980_v51, %v10968_v50  ;;  %v7793_v61 = vpack.c.bf16 %v11665_v53, %v11653_v52  ;;  %v14189_v40 = vld [vmem:[%s14374_s15 + $0x1030] ss:$8 sps:$4 sm:$0xff]   ;;  %v14195_v50 = vld [vmem:[%s14374_s15 + $0x1040] ss:$8 sps:$4 sm:$0xff]  }
 0x34f   : > { %v11005_v57 = vld [vmem:[%s14422_s19 + $0x11d8] sm:$0xff]  ;;  %v11713_v27 = vld [vmem:[%s14422_s19 + $0x1a70] sm:$0xff] }
 0x350   : > { %7087 = vmatpush1.bf16.msra.mxu0 %v14147_v4  ;;  %v11690_v59 = vld [vmem:[%s14422_s19 + $0x19b8] sm:$0xff]  ;;  %v5358_v0 = vpack.c.bf16 %v11005_v57, %v10993_v56  ;;  %v14176_v4 = vld [vmem:[%s14374_s15 + $0x15ec] ss:$8 sps:$4 sm:$0xff]   ;;  %v14198_v53 = vld [vmem:[%s14374_s15 + $0x1628] ss:$8 sps:$4 sm:$0xff]  }
 0x351   : > { %9535 = vmatpush1.bf16.msra.mxu1 %v14150_v5  ;;  %7197 = vmatprep.subr.bf16.mxu0 %v14155_v6  ;;  %v7806_v1 = vpack.c.bf16 %v11690_v59, %v11678_v58  ;;  %v11004_v5 = vld [vmem:[%s14422_s19 + $0x11d0] sm:$0xff]  ;;  %v11750_v51 = vld [vmem:[%s14422_s19 + $0x1b98] sm:$0xff] }
 0x352   : > { %9645 = vmatprep.subr.bf16.mxu1 %v14158_v7  ;;  %7028 = vmatmul.mubr.bf16.gmra.mrb[76].mxu0 %v5427_v8  ;;  %v11677_v6 = vld [vmem:[%s14422_s19 + $0x1950] sm:$0xff]  ;;  %v14171_v8 = vld [vmem:[%s14374_s15 + $0x1000] ss:$8 sps:$4 sm:$0xff]   ;;  %v5357_v16 = vpack.c.bf16 %v11004_v5, %v10992_v2  ;;  %v11762_v52 = vld [vmem:[%s14422_s19 + $0x1bf8] sm:$0xff] }
 0x353   : > { %9476 = vmatmul.mubr.bf16.gmra.mrb[76].mxu1 %v7875_v9  ;;  %7037 = vmatprep.mubr.bf16.mxu0 %v5440_v10  ;;  %v11689_v7 = vld [vmem:[%s14422_s19 + $0x19b0] sm:$0xff]  ;;  %v7842_v59 = vpack.c.bf16 %v11762_v52, %v11750_v51  ;;  %v11101_v5 = vld [vmem:[%s14422_s19 + $0x14d8] sm:$0xff] }
 0x354   : > { %9485 = vmatprep.mubr.bf16.mxu1 %v7888_v11  ;;  %v14174_v9 = vld [vmem:[%s14374_s15 + $0x15e8] ss:$8 sps:$4 sm:$0xff]   ;;  %v14179_v10 = vld [vmem:[%s14374_s15 + $0x1014] ss:$8 sps:$4 sm:$0xff]   ;;  %v7805_v17 = vpack.c.bf16 %v11689_v7, %v11677_v6 }
 0x355   : > { %v14182_v11 = vld [vmem:[%s14374_s15 + $0x15fc] ss:$8 sps:$4 sm:$0xff]   ;;  %v11749_v2 = vld [vmem:[%s14422_s19 + $0x1b90] sm:$0xff] }
 0x356   : > { %v11774_v6 = vld [vmem:[%s14422_s19 + $0x1c58] sm:$0xff]  ;;  %v11773_v22 = vld [vmem:[%s14422_s19 + $0x1c50] sm:$0xff] }
 0x357   : > { %v11786_v7 = vld [vmem:[%s14422_s19 + $0x1cb8] sm:$0xff]  ;;  %v11785_v23 = vld [vmem:[%s14422_s19 + $0x1cb0] sm:$0xff] }
 0x358   : > { %v7853_v33 = vpack.c.bf16 %v11785_v23, %v11773_v22  ;;  %v14242_v51 = vld [vmem:[%s14374_s15 + $0x169c] ss:$8 sps:$4 sm:$0xff]   ;;  %v11184_v22 = vld [vmem:[%s14422_s19 + $0x1770] sm:$0xff] }
 0x359   : > { %v11869_v23 = vld [vmem:[%s14422_s19 + $0x1f50] sm:$0xff] }
 0x35a   : > { %7038 = vmatmul.mubr.bf16.gmra.mrb[80].mxu0 %v5439_v18  ;;  %v14177_v18 = vld [vmem:[%s14374_s15 + $0x1010] ss:$8 sps:$4 sm:$0xff]  }
 0x35b   : > { %9486 = vmatmul.mubr.bf16.gmra.mrb[80].mxu1 %v7887_v19  ;;  %7047 = vmatprep.mubr.bf16.mxu0 %v5452_v20  ;;  %v5370_v19 = vpack.c.bf16 %v11029_v13, %v11017_v12  ;;  %v14180_v20 = vld [vmem:[%s14374_s15 + $0x15f8] ss:$8 sps:$4 sm:$0xff]  }
 0x35c   : > { %9495 = vmatprep.mubr.bf16.mxu1 %v7900_v21  ;;  %v7818_v21 = vpack.c.bf16 %v11714_v15, %v11702_v14  ;;  %v7854_v15 = vpack.c.bf16 %v11786_v7, %v11774_v6  ;;  %v14251_v6 = vld [vmem:[%s14374_s15 + $0x10d4] ss:$8 sps:$4 sm:$0xff]  }
 0x35d   : > { %v14254_v7 = vld [vmem:[%s14374_s15 + $0x16bc] ss:$8 sps:$4 sm:$0xff]  }
 0x362   : > { %7048 = vmatmul.mubr.bf16.gmra.mrb[84].mxu0 %v5451_v28  ;;  %v14183_v28 = vld [vmem:[%s14374_s15 + $0x1020] ss:$8 sps:$4 sm:$0xff]  }
 0x363   : > { %9496 = vmatmul.mubr.bf16.gmra.mrb[84].mxu1 %v7899_v29  ;;  %7088 = vmatprep.mubr.bf16.mxu0 %v5334_v30  ;;  %v14186_v29 = vld [vmem:[%s14374_s15 + $0x1608] ss:$8 sps:$4 sm:$0xff]   ;;  %v11041_v30 = vld [vmem:[%s14422_s19 + $0x12f8] sm:$0xff] }
 0x364   : > { %9536 = vmatprep.mubr.bf16.mxu1 %v7782_v31  ;;  %v11053_v31 = vld [vmem:[%s14422_s19 + $0x1358] sm:$0xff] }
 0x36a   : > { %7089 = vmatmul.mubr.bf16.vlgmr.msra.gmra.mrb[44].mxu0 %v5333_v37  ;;  %v7817_v37 = vpack.c.bf16 %v11713_v27, %v11701_v26  ;;  %v11798_v26 = vld [vmem:[%s14422_s19 + $0x1d18] sm:$0xff] }
 0x36b   : > { %9537 = vmatmul.mubr.bf16.vlgmr.msra.gmra.mrb[44].mxu1 %v7781_v38  ;;  %7198 = vmatpush1.bf16.msra.mxu0 %v14153_v42  ;;  %v5382_v38 = vpack.c.bf16 %v11053_v31, %v11041_v30  ;;  %v11040_v42 = vld [vmem:[%s14422_s19 + $0x12f0] sm:$0xff]  ;;  %v11810_v27 = vld [vmem:[%s14422_s19 + $0x1d78] sm:$0xff] }
 0x36c   : > { %9646 = vmatpush1.bf16.msra.mxu1 %v14156_v43  ;;  %7199 = vmatprep.subr.bf16.mxu0 %v14161_v44  ;;  %v14197_v43 = vld [vmem:[%s14374_s15 + $0x1044] ss:$8 sps:$4 sm:$0xff]   ;;  %v14227_v30 = vld [vmem:[%s14374_s15 + $0x1094] ss:$8 sps:$4 sm:$0xff]  }
 0x36d   : > { %9647 = vmatprep.subr.bf16.mxu1 %v14164_v45  ;;  %7098 = vmatprep.mubr.bf16.mxu0 %v5346_v46  ;;  %v14200_v44 = vld [vmem:[%s14374_s15 + $0x162c] ss:$8 sps:$4 sm:$0xff]   ;;  %v14230_v31 = vld [vmem:[%s14374_s15 + $0x167c] ss:$8 sps:$4 sm:$0xff]  }
 0x36e   : > { %9546 = vmatprep.mubr.bf16.mxu1 %v7794_v47  ;;  %v11052_v45 = vld [vmem:[%s14422_s19 + $0x1350] sm:$0xff] }
 0x36f   : > { %7200 = vmatpush1.bf16.msra.mxu0 %v14159_v48  ;;  %v11725_v46 = vld [vmem:[%s14422_s19 + $0x1ad0] sm:$0xff]  ;;  %v11065_v48 = vld [vmem:[%s14422_s19 + $0x13b8] sm:$0xff]  ;;  %v5381_v56 = vpack.c.bf16 %v11052_v45, %v11040_v42 }
 0x370   : > { %9648 = vmatpush1.bf16.msra.mxu1 %v14162_v49  ;;  %7201 = vmatprep.subr.bf16.mxu0 %v14167_v54  ;;  %v11737_v47 = vld [vmem:[%s14422_s19 + $0x1b30] sm:$0xff]  ;;  %v11077_v49 = vld [vmem:[%s14422_s19 + $0x1418] sm:$0xff] }
 0x371   : > { %9649 = vmatprep.subr.bf16.mxu1 %v14170_v55  ;;  %v14203_v54 = vld [vmem:[%s14374_s15 + $0x1054] ss:$8 sps:$4 sm:$0xff]   ;;  %v7829_v57 = vpack.c.bf16 %v11737_v47, %v11725_v46  ;;  %v5394_v58 = vpack.c.bf16 %v11077_v49, %v11065_v48  ;;  %v14231_v48 = vld [vmem:[%s14374_s15 + $0x10a0] ss:$8 sps:$4 sm:$0xff]  }
 0x372   : > { %7099 = vmatmul.mubr.bf16.gmra.mrb[48].mxu0 %v5345_v60  ;;  %v14206_v55 = vld [vmem:[%s14374_s15 + $0x163c] ss:$8 sps:$4 sm:$0xff]   ;;  %v14201_v60 = vld [vmem:[%s14374_s15 + $0x1050] ss:$8 sps:$4 sm:$0xff]  }
 0x373   : > { %9547 = vmatmul.mubr.bf16.gmra.mrb[48].mxu1 %v7793_v61  ;;  %7202 = vmatpush1.bf16.msra.mxu0 %v14165_v62  ;;  %v14204_v61 = vld [vmem:[%s14374_s15 + $0x1638] ss:$8 sps:$4 sm:$0xff]   ;;  %v11064_v62 = vld [vmem:[%s14422_s19 + $0x13b0] sm:$0xff] }
 0x374   : > { %9650 = vmatpush1.bf16.msra.mxu1 %v14168_v63  ;;  %7108 = vmatprep.mubr.bf16.mxu0 %v5358_v0  ;;  %v14209_v63 = vld [vmem:[%s14374_s15 + $0x1064] ss:$8 sps:$4 sm:$0xff]   ;;  %v11797_v42 = vld [vmem:[%s14422_s19 + $0x1d10] sm:$0xff]  ;;  %v11149_v45 = vld [vmem:[%s14422_s19 + $0x1658] sm:$0xff] }
 0x375   : > { %9556 = vmatprep.mubr.bf16.mxu1 %v7806_v1  ;;  %7203 = vmatprep.subr.bf16.mxu0 %v14173_v3  ;;  %v14212_v0 = vld [vmem:[%s14374_s15 + $0x164c] ss:$8 sps:$4 sm:$0xff]   ;;  %v11822_v46 = vld [vmem:[%s14422_s19 + $0x1dd8] sm:$0xff]  ;;  %v14234_v49 = vld [vmem:[%s14374_s15 + $0x1688] ss:$8 sps:$4 sm:$0xff]  }
 0x376   : > { %9651 = vmatprep.subr.bf16.mxu1 %v14176_v4  ;;  %v11076_v1 = vld [vmem:[%s14422_s19 + $0x1410] sm:$0xff]  ;;  %v11089_v4 = vld [vmem:[%s14422_s19 + $0x1478] sm:$0xff] }
 0x377   : > { %7204 = vmatpush1.bf16.msra.mxu0 %v14171_v8  ;;  %v11761_v3 = vld [vmem:[%s14422_s19 + $0x1bf0] sm:$0xff]  ;;  %v14207_v8 = vld [vmem:[%s14374_s15 + $0x1060] ss:$8 sps:$4 sm:$0xff]   ;;  %v5393_v12 = vpack.c.bf16 %v11076_v1, %v11064_v62  ;;  %v5406_v14 = vpack.c.bf16 %v11101_v5, %v11089_v4  ;;  %v11834_v47 = vld [vmem:[%s14422_s19 + $0x1e38] sm:$0xff] }
 0x378   : > { %9652 = vmatpush1.bf16.msra.mxu1 %v14174_v9  ;;  %7205 = vmatprep.subr.bf16.mxu0 %v14179_v10  ;;  %v14210_v9 = vld [vmem:[%s14374_s15 + $0x1648] ss:$8 sps:$4 sm:$0xff]   ;;  %v14215_v10 = vld [vmem:[%s14374_s15 + $0x1074] ss:$8 sps:$4 sm:$0xff]   ;;  %v7841_v13 = vpack.c.bf16 %v11761_v3, %v11749_v2 }
 0x379   : > { %9653 = vmatprep.subr.bf16.mxu1 %v14182_v11  ;;  %v14218_v11 = vld [vmem:[%s14374_s15 + $0x165c] ss:$8 sps:$4 sm:$0xff]   ;;  %v11821_v62 = vld [vmem:[%s14422_s19 + $0x1dd0] sm:$0xff]  ;;  %v14243_v4 = vld [vmem:[%s14374_s15 + $0x10c0] ss:$8 sps:$4 sm:$0xff]  }
 0x37a   : > { %7109 = vmatmul.mubr.bf16.gmra.mrb[52].mxu0 %v5357_v16  ;;  %v14213_v16 = vld [vmem:[%s14374_s15 + $0x1070] ss:$8 sps:$4 sm:$0xff]  }
 0x37b   : > { %9557 = vmatmul.mubr.bf16.gmra.mrb[52].mxu1 %v7805_v17  ;;  %7118 = vmatprep.mubr.bf16.mxu0 %v5370_v19  ;;  %v14216_v17 = vld [vmem:[%s14374_s15 + $0x1658] ss:$8 sps:$4 sm:$0xff]   ;;  %v14221_v19 = vld [vmem:[%s14374_s15 + $0x1084] ss:$8 sps:$4 sm:$0xff]   ;;  %v14246_v5 = vld [vmem:[%s14374_s15 + $0x16a8] ss:$8 sps:$4 sm:$0xff]  }
 0x37c   : > { %7206 = vmatpush1.bf16.msra.mxu0 %v14177_v18  ;;  %9566 = vmatprep.mubr.bf16.mxu1 %v7818_v21  ;;  %v11088_v18 = vld [vmem:[%s14422_s19 + $0x1470] sm:$0xff]  ;;  %v11173_v1 = vld [vmem:[%s14422_s19 + $0x1718] sm:$0xff] }
 0x37d   : > { %9654 = vmatpush1.bf16.msra.mxu1 %v14180_v20  ;;  %7207 = vmatprep.subr.bf16.mxu0 %v14185_v24  ;;  %v14224_v20 = vld [vmem:[%s14374_s15 + $0x166c] ss:$8 sps:$4 sm:$0xff]   ;;  %v11113_v24 = vld [vmem:[%s14422_s19 + $0x1538] sm:$0xff] }
 0x37e   : > { %9655 = vmatprep.subr.bf16.mxu1 %v14188_v25  ;;  %v11100_v21 = vld [vmem:[%s14422_s19 + $0x14d0] sm:$0xff]  ;;  %v11125_v25 = vld [vmem:[%s14422_s19 + $0x1598] sm:$0xff] }
 0x37f   : > { %v5405_v32 = vpack.c.bf16 %v11100_v21, %v11088_v18  ;;  %v11846_v2 = vld [vmem:[%s14422_s19 + $0x1e98] sm:$0xff] }
 0x380   : > { %7208 = vmatpush1.bf16.msra.mxu0 %v14183_v28  ;;  %v14219_v28 = vld [vmem:[%s14374_s15 + $0x1080] ss:$8 sps:$4 sm:$0xff]   ;;  %v11858_v3 = vld [vmem:[%s14422_s19 + $0x1ef8] sm:$0xff] }
 0x381   : > { %9656 = vmatpush1.bf16.msra.mxu1 %v14186_v29  ;;  %7209 = vmatprep.subr.bf16.mxu0 %v14191_v34  ;;  %v14222_v29 = vld [vmem:[%s14374_s15 + $0x1668] ss:$8 sps:$4 sm:$0xff]   ;;  %v5418_v34 = vpack.c.bf16 %v11125_v25, %v11113_v24 }
 0x382   : > { %9657 = vmatprep.subr.bf16.mxu1 %v14194_v35  ;;  %7119 = vmatmul.mubr.bf16.gmra.mrb[56].mxu0 %v5369_v36  ;;  %v7866_v35 = vpack.c.bf16 %v11810_v27, %v11798_v26  ;;  %v14225_v36 = vld [vmem:[%s14374_s15 + $0x1090] ss:$8 sps:$4 sm:$0xff]   ;;  %v10947_v24 = vld [vmem:[%s14422_s19 + $0x1008] sm:$0xff] }
 0x383   : > { %9567 = vmatmul.mubr.bf16.gmra.mrb[56].mxu1 %v7817_v37  ;;  %7128 = vmatprep.mubr.bf16.mxu0 %v5382_v38  ;;  %v14228_v37 = vld [vmem:[%s14374_s15 + $0x1678] ss:$8 sps:$4 sm:$0xff]   ;;  %v11112_v38 = vld [vmem:[%s14422_s19 + $0x1530] sm:$0xff]  ;;  %v10959_v25 = vld [vmem:[%s14422_s19 + $0x1068] sm:$0xff] }
 0x384   : > { %9576 = vmatprep.mubr.bf16.mxu1 %v7830_v39  ;;  %7210 = vmatpush1.bf16.msra.mxu0 %v14189_v40  ;;  %v14233_v39 = vld [vmem:[%s14374_s15 + $0x10a4] ss:$8 sps:$4 sm:$0xff]  }
 0x385   : > { %9658 = vmatpush1.bf16.msra.mxu1 %v14192_v41  ;;  %7211 = vmatprep.subr.bf16.mxu0 %v14197_v43  ;;  %v14236_v40 = vld [vmem:[%s14374_s15 + $0x168c] ss:$8 sps:$4 sm:$0xff]  }
 0x386   : > { %9659 = vmatprep.subr.bf16.mxu1 %v14200_v44  ;;  %v11124_v41 = vld [vmem:[%s14422_s19 + $0x1590] sm:$0xff]  ;;  %v11137_v44 = vld [vmem:[%s14422_s19 + $0x15f8] sm:$0xff]  ;;  %v11632_v26 = vld [vmem:[%s14422_s19 + $0x17e8] sm:$0xff] }
 0x387   : > { %v11809_v43 = vld [vmem:[%s14422_s19 + $0x1d70] sm:$0xff]  ;;  %v5417_v52 = vpack.c.bf16 %v11124_v41, %v11112_v38  ;;  %v11644_v27 = vld [vmem:[%s14422_s19 + $0x1848] sm:$0xff] }
 0x388   : > { %7212 = vmatpush1.bf16.msra.mxu0 %v14195_v50  ;;  %v14239_v50 = vld [vmem:[%s14374_s15 + $0x10b4] ss:$8 sps:$4 sm:$0xff]   ;;  %v11668_v41 = vld [vmem:[%s14422_s19 + $0x1908] sm:$0xff] }
 0x389   : > { %9660 = vmatpush1.bf16.msra.mxu1 %v14198_v53  ;;  %7213 = vmatprep.subr.bf16.mxu0 %v14203_v54  ;;  %v7865_v53 = vpack.c.bf16 %v11809_v43, %v11797_v42  ;;  %v5430_v54 = vpack.c.bf16 %v11149_v45, %v11137_v44  ;;  %v14249_v42 = vld [vmem:[%s14374_s15 + $0x10d0] ss:$8 sps:$4 sm:$0xff]   ;;  %v14257_v44 = vld [vmem:[%s14374_s15 + $0x10e4] ss:$8 sps:$4 sm:$0xff]  }
 0x38a   : > { %9661 = vmatprep.subr.bf16.mxu1 %v14206_v55  ;;  %7129 = vmatmul.mubr.bf16.gmra.mrb[60].mxu0 %v5381_v56  ;;  %v7878_v55 = vpack.c.bf16 %v11834_v47, %v11822_v46  ;;  %v14237_v56 = vld [vmem:[%s14374_s15 + $0x10b0] ss:$8 sps:$4 sm:$0xff]   ;;  %v14260_v45 = vld [vmem:[%s14374_s15 + $0x16cc] ss:$8 sps:$4 sm:$0xff]  }
 0x38b   : > { %9577 = vmatmul.mubr.bf16.gmra.mrb[60].mxu1 %v7829_v57  ;;  %7138 = vmatprep.mubr.bf16.mxu0 %v5394_v58  ;;  %v14240_v57 = vld [vmem:[%s14374_s15 + $0x1698] ss:$8 sps:$4 sm:$0xff]   ;;  %v11136_v58 = vld [vmem:[%s14422_s19 + $0x15f0] sm:$0xff] }
 0x38c   : > { %9586 = vmatprep.mubr.bf16.mxu1 %v7842_v59  ;;  %7214 = vmatpush1.bf16.msra.mxu0 %v14201_v60  ;;  %v14245_v59 = vld [vmem:[%s14374_s15 + $0x10c4] ss:$8 sps:$4 sm:$0xff]   ;;  %v14252_v43 = vld [vmem:[%s14374_s15 + $0x16b8] ss:$8 sps:$4 sm:$0xff]  }
 0x38d   : > { %9662 = vmatpush1.bf16.msra.mxu1 %v14204_v61  ;;  %7215 = vmatprep.subr.bf16.mxu0 %v14209_v63  ;;  %v14248_v60 = vld [vmem:[%s14374_s15 + $0x16ac] ss:$8 sps:$4 sm:$0xff]  }
 0x38e   : > { %9663 = vmatprep.subr.bf16.mxu1 %v14212_v0  ;;  %v11148_v61 = vld [vmem:[%s14422_s19 + $0x1650] sm:$0xff]  ;;  %v11161_v0 = vld [vmem:[%s14422_s19 + $0x16b8] sm:$0xff] }
 0x38f   : > { %v11833_v63 = vld [vmem:[%s14422_s19 + $0x1e30] sm:$0xff] }
 0x390   : > { %7216 = vmatpush1.bf16.msra.mxu0 %v14207_v8  ;;  %v5429_v8 = vpack.c.bf16 %v11148_v61, %v11136_v58  ;;  %v11680_v58 = vld [vmem:[%s14422_s19 + $0x1968] sm:$0xff] }
 0x391   : > { %9664 = vmatpush1.bf16.msra.mxu1 %v14210_v9  ;;  %7217 = vmatprep.subr.bf16.mxu0 %v14215_v10  ;;  %v7877_v9 = vpack.c.bf16 %v11833_v63, %v11821_v62  ;;  %v5442_v10 = vpack.c.bf16 %v11173_v1, %v11161_v0  ;;  %v14261_v62 = vld [vmem:[%s14374_s15 + $0x10f0] ss:$8 sps:$4 sm:$0xff]  }
 0x392   : > { %9665 = vmatprep.subr.bf16.mxu1 %v14218_v11  ;;  %7139 = vmatmul.mubr.bf16.gmra.mrb[64].mxu0 %v5393_v12  ;;  %v7890_v11 = vpack.c.bf16 %v11858_v3, %v11846_v2  ;;  %v11160_v12 = vld [vmem:[%s14422_s19 + $0x16b0] sm:$0xff]  ;;  %v14264_v63 = vld [vmem:[%s14374_s15 + $0x16d8] ss:$8 sps:$4 sm:$0xff]  }
 0x393   : > { %9587 = vmatmul.mubr.bf16.gmra.mrb[64].mxu1 %v7841_v13  ;;  %7148 = vmatprep.mubr.bf16.mxu0 %v5406_v14  ;;  %v11172_v13 = vld [vmem:[%s14422_s19 + $0x1710] sm:$0xff]  ;;  %v10994_v2 = vld [vmem:[%s14422_s19 + $0x1180] sm:$0xff] }
 0x394   : > { %9596 = vmatprep.mubr.bf16.mxu1 %v7854_v15  ;;  %7218 = vmatpush1.bf16.msra.mxu0 %v14213_v16  ;;  %v11845_v14 = vld [vmem:[%s14422_s19 + $0x1e90] sm:$0xff]  ;;  %v11185_v16 = vld [vmem:[%s14422_s19 + $0x1778] sm:$0xff]  ;;  %v5441_v18 = vpack.c.bf16 %v11172_v13, %v11160_v12  ;;  %v11006_v3 = vld [vmem:[%s14422_s19 + $0x11e0] sm:$0xff] }
 0x395   : > { %9666 = vmatpush1.bf16.msra.mxu1 %v14216_v17  ;;  %7219 = vmatprep.subr.bf16.mxu0 %v14221_v19  ;;  %v11857_v15 = vld [vmem:[%s14422_s19 + $0x1ef0] sm:$0xff]  ;;  %v11870_v17 = vld [vmem:[%s14422_s19 + $0x1f58] sm:$0xff]  ;;  %v11704_v12 = vld [vmem:[%s14422_s19 + $0x1a28] sm:$0xff] }
 0x396   : > { %9667 = vmatprep.subr.bf16.mxu1 %v14224_v20  ;;  %v7889_v19 = vpack.c.bf16 %v11857_v15, %v11845_v14  ;;  %v5454_v20 = vpack.c.bf16 %v11185_v16, %v11185_v16  ;;  %v7902_v21 = vpack.c.bf16 %v11870_v17, %v11870_v17  ;;  %v11716_v13 = vld [vmem:[%s14422_s19 + $0x1a88] sm:$0xff]  ;;  %v14275_v14 = vld [vmem:[%s14374_s15 + $0x1114] ss:$8 sps:$4 sm:$0xff]   ;;  %v5359_v16 = vpack.c.bf16 %v11006_v3, %v10994_v2  ;;  %v11751_v2 = vld [vmem:[%s14422_s19 + $0x1ba0] sm:$0xff] }
 0x397   : > { %v14278_v15 = vld [vmem:[%s14374_s15 + $0x16fc] ss:$8 sps:$4 sm:$0xff]  }
 0x398   : > { %7220 = vmatpush1.bf16.msra.mxu0 %v14219_v28  ;;  %v5453_v28 = vpack.c.bf16 %v11184_v22, %v11184_v22  ;;  %v11018_v22 = vld [vmem:[%s14422_s19 + $0x1240] sm:$0xff] }
 0x399   : > { %9668 = vmatpush1.bf16.msra.mxu1 %v14222_v29  ;;  %7221 = vmatprep.subr.bf16.mxu0 %v14227_v30  ;;  %v7901_v29 = vpack.c.bf16 %v11869_v23, %v11869_v23  ;;  %v5336_v30 = vpack.c.bf16 %v10959_v25, %v10947_v24  ;;  %v14281_v23 = vld [vmem:[%s14374_s15 + $0x1124] ss:$8 sps:$4 sm:$0xff]  }
 0x39a   : > { %9669 = vmatprep.subr.bf16.mxu1 %v14230_v31  ;;  %7149 = vmatmul.mubr.bf16.gmra.mrb[68].mxu0 %v5405_v32  ;;  %v7784_v31 = vpack.c.bf16 %v11644_v27, %v11632_v26  ;;  %v10946_v32 = vld [vmem:[%s14422_s19 + $0x1000] sm:$0xff]  ;;  %v14284_v24 = vld [vmem:[%s14374_s15 + $0x170c] ss:$8 sps:$4 sm:$0xff]  }
 0x39b   : > { %9597 = vmatmul.mubr.bf16.gmra.mrb[68].mxu1 %v7853_v33  ;;  %7158 = vmatprep.mubr.bf16.mxu0 %v5418_v34  ;;  %v10958_v33 = vld [vmem:[%s14422_s19 + $0x1060] sm:$0xff] }
 0x39c   : > { %9606 = vmatprep.mubr.bf16.mxu1 %v7866_v35  ;;  %7222 = vmatpush1.bf16.msra.mxu0 %v14225_v36  ;;  %v11631_v34 = vld [vmem:[%s14422_s19 + $0x17e0] sm:$0xff]  ;;  %v10971_v36 = vld [vmem:[%s14422_s19 + $0x10c8] sm:$0xff] }
 0x39d   : > { %9670 = vmatpush1.bf16.msra.mxu1 %v14228_v37  ;;  %7223 = vmatprep.subr.bf16.mxu0 %v14233_v39  ;;  %v11643_v35 = vld [vmem:[%s14422_s19 + $0x1840] sm:$0xff]  ;;  %v5335_v37 = vpack.c.bf16 %v10958_v33, %v10946_v32  ;;  %v10983_v39 = vld [vmem:[%s14422_s19 + $0x1128] sm:$0xff] }
 0x39e   : > { %9671 = vmatprep.subr.bf16.mxu1 %v14236_v40  ;;  %v7783_v38 = vpack.c.bf16 %v11643_v35, %v11631_v34  ;;  %v11656_v40 = vld [vmem:[%s14422_s19 + $0x18a8] sm:$0xff]  ;;  %v5348_v46 = vpack.c.bf16 %v10983_v39, %v10971_v36  ;;  %v11030_v25 = vld [vmem:[%s14422_s19 + $0x12a0] sm:$0xff]  ;;  %v14287_v34 = vld [vmem:[%s14374_s15 + $0x1134] ss:$8 sps:$4 sm:$0xff]  }
 0x39f   : > { %v7796_v47 = vpack.c.bf16 %v11668_v41, %v11656_v40  ;;  %v11703_v26 = vld [vmem:[%s14422_s19 + $0x1a20] sm:$0xff]  ;;  %v11728_v32 = vld [vmem:[%s14422_s19 + $0x1ae8] sm:$0xff]  ;;  %v5371_v36 = vpack.c.bf16 %v11030_v25, %v11018_v22  ;;  %v14285_v40 = vld [vmem:[%s14374_s15 + $0x1130] ss:$8 sps:$4 sm:$0xff]  }
 0x3a0   : > { %7224 = vmatpush1.bf16.msra.mxu0 %v14231_v48  ;;  %v14255_v48 = vld [vmem:[%s14374_s15 + $0x10e0] ss:$8 sps:$4 sm:$0xff]   ;;  %v14290_v35 = vld [vmem:[%s14374_s15 + $0x171c] ss:$8 sps:$4 sm:$0xff]  }
 0x3a1   : > { %9672 = vmatpush1.bf16.msra.mxu1 %v14234_v49  ;;  %7225 = vmatprep.subr.bf16.mxu0 %v14239_v50  ;;  %v14258_v49 = vld [vmem:[%s14374_s15 + $0x16c8] ss:$8 sps:$4 sm:$0xff]   ;;  %v10970_v50 = vld [vmem:[%s14422_s19 + $0x10c0] sm:$0xff] }
 0x3a2   : > { %9673 = vmatprep.subr.bf16.mxu1 %v14242_v51  ;;  %7159 = vmatmul.mubr.bf16.gmra.mrb[72].mxu0 %v5417_v52  ;;  %v10982_v51 = vld [vmem:[%s14422_s19 + $0x1120] sm:$0xff]  ;;  %v11740_v33 = vld [vmem:[%s14422_s19 + $0x1b48] sm:$0xff] }
 0x3a3   : > { %9607 = vmatmul.mubr.bf16.gmra.mrb[72].mxu1 %v7865_v53  ;;  %7168 = vmatprep.mubr.bf16.mxu0 %v5430_v54  ;;  %v11655_v52 = vld [vmem:[%s14422_s19 + $0x18a0] sm:$0xff]  ;;  %v14263_v54 = vld [vmem:[%s14374_s15 + $0x10f4] ss:$8 sps:$4 sm:$0xff]   ;;  %v7832_v39 = vpack.c.bf16 %v11740_v33, %v11728_v32  ;;  %v11127_v25 = vld [vmem:[%s14422_s19 + $0x15a8] sm:$0xff] }
 0x3a4   : > { %9616 = vmatprep.mubr.bf16.mxu1 %v7878_v55  ;;  %7226 = vmatpush1.bf16.msra.mxu0 %v14237_v56  ;;  %v11667_v53 = vld [vmem:[%s14422_s19 + $0x1900] sm:$0xff]  ;;  %v10995_v56 = vld [vmem:[%s14422_s19 + $0x1188] sm:$0xff] }
 0x3a5   : > { %9674 = vmatpush1.bf16.msra.mxu1 %v14240_v57  ;;  %7227 = vmatprep.subr.bf16.mxu0 %v14245_v59  ;;  %v14266_v55 = vld [vmem:[%s14374_s15 + $0x16dc] ss:$8 sps:$4 sm:$0xff]   ;;  %v11007_v57 = vld [vmem:[%s14422_s19 + $0x11e8] sm:$0xff]  ;;  %v7795_v61 = vpack.c.bf16 %v11667_v53, %v11655_v52  ;;  %v14288_v41 = vld [vmem:[%s14374_s15 + $0x1718] ss:$8 sps:$4 sm:$0xff]  }
 0x3a6   : > { %9675 = vmatprep.subr.bf16.mxu1 %v14248_v60  ;;  %v11692_v59 = vld [vmem:[%s14422_s19 + $0x19c8] sm:$0xff]  ;;  %v5347_v60 = vpack.c.bf16 %v10982_v51, %v10970_v50  ;;  %v5360_v0 = vpack.c.bf16 %v11007_v57, %v10995_v56  ;;  %v11715_v27 = vld [vmem:[%s14422_s19 + $0x1a80] sm:$0xff] }
 0x3a7   : > { %v7808_v1 = vpack.c.bf16 %v11692_v59, %v11680_v58  ;;  %v11752_v50 = vld [vmem:[%s14422_s19 + $0x1ba8] sm:$0xff]  ;;  %v11763_v3 = vld [vmem:[%s14422_s19 + $0x1c00] sm:$0xff] }
 0x3a8   : > { %7228 = vmatpush1.bf16.msra.mxu0 %v14243_v4  ;;  %v11679_v4 = vld [vmem:[%s14422_s19 + $0x1960] sm:$0xff]  ;;  %v11764_v51 = vld [vmem:[%s14422_s19 + $0x1c08] sm:$0xff] }
 0x3a9   : > { %9676 = vmatpush1.bf16.msra.mxu1 %v14246_v5  ;;  %7338 = vmatprep.subr.bf16.mxu0 %v14251_v6  ;;  %v14269_v5 = vld [vmem:[%s14374_s15 + $0x1104] ss:$8 sps:$4 sm:$0xff]   ;;  %v14291_v52 = vld [vmem:[%s14374_s15 + $0x1140] ss:$8 sps:$4 sm:$0xff]   ;;  %v7844_v59 = vpack.c.bf16 %v11764_v51, %v11752_v50 }
 0x3aa   : > { %9786 = vmatprep.subr.bf16.mxu1 %v14254_v7  ;;  %7169 = vmatmul.mubr.bf16.gmra.mrb[76].mxu0 %v5429_v8  ;;  %v14272_v6 = vld [vmem:[%s14374_s15 + $0x16ec] ss:$8 sps:$4 sm:$0xff]   ;;  %v11691_v7 = vld [vmem:[%s14422_s19 + $0x19c0] sm:$0xff]  ;;  %v14294_v53 = vld [vmem:[%s14374_s15 + $0x1728] ss:$8 sps:$4 sm:$0xff]  }
 0x3ab   : > { %9617 = vmatmul.mubr.bf16.gmra.mrb[76].mxu1 %v7877_v9  ;;  %7178 = vmatprep.mubr.bf16.mxu0 %v5442_v10  ;;  %v14267_v8 = vld [vmem:[%s14374_s15 + $0x1100] ss:$8 sps:$4 sm:$0xff]   ;;  %v7807_v17 = vpack.c.bf16 %v11691_v7, %v11679_v4 }
 0x3ac   : > { %9626 = vmatprep.mubr.bf16.mxu1 %v7890_v11  ;;  %v14270_v9 = vld [vmem:[%s14374_s15 + $0x16e8] ss:$8 sps:$4 sm:$0xff]   ;;  %v11775_v22 = vld [vmem:[%s14422_s19 + $0x1c60] sm:$0xff] }
 0x3ad   : > { %v11019_v10 = vld [vmem:[%s14422_s19 + $0x1248] sm:$0xff] }
 0x3ae   : > { %v11031_v11 = vld [vmem:[%s14422_s19 + $0x12a8] sm:$0xff] }
 0x3af   : > { %v11091_v4 = vld [vmem:[%s14422_s19 + $0x1488] sm:$0xff] }
 0x3b0   : > { %v11788_v7 = vld [vmem:[%s14422_s19 + $0x1cc8] sm:$0xff] }
 0x3b1   : > { %v14327_v50 = vld [vmem:[%s14374_s15 + $0x11a0] ss:$8 sps:$4 sm:$0xff]  }
 0x3b2   : > { %7179 = vmatmul.mubr.bf16.gmra.mrb[80].mxu0 %v5441_v18  ;;  %v5372_v18 = vpack.c.bf16 %v11031_v11, %v11019_v10  ;;  %v14311_v10 = vld [vmem:[%s14374_s15 + $0x1174] ss:$8 sps:$4 sm:$0xff]   ;;  %v14330_v51 = vld [vmem:[%s14374_s15 + $0x1788] ss:$8 sps:$4 sm:$0xff]  }
 0x3b3   : > { %9627 = vmatmul.mubr.bf16.gmra.mrb[80].mxu1 %v7889_v19  ;;  %7188 = vmatprep.mubr.bf16.mxu0 %v5454_v20  ;;  %v7820_v19 = vpack.c.bf16 %v11716_v13, %v11704_v12  ;;  %v14273_v20 = vld [vmem:[%s14374_s15 + $0x1110] ss:$8 sps:$4 sm:$0xff]   ;;  %v14314_v11 = vld [vmem:[%s14374_s15 + $0x175c] ss:$8 sps:$4 sm:$0xff]   ;;  %v7843_v13 = vpack.c.bf16 %v11763_v3, %v11751_v2  ;;  %v11163_v2 = vld [vmem:[%s14422_s19 + $0x16c8] sm:$0xff] }
 0x3b4   : > { %9636 = vmatprep.mubr.bf16.mxu1 %v7902_v21  ;;  %v14276_v21 = vld [vmem:[%s14374_s15 + $0x16f8] ss:$8 sps:$4 sm:$0xff]   ;;  %v11175_v3 = vld [vmem:[%s14422_s19 + $0x1728] sm:$0xff] }
 0x3ba   : > { %7189 = vmatmul.mubr.bf16.gmra.mrb[84].mxu0 %v5453_v28  ;;  %v14279_v28 = vld [vmem:[%s14374_s15 + $0x1120] ss:$8 sps:$4 sm:$0xff]  }
 0x3bb   : > { %9637 = vmatmul.mubr.bf16.gmra.mrb[84].mxu1 %v7901_v29  ;;  %7229 = vmatprep.mubr.bf16.mxu0 %v5336_v30  ;;  %v14282_v29 = vld [vmem:[%s14374_s15 + $0x1708] ss:$8 sps:$4 sm:$0xff]  }
 0x3bc   : > { %9677 = vmatprep.mubr.bf16.mxu1 %v7784_v31  ;;  %v11043_v30 = vld [vmem:[%s14422_s19 + $0x1308] sm:$0xff] }
 0x3bd   : > { %v11055_v31 = vld [vmem:[%s14422_s19 + $0x1368] sm:$0xff] }
 0x3c2   : > { %7230 = vmatmul.mubr.bf16.vlgmr.msra.gmra.mrb[44].mxu0 %v5335_v37  ;;  %v7819_v37 = vpack.c.bf16 %v11715_v27, %v11703_v26  ;;  %v11800_v26 = vld [vmem:[%s14422_s19 + $0x1d28] sm:$0xff] }
 0x3c3   : > { %9678 = vmatmul.mubr.bf16.vlgmr.msra.gmra.mrb[44].mxu1 %v7783_v38  ;;  %7339 = vmatpush1.bf16.msra.mxu0 %v14249_v42  ;;  %v5384_v38 = vpack.c.bf16 %v11055_v31, %v11043_v30  ;;  %v11042_v42 = vld [vmem:[%s14422_s19 + $0x1300] sm:$0xff]  ;;  %v11812_v27 = vld [vmem:[%s14422_s19 + $0x1d88] sm:$0xff]  ;;  %v14323_v30 = vld [vmem:[%s14374_s15 + $0x1194] ss:$8 sps:$4 sm:$0xff]  }
 0x3c4   : > { %9787 = vmatpush1.bf16.msra.mxu1 %v14252_v43  ;;  %7340 = vmatprep.subr.bf16.mxu0 %v14257_v44  ;;  %v14293_v43 = vld [vmem:[%s14374_s15 + $0x1144] ss:$8 sps:$4 sm:$0xff]  }
 0x3c5   : > { %9788 = vmatprep.subr.bf16.mxu1 %v14260_v45  ;;  %7239 = vmatprep.mubr.bf16.mxu0 %v5348_v46  ;;  %v14296_v44 = vld [vmem:[%s14374_s15 + $0x172c] ss:$8 sps:$4 sm:$0xff]   ;;  %v11054_v45 = vld [vmem:[%s14422_s19 + $0x1360] sm:$0xff] }
 0x3c6   : > { %9687 = vmatprep.mubr.bf16.mxu1 %v7796_v47  ;;  %v11727_v46 = vld [vmem:[%s14422_s19 + $0x1ae0] sm:$0xff]  ;;  %v5383_v56 = vpack.c.bf16 %v11054_v45, %v11042_v42  ;;  %v11378_v42 = vld [vmem:[%s14374_s15 + $0x11b0] sm:$0xff]  ;;  %v12063_v45 = vld [vmem:[%s14374_s15 + $0x1798] sm:$0xff] }
 0x3c7   : > { %7341 = vmatpush1.bf16.msra.mxu0 %v14255_v48  ;;  %v11739_v47 = vld [vmem:[%s14422_s19 + $0x1b40] sm:$0xff]  ;;  %v11067_v48 = vld [vmem:[%s14422_s19 + $0x13c8] sm:$0xff] }
 0x3c8   : > { %9789 = vmatpush1.bf16.msra.mxu1 %v14258_v49  ;;  %7342 = vmatprep.subr.bf16.mxu0 %v14263_v54  ;;  %v11079_v49 = vld [vmem:[%s14422_s19 + $0x1428] sm:$0xff]  ;;  %v14299_v54 = vld [vmem:[%s14374_s15 + $0x1154] ss:$8 sps:$4 sm:$0xff]   ;;  %v7831_v57 = vpack.c.bf16 %v11739_v47, %v11727_v46 }
 0x3c9   : > { %9790 = vmatprep.subr.bf16.mxu1 %v14266_v55  ;;  %v14302_v55 = vld [vmem:[%s14374_s15 + $0x173c] ss:$8 sps:$4 sm:$0xff]   ;;  %v5396_v58 = vpack.c.bf16 %v11079_v49, %v11067_v48  ;;  %v11139_v46 = vld [vmem:[%s14422_s19 + $0x1608] sm:$0xff] }
 0x3ca   : > { %7240 = vmatmul.mubr.bf16.gmra.mrb[48].mxu0 %v5347_v60  ;;  %v14297_v60 = vld [vmem:[%s14374_s15 + $0x1150] ss:$8 sps:$4 sm:$0xff]   ;;  %v14326_v31 = vld [vmem:[%s14374_s15 + $0x177c] ss:$8 sps:$4 sm:$0xff]   ;;  %v11151_v47 = vld [vmem:[%s14422_s19 + $0x1668] sm:$0xff] }
 0x3cb   : > { %9688 = vmatmul.mubr.bf16.gmra.mrb[48].mxu1 %v7795_v61  ;;  %7343 = vmatpush1.bf16.msra.mxu0 %v14261_v62  ;;  %v14300_v61 = vld [vmem:[%s14374_s15 + $0x1738] ss:$8 sps:$4 sm:$0xff]   ;;  %v11824_v48 = vld [vmem:[%s14422_s19 + $0x1de8] sm:$0xff] }
 0x3cc   : > { %9791 = vmatpush1.bf16.msra.mxu1 %v14264_v63  ;;  %7249 = vmatprep.mubr.bf16.mxu0 %v5360_v0  ;;  %v11066_v62 = vld [vmem:[%s14422_s19 + $0x13c0] sm:$0xff]  ;;  %v14308_v0 = vld [vmem:[%s14374_s15 + $0x174c] ss:$8 sps:$4 sm:$0xff]  }
 0x3cd   : > { %9697 = vmatprep.mubr.bf16.mxu1 %v7808_v1  ;;  %7344 = vmatprep.subr.bf16.mxu0 %v14269_v5  ;;  %v14305_v63 = vld [vmem:[%s14374_s15 + $0x1164] ss:$8 sps:$4 sm:$0xff]  }
 0x3ce   : > { %9792 = vmatprep.subr.bf16.mxu1 %v14272_v6  ;;  %v11078_v1 = vld [vmem:[%s14422_s19 + $0x1420] sm:$0xff]  ;;  %v11103_v5 = vld [vmem:[%s14422_s19 + $0x14e8] sm:$0xff] }
 0x3cf   : > { %7345 = vmatpush1.bf16.msra.mxu0 %v14267_v8  ;;  %v11776_v6 = vld [vmem:[%s14422_s19 + $0x1c68] sm:$0xff]  ;;  %v5395_v12 = vpack.c.bf16 %v11078_v1, %v11066_v62  ;;  %v11138_v62 = vld [vmem:[%s14422_s19 + $0x1600] sm:$0xff] }
 0x3d0   : > { %9793 = vmatpush1.bf16.msra.mxu1 %v14270_v9  ;;  %7346 = vmatprep.subr.bf16.mxu0 %v14275_v14  ;;  %v14303_v8 = vld [vmem:[%s14374_s15 + $0x1160] ss:$8 sps:$4 sm:$0xff]   ;;  %v5408_v14 = vpack.c.bf16 %v11103_v5, %v11091_v4 }
 0x3d1   : > { %9794 = vmatprep.subr.bf16.mxu1 %v14278_v15  ;;  %v14306_v9 = vld [vmem:[%s14374_s15 + $0x1748] ss:$8 sps:$4 sm:$0xff]   ;;  %v7856_v15 = vpack.c.bf16 %v11788_v7, %v11776_v6  ;;  %v11835_v1 = vld [vmem:[%s14422_s19 + $0x1e40] sm:$0xff] }
 0x3d2   : > { %7250 = vmatmul.mubr.bf16.gmra.mrb[52].mxu0 %v5359_v16  ;;  %v14309_v16 = vld [vmem:[%s14374_s15 + $0x1170] ss:$8 sps:$4 sm:$0xff]   ;;  %v11836_v49 = vld [vmem:[%s14422_s19 + $0x1e48] sm:$0xff] }
 0x3d3   : > { %9698 = vmatmul.mubr.bf16.gmra.mrb[52].mxu1 %v7807_v17  ;;  %7259 = vmatprep.mubr.bf16.mxu0 %v5372_v18  ;;  %v14312_v17 = vld [vmem:[%s14374_s15 + $0x1758] ss:$8 sps:$4 sm:$0xff]   ;;  %v11848_v4 = vld [vmem:[%s14422_s19 + $0x1ea8] sm:$0xff] }
 0x3d4   : > { %9707 = vmatprep.mubr.bf16.mxu1 %v7820_v19  ;;  %7347 = vmatpush1.bf16.msra.mxu0 %v14273_v20  ;;  %v11090_v18 = vld [vmem:[%s14422_s19 + $0x1480] sm:$0xff]  ;;  %v14320_v20 = vld [vmem:[%s14374_s15 + $0x176c] ss:$8 sps:$4 sm:$0xff]  }
 0x3d5   : > { %9795 = vmatpush1.bf16.msra.mxu1 %v14276_v21  ;;  %7348 = vmatprep.subr.bf16.mxu0 %v14281_v23  ;;  %v14317_v19 = vld [vmem:[%s14374_s15 + $0x1184] ss:$8 sps:$4 sm:$0xff]  }
 0x3d6   : > { %9796 = vmatprep.subr.bf16.mxu1 %v14284_v24  ;;  %v11102_v21 = vld [vmem:[%s14422_s19 + $0x14e0] sm:$0xff]  ;;  %v11115_v24 = vld [vmem:[%s14422_s19 + $0x1548] sm:$0xff] }
 0x3d7   : > { %v11787_v23 = vld [vmem:[%s14422_s19 + $0x1cc0] sm:$0xff]  ;;  %v5407_v32 = vpack.c.bf16 %v11102_v21, %v11090_v18  ;;  %v11860_v5 = vld [vmem:[%s14422_s19 + $0x1f08] sm:$0xff] }
 0x3d8   : > { %7349 = vmatpush1.bf16.msra.mxu0 %v14279_v28  ;;  %v14315_v28 = vld [vmem:[%s14374_s15 + $0x1180] ss:$8 sps:$4 sm:$0xff]   ;;  %v7855_v33 = vpack.c.bf16 %v11787_v23, %v11775_v22  ;;  %v10949_v22 = vld [vmem:[%s14422_s19 + $0x1018] sm:$0xff] }
 0x3d9   : > { %9797 = vmatpush1.bf16.msra.mxu1 %v14282_v29  ;;  %7350 = vmatprep.subr.bf16.mxu0 %v14287_v34  ;;  %v14318_v29 = vld [vmem:[%s14374_s15 + $0x1768] ss:$8 sps:$4 sm:$0xff]   ;;  %v5420_v34 = vpack.c.bf16 %v11127_v25, %v11115_v24  ;;  %v11871_v21 = vld [vmem:[%s14422_s19 + $0x1f60] sm:$0xff]  ;;  %v10961_v23 = vld [vmem:[%s14422_s19 + $0x1078] sm:$0xff] }
 0x3da   : > { %9798 = vmatprep.subr.bf16.mxu1 %v14290_v35  ;;  %7260 = vmatmul.mubr.bf16.gmra.mrb[56].mxu0 %v5371_v36  ;;  %v7868_v35 = vpack.c.bf16 %v11812_v27, %v11800_v26  ;;  %v14321_v36 = vld [vmem:[%s14374_s15 + $0x1190] ss:$8 sps:$4 sm:$0xff]   ;;  %v7903_v27 = vpack.c.bf16 %v11871_v21, %v11871_v21 }
 0x3db   : > { %9708 = vmatmul.mubr.bf16.gmra.mrb[56].mxu1 %v7819_v37  ;;  %7269 = vmatprep.mubr.bf16.mxu0 %v5384_v38  ;;  %v14324_v37 = vld [vmem:[%s14374_s15 + $0x1778] ss:$8 sps:$4 sm:$0xff]  }
 0x3dc   : > { %9717 = vmatprep.mubr.bf16.mxu1 %v7832_v39  ;;  %7351 = vmatpush1.bf16.msra.mxu0 %v14285_v40  ;;  %v11114_v38 = vld [vmem:[%s14422_s19 + $0x1540] sm:$0xff]  ;;  %v11634_v24 = vld [vmem:[%s14422_s19 + $0x17f8] sm:$0xff] }
 0x3dd   : > { %9799 = vmatpush1.bf16.msra.mxu1 %v14288_v41  ;;  %7352 = vmatprep.subr.bf16.mxu0 %v14293_v43  ;;  %v11126_v39 = vld [vmem:[%s14422_s19 + $0x15a0] sm:$0xff]  ;;  %v14332_v41 = vld [vmem:[%s14374_s15 + $0x178c] ss:$8 sps:$4 sm:$0xff]   ;;  %v11646_v25 = vld [vmem:[%s14422_s19 + $0x1858] sm:$0xff] }
 0x3de   : > { %9800 = vmatprep.subr.bf16.mxu1 %v14296_v44  ;;  %v14329_v40 = vld [vmem:[%s14374_s15 + $0x11a4] ss:$8 sps:$4 sm:$0xff]   ;;  %v11766_v21 = vld [vmem:[%s14422_s19 + $0x1c18] sm:$0xff] }
 0x3df   : > { %v11799_v43 = vld [vmem:[%s14422_s19 + $0x1d20] sm:$0xff] }
 0x3e0   : > { %7353 = vmatpush1.bf16.msra.mxu0 %v14291_v52  ;;  %v11811_v44 = vld [vmem:[%s14422_s19 + $0x1d80] sm:$0xff]  ;;  %v11568_v52 = vcombine.high %v11378_v42, %v11378_v42 }
 0x3e1   : > { %9801 = vmatpush1.bf16.msra.mxu1 %v14294_v53  ;;  %7354 = vmatprep.subr.bf16.mxu0 %v14299_v54  ;;  %v12253_v53 = vcombine.high %v12063_v45, %v12063_v45  ;;  %v11567_v54 = vcombine.low %v11378_v42, %v11378_v42  ;;  %v10972_v42 = vld [vmem:[%s14422_s19 + $0x10d0] sm:$0xff] }
 0x3e2   : > { %9802 = vmatprep.subr.bf16.mxu1 %v14302_v55  ;;  %7270 = vmatmul.mubr.bf16.gmra.mrb[60].mxu0 %v5383_v56  ;;  %v12252_v55 = vcombine.low %v12063_v45, %v12063_v45  ;;  %v5419_v56 = vpack.c.bf16 %v11126_v39, %v11114_v38  ;;  %v11669_v45 = vld [vmem:[%s14422_s19 + $0x1910] sm:$0xff] }
 0x3e3   : > { %9718 = vmatmul.mubr.bf16.gmra.mrb[60].mxu1 %v7831_v57  ;;  %7279 = vmatprep.mubr.bf16.mxu0 %v5396_v58  ;;  %v7867_v57 = vpack.c.bf16 %v11811_v44, %v11799_v43  ;;  %v5432_v58 = vpack.c.bf16 %v11151_v47, %v11139_v46  ;;  %v10984_v43 = vld [vmem:[%s14422_s19 + $0x1130] sm:$0xff]  ;;  %v10997_v46 = vld [vmem:[%s14422_s19 + $0x1198] sm:$0xff] }
 0x3e4   : > { %9727 = vmatprep.mubr.bf16.mxu1 %v7844_v59  ;;  %7355 = vmatpush1.bf16.msra.mxu0 %v14297_v60  ;;  %v7880_v59 = vpack.c.bf16 %v11836_v49, %v11824_v48  ;;  %v6628_v60 = vsel %vm1730_vm0, %v11567_v54, 0  ;;  %v11657_v44 = vld [vmem:[%s14422_s19 + $0x18b0] sm:$0xff]  ;;  %v11009_v47 = vld [vmem:[%s14422_s19 + $0x11f8] sm:$0xff] }
 0x3e5   : > { %9803 = vmatpush1.bf16.msra.mxu1 %v14300_v61  ;;  %7356 = vmatprep.subr.bf16.mxu0 %v14305_v63  ;;  %v9076_v61 = vsel %vm1730_vm0, %v12252_v55, 0  ;;  %v11150_v63 = vld [vmem:[%s14422_s19 + $0x1660] sm:$0xff]  ;;  %v11682_v48 = vld [vmem:[%s14422_s19 + $0x1978] sm:$0xff]  ;;  %v10996_v54 = vld [vmem:[%s14422_s19 + $0x1190] sm:$0xff] }
 0x3e6   : > { %9804 = vmatprep.subr.bf16.mxu1 %v14308_v0  ;;  %v11823_v0 = vld [vmem:[%s14422_s19 + $0x1de0] sm:$0xff]  ;;  %v5431_v6 = vpack.c.bf16 %v11150_v63, %v11138_v62  ;;  %v11694_v49 = vld [vmem:[%s14422_s19 + $0x19d8] sm:$0xff]  ;;  %v11008_v55 = vld [vmem:[%s14422_s19 + $0x11f0] sm:$0xff] }
 0x3e7   : > { %v7879_v7 = vpack.c.bf16 %v11835_v1, %v11823_v0  ;;  %v5361_v62 = vpack.c.bf16 %v11008_v55, %v10996_v54  ;;  %v11141_v54 = vld [vmem:[%s14422_s19 + $0x1618] sm:$0xff] }
 0x3e8   : > { %7357 = vmatpush1.bf16.msra.mxu0 %v14303_v8  ;;  %v5444_v8 = vpack.c.bf16 %v11175_v3, %v11163_v2  ;;  %v11020_v2 = vld [vmem:[%s14422_s19 + $0x1250] sm:$0xff]  ;;  %v11153_v55 = vld [vmem:[%s14422_s19 + $0x1678] sm:$0xff] }
 0x3e9   : > { %9805 = vmatpush1.bf16.msra.mxu1 %v14306_v9  ;;  %7358 = vmatprep.subr.bf16.mxu0 %v14311_v10  ;;  %v7892_v9 = vpack.c.bf16 %v11860_v5, %v11848_v4  ;;  %v11162_v10 = vld [vmem:[%s14422_s19 + $0x16c0] sm:$0xff]  ;;  %v11032_v3 = vld [vmem:[%s14422_s19 + $0x12b0] sm:$0xff] }
 0x3ea   : > { %9806 = vmatprep.subr.bf16.mxu1 %v14314_v11  ;;  %7280 = vmatmul.mubr.bf16.gmra.mrb[64].mxu0 %v5395_v12  ;;  %v11174_v11 = vld [vmem:[%s14422_s19 + $0x1720] sm:$0xff]  ;;  %v11705_v4 = vld [vmem:[%s14422_s19 + $0x1a30] sm:$0xff] }
 0x3eb   : > { %9728 = vmatmul.mubr.bf16.gmra.mrb[64].mxu1 %v7843_v13  ;;  %7289 = vmatprep.mubr.bf16.mxu0 %v5408_v14  ;;  %v11847_v12 = vld [vmem:[%s14422_s19 + $0x1ea0] sm:$0xff]  ;;  %v11187_v14 = vld [vmem:[%s14422_s19 + $0x1788] sm:$0xff]  ;;  %v11717_v5 = vld [vmem:[%s14422_s19 + $0x1a90] sm:$0xff] }
 0x3ec   : > { %9737 = vmatprep.mubr.bf16.mxu1 %v7856_v15  ;;  %7359 = vmatpush1.bf16.msra.mxu0 %v14309_v16  ;;  %v11859_v13 = vld [vmem:[%s14422_s19 + $0x1f00] sm:$0xff]  ;;  %v11872_v15 = vld [vmem:[%s14422_s19 + $0x1f68] sm:$0xff]  ;;  %v5443_v16 = vpack.c.bf16 %v11174_v11, %v11162_v10  ;;  %v5456_v18 = vpack.c.bf16 %v11187_v14, %v11187_v14  ;;  %v5373_v10 = vpack.c.bf16 %v11032_v3, %v11020_v2  ;;  %v11044_v14 = vld [vmem:[%s14422_s19 + $0x1310] sm:$0xff] }
 0x3ed   : > { %9807 = vmatpush1.bf16.msra.mxu1 %v14312_v17  ;;  %7360 = vmatprep.subr.bf16.mxu0 %v14317_v19  ;;  %v7891_v17 = vpack.c.bf16 %v11859_v13, %v11847_v12  ;;  %v7904_v19 = vpack.c.bf16 %v11872_v15, %v11872_v15  ;;  %v7821_v11 = vpack.c.bf16 %v11717_v5, %v11705_v4  ;;  %v11056_v15 = vld [vmem:[%s14422_s19 + $0x1370] sm:$0xff]  ;;  %v11165_v2 = vld [vmem:[%s14422_s19 + $0x16d8] sm:$0xff] }
 0x3ee   : > { %9808 = vmatprep.subr.bf16.mxu1 %v14320_v20  ;;  %v11186_v20 = vld [vmem:[%s14422_s19 + $0x1780] sm:$0xff]  ;;  %v11177_v3 = vld [vmem:[%s14422_s19 + $0x1738] sm:$0xff] }
 0x3ef   : > { %v5455_v26 = vpack.c.bf16 %v11186_v20, %v11186_v20  ;;  %v11754_v20 = vld [vmem:[%s14422_s19 + $0x1bb8] sm:$0xff] }
 0x3f0   : > { %7361 = vmatpush1.bf16.msra.mxu0 %v14315_v28  ;;  %v5338_v28 = vpack.c.bf16 %v10961_v23, %v10949_v22  ;;  %v5385_v22 = vpack.c.bf16 %v11056_v15, %v11044_v14  ;;  %v11850_v4 = vld [vmem:[%s14422_s19 + $0x1eb8] sm:$0xff] }
 0x3f1   : > { %9809 = vmatpush1.bf16.msra.mxu1 %v14318_v29  ;;  %7362 = vmatprep.subr.bf16.mxu0 %v14323_v30  ;;  %v7786_v29 = vpack.c.bf16 %v11646_v25, %v11634_v24  ;;  %v10948_v30 = vld [vmem:[%s14422_s19 + $0x1010] sm:$0xff]  ;;  %v7846_v25 = vpack.c.bf16 %v11766_v21, %v11754_v20  ;;  %v11862_v5 = vld [vmem:[%s14422_s19 + $0x1f18] sm:$0xff] }
 0x3f2   : > { %9810 = vmatprep.subr.bf16.mxu1 %v14326_v31  ;;  %7290 = vmatmul.mubr.bf16.gmra.mrb[68].mxu0 %v5407_v32  ;;  %v10960_v31 = vld [vmem:[%s14422_s19 + $0x1070] sm:$0xff]  ;;  %v11189_v14 = vld [vmem:[%s14422_s19 + $0x1798] sm:$0xff] }
 0x3f3   : > { %9738 = vmatmul.mubr.bf16.gmra.mrb[68].mxu1 %v7855_v33  ;;  %7299 = vmatprep.mubr.bf16.mxu0 %v5420_v34  ;;  %v11633_v32 = vld [vmem:[%s14422_s19 + $0x17f0] sm:$0xff]  ;;  %v10973_v34 = vld [vmem:[%s14422_s19 + $0x10d8] sm:$0xff]  ;;  %v5337_v38 = vpack.c.bf16 %v10960_v31, %v10948_v30 }
 0x3f4   : > { %9747 = vmatprep.mubr.bf16.mxu1 %v7868_v35  ;;  %7363 = vmatpush1.bf16.msra.mxu0 %v14321_v36  ;;  %v11645_v33 = vld [vmem:[%s14422_s19 + $0x1850] sm:$0xff]  ;;  %v10985_v35 = vld [vmem:[%s14422_s19 + $0x1138] sm:$0xff] }
 0x3f5   : > { %9811 = vmatpush1.bf16.msra.mxu1 %v14324_v37  ;;  %7364 = vmatprep.subr.bf16.mxu0 %v14329_v40  ;;  %v11658_v36 = vld [vmem:[%s14422_s19 + $0x18b8] sm:$0xff]  ;;  %v7785_v39 = vpack.c.bf16 %v11645_v33, %v11633_v32  ;;  %v5350_v40 = vpack.c.bf16 %v10985_v35, %v10973_v34  ;;  %v11188_v20 = vld [vmem:[%s14422_s19 + $0x1790] sm:$0xff] }
 0x3f6   : > { %9812 = vmatprep.subr.bf16.mxu1 %v14332_v41  ;;  %v11670_v37 = vld [vmem:[%s14422_s19 + $0x1918] sm:$0xff]  ;;  %v11873_v21 = vld [vmem:[%s14422_s19 + $0x1f70] sm:$0xff] }
 0x3f7   : > { %v7798_v41 = vpack.c.bf16 %v11670_v37, %v11658_v36  ;;  %v11093_v30 = vld [vmem:[%s14422_s19 + $0x1498] sm:$0xff] }
 0x3f8   : > { %7365 = vmatpush1.bf16.msra.mxu0 %v14327_v50  ;;  %v5349_v50 = vpack.c.bf16 %v10984_v43, %v10972_v42  ;;  %v11105_v31 = vld [vmem:[%s14422_s19 + $0x14f8] sm:$0xff] }
 0x3f9   : > { %9813 = vmatpush1.bf16.msra.mxu1 %v14330_v51  ;;  %11569 = vmatprep.subr.msk.bf16.mxu0 %vm1730_vm0, %v11568_v52  ;;  %v7797_v51 = vpack.c.bf16 %v11669_v45, %v11657_v44  ;;  %v5362_v52 = vpack.c.bf16 %v11009_v47, %v10997_v46  ;;  %v11778_v32 = vld [vmem:[%s14422_s19 + $0x1c78] sm:$0xff]  ;;  %v5410_v36 = vpack.c.bf16 %v11105_v31, %v11093_v30 }
 0x3fa   : > { %12254 = vmatprep.subr.msk.bf16.mxu1 %vm1730_vm0, %v12253_v53  ;;  %7300 = vmatmul.mubr.bf16.gmra.mrb[72].mxu0 %v5419_v56  ;;  %v7810_v53 = vpack.c.bf16 %v11694_v49, %v11682_v48  ;;  %v11681_v56 = vld [vmem:[%s14422_s19 + $0x1970] sm:$0xff]  ;;  %v11790_v33 = vld [vmem:[%s14422_s19 + $0x1cd8] sm:$0xff] }
 0x3fb   : > { %9748 = vmatmul.mubr.bf16.gmra.mrb[72].mxu1 %v7867_v57  ;;  %7309 = vmatprep.mubr.bf16.mxu0 %v5432_v58  ;;  %v11693_v57 = vld [vmem:[%s14422_s19 + $0x19d0] sm:$0xff]  ;;  %v11021_v58 = vld [vmem:[%s14422_s19 + $0x1258] sm:$0xff]  ;;  %v7858_v37 = vpack.c.bf16 %v11790_v33, %v11778_v32 }
 0x3fc   : > { %9757 = vmatprep.mubr.bf16.mxu1 %v7880_v59  ;;  %7367 = vmatpush1.bf16.msra.mxu0 %v6628_v60  ;;  %v11033_v59 = vld [vmem:[%s14422_s19 + $0x12b8] sm:$0xff]  ;;  %v7809_v63 = vpack.c.bf16 %v11693_v57, %v11681_v56 }
 0x3fd   : > { %9815 = vmatpush1.bf16.msra.mxu1 %v9076_v61  ;;  %v11706_v60 = vld [vmem:[%s14422_s19 + $0x1a38] sm:$0xff]  ;;  %v5374_v0 = vpack.c.bf16 %v11033_v59, %v11021_v58 }
 0x3fe   : > { %v11718_v61 = vld [vmem:[%s14422_s19 + $0x1a98] sm:$0xff] }
 0x3ff   : > { %v7822_v1 = vpack.c.bf16 %v11718_v61, %v11706_v60  ;;  %v11117_v42 = vld [vmem:[%s14422_s19 + $0x1558] sm:$0xff]  ;;  %v5434_v60 = vpack.c.bf16 %v11153_v55, %v11141_v54 }
 0x400   : > { %v11129_v43 = vld [vmem:[%s14422_s19 + $0x15b8] sm:$0xff] }
 0x401   : > { %v11802_v44 = vld [vmem:[%s14422_s19 + $0x1d38] sm:$0xff]  ;;  %v5422_v48 = vpack.c.bf16 %v11129_v43, %v11117_v42 }
 0x402   : > { %7310 = vmatmul.mubr.bf16.gmra.mrb[76].mxu0 %v5431_v6  ;;  %v11045_v6 = vld [vmem:[%s14422_s19 + $0x1318] sm:$0xff] }
 0x403   : > { %9758 = vmatmul.mubr.bf16.gmra.mrb[76].mxu1 %v7879_v7  ;;  %7319 = vmatprep.mubr.bf16.mxu0 %v5444_v8  ;;  %v11057_v7 = vld [vmem:[%s14422_s19 + $0x1378] sm:$0xff] }
 0x404   : > { %9767 = vmatprep.mubr.bf16.mxu1 %v7892_v9  ;;  %v11730_v8 = vld [vmem:[%s14422_s19 + $0x1af8] sm:$0xff]  ;;  %v5386_v12 = vpack.c.bf16 %v11057_v7, %v11045_v6 }
 0x405   : > { %v11742_v9 = vld [vmem:[%s14422_s19 + $0x1b58] sm:$0xff] }
 0x406   : > { %v7834_v13 = vpack.c.bf16 %v11742_v9, %v11730_v8  ;;  %v11814_v45 = vld [vmem:[%s14422_s19 + $0x1d98] sm:$0xff]  ;;  %v5446_v8 = vpack.c.bf16 %v11177_v3, %v11165_v2  ;;  %v7894_v9 = vpack.c.bf16 %v11862_v5, %v11850_v4 }
 0x407   : > { %v7870_v49 = vpack.c.bf16 %v11814_v45, %v11802_v44  ;;  %v11826_v56 = vld [vmem:[%s14422_s19 + $0x1df8] sm:$0xff] }
 0x408   : > { %v11838_v57 = vld [vmem:[%s14422_s19 + $0x1e58] sm:$0xff] }
 0x409   : > { %v7882_v61 = vpack.c.bf16 %v11838_v57, %v11826_v56  ;;  %v11874_v15 = vld [vmem:[%s14422_s19 + $0x1f78] sm:$0xff] }
 0x40a   : > { %7320 = vmatmul.mubr.bf16.gmra.mrb[80].mxu0 %v5443_v16  ;;  %v11729_v16 = vld [vmem:[%s14422_s19 + $0x1af0] sm:$0xff] }
 0x40b   : > { %9768 = vmatmul.mubr.bf16.gmra.mrb[80].mxu1 %v7891_v17  ;;  %7329 = vmatprep.mubr.bf16.mxu0 %v5456_v18  ;;  %v11741_v17 = vld [vmem:[%s14422_s19 + $0x1b50] sm:$0xff]  ;;  %v11069_v18 = vld [vmem:[%s14422_s19 + $0x13d8] sm:$0xff] }
 0x40c   : > { %9777 = vmatprep.mubr.bf16.mxu1 %v7904_v19  ;;  %v11081_v19 = vld [vmem:[%s14422_s19 + $0x1438] sm:$0xff]  ;;  %v7833_v23 = vpack.c.bf16 %v11741_v17, %v11729_v16 }
 0x40d   : > { %v5398_v24 = vpack.c.bf16 %v11081_v19, %v11069_v18  ;;  %v5458_v18 = vpack.c.bf16 %v11189_v14, %v11189_v14  ;;  %v7906_v19 = vpack.c.bf16 %v11874_v15, %v11874_v15 }
 0x412   : > { %7330 = vmatmul.mubr.bf16.gmra.mrb[84].mxu0 %v5455_v26  ;;  %v11068_v26 = vld [vmem:[%s14422_s19 + $0x13d0] sm:$0xff] }
 0x413   : > { %9778 = vmatmul.mubr.bf16.gmra.mrb[84].mxu1 %v7903_v27  ;;  %11570 = vmatprep.mubr.msk.bf16.mxu0 %vm1696_vm1, %v5338_v28  ;;  %v11080_v27 = vld [vmem:[%s14422_s19 + $0x1430] sm:$0xff] }
 0x414   : > { %12255 = vmatprep.mubr.msk.bf16.mxu1 %vm1696_vm1, %v7786_v29  ;;  %v11753_v28 = vld [vmem:[%s14422_s19 + $0x1bb0] sm:$0xff]  ;;  %v5397_v34 = vpack.c.bf16 %v11080_v27, %v11068_v26 }
 0x415   : > { %v11765_v29 = vld [vmem:[%s14422_s19 + $0x1c10] sm:$0xff] }
 0x416   : > { %v7845_v35 = vpack.c.bf16 %v11765_v29, %v11753_v28 }
 0x41a   : > { %7371 = vmatmul.mubr.bf16.vlgmr.msra.gmra.mrb[44].mxu0 %v5337_v38  ;;  %v11092_v38 = vld [vmem:[%s14422_s19 + $0x1490] sm:$0xff] }
 0x41b   : > { %9819 = vmatmul.mubr.bf16.vlgmr.msra.gmra.mrb[44].mxu1 %v7785_v39  ;;  %11571 = vmatprep.mubr.msk.bf16.mxu0 %vm1696_vm1, %v5350_v40  ;;  %v11104_v39 = vld [vmem:[%s14422_s19 + $0x14f0] sm:$0xff] }
 0x41c   : > { %12256 = vmatprep.mubr.msk.bf16.mxu1 %vm1696_vm1, %v7798_v41  ;;  %v11777_v40 = vld [vmem:[%s14422_s19 + $0x1c70] sm:$0xff]  ;;  %v5409_v46 = vpack.c.bf16 %v11104_v39, %v11092_v38 }
 0x41d   : > { %v11789_v41 = vld [vmem:[%s14422_s19 + $0x1cd0] sm:$0xff] }
 0x41e   : > { %v7857_v47 = vpack.c.bf16 %v11789_v41, %v11777_v40 }
 0x422   : > { %7381 = vmatmul.mubr.bf16.gmra.mrb[48].mxu0 %v5349_v50  ;;  %v11116_v50 = vld [vmem:[%s14422_s19 + $0x1550] sm:$0xff] }
 0x423   : > { %9829 = vmatmul.mubr.bf16.gmra.mrb[48].mxu1 %v7797_v51  ;;  %11572 = vmatprep.mubr.msk.bf16.mxu0 %vm1696_vm1, %v5362_v52  ;;  %v11128_v51 = vld [vmem:[%s14422_s19 + $0x15b0] sm:$0xff] }
 0x424   : > { %12257 = vmatprep.mubr.msk.bf16.mxu1 %vm1696_vm1, %v7810_v53  ;;  %v11801_v52 = vld [vmem:[%s14422_s19 + $0x1d30] sm:$0xff]  ;;  %v5421_v58 = vpack.c.bf16 %v11128_v51, %v11116_v50 }
 0x425   : > { %v11813_v53 = vld [vmem:[%s14422_s19 + $0x1d90] sm:$0xff] }
 0x426   : > { %v7869_v59 = vpack.c.bf16 %v11813_v53, %v11801_v52 }
 0x42a   : > { %7391 = vmatmul.mubr.bf16.gmra.mrb[52].mxu0 %v5361_v62  ;;  %v11140_v62 = vld [vmem:[%s14422_s19 + $0x1610] sm:$0xff] }
 0x42b   : > { %9839 = vmatmul.mubr.bf16.gmra.mrb[52].mxu1 %v7809_v63  ;;  %11573 = vmatprep.mubr.msk.bf16.mxu0 %vm1696_vm1, %v5374_v0  ;;  %v11152_v63 = vld [vmem:[%s14422_s19 + $0x1670] sm:$0xff] }
 0x42c   : > { %12258 = vmatprep.mubr.msk.bf16.mxu1 %vm1696_vm1, %v7822_v1  ;;  %v11825_v0 = vld [vmem:[%s14422_s19 + $0x1df0] sm:$0xff]  ;;  %v5433_v6 = vpack.c.bf16 %v11152_v63, %v11140_v62 }
 0x42d   : > { %v11837_v1 = vld [vmem:[%s14422_s19 + $0x1e50] sm:$0xff] }
 0x42e   : > { %v7881_v7 = vpack.c.bf16 %v11837_v1, %v11825_v0 }
 0x432   : > { %7401 = vmatmul.mubr.bf16.gmra.mrb[56].mxu0 %v5373_v10  ;;  %v11164_v10 = vld [vmem:[%s14422_s19 + $0x16d0] sm:$0xff] }
 0x433   : > { %9849 = vmatmul.mubr.bf16.gmra.mrb[56].mxu1 %v7821_v11  ;;  %11574 = vmatprep.mubr.msk.bf16.mxu0 %vm1696_vm1, %v5386_v12  ;;  %v11176_v11 = vld [vmem:[%s14422_s19 + $0x1730] sm:$0xff] }
 0x434   : > { %12259 = vmatprep.mubr.msk.bf16.mxu1 %vm1696_vm1, %v7834_v13  ;;  %v11849_v12 = vld [vmem:[%s14422_s19 + $0x1eb0] sm:$0xff]  ;;  %v5445_v16 = vpack.c.bf16 %v11176_v11, %v11164_v10 }
 0x435   : > { %v11861_v13 = vld [vmem:[%s14422_s19 + $0x1f10] sm:$0xff] }
 0x436   : > { %v7893_v17 = vpack.c.bf16 %v11861_v13, %v11849_v12 }
 0x43a   : > { %7411 = vmatmul.mubr.bf16.gmra.mrb[60].mxu0 %v5385_v22  ;;  %v5457_v22 = vpack.c.bf16 %v11188_v20, %v11188_v20 }
 0x43b   : > { %9859 = vmatmul.mubr.bf16.gmra.mrb[60].mxu1 %v7833_v23  ;;  %11575 = vmatprep.mubr.msk.bf16.mxu0 %vm1696_vm1, %v5398_v24  ;;  %v7905_v23 = vpack.c.bf16 %v11873_v21, %v11873_v21 }
 0x43c   : > { %12260 = vmatprep.mubr.msk.bf16.mxu1 %vm1696_vm1, %v7846_v25 }
 0x442   : > { %7421 = vmatmul.mubr.bf16.gmra.mrb[64].mxu0 %v5397_v34 }
 0x443   : > { %9869 = vmatmul.mubr.bf16.gmra.mrb[64].mxu1 %v7845_v35  ;;  %11576 = vmatprep.mubr.msk.bf16.mxu0 %vm1696_vm1, %v5410_v36 }
 0x444   : > { %12261 = vmatprep.mubr.msk.bf16.mxu1 %vm1696_vm1, %v7858_v37 }
 0x44a   : > { %7431 = vmatmul.mubr.bf16.gmra.mrb[68].mxu0 %v5409_v46 }
 0x44b   : > { %9879 = vmatmul.mubr.bf16.gmra.mrb[68].mxu1 %v7857_v47  ;;  %11577 = vmatprep.mubr.msk.bf16.mxu0 %vm1696_vm1, %v5422_v48 }
 0x44c   : > { %12262 = vmatprep.mubr.msk.bf16.mxu1 %vm1696_vm1, %v7870_v49 }
 0x452   : > { %7441 = vmatmul.mubr.bf16.gmra.mrb[72].mxu0 %v5421_v58 }
 0x453   : > { %9889 = vmatmul.mubr.bf16.gmra.mrb[72].mxu1 %v7869_v59  ;;  %11578 = vmatprep.mubr.msk.bf16.mxu0 %vm1696_vm1, %v5434_v60 }
 0x454   : > { %12263 = vmatprep.mubr.msk.bf16.mxu1 %vm1696_vm1, %v7882_v61 }
 0x45a   : > { %7451 = vmatmul.mubr.bf16.gmra.mrb[76].mxu0 %v5433_v6 }
 0x45b   : > { %9899 = vmatmul.mubr.bf16.gmra.mrb[76].mxu1 %v7881_v7  ;;  %11579 = vmatprep.mubr.msk.bf16.mxu0 %vm1696_vm1, %v5446_v8 }
 0x45c   : > { %12264 = vmatprep.mubr.msk.bf16.mxu1 %vm1696_vm1, %v7894_v9 }
 0x462   : > { %7461 = vmatmul.mubr.bf16.gmra.mrb[80].mxu0 %v5445_v16 }
 0x463   : > { %9909 = vmatmul.mubr.bf16.gmra.mrb[80].mxu1 %v7893_v17  ;;  %11580 = vmatprep.mubr.msk.bf16.mxu0 %vm1696_vm1, %v5458_v18 }
 0x464   : > { %12265 = vmatprep.mubr.msk.bf16.mxu1 %vm1696_vm1, %v7906_v19 }
 0x46a   : > { %7471 = vmatmul.mubr.bf16.gmra.mrb[84].mxu0 %v5457_v22 }
 0x46b   : > { %9919 = vmatmul.mubr.bf16.gmra.mrb[84].mxu1 %v7905_v23 }
 0x4ed   : > { %v7372_v24 = vpop.f32.mrb[44].mxu0 }
 0x4ee   : > { %v9820_v25 = vpop.f32.mrb[44].mxu1  ;;  %11581 = vst [vmem:[%s15592_s23 + $0x2a0] sm:$0xff] %v7372_v24  ;;  %v7374_v26 = vpop.f32.mrb[45].mxu0 }
 0x4ef   : > { %v9822_v27 = vpop.f32.mrb[45].mxu1  ;;  %12266 = vst [vmem:[%s15592_s23 + $0x3f0] sm:$0xff] %v9820_v25  ;;  %11582 = vst.msk [vmem:[%s15592_s23 + $0x2a8] sm:$0xff] %vm2584_vm2, %v7374_v26  ;;  %v7376_v28 = vpop.f32.mrb[46].mxu0 }
 0x4f0   : > { %v9824_v29 = vpop.f32.mrb[46].mxu1  ;;  %12267 = vst.msk [vmem:[%s15592_s23 + $0x3f8] sm:$0xff] %vm2584_vm2, %v9822_v27  ;;  %11583 = vst [vmem:[%s15592_s23 + $0x2b0] sm:$0xff] %v7376_v28  ;;  %v7378_v30 = vpop.f32.mrb[47].mxu0 }
 0x4f1   : > { %v9826_v31 = vpop.f32.mrb[47].mxu1  ;;  %12268 = vst [vmem:[%s15592_s23 + $0x400] sm:$0xff] %v9824_v29  ;;  %11584 = vst.msk [vmem:[%s15592_s23 + $0x2b8] sm:$0xff] %vm2584_vm2, %v7378_v30 }
 0x4f2   : > { %12269 = vst.msk [vmem:[%s15592_s23 + $0x408] sm:$0xff] %vm2584_vm2, %v9826_v31 }
 0x4f5   : > { %v7382_v32 = vpop.f32.mrb[48].mxu0 }
 0x4f6   : > { %v9830_v33 = vpop.f32.mrb[48].mxu1  ;;  %11585 = vst [vmem:[%s15592_s23 + $0x2c0] sm:$0xff] %v7382_v32  ;;  %v7384_v34 = vpop.f32.mrb[49].mxu0 }
 0x4f7   : > { %v9832_v35 = vpop.f32.mrb[49].mxu1  ;;  %12270 = vst [vmem:[%s15592_s23 + $0x410] sm:$0xff] %v9830_v33  ;;  %11586 = vst.msk [vmem:[%s15592_s23 + $0x2c8] sm:$0xff] %vm2584_vm2, %v7384_v34  ;;  %v7386_v36 = vpop.f32.mrb[50].mxu0 }
 0x4f8   : > { %v9834_v37 = vpop.f32.mrb[50].mxu1  ;;  %12271 = vst.msk [vmem:[%s15592_s23 + $0x418] sm:$0xff] %vm2584_vm2, %v9832_v35  ;;  %11587 = vst [vmem:[%s15592_s23 + $0x2d0] sm:$0xff] %v7386_v36  ;;  %v7388_v38 = vpop.f32.mrb[51].mxu0 }
 0x4f9   : > { %v9836_v39 = vpop.f32.mrb[51].mxu1  ;;  %12272 = vst [vmem:[%s15592_s23 + $0x420] sm:$0xff] %v9834_v37  ;;  %11588 = vst.msk [vmem:[%s15592_s23 + $0x2d8] sm:$0xff] %vm2584_vm2, %v7388_v38 }
 0x4fa   : > { %12273 = vst.msk [vmem:[%s15592_s23 + $0x428] sm:$0xff] %vm2584_vm2, %v9836_v39 }
 0x4fd   : > { %v7392_v40 = vpop.f32.mrb[52].mxu0 }
 0x4fe   : > { %v9840_v41 = vpop.f32.mrb[52].mxu1  ;;  %11589 = vst [vmem:[%s15592_s23 + $0x2e0] sm:$0xff] %v7392_v40  ;;  %v7394_v42 = vpop.f32.mrb[53].mxu0 }
 0x4ff   : > { %v9842_v43 = vpop.f32.mrb[53].mxu1  ;;  %12274 = vst [vmem:[%s15592_s23 + $0x430] sm:$0xff] %v9840_v41  ;;  %11590 = vst.msk [vmem:[%s15592_s23 + $0x2e8] sm:$0xff] %vm2584_vm2, %v7394_v42  ;;  %v7396_v44 = vpop.f32.mrb[54].mxu0 }
 0x500   : > { %v9844_v45 = vpop.f32.mrb[54].mxu1  ;;  %12275 = vst.msk [vmem:[%s15592_s23 + $0x438] sm:$0xff] %vm2584_vm2, %v9842_v43  ;;  %11591 = vst [vmem:[%s15592_s23 + $0x2f0] sm:$0xff] %v7396_v44  ;;  %v7398_v46 = vpop.f32.mrb[55].mxu0 }
 0x501   : > { %v9846_v47 = vpop.f32.mrb[55].mxu1  ;;  %12276 = vst [vmem:[%s15592_s23 + $0x440] sm:$0xff] %v9844_v45  ;;  %11592 = vst.msk [vmem:[%s15592_s23 + $0x2f8] sm:$0xff] %vm2584_vm2, %v7398_v46 }
 0x502   : > { %12277 = vst.msk [vmem:[%s15592_s23 + $0x448] sm:$0xff] %vm2584_vm2, %v9846_v47 }
 0x505   : > { %v7402_v48 = vpop.f32.mrb[56].mxu0 }
 0x506   : > { %v9850_v49 = vpop.f32.mrb[56].mxu1  ;;  %11593 = vst [vmem:[%s15592_s23 + $0x300] sm:$0xff] %v7402_v48  ;;  %v7404_v50 = vpop.f32.mrb[57].mxu0 }
 0x507   : > { %v9852_v51 = vpop.f32.mrb[57].mxu1  ;;  %12278 = vst [vmem:[%s15592_s23 + $0x450] sm:$0xff] %v9850_v49  ;;  %11594 = vst.msk [vmem:[%s15592_s23 + $0x308] sm:$0xff] %vm2584_vm2, %v7404_v50  ;;  %v7406_v52 = vpop.f32.mrb[58].mxu0 }
 0x508   : > { %v9854_v53 = vpop.f32.mrb[58].mxu1  ;;  %12279 = vst.msk [vmem:[%s15592_s23 + $0x458] sm:$0xff] %vm2584_vm2, %v9852_v51  ;;  %11595 = vst [vmem:[%s15592_s23 + $0x310] sm:$0xff] %v7406_v52  ;;  %v7408_v54 = vpop.f32.mrb[59].mxu0 }
 0x509   : > { %v9856_v55 = vpop.f32.mrb[59].mxu1  ;;  %12280 = vst [vmem:[%s15592_s23 + $0x460] sm:$0xff] %v9854_v53  ;;  %11596 = vst.msk [vmem:[%s15592_s23 + $0x318] sm:$0xff] %vm2584_vm2, %v7408_v54 }
 0x50a   : > { %12281 = vst.msk [vmem:[%s15592_s23 + $0x468] sm:$0xff] %vm2584_vm2, %v9856_v55 }
 0x50d   : > { %v7412_v56 = vpop.f32.mrb[60].mxu0 }
 0x50e   : > { %v9860_v57 = vpop.f32.mrb[60].mxu1  ;;  %11597 = vst [vmem:[%s15592_s23 + $0x320] sm:$0xff] %v7412_v56  ;;  %v7414_v58 = vpop.f32.mrb[61].mxu0 }
 0x50f   : > { %v9862_v59 = vpop.f32.mrb[61].mxu1  ;;  %12282 = vst [vmem:[%s15592_s23 + $0x470] sm:$0xff] %v9860_v57  ;;  %11598 = vst.msk [vmem:[%s15592_s23 + $0x328] sm:$0xff] %vm2584_vm2, %v7414_v58  ;;  %v7416_v60 = vpop.f32.mrb[62].mxu0 }
 0x510   : > { %v9864_v61 = vpop.f32.mrb[62].mxu1  ;;  %12283 = vst.msk [vmem:[%s15592_s23 + $0x478] sm:$0xff] %vm2584_vm2, %v9862_v59  ;;  %11599 = vst [vmem:[%s15592_s23 + $0x330] sm:$0xff] %v7416_v60  ;;  %v7418_v62 = vpop.f32.mrb[63].mxu0 }
 0x511   : > { %v9866_v63 = vpop.f32.mrb[63].mxu1  ;;  %12284 = vst [vmem:[%s15592_s23 + $0x480] sm:$0xff] %v9864_v61  ;;  %11600 = vst.msk [vmem:[%s15592_s23 + $0x338] sm:$0xff] %vm2584_vm2, %v7418_v62 }
 0x512   : > { %12285 = vst.msk [vmem:[%s15592_s23 + $0x488] sm:$0xff] %vm2584_vm2, %v9866_v63 }
 0x515   : > { %v7422_v0 = vpop.f32.mrb[64].mxu0 }
 0x516   : > { %v9870_v1 = vpop.f32.mrb[64].mxu1  ;;  %11601 = vst [vmem:[%s15592_s23 + $0x340] sm:$0xff] %v7422_v0  ;;  %v7424_v2 = vpop.f32.mrb[65].mxu0 }
 0x517   : > { %v9872_v3 = vpop.f32.mrb[65].mxu1  ;;  %12286 = vst [vmem:[%s15592_s23 + $0x490] sm:$0xff] %v9870_v1  ;;  %11602 = vst.msk [vmem:[%s15592_s23 + $0x348] sm:$0xff] %vm2584_vm2, %v7424_v2  ;;  %v7426_v4 = vpop.f32.mrb[66].mxu0 }
 0x518   : > { %v9874_v5 = vpop.f32.mrb[66].mxu1  ;;  %12287 = vst.msk [vmem:[%s15592_s23 + $0x498] sm:$0xff] %vm2584_vm2, %v9872_v3  ;;  %11603 = vst [vmem:[%s15592_s23 + $0x350] sm:$0xff] %v7426_v4  ;;  %v7428_v6 = vpop.f32.mrb[67].mxu0 }
 0x519   : > { %v9876_v7 = vpop.f32.mrb[67].mxu1  ;;  %12288 = vst [vmem:[%s15592_s23 + $0x4a0] sm:$0xff] %v9874_v5  ;;  %11604 = vst.msk [vmem:[%s15592_s23 + $0x358] sm:$0xff] %vm2584_vm2, %v7428_v6 }
 0x51a   : > { %12289 = vst.msk [vmem:[%s15592_s23 + $0x4a8] sm:$0xff] %vm2584_vm2, %v9876_v7 }
 0x51d   : > { %v7432_v8 = vpop.f32.mrb[68].mxu0 }
 0x51e   : > { %v9880_v9 = vpop.f32.mrb[68].mxu1  ;;  %11605 = vst [vmem:[%s15592_s23 + $0x360] sm:$0xff] %v7432_v8  ;;  %v7434_v10 = vpop.f32.mrb[69].mxu0 }
 0x51f   : > { %v9882_v11 = vpop.f32.mrb[69].mxu1  ;;  %12290 = vst [vmem:[%s15592_s23 + $0x4b0] sm:$0xff] %v9880_v9  ;;  %11606 = vst.msk [vmem:[%s15592_s23 + $0x368] sm:$0xff] %vm2584_vm2, %v7434_v10  ;;  %v7436_v12 = vpop.f32.mrb[70].mxu0 }
 0x520   : > { %v9884_v13 = vpop.f32.mrb[70].mxu1  ;;  %12291 = vst.msk [vmem:[%s15592_s23 + $0x4b8] sm:$0xff] %vm2584_vm2, %v9882_v11  ;;  %11607 = vst [vmem:[%s15592_s23 + $0x370] sm:$0xff] %v7436_v12  ;;  %v7438_v14 = vpop.f32.mrb[71].mxu0 }
 0x521   : > { %v9886_v15 = vpop.f32.mrb[71].mxu1  ;;  %12292 = vst [vmem:[%s15592_s23 + $0x4c0] sm:$0xff] %v9884_v13  ;;  %11608 = vst.msk [vmem:[%s15592_s23 + $0x378] sm:$0xff] %vm2584_vm2, %v7438_v14 }
 0x522   : > { %12293 = vst.msk [vmem:[%s15592_s23 + $0x4c8] sm:$0xff] %vm2584_vm2, %v9886_v15 }
 0x525   : > { %v7442_v16 = vpop.f32.mrb[72].mxu0 }
 0x526   : > { %v9890_v17 = vpop.f32.mrb[72].mxu1  ;;  %11609 = vst [vmem:[%s15592_s23 + $0x380] sm:$0xff] %v7442_v16  ;;  %v7444_v18 = vpop.f32.mrb[73].mxu0 }
 0x527   : > { %v9892_v19 = vpop.f32.mrb[73].mxu1  ;;  %12294 = vst [vmem:[%s15592_s23 + $0x4d0] sm:$0xff] %v9890_v17  ;;  %11610 = vst.msk [vmem:[%s15592_s23 + $0x388] sm:$0xff] %vm2584_vm2, %v7444_v18  ;;  %v7446_v20 = vpop.f32.mrb[74].mxu0 }
 0x528   : > { %v9894_v21 = vpop.f32.mrb[74].mxu1  ;;  %12295 = vst.msk [vmem:[%s15592_s23 + $0x4d8] sm:$0xff] %vm2584_vm2, %v9892_v19  ;;  %11611 = vst [vmem:[%s15592_s23 + $0x390] sm:$0xff] %v7446_v20  ;;  %v7448_v22 = vpop.f32.mrb[75].mxu0 }
 0x529   : > { %v9896_v23 = vpop.f32.mrb[75].mxu1  ;;  %12296 = vst [vmem:[%s15592_s23 + $0x4e0] sm:$0xff] %v9894_v21  ;;  %11612 = vst.msk [vmem:[%s15592_s23 + $0x398] sm:$0xff] %vm2584_vm2, %v7448_v22 }
 0x52a   : > { %12297 = vst.msk [vmem:[%s15592_s23 + $0x4e8] sm:$0xff] %vm2584_vm2, %v9896_v23 }
 0x52d   : > { %v7452_v24 = vpop.f32.mrb[76].mxu0 }
 0x52e   : > { %v9900_v25 = vpop.f32.mrb[76].mxu1  ;;  %11613 = vst [vmem:[%s15592_s23 + $0x3a0] sm:$0xff] %v7452_v24  ;;  %v7454_v26 = vpop.f32.mrb[77].mxu0 }
 0x52f   : > { %v9902_v27 = vpop.f32.mrb[77].mxu1  ;;  %12298 = vst [vmem:[%s15592_s23 + $0x4f0] sm:$0xff] %v9900_v25  ;;  %11614 = vst.msk [vmem:[%s15592_s23 + $0x3a8] sm:$0xff] %vm2584_vm2, %v7454_v26  ;;  %v7456_v28 = vpop.f32.mrb[78].mxu0 }
 0x530   : > { %v9904_v29 = vpop.f32.mrb[78].mxu1  ;;  %12299 = vst.msk [vmem:[%s15592_s23 + $0x4f8] sm:$0xff] %vm2584_vm2, %v9902_v27  ;;  %11615 = vst [vmem:[%s15592_s23 + $0x3b0] sm:$0xff] %v7456_v28  ;;  %v7458_v30 = vpop.f32.mrb[79].mxu0 }
 0x531   : > { %v9906_v31 = vpop.f32.mrb[79].mxu1  ;;  %12300 = vst [vmem:[%s15592_s23 + $0x500] sm:$0xff] %v9904_v29  ;;  %11616 = vst.msk [vmem:[%s15592_s23 + $0x3b8] sm:$0xff] %vm2584_vm2, %v7458_v30 }
 0x532   : > { %12301 = vst.msk [vmem:[%s15592_s23 + $0x508] sm:$0xff] %vm2584_vm2, %v9906_v31 }
 0x535   : > { %v7462_v32 = vpop.f32.mrb[80].mxu0 }
 0x536   : > { %v9910_v33 = vpop.f32.mrb[80].mxu1  ;;  %11617 = vst [vmem:[%s15592_s23 + $0x3c0] sm:$0xff] %v7462_v32  ;;  %v7464_v34 = vpop.f32.mrb[81].mxu0 }
 0x537   : > { %v9912_v35 = vpop.f32.mrb[81].mxu1  ;;  %12302 = vst [vmem:[%s15592_s23 + $0x510] sm:$0xff] %v9910_v33  ;;  %11618 = vst.msk [vmem:[%s15592_s23 + $0x3c8] sm:$0xff] %vm2584_vm2, %v7464_v34  ;;  %v7466_v36 = vpop.f32.mrb[82].mxu0 }
 0x538   : > { %v9914_v37 = vpop.f32.mrb[82].mxu1  ;;  %12303 = vst.msk [vmem:[%s15592_s23 + $0x518] sm:$0xff] %vm2584_vm2, %v9912_v35  ;;  %11619 = vst [vmem:[%s15592_s23 + $0x3d0] sm:$0xff] %v7466_v36  ;;  %v7468_v38 = vpop.f32.mrb[83].mxu0 }
 0x539   : > { %v9916_v39 = vpop.f32.mrb[83].mxu1  ;;  %12304 = vst [vmem:[%s15592_s23 + $0x520] sm:$0xff] %v9914_v37  ;;  %11620 = vst.msk [vmem:[%s15592_s23 + $0x3d8] sm:$0xff] %vm2584_vm2, %v7468_v38 }
 0x53a   : > { %12305 = vst.msk [vmem:[%s15592_s23 + $0x528] sm:$0xff] %vm2584_vm2, %v9916_v39 }
 0x53d   : > { %v7472_v40 = vpop.f32.mrb[84].mxu0 }
 0x53e   : > { %v9920_v41 = vpop.f32.mrb[84].mxu1  ;;  %11621 = vst [vmem:[%s15592_s23 + $0x3e0] sm:$0xff] %v7472_v40  ;;  %v7474_v42 = vpop.f32.mrb[85].mxu0 }
 0x53f   : > { %v9922_v43 = vpop.f32.mrb[85].mxu1  ;;  %12306 = vst [vmem:[%s15592_s23 + $0x530] sm:$0xff] %v9920_v41  ;;  %11622 = vst.msk [vmem:[%s15592_s23 + $0x3e8] sm:$0xff] %vm2584_vm2, %v7474_v42  ;;  %v7476_v44 = vpop.f32.mrb[86].mxu0 }
 0x540   : > { %v9924_v45 = vpop.f32.mrb[86].mxu1  ;;  %12307 = vst.msk [vmem:[%s15592_s23 + $0x538] sm:$0xff] %vm2584_vm2, %v9922_v43  ;;  %v7477_v46 = vpop.f32.mrb[87].mxu0 }
 0x541   : > { %v9925_v47 = vpop.f32.mrb[87].mxu1 }
 0x542 PF: > { %s12_s9 = sadd.s32 1, %s14343_s9  }
 0x543   : > { %p9_p4 = scmp.ge.s32.totalorder %s12_s9, 4  }
 0x545   :  { %11 = sbr.rel (!%p9_p4) target bundleno = 1 (0x1), region = 70 }

</bundles_post_ra>
